<compile_context>
chip_gen: v6e
topology: v6e:2x2x1
jax: 0.10.0
libtpu: 0.0.40
codegen_flags: <defaults>
</compile_context>

<pallas_src>
import functools

import numpy as np
import jax
import jax.numpy as jnp
from jax import lax
from jax.experimental import pallas as pl
from jax.experimental.pallas import tpu as pltpu


# ----------------------------------------------------------------------------
# Constant 0/1 selector matrices (host-built once per (H, W)).
#   scatter_sel(Hc, Wc)[t=2a+b, coarse(h,w), fine(2h+a,2w+b)] = 1
# Used transposed for max-pool (fine -> coarse) and directly for the stride-2
# ConvTranspose spatial interleave (coarse -> fine).
# ----------------------------------------------------------------------------
@functools.lru_cache(maxsize=None)
def _selectors(H, W):
    def scatter_sel(Hc, Wc):
        Wf = 2 * Wc
        P = np.zeros((4, Hc * Wc, 4 * Hc * Wc), np.float32)
        for a in range(2):
            for b in range(2):
                t = 2 * a + b
                for h in range(Hc):
                    for w in range(Wc):
                        P[t, h * Wc + w, (2 * h + a) * Wf + (2 * w + b)] = 1.0
        return P

    S1 = scatter_sel(H // 2, W // 2)     # (4, HW/4, HW)    H/2-grid -> H-grid
    S2 = scatter_sel(H // 4, W // 4)     # (4, HW/16, HW/4) H/4-grid -> H/2-grid
    P1 = np.ascontiguousarray(np.transpose(S1, (0, 2, 1)))   # pool HxW -> H/2
    P2 = np.ascontiguousarray(np.transpose(S2, (0, 2, 1)))   # pool H/2 -> H/4
    return P1, P2, S2, S1                # pool1T, pool2T, scat_u1, scat_u2


# ----------------------------------------------------------------------------
# The fused kernel (one grid step = full forward for one image)
# ----------------------------------------------------------------------------
def _fused_forward_kernel(
    x_ref,
    we1, we2, we3, we4, wu1, wu2, wd3, wd4,
    be1, be2, be3, be4, bu1, bu2, bd3, bd4,
    pool1, pool2, scat1, scat2,
    o_ref,
    *, H, W,
):
    f32, bf16 = jnp.float32, jnp.bfloat16
    W2 = W // 2

    def conv3x3(act, w_ref, b_ref, wt, epilogue):
        # act: (Cin, S) bf16, spatial flattened row-major on lanes (width wt).
        c, s = act.shape
        zpad = jnp.zeros((c, wt + 1), bf16)
        row = jnp.concatenate([zpad, act, zpad], axis=1)      # (Cin, S + 2*wt + 2)
        col = lax.broadcasted_iota(jnp.int32, (c, s), 1) & (wt - 1)
        not_left = col != 0
        not_right = col != wt - 1
        taps = []
        for dh in (-1, 0, 1):
            for dw in (-1, 0, 1):
                start = (wt + 1) + dh * wt + dw
                t = row[:, start:start + s]                   # static lane shift
                if dw == -1:
                    t = jnp.where(not_left, t, jnp.zeros_like(t))
                elif dw == 1:
                    t = jnp.where(not_right, t, jnp.zeros_like(t))
                taps.append(t)
        cols = jnp.concatenate(taps, axis=0)                  # (9*Cin, S) bf16
        y = jnp.dot(w_ref[...], cols, preferred_element_type=f32) + b_ref[...]
        if epilogue == "relu":
            return jnp.maximum(y, 0.0).astype(bf16)
        return 1.0 / (1.0 + jnp.exp(-y))                      # exact sigmoid, f32

    def maxpool2x2(act, selT_ref):
        # act: (C, S_fine) bf16; selT_ref: (4, S_fine, S_coarse) 0/1 bf16.
        out = None
        for t in range(4):
            v = jnp.dot(act, selT_ref[t], preferred_element_type=f32)
            out = v if out is None else jnp.maximum(out, v)
        return out.astype(bf16)

    def upsample2x2(act, w_ref, b_ref, scat_ref):
        # ConvTranspose2d(k=2, s=2): per-pixel matmul (4*Cout rows), bias+ReLU,
        # then 0/1 scatter matmuls interleave the 2x2 blocks along lanes.
        y = jnp.dot(w_ref[...], act, preferred_element_type=f32) + b_ref[...]
        y = jnp.maximum(y, 0.0).astype(bf16)                  # (4*Cout, S_coarse)
        cout = y.shape[0] // 4
        out = None
        for t in range(4):
            part = jnp.dot(y[t * cout:(t + 1) * cout, :], scat_ref[t],
                           preferred_element_type=f32)
            out = part if out is None else out + part
        return out.astype(bf16)                               # (Cout, S_fine)

    x0 = x_ref[0].astype(bf16)                                # (3, H*W)
    # ------------------------------ encoder ------------------------------
    y = conv3x3(x0, we1, be1, W, "relu")                      # (32, H*W)
    y = conv3x3(y, we2, be2, W, "relu")                       # (64, H*W)
    y = maxpool2x2(y, pool1)                                  # (64, H*W/4)
    y = conv3x3(y, we3, be3, W2, "relu")                      # (128, H*W/4)
    y = conv3x3(y, we4, be4, W2, "relu")                      # (256, H*W/4)
    z = maxpool2x2(y, pool2)                                  # (256, H*W/16)
    # ------------------------------ decoder ------------------------------
    y = upsample2x2(z, wu1, bu1, scat1)                       # (128, H*W/4)
    y = upsample2x2(y, wu2, bu2, scat2)                       # (64, H*W)
    y = conv3x3(y, wd3, bd3, W, "relu")                       # (32, H*W)
    y = conv3x3(y, wd4, bd4, W, "sigmoid")                    # (3, H*W) f32
    o_ref[0] = y


# ----------------------------------------------------------------------------
# Wrapper: PyTorch-shaped params + NCHW input -> one fused pallas_call
# ----------------------------------------------------------------------------
def color_reduction_net(params, x_nchw):
    N, C, H, W = x_nchw.shape
    assert C == 3 and H % 4 == 0 and W % 4 == 0, (N, C, H, W)
    assert (W & (W - 1)) == 0 and ((W // 2) & (W // 2 - 1)) == 0  # masks use `&`
    f32, bf16 = jnp.float32, jnp.bfloat16
    HW = H * W

    x = x_nchw.reshape(N, 3, HW).astype(f32)      # flattened NCHW, no transpose

    def conv_w(w):      # nn.Conv2d (Cout, Cin, 3, 3) -> (Cout, 9*Cin)
        co, ci = w.shape[0], w.shape[1]
        return jnp.transpose(w, (0, 2, 3, 1)).reshape(co, 9 * ci).astype(bf16)

    def convT3_w(w):    # nn.ConvTranspose2d (Cin, Cout, 3, 3) -> flipped conv
        return conv_w(jnp.transpose(w[:, :, ::-1, ::-1], (1, 0, 2, 3)))

    def convT2_w(w):    # nn.ConvTranspose2d (Cin, Cout, 2, 2) -> (4*Cout, Cin)
        ci, co = w.shape[0], w.shape[1]
        return jnp.transpose(w, (2, 3, 1, 0)).reshape(4 * co, ci).astype(bf16)

    def bcol(b):        # per-channel bias as a column (broadcast along lanes)
        return b.reshape(-1, 1).astype(f32)

    we1, we2, we3, we4 = (conv_w(params[k]) for k in ("e1_w", "e2_w", "e3_w", "e4_w"))
    wu1, wu2 = convT2_w(params["d1_w"]), convT2_w(params["d2_w"])
    wd3, wd4 = convT3_w(params["d3_w"]), convT3_w(params["d4_w"])
    be1, be2, be3, be4 = (bcol(params[k]) for k in ("e1_b", "e2_b", "e3_b", "e4_b"))
    bu1, bu2 = bcol(jnp.tile(params["d1_b"], 4)), bcol(jnp.tile(params["d2_b"], 4))
    bd3, bd4 = bcol(params["d3_b"]), bcol(params["d4_b"])

    p1n, p2n, su1n, su2n = _selectors(H, W)
    pool1, pool2 = jnp.asarray(p1n, bf16), jnp.asarray(p2n, bf16)
    scat1, scat2 = jnp.asarray(su1n, bf16), jnp.asarray(su2n, bf16)

    inputs = (x, we1, we2, we3, we4, wu1, wu2, wd3, wd4,
              be1, be2, be3, be4, bu1, bu2, bd3, bd4,
              pool1, pool2, scat1, scat2)

    def full_spec(a):   # grid-invariant operand, resident for the whole call
        zeros = (0,) * a.ndim
        return pl.BlockSpec(a.shape, lambda n, _z=zeros: _z)

    in_specs = [pl.BlockSpec((1, 3, HW), lambda n: (n, 0, 0))]
    in_specs += [full_spec(a) for a in inputs[1:]]

    kernel = functools.partial(_fused_forward_kernel, H=H, W=W)

    y = pl.pallas_call(
        kernel,
        out_shape=jax.ShapeDtypeStruct((N, 3, HW), f32),
        grid=(N,),
        in_specs=in_specs,
        out_specs=pl.BlockSpec((1, 3, HW), lambda n: (n, 0, 0)),
        compiler_params=pltpu.CompilerParams(
            dimension_semantics=("parallel",),
        ),
    )(*inputs)

    return y.reshape(N, 3, H, W)                  # already NCHW


# ----------------------------------------------------------------------------
# Pure-JAX reference (independent path, correctness sanity check)
# ----------------------------------------------------------------------------
def _ref_conv3x3(x, w_oihw, b):
    w_hwio = jnp.transpose(w_oihw, (2, 3, 1, 0))
    y = lax.conv_general_dilated(x, w_hwio, (1, 1), ((1, 1), (1, 1)),
                                 dimension_numbers=("NHWC", "HWIO", "NHWC"))
    return y + b


def _ref_conv_transpose(x, w_iohw, b, k, s, p):
    w_hwio = jnp.transpose(w_iohw[:, :, ::-1, ::-1], (2, 3, 0, 1))
    pad = k - 1 - p
    y = lax.conv_general_dilated(x, w_hwio, (1, 1), ((pad, pad), (pad, pad)),
                                 lhs_dilation=(s, s),
                                 dimension_numbers=("NHWC", "HWIO", "NHWC"))
    return y + b


def reference_net(params, x_nchw):
    x = jnp.transpose(x_nchw, (0, 2, 3, 1)).astype(jnp.float32)
    relu = lambda v: jnp.maximum(v, 0.0)
    pool = lambda v: lax.reduce_window(v, -jnp.inf, lax.max,
                                       (1, 2, 2, 1), (1, 2, 2, 1), "VALID")
    x = relu(_ref_conv3x3(x, params["e1_w"], params["e1_b"]))
    x = relu(_ref_conv3x3(x, params["e2_w"], params["e2_b"]))
    x = pool(x)
    x = relu(_ref_conv3x3(x, params["e3_w"], params["e3_b"]))
    x = relu(_ref_conv3x3(x, params["e4_w"], params["e4_b"]))
    x = pool(x)
    x = relu(_ref_conv_transpose(x, params["d1_w"], params["d1_b"], 2, 2, 0))
    x = relu(_ref_conv_transpose(x, params["d2_w"], params["d2_b"], 2, 2, 0))
    x = relu(_ref_conv_transpose(x, params["d3_w"], params["d3_b"], 3, 1, 1))
    x = jax.nn.sigmoid(_ref_conv_transpose(x, params["d4_w"], params["d4_b"], 3, 1, 1))
    return jnp.transpose(x, (0, 3, 1, 2))


# ----------------------------------------------------------------------------
# Deterministic parameter init (PyTorch-shaped weights, uniform fan-in scaling)
# ----------------------------------------------------------------------------
def init_params(key):
    def uconv(k, cout, cin, ksz):          # nn.Conv2d weight (Cout, Cin, k, k)
        kw_, kb_ = jax.random.split(k)
        bound = 1.0 / np.sqrt(cin * ksz * ksz)
        w = jax.random.uniform(kw_, (cout, cin, ksz, ksz), jnp.float32, -bound, bound)
        b = jax.random.uniform(kb_, (cout,), jnp.float32, -bound, bound)
        return w, b

    def uconvT(k, cin, cout, ksz):         # nn.ConvTranspose2d weight (Cin, Cout, k, k)
        kw_, kb_ = jax.random.split(k)
        bound = 1.0 / np.sqrt(cout * ksz * ksz)
        w = jax.random.uniform(kw_, (cin, cout, ksz, ksz), jnp.float32, -bound, bound)
        b = jax.random.uniform(kb_, (cout,), jnp.float32, -bound, bound)
        return w, b

    ks = jax.random.split(key, 8)
    p = {}
    p["e1_w"], p["e1_b"] = uconv(ks[0], 32, 3, 3)
    p["e2_w"], p["e2_b"] = uconv(ks[1], 64, 32, 3)
    p["e3_w"], p["e3_b"] = uconv(ks[2], 128, 64, 3)
    p["e4_w"], p["e4_b"] = uconv(ks[3], 256, 128, 3)
    p["d1_w"], p["d1_b"] = uconvT(ks[4], 256, 128, 2)
    p["d2_w"], p["d2_b"] = uconvT(ks[5], 128, 64, 2)
    p["d3_w"], p["d3_b"] = uconvT(ks[6], 64, 32, 3)
    p["d4_w"], p["d4_b"] = uconvT(ks[7], 32, 3, 3)
    return p


if __name__ == "__main__":
    key = jax.random.PRNGKey(0)
    pkey, xkey = jax.random.split(key)
    params = init_params(pkey)
    x = jax.random.uniform(xkey, (2, 3, 16, 16), jnp.float32)   # NCHW, like PyTorch

    fwd = jax.jit(color_reduction_net)
    y = fwd(params, x)
    jax.block_until_ready(y)
    assert y.shape == (2, 3, 16, 16), y.shape

    y_ref = jax.jit(reference_net)(params, x)
    jax.block_until_ready(y_ref)
    err = float(jnp.max(jnp.abs(y - y_ref)))
    assert err < 2e-2, f"mismatch vs reference: {err}"

    print("KERNEL_OK")
</pallas_src>

<mosaic_0001>
module attributes {stable_mosaic.version = 11 : i64} {
  func.func @_fused_forward_kernel(%arg0: i32, %arg1: memref<1x3x256xf32, #tpu.memory_space<vmem>>, %arg2: memref<32x27xbf16, #tpu.memory_space<vmem>>, %arg3: memref<64x288xbf16, #tpu.memory_space<vmem>>, %arg4: memref<128x576xbf16, #tpu.memory_space<vmem>>, %arg5: memref<256x1152xbf16, #tpu.memory_space<vmem>>, %arg6: memref<512x256xbf16, #tpu.memory_space<vmem>>, %arg7: memref<256x128xbf16, #tpu.memory_space<vmem>>, %arg8: memref<32x576xbf16, #tpu.memory_space<vmem>>, %arg9: memref<3x288xbf16, #tpu.memory_space<vmem>>, %arg10: memref<32x1xf32, #tpu.memory_space<vmem>>, %arg11: memref<64x1xf32, #tpu.memory_space<vmem>>, %arg12: memref<128x1xf32, #tpu.memory_space<vmem>>, %arg13: memref<256x1xf32, #tpu.memory_space<vmem>>, %arg14: memref<512x1xf32, #tpu.memory_space<vmem>>, %arg15: memref<256x1xf32, #tpu.memory_space<vmem>>, %arg16: memref<32x1xf32, #tpu.memory_space<vmem>>, %arg17: memref<3x1xf32, #tpu.memory_space<vmem>>, %arg18: memref<4x256x64xbf16, #tpu.memory_space<vmem>>, %arg19: memref<4x64x16xbf16, #tpu.memory_space<vmem>>, %arg20: memref<4x16x64xbf16, #tpu.memory_space<vmem>>, %arg21: memref<4x64x256xbf16, #tpu.memory_space<vmem>>, %arg22: memref<1x3x256xf32, #tpu.memory_space<vmem>>) attributes {dimension_semantics = [#tpu.dimension_semantics<parallel>], iteration_bounds = array<i64: 2>, scalar_prefetch = 0 : i64, scratch_operands = 0 : i64, tpu.core_type = #tpu.core_type<tc>, window_params = [{transform_indices = @transform_0, window_bounds = array<i64: 1, 3, 256>}, {pipeline_mode = #tpu.pipeline_mode<synchronous>, transform_indices = @transform_1, window_bounds = array<i64: 32, 27>}, {pipeline_mode = #tpu.pipeline_mode<synchronous>, transform_indices = @transform_2, window_bounds = array<i64: 64, 288>}, {pipeline_mode = #tpu.pipeline_mode<synchronous>, transform_indices = @transform_3, window_bounds = array<i64: 128, 576>}, {pipeline_mode = #tpu.pipeline_mode<synchronous>, transform_indices = @transform_4, window_bounds = array<i64: 256, 1152>}, {pipeline_mode = #tpu.pipeline_mode<synchronous>, transform_indices = @transform_5, window_bounds = array<i64: 512, 256>}, {pipeline_mode = #tpu.pipeline_mode<synchronous>, transform_indices = @transform_6, window_bounds = array<i64: 256, 128>}, {pipeline_mode = #tpu.pipeline_mode<synchronous>, transform_indices = @transform_7, window_bounds = array<i64: 32, 576>}, {pipeline_mode = #tpu.pipeline_mode<synchronous>, transform_indices = @transform_8, window_bounds = array<i64: 3, 288>}, {pipeline_mode = #tpu.pipeline_mode<synchronous>, transform_indices = @transform_9, window_bounds = array<i64: 32, 1>}, {pipeline_mode = #tpu.pipeline_mode<synchronous>, transform_indices = @transform_10, window_bounds = array<i64: 64, 1>}, {pipeline_mode = #tpu.pipeline_mode<synchronous>, transform_indices = @transform_11, window_bounds = array<i64: 128, 1>}, {pipeline_mode = #tpu.pipeline_mode<synchronous>, transform_indices = @transform_12, window_bounds = array<i64: 256, 1>}, {pipeline_mode = #tpu.pipeline_mode<synchronous>, transform_indices = @transform_13, window_bounds = array<i64: 512, 1>}, {pipeline_mode = #tpu.pipeline_mode<synchronous>, transform_indices = @transform_14, window_bounds = array<i64: 256, 1>}, {pipeline_mode = #tpu.pipeline_mode<synchronous>, transform_indices = @transform_15, window_bounds = array<i64: 32, 1>}, {pipeline_mode = #tpu.pipeline_mode<synchronous>, transform_indices = @transform_16, window_bounds = array<i64: 3, 1>}, {pipeline_mode = #tpu.pipeline_mode<synchronous>, transform_indices = @transform_17, window_bounds = array<i64: 4, 256, 64>}, {pipeline_mode = #tpu.pipeline_mode<synchronous>, transform_indices = @transform_18, window_bounds = array<i64: 4, 64, 16>}, {pipeline_mode = #tpu.pipeline_mode<synchronous>, transform_indices = @transform_19, window_bounds = array<i64: 4, 16, 64>}, {pipeline_mode = #tpu.pipeline_mode<synchronous>, transform_indices = @transform_20, window_bounds = array<i64: 4, 64, 256>}, {transform_indices = @transform_21, window_bounds = array<i64: 1, 3, 256>}]} {
    %c0 = arith.constant 0 : index
    %c0_0 = arith.constant 0 : index
    %c0_1 = arith.constant 0 : index
    %0 = vector.load %arg1[%c0, %c0_0, %c0_1] : memref<1x3x256xf32, #tpu.memory_space<vmem>>, vector<1x3x256xf32>
    %1 = vector.shape_cast %0 : vector<1x3x256xf32> to vector<3x256xf32>
    %2 = arith.truncf %1 : vector<3x256xf32> to vector<3x256xbf16>
    %cst = arith.constant 0.000000e+00 : bf16
    %3 = vector.broadcast %cst : bf16 to vector<3x17xbf16>
    %4 = tpu.concatenate %3, %2, %3 in 1 : vector<3x17xbf16>, vector<3x256xbf16>, vector<3x17xbf16> -> vector<3x290xbf16>
    %5 = tpu.iota {dimensions = array<i32: 1>} : vector<3x256xi32>
    %c15_i32 = arith.constant 15 : i32
    %6 = vector.broadcast %c15_i32 : i32 to vector<3x256xi32>
    %7 = arith.andi %5, %6 : vector<3x256xi32>
    %c0_i32 = arith.constant 0 : i32
    %8 = vector.broadcast %c0_i32 : i32 to vector<3x256xi32>
    %9 = arith.cmpi ne, %7, %8 : vector<3x256xi32>
    %c15_i32_2 = arith.constant 15 : i32
    %10 = vector.broadcast %c15_i32_2 : i32 to vector<3x256xi32>
    %11 = arith.cmpi ne, %7, %10 : vector<3x256xi32>
    %12 = vector.extract_strided_slice %4 {offsets = [0, 0], sizes = [3, 256], strides = [1, 1]} : vector<3x290xbf16> to vector<3x256xbf16>
    %cst_3 = arith.constant 0.000000e+00 : bf16
    %13 = vector.broadcast %cst_3 : bf16 to vector<3x256xbf16>
    %14 = arith.select %9, %12, %13 : vector<3x256xi1>, vector<3x256xbf16>
    %15 = vector.extract_strided_slice %4 {offsets = [0, 1], sizes = [3, 256], strides = [1, 1]} : vector<3x290xbf16> to vector<3x256xbf16>
    %16 = vector.extract_strided_slice %4 {offsets = [0, 2], sizes = [3, 256], strides = [1, 1]} : vector<3x290xbf16> to vector<3x256xbf16>
    %cst_4 = arith.constant 0.000000e+00 : bf16
    %17 = vector.broadcast %cst_4 : bf16 to vector<3x256xbf16>
    %18 = arith.select %11, %16, %17 : vector<3x256xi1>, vector<3x256xbf16>
    %19 = vector.extract_strided_slice %4 {offsets = [0, 16], sizes = [3, 256], strides = [1, 1]} : vector<3x290xbf16> to vector<3x256xbf16>
    %cst_5 = arith.constant 0.000000e+00 : bf16
    %20 = vector.broadcast %cst_5 : bf16 to vector<3x256xbf16>
    %21 = arith.select %9, %19, %20 : vector<3x256xi1>, vector<3x256xbf16>
    %22 = vector.extract_strided_slice %4 {offsets = [0, 17], sizes = [3, 256], strides = [1, 1]} : vector<3x290xbf16> to vector<3x256xbf16>
    %23 = vector.extract_strided_slice %4 {offsets = [0, 18], sizes = [3, 256], strides = [1, 1]} : vector<3x290xbf16> to vector<3x256xbf16>
    %cst_6 = arith.constant 0.000000e+00 : bf16
    %24 = vector.broadcast %cst_6 : bf16 to vector<3x256xbf16>
    %25 = arith.select %11, %23, %24 : vector<3x256xi1>, vector<3x256xbf16>
    %26 = vector.extract_strided_slice %4 {offsets = [0, 32], sizes = [3, 256], strides = [1, 1]} : vector<3x290xbf16> to vector<3x256xbf16>
    %cst_7 = arith.constant 0.000000e+00 : bf16
    %27 = vector.broadcast %cst_7 : bf16 to vector<3x256xbf16>
    %28 = arith.select %9, %26, %27 : vector<3x256xi1>, vector<3x256xbf16>
    %29 = vector.extract_strided_slice %4 {offsets = [0, 33], sizes = [3, 256], strides = [1, 1]} : vector<3x290xbf16> to vector<3x256xbf16>
    %30 = vector.extract_strided_slice %4 {offsets = [0, 34], sizes = [3, 256], strides = [1, 1]} : vector<3x290xbf16> to vector<3x256xbf16>
    %cst_8 = arith.constant 0.000000e+00 : bf16
    %31 = vector.broadcast %cst_8 : bf16 to vector<3x256xbf16>
    %32 = arith.select %11, %30, %31 : vector<3x256xi1>, vector<3x256xbf16>
    %33 = tpu.concatenate %14, %15, %18, %21, %22, %25, %28, %29, %32 in 0 : vector<3x256xbf16>, vector<3x256xbf16>, vector<3x256xbf16>, vector<3x256xbf16>, vector<3x256xbf16>, vector<3x256xbf16>, vector<3x256xbf16>, vector<3x256xbf16>, vector<3x256xbf16> -> vector<27x256xbf16>
    %c0_9 = arith.constant 0 : index
    %c0_10 = arith.constant 0 : index
    %34 = vector.load %arg2[%c0_9, %c0_10] : memref<32x27xbf16, #tpu.memory_space<vmem>>, vector<32x27xbf16>
    %cst_11 = arith.constant dense<0.000000e+00> : vector<32x256xf32>
    %35 = tpu.matmul %34, %33, %cst_11 {dimension_numbers = #tpu.dot_dimension_numbers<[1], [0], [0], [1], [0, 0, 1, 1], [], []>} : vector<32x27xbf16>, vector<27x256xbf16>, vector<32x256xf32> -> vector<32x256xf32>
    %c0_12 = arith.constant 0 : index
    %c0_13 = arith.constant 0 : index
    %36 = vector.load %arg10[%c0_12, %c0_13] : memref<32x1xf32, #tpu.memory_space<vmem>>, vector<32x1xf32>
    %37 = vector.broadcast %36 : vector<32x1xf32> to vector<32x256xf32>
    %38 = arith.addf %35, %37 : vector<32x256xf32>
    %cst_14 = arith.constant 0.000000e+00 : f32
    %39 = vector.broadcast %cst_14 : f32 to vector<32x256xf32>
    %40 = arith.maximumf %38, %39 : vector<32x256xf32>
    %41 = arith.truncf %40 : vector<32x256xf32> to vector<32x256xbf16>
    %cst_15 = arith.constant 0.000000e+00 : bf16
    %42 = vector.broadcast %cst_15 : bf16 to vector<32x17xbf16>
    %43 = tpu.concatenate %42, %41, %42 in 1 : vector<32x17xbf16>, vector<32x256xbf16>, vector<32x17xbf16> -> vector<32x290xbf16>
    %44 = tpu.iota {dimensions = array<i32: 1>} : vector<32x256xi32>
    %c15_i32_16 = arith.constant 15 : i32
    %45 = vector.broadcast %c15_i32_16 : i32 to vector<32x256xi32>
    %46 = arith.andi %44, %45 : vector<32x256xi32>
    %c0_i32_17 = arith.constant 0 : i32
    %47 = vector.broadcast %c0_i32_17 : i32 to vector<32x256xi32>
    %48 = arith.cmpi ne, %46, %47 : vector<32x256xi32>
    %c15_i32_18 = arith.constant 15 : i32
    %49 = vector.broadcast %c15_i32_18 : i32 to vector<32x256xi32>
    %50 = arith.cmpi ne, %46, %49 : vector<32x256xi32>
    %51 = vector.extract_strided_slice %43 {offsets = [0, 0], sizes = [32, 256], strides = [1, 1]} : vector<32x290xbf16> to vector<32x256xbf16>
    %cst_19 = arith.constant 0.000000e+00 : bf16
    %52 = vector.broadcast %cst_19 : bf16 to vector<32x256xbf16>
    %53 = arith.select %48, %51, %52 : vector<32x256xi1>, vector<32x256xbf16>
    %54 = vector.extract_strided_slice %43 {offsets = [0, 1], sizes = [32, 256], strides = [1, 1]} : vector<32x290xbf16> to vector<32x256xbf16>
    %55 = vector.extract_strided_slice %43 {offsets = [0, 2], sizes = [32, 256], strides = [1, 1]} : vector<32x290xbf16> to vector<32x256xbf16>
    %cst_20 = arith.constant 0.000000e+00 : bf16
    %56 = vector.broadcast %cst_20 : bf16 to vector<32x256xbf16>
    %57 = arith.select %50, %55, %56 : vector<32x256xi1>, vector<32x256xbf16>
    %58 = vector.extract_strided_slice %43 {offsets = [0, 16], sizes = [32, 256], strides = [1, 1]} : vector<32x290xbf16> to vector<32x256xbf16>
    %cst_21 = arith.constant 0.000000e+00 : bf16
    %59 = vector.broadcast %cst_21 : bf16 to vector<32x256xbf16>
    %60 = arith.select %48, %58, %59 : vector<32x256xi1>, vector<32x256xbf16>
    %61 = vector.extract_strided_slice %43 {offsets = [0, 17], sizes = [32, 256], strides = [1, 1]} : vector<32x290xbf16> to vector<32x256xbf16>
    %62 = vector.extract_strided_slice %43 {offsets = [0, 18], sizes = [32, 256], strides = [1, 1]} : vector<32x290xbf16> to vector<32x256xbf16>
    %cst_22 = arith.constant 0.000000e+00 : bf16
    %63 = vector.broadcast %cst_22 : bf16 to vector<32x256xbf16>
    %64 = arith.select %50, %62, %63 : vector<32x256xi1>, vector<32x256xbf16>
    %65 = vector.extract_strided_slice %43 {offsets = [0, 32], sizes = [32, 256], strides = [1, 1]} : vector<32x290xbf16> to vector<32x256xbf16>
    %cst_23 = arith.constant 0.000000e+00 : bf16
    %66 = vector.broadcast %cst_23 : bf16 to vector<32x256xbf16>
    %67 = arith.select %48, %65, %66 : vector<32x256xi1>, vector<32x256xbf16>
    %68 = vector.extract_strided_slice %43 {offsets = [0, 33], sizes = [32, 256], strides = [1, 1]} : vector<32x290xbf16> to vector<32x256xbf16>
    %69 = vector.extract_strided_slice %43 {offsets = [0, 34], sizes = [32, 256], strides = [1, 1]} : vector<32x290xbf16> to vector<32x256xbf16>
    %cst_24 = arith.constant 0.000000e+00 : bf16
    %70 = vector.broadcast %cst_24 : bf16 to vector<32x256xbf16>
    %71 = arith.select %50, %69, %70 : vector<32x256xi1>, vector<32x256xbf16>
    %72 = tpu.concatenate %53, %54, %57, %60, %61, %64, %67, %68, %71 in 0 : vector<32x256xbf16>, vector<32x256xbf16>, vector<32x256xbf16>, vector<32x256xbf16>, vector<32x256xbf16>, vector<32x256xbf16>, vector<32x256xbf16>, vector<32x256xbf16>, vector<32x256xbf16> -> vector<288x256xbf16>
    %c0_25 = arith.constant 0 : index
    %c0_26 = arith.constant 0 : index
    %73 = vector.load %arg3[%c0_25, %c0_26] : memref<64x288xbf16, #tpu.memory_space<vmem>>, vector<64x288xbf16>
    %cst_27 = arith.constant dense<0.000000e+00> : vector<64x256xf32>
    %74 = tpu.matmul %73, %72, %cst_27 {dimension_numbers = #tpu.dot_dimension_numbers<[1], [0], [0], [1], [0, 0, 1, 1], [], []>} : vector<64x288xbf16>, vector<288x256xbf16>, vector<64x256xf32> -> vector<64x256xf32>
    %c0_28 = arith.constant 0 : index
    %c0_29 = arith.constant 0 : index
    %75 = vector.load %arg11[%c0_28, %c0_29] : memref<64x1xf32, #tpu.memory_space<vmem>>, vector<64x1xf32>
    %76 = vector.broadcast %75 : vector<64x1xf32> to vector<64x256xf32>
    %77 = arith.addf %74, %76 : vector<64x256xf32>
    %cst_30 = arith.constant 0.000000e+00 : f32
    %78 = vector.broadcast %cst_30 : f32 to vector<64x256xf32>
    %79 = arith.maximumf %77, %78 : vector<64x256xf32>
    %80 = arith.truncf %79 : vector<64x256xf32> to vector<64x256xbf16>
    %c0_31 = arith.constant 0 : index
    %c0_32 = arith.constant 0 : index
    %c0_33 = arith.constant 0 : index
    %81 = vector.load %arg18[%c0_31, %c0_32, %c0_33] : memref<4x256x64xbf16, #tpu.memory_space<vmem>>, vector<1x256x64xbf16>
    %82 = vector.shape_cast %81 : vector<1x256x64xbf16> to vector<256x64xbf16>
    %cst_34 = arith.constant dense<0.000000e+00> : vector<64x64xf32>
    %83 = tpu.matmul %80, %82, %cst_34 {dimension_numbers = #tpu.dot_dimension_numbers<[1], [0], [0], [1], [0, 0, 1, 1], [], []>} : vector<64x256xbf16>, vector<256x64xbf16>, vector<64x64xf32> -> vector<64x64xf32>
    %c1 = arith.constant 1 : index
    %c0_35 = arith.constant 0 : index
    %c0_36 = arith.constant 0 : index
    %84 = vector.load %arg18[%c1, %c0_35, %c0_36] : memref<4x256x64xbf16, #tpu.memory_space<vmem>>, vector<1x256x64xbf16>
    %85 = vector.shape_cast %84 : vector<1x256x64xbf16> to vector<256x64xbf16>
    %cst_37 = arith.constant dense<0.000000e+00> : vector<64x64xf32>
    %86 = tpu.matmul %80, %85, %cst_37 {dimension_numbers = #tpu.dot_dimension_numbers<[1], [0], [0], [1], [0, 0, 1, 1], [], []>} : vector<64x256xbf16>, vector<256x64xbf16>, vector<64x64xf32> -> vector<64x64xf32>
    %87 = arith.maximumf %83, %86 : vector<64x64xf32>
    %c2 = arith.constant 2 : index
    %c0_38 = arith.constant 0 : index
    %c0_39 = arith.constant 0 : index
    %88 = vector.load %arg18[%c2, %c0_38, %c0_39] : memref<4x256x64xbf16, #tpu.memory_space<vmem>>, vector<1x256x64xbf16>
    %89 = vector.shape_cast %88 : vector<1x256x64xbf16> to vector<256x64xbf16>
    %cst_40 = arith.constant dense<0.000000e+00> : vector<64x64xf32>
    %90 = tpu.matmul %80, %89, %cst_40 {dimension_numbers = #tpu.dot_dimension_numbers<[1], [0], [0], [1], [0, 0, 1, 1], [], []>} : vector<64x256xbf16>, vector<256x64xbf16>, vector<64x64xf32> -> vector<64x64xf32>
    %91 = arith.maximumf %87, %90 : vector<64x64xf32>
    %c3 = arith.constant 3 : index
    %c0_41 = arith.constant 0 : index
    %c0_42 = arith.constant 0 : index
    %92 = vector.load %arg18[%c3, %c0_41, %c0_42] : memref<4x256x64xbf16, #tpu.memory_space<vmem>>, vector<1x256x64xbf16>
    %93 = vector.shape_cast %92 : vector<1x256x64xbf16> to vector<256x64xbf16>
    %cst_43 = arith.constant dense<0.000000e+00> : vector<64x64xf32>
    %94 = tpu.matmul %80, %93, %cst_43 {dimension_numbers = #tpu.dot_dimension_numbers<[1], [0], [0], [1], [0, 0, 1, 1], [], []>} : vector<64x256xbf16>, vector<256x64xbf16>, vector<64x64xf32> -> vector<64x64xf32>
    %95 = arith.maximumf %91, %94 : vector<64x64xf32>
    %96 = arith.truncf %95 : vector<64x64xf32> to vector<64x64xbf16>
    %cst_44 = arith.constant 0.000000e+00 : bf16
    %97 = vector.broadcast %cst_44 : bf16 to vector<64x9xbf16>
    %98 = tpu.concatenate %97, %96, %97 in 1 : vector<64x9xbf16>, vector<64x64xbf16>, vector<64x9xbf16> -> vector<64x82xbf16>
    %99 = tpu.iota {dimensions = array<i32: 1>} : vector<64x64xi32>
    %c7_i32 = arith.constant 7 : i32
    %100 = vector.broadcast %c7_i32 : i32 to vector<64x64xi32>
    %101 = arith.andi %99, %100 : vector<64x64xi32>
    %c0_i32_45 = arith.constant 0 : i32
    %102 = vector.broadcast %c0_i32_45 : i32 to vector<64x64xi32>
    %103 = arith.cmpi ne, %101, %102 : vector<64x64xi32>
    %c7_i32_46 = arith.constant 7 : i32
    %104 = vector.broadcast %c7_i32_46 : i32 to vector<64x64xi32>
    %105 = arith.cmpi ne, %101, %104 : vector<64x64xi32>
    %106 = vector.extract_strided_slice %98 {offsets = [0, 0], sizes = [64, 64], strides = [1, 1]} : vector<64x82xbf16> to vector<64x64xbf16>
    %cst_47 = arith.constant 0.000000e+00 : bf16
    %107 = vector.broadcast %cst_47 : bf16 to vector<64x64xbf16>
    %108 = arith.select %103, %106, %107 : vector<64x64xi1>, vector<64x64xbf16>
    %109 = vector.extract_strided_slice %98 {offsets = [0, 1], sizes = [64, 64], strides = [1, 1]} : vector<64x82xbf16> to vector<64x64xbf16>
    %110 = vector.extract_strided_slice %98 {offsets = [0, 2], sizes = [64, 64], strides = [1, 1]} : vector<64x82xbf16> to vector<64x64xbf16>
    %cst_48 = arith.constant 0.000000e+00 : bf16
    %111 = vector.broadcast %cst_48 : bf16 to vector<64x64xbf16>
    %112 = arith.select %105, %110, %111 : vector<64x64xi1>, vector<64x64xbf16>
    %113 = vector.extract_strided_slice %98 {offsets = [0, 8], sizes = [64, 64], strides = [1, 1]} : vector<64x82xbf16> to vector<64x64xbf16>
    %cst_49 = arith.constant 0.000000e+00 : bf16
    %114 = vector.broadcast %cst_49 : bf16 to vector<64x64xbf16>
    %115 = arith.select %103, %113, %114 : vector<64x64xi1>, vector<64x64xbf16>
    %116 = vector.extract_strided_slice %98 {offsets = [0, 9], sizes = [64, 64], strides = [1, 1]} : vector<64x82xbf16> to vector<64x64xbf16>
    %117 = vector.extract_strided_slice %98 {offsets = [0, 10], sizes = [64, 64], strides = [1, 1]} : vector<64x82xbf16> to vector<64x64xbf16>
    %cst_50 = arith.constant 0.000000e+00 : bf16
    %118 = vector.broadcast %cst_50 : bf16 to vector<64x64xbf16>
    %119 = arith.select %105, %117, %118 : vector<64x64xi1>, vector<64x64xbf16>
    %120 = vector.extract_strided_slice %98 {offsets = [0, 16], sizes = [64, 64], strides = [1, 1]} : vector<64x82xbf16> to vector<64x64xbf16>
    %cst_51 = arith.constant 0.000000e+00 : bf16
    %121 = vector.broadcast %cst_51 : bf16 to vector<64x64xbf16>
    %122 = arith.select %103, %120, %121 : vector<64x64xi1>, vector<64x64xbf16>
    %123 = vector.extract_strided_slice %98 {offsets = [0, 17], sizes = [64, 64], strides = [1, 1]} : vector<64x82xbf16> to vector<64x64xbf16>
    %124 = vector.extract_strided_slice %98 {offsets = [0, 18], sizes = [64, 64], strides = [1, 1]} : vector<64x82xbf16> to vector<64x64xbf16>
    %cst_52 = arith.constant 0.000000e+00 : bf16
    %125 = vector.broadcast %cst_52 : bf16 to vector<64x64xbf16>
    %126 = arith.select %105, %124, %125 : vector<64x64xi1>, vector<64x64xbf16>
    %127 = tpu.concatenate %108, %109, %112, %115, %116, %119, %122, %123, %126 in 0 : vector<64x64xbf16>, vector<64x64xbf16>, vector<64x64xbf16>, vector<64x64xbf16>, vector<64x64xbf16>, vector<64x64xbf16>, vector<64x64xbf16>, vector<64x64xbf16>, vector<64x64xbf16> -> vector<576x64xbf16>
    %c0_53 = arith.constant 0 : index
    %c0_54 = arith.constant 0 : index
    %128 = vector.load %arg4[%c0_53, %c0_54] : memref<128x576xbf16, #tpu.memory_space<vmem>>, vector<128x576xbf16>
    %cst_55 = arith.constant dense<0.000000e+00> : vector<128x64xf32>
    %129 = tpu.matmul %128, %127, %cst_55 {dimension_numbers = #tpu.dot_dimension_numbers<[1], [0], [0], [1], [0, 0, 1, 1], [], []>} : vector<128x576xbf16>, vector<576x64xbf16>, vector<128x64xf32> -> vector<128x64xf32>
    %c0_56 = arith.constant 0 : index
    %c0_57 = arith.constant 0 : index
    %130 = vector.load %arg12[%c0_56, %c0_57] : memref<128x1xf32, #tpu.memory_space<vmem>>, vector<128x1xf32>
    %131 = vector.broadcast %130 : vector<128x1xf32> to vector<128x64xf32>
    %132 = arith.addf %129, %131 : vector<128x64xf32>
    %cst_58 = arith.constant 0.000000e+00 : f32
    %133 = vector.broadcast %cst_58 : f32 to vector<128x64xf32>
    %134 = arith.maximumf %132, %133 : vector<128x64xf32>
    %135 = arith.truncf %134 : vector<128x64xf32> to vector<128x64xbf16>
    %cst_59 = arith.constant 0.000000e+00 : bf16
    %136 = vector.broadcast %cst_59 : bf16 to vector<128x9xbf16>
    %137 = tpu.concatenate %136, %135, %136 in 1 : vector<128x9xbf16>, vector<128x64xbf16>, vector<128x9xbf16> -> vector<128x82xbf16>
    %138 = tpu.iota {dimensions = array<i32: 1>} : vector<128x64xi32>
    %c7_i32_60 = arith.constant 7 : i32
    %139 = vector.broadcast %c7_i32_60 : i32 to vector<128x64xi32>
    %140 = arith.andi %138, %139 : vector<128x64xi32>
    %c0_i32_61 = arith.constant 0 : i32
    %141 = vector.broadcast %c0_i32_61 : i32 to vector<128x64xi32>
    %142 = arith.cmpi ne, %140, %141 : vector<128x64xi32>
    %c7_i32_62 = arith.constant 7 : i32
    %143 = vector.broadcast %c7_i32_62 : i32 to vector<128x64xi32>
    %144 = arith.cmpi ne, %140, %143 : vector<128x64xi32>
    %145 = vector.extract_strided_slice %137 {offsets = [0, 0], sizes = [128, 64], strides = [1, 1]} : vector<128x82xbf16> to vector<128x64xbf16>
    %cst_63 = arith.constant 0.000000e+00 : bf16
    %146 = vector.broadcast %cst_63 : bf16 to vector<128x64xbf16>
    %147 = arith.select %142, %145, %146 : vector<128x64xi1>, vector<128x64xbf16>
    %148 = vector.extract_strided_slice %137 {offsets = [0, 1], sizes = [128, 64], strides = [1, 1]} : vector<128x82xbf16> to vector<128x64xbf16>
    %149 = vector.extract_strided_slice %137 {offsets = [0, 2], sizes = [128, 64], strides = [1, 1]} : vector<128x82xbf16> to vector<128x64xbf16>
    %cst_64 = arith.constant 0.000000e+00 : bf16
    %150 = vector.broadcast %cst_64 : bf16 to vector<128x64xbf16>
    %151 = arith.select %144, %149, %150 : vector<128x64xi1>, vector<128x64xbf16>
    %152 = vector.extract_strided_slice %137 {offsets = [0, 8], sizes = [128, 64], strides = [1, 1]} : vector<128x82xbf16> to vector<128x64xbf16>
    %cst_65 = arith.constant 0.000000e+00 : bf16
    %153 = vector.broadcast %cst_65 : bf16 to vector<128x64xbf16>
    %154 = arith.select %142, %152, %153 : vector<128x64xi1>, vector<128x64xbf16>
    %155 = vector.extract_strided_slice %137 {offsets = [0, 9], sizes = [128, 64], strides = [1, 1]} : vector<128x82xbf16> to vector<128x64xbf16>
    %156 = vector.extract_strided_slice %137 {offsets = [0, 10], sizes = [128, 64], strides = [1, 1]} : vector<128x82xbf16> to vector<128x64xbf16>
    %cst_66 = arith.constant 0.000000e+00 : bf16
    %157 = vector.broadcast %cst_66 : bf16 to vector<128x64xbf16>
    %158 = arith.select %144, %156, %157 : vector<128x64xi1>, vector<128x64xbf16>
    %159 = vector.extract_strided_slice %137 {offsets = [0, 16], sizes = [128, 64], strides = [1, 1]} : vector<128x82xbf16> to vector<128x64xbf16>
    %cst_67 = arith.constant 0.000000e+00 : bf16
    %160 = vector.broadcast %cst_67 : bf16 to vector<128x64xbf16>
    %161 = arith.select %142, %159, %160 : vector<128x64xi1>, vector<128x64xbf16>
    %162 = vector.extract_strided_slice %137 {offsets = [0, 17], sizes = [128, 64], strides = [1, 1]} : vector<128x82xbf16> to vector<128x64xbf16>
    %163 = vector.extract_strided_slice %137 {offsets = [0, 18], sizes = [128, 64], strides = [1, 1]} : vector<128x82xbf16> to vector<128x64xbf16>
    %cst_68 = arith.constant 0.000000e+00 : bf16
    %164 = vector.broadcast %cst_68 : bf16 to vector<128x64xbf16>
    %165 = arith.select %144, %163, %164 : vector<128x64xi1>, vector<128x64xbf16>
    %166 = tpu.concatenate %147, %148, %151, %154, %155, %158, %161, %162, %165 in 0 : vector<128x64xbf16>, vector<128x64xbf16>, vector<128x64xbf16>, vector<128x64xbf16>, vector<128x64xbf16>, vector<128x64xbf16>, vector<128x64xbf16>, vector<128x64xbf16>, vector<128x64xbf16> -> vector<1152x64xbf16>
    %c0_69 = arith.constant 0 : index
    %c0_70 = arith.constant 0 : index
    %167 = vector.load %arg5[%c0_69, %c0_70] : memref<256x1152xbf16, #tpu.memory_space<vmem>>, vector<256x1152xbf16>
    %cst_71 = arith.constant dense<0.000000e+00> : vector<256x64xf32>
    %168 = tpu.matmul %167, %166, %cst_71 {dimension_numbers = #tpu.dot_dimension_numbers<[1], [0], [0], [1], [0, 0, 1, 1], [], []>} : vector<256x1152xbf16>, vector<1152x64xbf16>, vector<256x64xf32> -> vector<256x64xf32>
    %c0_72 = arith.constant 0 : index
    %c0_73 = arith.constant 0 : index
    %169 = vector.load %arg13[%c0_72, %c0_73] : memref<256x1xf32, #tpu.memory_space<vmem>>, vector<256x1xf32>
    %170 = vector.broadcast %169 : vector<256x1xf32> to vector<256x64xf32>
    %171 = arith.addf %168, %170 : vector<256x64xf32>
    %cst_74 = arith.constant 0.000000e+00 : f32
    %172 = vector.broadcast %cst_74 : f32 to vector<256x64xf32>
    %173 = arith.maximumf %171, %172 : vector<256x64xf32>
    %174 = arith.truncf %173 : vector<256x64xf32> to vector<256x64xbf16>
    %c0_75 = arith.constant 0 : index
    %c0_76 = arith.constant 0 : index
    %c0_77 = arith.constant 0 : index
    %175 = vector.load %arg19[%c0_75, %c0_76, %c0_77] : memref<4x64x16xbf16, #tpu.memory_space<vmem>>, vector<1x64x16xbf16>
    %176 = vector.shape_cast %175 : vector<1x64x16xbf16> to vector<64x16xbf16>
    %cst_78 = arith.constant dense<0.000000e+00> : vector<256x16xf32>
    %177 = tpu.matmul %174, %176, %cst_78 {dimension_numbers = #tpu.dot_dimension_numbers<[1], [0], [0], [1], [0, 0, 1, 1], [], []>} : vector<256x64xbf16>, vector<64x16xbf16>, vector<256x16xf32> -> vector<256x16xf32>
    %c1_79 = arith.constant 1 : index
    %c0_80 = arith.constant 0 : index
    %c0_81 = arith.constant 0 : index
    %178 = vector.load %arg19[%c1_79, %c0_80, %c0_81] : memref<4x64x16xbf16, #tpu.memory_space<vmem>>, vector<1x64x16xbf16>
    %179 = vector.shape_cast %178 : vector<1x64x16xbf16> to vector<64x16xbf16>
    %cst_82 = arith.constant dense<0.000000e+00> : vector<256x16xf32>
    %180 = tpu.matmul %174, %179, %cst_82 {dimension_numbers = #tpu.dot_dimension_numbers<[1], [0], [0], [1], [0, 0, 1, 1], [], []>} : vector<256x64xbf16>, vector<64x16xbf16>, vector<256x16xf32> -> vector<256x16xf32>
    %181 = arith.maximumf %177, %180 : vector<256x16xf32>
    %c2_83 = arith.constant 2 : index
    %c0_84 = arith.constant 0 : index
    %c0_85 = arith.constant 0 : index
    %182 = vector.load %arg19[%c2_83, %c0_84, %c0_85] : memref<4x64x16xbf16, #tpu.memory_space<vmem>>, vector<1x64x16xbf16>
    %183 = vector.shape_cast %182 : vector<1x64x16xbf16> to vector<64x16xbf16>
    %cst_86 = arith.constant dense<0.000000e+00> : vector<256x16xf32>
    %184 = tpu.matmul %174, %183, %cst_86 {dimension_numbers = #tpu.dot_dimension_numbers<[1], [0], [0], [1], [0, 0, 1, 1], [], []>} : vector<256x64xbf16>, vector<64x16xbf16>, vector<256x16xf32> -> vector<256x16xf32>
    %185 = arith.maximumf %181, %184 : vector<256x16xf32>
    %c3_87 = arith.constant 3 : index
    %c0_88 = arith.constant 0 : index
    %c0_89 = arith.constant 0 : index
    %186 = vector.load %arg19[%c3_87, %c0_88, %c0_89] : memref<4x64x16xbf16, #tpu.memory_space<vmem>>, vector<1x64x16xbf16>
    %187 = vector.shape_cast %186 : vector<1x64x16xbf16> to vector<64x16xbf16>
    %cst_90 = arith.constant dense<0.000000e+00> : vector<256x16xf32>
    %188 = tpu.matmul %174, %187, %cst_90 {dimension_numbers = #tpu.dot_dimension_numbers<[1], [0], [0], [1], [0, 0, 1, 1], [], []>} : vector<256x64xbf16>, vector<64x16xbf16>, vector<256x16xf32> -> vector<256x16xf32>
    %189 = arith.maximumf %185, %188 : vector<256x16xf32>
    %190 = arith.truncf %189 : vector<256x16xf32> to vector<256x16xbf16>
    %c0_91 = arith.constant 0 : index
    %c0_92 = arith.constant 0 : index
    %191 = vector.load %arg6[%c0_91, %c0_92] : memref<512x256xbf16, #tpu.memory_space<vmem>>, vector<512x256xbf16>
    %cst_93 = arith.constant dense<0.000000e+00> : vector<512x16xf32>
    %192 = tpu.matmul %191, %190, %cst_93 {dimension_numbers = #tpu.dot_dimension_numbers<[1], [0], [0], [1], [0, 0, 1, 1], [], []>} : vector<512x256xbf16>, vector<256x16xbf16>, vector<512x16xf32> -> vector<512x16xf32>
    %c0_94 = arith.constant 0 : index
    %c0_95 = arith.constant 0 : index
    %193 = vector.load %arg14[%c0_94, %c0_95] : memref<512x1xf32, #tpu.memory_space<vmem>>, vector<512x1xf32>
    %194 = vector.broadcast %193 : vector<512x1xf32> to vector<512x16xf32>
    %195 = arith.addf %192, %194 : vector<512x16xf32>
    %cst_96 = arith.constant 0.000000e+00 : f32
    %196 = vector.broadcast %cst_96 : f32 to vector<512x16xf32>
    %197 = arith.maximumf %195, %196 : vector<512x16xf32>
    %198 = arith.truncf %197 : vector<512x16xf32> to vector<512x16xbf16>
    %199 = vector.extract_strided_slice %198 {offsets = [0, 0], sizes = [128, 16], strides = [1, 1]} : vector<512x16xbf16> to vector<128x16xbf16>
    %c0_97 = arith.constant 0 : index
    %c0_98 = arith.constant 0 : index
    %c0_99 = arith.constant 0 : index
    %200 = vector.load %arg20[%c0_97, %c0_98, %c0_99] : memref<4x16x64xbf16, #tpu.memory_space<vmem>>, vector<1x16x64xbf16>
    %201 = vector.shape_cast %200 : vector<1x16x64xbf16> to vector<16x64xbf16>
    %cst_100 = arith.constant dense<0.000000e+00> : vector<128x64xf32>
    %202 = tpu.matmul %199, %201, %cst_100 {dimension_numbers = #tpu.dot_dimension_numbers<[1], [0], [0], [1], [0, 0, 1, 1], [], []>} : vector<128x16xbf16>, vector<16x64xbf16>, vector<128x64xf32> -> vector<128x64xf32>
    %203 = vector.extract_strided_slice %198 {offsets = [128, 0], sizes = [128, 16], strides = [1, 1]} : vector<512x16xbf16> to vector<128x16xbf16>
    %c1_101 = arith.constant 1 : index
    %c0_102 = arith.constant 0 : index
    %c0_103 = arith.constant 0 : index
    %204 = vector.load %arg20[%c1_101, %c0_102, %c0_103] : memref<4x16x64xbf16, #tpu.memory_space<vmem>>, vector<1x16x64xbf16>
    %205 = vector.shape_cast %204 : vector<1x16x64xbf16> to vector<16x64xbf16>
    %cst_104 = arith.constant dense<0.000000e+00> : vector<128x64xf32>
    %206 = tpu.matmul %203, %205, %cst_104 {dimension_numbers = #tpu.dot_dimension_numbers<[1], [0], [0], [1], [0, 0, 1, 1], [], []>} : vector<128x16xbf16>, vector<16x64xbf16>, vector<128x64xf32> -> vector<128x64xf32>
    %207 = arith.addf %202, %206 : vector<128x64xf32>
    %208 = vector.extract_strided_slice %198 {offsets = [256, 0], sizes = [128, 16], strides = [1, 1]} : vector<512x16xbf16> to vector<128x16xbf16>
    %c2_105 = arith.constant 2 : index
    %c0_106 = arith.constant 0 : index
    %c0_107 = arith.constant 0 : index
    %209 = vector.load %arg20[%c2_105, %c0_106, %c0_107] : memref<4x16x64xbf16, #tpu.memory_space<vmem>>, vector<1x16x64xbf16>
    %210 = vector.shape_cast %209 : vector<1x16x64xbf16> to vector<16x64xbf16>
    %cst_108 = arith.constant dense<0.000000e+00> : vector<128x64xf32>
    %211 = tpu.matmul %208, %210, %cst_108 {dimension_numbers = #tpu.dot_dimension_numbers<[1], [0], [0], [1], [0, 0, 1, 1], [], []>} : vector<128x16xbf16>, vector<16x64xbf16>, vector<128x64xf32> -> vector<128x64xf32>
    %212 = arith.addf %207, %211 : vector<128x64xf32>
    %213 = vector.extract_strided_slice %198 {offsets = [384, 0], sizes = [128, 16], strides = [1, 1]} : vector<512x16xbf16> to vector<128x16xbf16>
    %c3_109 = arith.constant 3 : index
    %c0_110 = arith.constant 0 : index
    %c0_111 = arith.constant 0 : index
    %214 = vector.load %arg20[%c3_109, %c0_110, %c0_111] : memref<4x16x64xbf16, #tpu.memory_space<vmem>>, vector<1x16x64xbf16>
    %215 = vector.shape_cast %214 : vector<1x16x64xbf16> to vector<16x64xbf16>
    %cst_112 = arith.constant dense<0.000000e+00> : vector<128x64xf32>
    %216 = tpu.matmul %213, %215, %cst_112 {dimension_numbers = #tpu.dot_dimension_numbers<[1], [0], [0], [1], [0, 0, 1, 1], [], []>} : vector<128x16xbf16>, vector<16x64xbf16>, vector<128x64xf32> -> vector<128x64xf32>
    %217 = arith.addf %212, %216 : vector<128x64xf32>
    %218 = arith.truncf %217 : vector<128x64xf32> to vector<128x64xbf16>
    %c0_113 = arith.constant 0 : index
    %c0_114 = arith.constant 0 : index
    %219 = vector.load %arg7[%c0_113, %c0_114] : memref<256x128xbf16, #tpu.memory_space<vmem>>, vector<256x128xbf16>
    %cst_115 = arith.constant dense<0.000000e+00> : vector<256x64xf32>
    %220 = tpu.matmul %219, %218, %cst_115 {dimension_numbers = #tpu.dot_dimension_numbers<[1], [0], [0], [1], [0, 0, 1, 1], [], []>} : vector<256x128xbf16>, vector<128x64xbf16>, vector<256x64xf32> -> vector<256x64xf32>
    %c0_116 = arith.constant 0 : index
    %c0_117 = arith.constant 0 : index
    %221 = vector.load %arg15[%c0_116, %c0_117] : memref<256x1xf32, #tpu.memory_space<vmem>>, vector<256x1xf32>
    %222 = vector.broadcast %221 : vector<256x1xf32> to vector<256x64xf32>
    %223 = arith.addf %220, %222 : vector<256x64xf32>
    %cst_118 = arith.constant 0.000000e+00 : f32
    %224 = vector.broadcast %cst_118 : f32 to vector<256x64xf32>
    %225 = arith.maximumf %223, %224 : vector<256x64xf32>
    %226 = arith.truncf %225 : vector<256x64xf32> to vector<256x64xbf16>
    %227 = vector.extract_strided_slice %226 {offsets = [0, 0], sizes = [64, 64], strides = [1, 1]} : vector<256x64xbf16> to vector<64x64xbf16>
    %c0_119 = arith.constant 0 : index
    %c0_120 = arith.constant 0 : index
    %c0_121 = arith.constant 0 : index
    %228 = vector.load %arg21[%c0_119, %c0_120, %c0_121] : memref<4x64x256xbf16, #tpu.memory_space<vmem>>, vector<1x64x256xbf16>
    %229 = vector.shape_cast %228 : vector<1x64x256xbf16> to vector<64x256xbf16>
    %cst_122 = arith.constant dense<0.000000e+00> : vector<64x256xf32>
    %230 = tpu.matmul %227, %229, %cst_122 {dimension_numbers = #tpu.dot_dimension_numbers<[1], [0], [0], [1], [0, 0, 1, 1], [], []>} : vector<64x64xbf16>, vector<64x256xbf16>, vector<64x256xf32> -> vector<64x256xf32>
    %231 = vector.extract_strided_slice %226 {offsets = [64, 0], sizes = [64, 64], strides = [1, 1]} : vector<256x64xbf16> to vector<64x64xbf16>
    %c1_123 = arith.constant 1 : index
    %c0_124 = arith.constant 0 : index
    %c0_125 = arith.constant 0 : index
    %232 = vector.load %arg21[%c1_123, %c0_124, %c0_125] : memref<4x64x256xbf16, #tpu.memory_space<vmem>>, vector<1x64x256xbf16>
    %233 = vector.shape_cast %232 : vector<1x64x256xbf16> to vector<64x256xbf16>
    %cst_126 = arith.constant dense<0.000000e+00> : vector<64x256xf32>
    %234 = tpu.matmul %231, %233, %cst_126 {dimension_numbers = #tpu.dot_dimension_numbers<[1], [0], [0], [1], [0, 0, 1, 1], [], []>} : vector<64x64xbf16>, vector<64x256xbf16>, vector<64x256xf32> -> vector<64x256xf32>
    %235 = arith.addf %230, %234 : vector<64x256xf32>
    %236 = vector.extract_strided_slice %226 {offsets = [128, 0], sizes = [64, 64], strides = [1, 1]} : vector<256x64xbf16> to vector<64x64xbf16>
    %c2_127 = arith.constant 2 : index
    %c0_128 = arith.constant 0 : index
    %c0_129 = arith.constant 0 : index
    %237 = vector.load %arg21[%c2_127, %c0_128, %c0_129] : memref<4x64x256xbf16, #tpu.memory_space<vmem>>, vector<1x64x256xbf16>
    %238 = vector.shape_cast %237 : vector<1x64x256xbf16> to vector<64x256xbf16>
    %cst_130 = arith.constant dense<0.000000e+00> : vector<64x256xf32>
    %239 = tpu.matmul %236, %238, %cst_130 {dimension_numbers = #tpu.dot_dimension_numbers<[1], [0], [0], [1], [0, 0, 1, 1], [], []>} : vector<64x64xbf16>, vector<64x256xbf16>, vector<64x256xf32> -> vector<64x256xf32>
    %240 = arith.addf %235, %239 : vector<64x256xf32>
    %241 = vector.extract_strided_slice %226 {offsets = [192, 0], sizes = [64, 64], strides = [1, 1]} : vector<256x64xbf16> to vector<64x64xbf16>
    %c3_131 = arith.constant 3 : index
    %c0_132 = arith.constant 0 : index
    %c0_133 = arith.constant 0 : index
    %242 = vector.load %arg21[%c3_131, %c0_132, %c0_133] : memref<4x64x256xbf16, #tpu.memory_space<vmem>>, vector<1x64x256xbf16>
    %243 = vector.shape_cast %242 : vector<1x64x256xbf16> to vector<64x256xbf16>
    %cst_134 = arith.constant dense<0.000000e+00> : vector<64x256xf32>
    %244 = tpu.matmul %241, %243, %cst_134 {dimension_numbers = #tpu.dot_dimension_numbers<[1], [0], [0], [1], [0, 0, 1, 1], [], []>} : vector<64x64xbf16>, vector<64x256xbf16>, vector<64x256xf32> -> vector<64x256xf32>
    %245 = arith.addf %240, %244 : vector<64x256xf32>
    %246 = arith.truncf %245 : vector<64x256xf32> to vector<64x256xbf16>
    %cst_135 = arith.constant 0.000000e+00 : bf16
    %247 = vector.broadcast %cst_135 : bf16 to vector<64x17xbf16>
    %248 = tpu.concatenate %247, %246, %247 in 1 : vector<64x17xbf16>, vector<64x256xbf16>, vector<64x17xbf16> -> vector<64x290xbf16>
    %249 = tpu.iota {dimensions = array<i32: 1>} : vector<64x256xi32>
    %c15_i32_136 = arith.constant 15 : i32
    %250 = vector.broadcast %c15_i32_136 : i32 to vector<64x256xi32>
    %251 = arith.andi %249, %250 : vector<64x256xi32>
    %c0_i32_137 = arith.constant 0 : i32
    %252 = vector.broadcast %c0_i32_137 : i32 to vector<64x256xi32>
    %253 = arith.cmpi ne, %251, %252 : vector<64x256xi32>
    %c15_i32_138 = arith.constant 15 : i32
    %254 = vector.broadcast %c15_i32_138 : i32 to vector<64x256xi32>
    %255 = arith.cmpi ne, %251, %254 : vector<64x256xi32>
    %256 = vector.extract_strided_slice %248 {offsets = [0, 0], sizes = [64, 256], strides = [1, 1]} : vector<64x290xbf16> to vector<64x256xbf16>
    %cst_139 = arith.constant 0.000000e+00 : bf16
    %257 = vector.broadcast %cst_139 : bf16 to vector<64x256xbf16>
    %258 = arith.select %253, %256, %257 : vector<64x256xi1>, vector<64x256xbf16>
    %259 = vector.extract_strided_slice %248 {offsets = [0, 1], sizes = [64, 256], strides = [1, 1]} : vector<64x290xbf16> to vector<64x256xbf16>
    %260 = vector.extract_strided_slice %248 {offsets = [0, 2], sizes = [64, 256], strides = [1, 1]} : vector<64x290xbf16> to vector<64x256xbf16>
    %cst_140 = arith.constant 0.000000e+00 : bf16
    %261 = vector.broadcast %cst_140 : bf16 to vector<64x256xbf16>
    %262 = arith.select %255, %260, %261 : vector<64x256xi1>, vector<64x256xbf16>
    %263 = vector.extract_strided_slice %248 {offsets = [0, 16], sizes = [64, 256], strides = [1, 1]} : vector<64x290xbf16> to vector<64x256xbf16>
    %cst_141 = arith.constant 0.000000e+00 : bf16
    %264 = vector.broadcast %cst_141 : bf16 to vector<64x256xbf16>
    %265 = arith.select %253, %263, %264 : vector<64x256xi1>, vector<64x256xbf16>
    %266 = vector.extract_strided_slice %248 {offsets = [0, 17], sizes = [64, 256], strides = [1, 1]} : vector<64x290xbf16> to vector<64x256xbf16>
    %267 = vector.extract_strided_slice %248 {offsets = [0, 18], sizes = [64, 256], strides = [1, 1]} : vector<64x290xbf16> to vector<64x256xbf16>
    %cst_142 = arith.constant 0.000000e+00 : bf16
    %268 = vector.broadcast %cst_142 : bf16 to vector<64x256xbf16>
    %269 = arith.select %255, %267, %268 : vector<64x256xi1>, vector<64x256xbf16>
    %270 = vector.extract_strided_slice %248 {offsets = [0, 32], sizes = [64, 256], strides = [1, 1]} : vector<64x290xbf16> to vector<64x256xbf16>
    %cst_143 = arith.constant 0.000000e+00 : bf16
    %271 = vector.broadcast %cst_143 : bf16 to vector<64x256xbf16>
    %272 = arith.select %253, %270, %271 : vector<64x256xi1>, vector<64x256xbf16>
    %273 = vector.extract_strided_slice %248 {offsets = [0, 33], sizes = [64, 256], strides = [1, 1]} : vector<64x290xbf16> to vector<64x256xbf16>
    %274 = vector.extract_strided_slice %248 {offsets = [0, 34], sizes = [64, 256], strides = [1, 1]} : vector<64x290xbf16> to vector<64x256xbf16>
    %cst_144 = arith.constant 0.000000e+00 : bf16
    %275 = vector.broadcast %cst_144 : bf16 to vector<64x256xbf16>
    %276 = arith.select %255, %274, %275 : vector<64x256xi1>, vector<64x256xbf16>
    %277 = tpu.concatenate %258, %259, %262, %265, %266, %269, %272, %273, %276 in 0 : vector<64x256xbf16>, vector<64x256xbf16>, vector<64x256xbf16>, vector<64x256xbf16>, vector<64x256xbf16>, vector<64x256xbf16>, vector<64x256xbf16>, vector<64x256xbf16>, vector<64x256xbf16> -> vector<576x256xbf16>
    %c0_145 = arith.constant 0 : index
    %c0_146 = arith.constant 0 : index
    %278 = vector.load %arg8[%c0_145, %c0_146] : memref<32x576xbf16, #tpu.memory_space<vmem>>, vector<32x576xbf16>
    %cst_147 = arith.constant dense<0.000000e+00> : vector<32x256xf32>
    %279 = tpu.matmul %278, %277, %cst_147 {dimension_numbers = #tpu.dot_dimension_numbers<[1], [0], [0], [1], [0, 0, 1, 1], [], []>} : vector<32x576xbf16>, vector<576x256xbf16>, vector<32x256xf32> -> vector<32x256xf32>
    %c0_148 = arith.constant 0 : index
    %c0_149 = arith.constant 0 : index
    %280 = vector.load %arg16[%c0_148, %c0_149] : memref<32x1xf32, #tpu.memory_space<vmem>>, vector<32x1xf32>
    %281 = vector.broadcast %280 : vector<32x1xf32> to vector<32x256xf32>
    %282 = arith.addf %279, %281 : vector<32x256xf32>
    %cst_150 = arith.constant 0.000000e+00 : f32
    %283 = vector.broadcast %cst_150 : f32 to vector<32x256xf32>
    %284 = arith.maximumf %282, %283 : vector<32x256xf32>
    %285 = arith.truncf %284 : vector<32x256xf32> to vector<32x256xbf16>
    %cst_151 = arith.constant 0.000000e+00 : bf16
    %286 = vector.broadcast %cst_151 : bf16 to vector<32x17xbf16>
    %287 = tpu.concatenate %286, %285, %286 in 1 : vector<32x17xbf16>, vector<32x256xbf16>, vector<32x17xbf16> -> vector<32x290xbf16>
    %288 = tpu.iota {dimensions = array<i32: 1>} : vector<32x256xi32>
    %c15_i32_152 = arith.constant 15 : i32
    %289 = vector.broadcast %c15_i32_152 : i32 to vector<32x256xi32>
    %290 = arith.andi %288, %289 : vector<32x256xi32>
    %c0_i32_153 = arith.constant 0 : i32
    %291 = vector.broadcast %c0_i32_153 : i32 to vector<32x256xi32>
    %292 = arith.cmpi ne, %290, %291 : vector<32x256xi32>
    %c15_i32_154 = arith.constant 15 : i32
    %293 = vector.broadcast %c15_i32_154 : i32 to vector<32x256xi32>
    %294 = arith.cmpi ne, %290, %293 : vector<32x256xi32>
    %295 = vector.extract_strided_slice %287 {offsets = [0, 0], sizes = [32, 256], strides = [1, 1]} : vector<32x290xbf16> to vector<32x256xbf16>
    %cst_155 = arith.constant 0.000000e+00 : bf16
    %296 = vector.broadcast %cst_155 : bf16 to vector<32x256xbf16>
    %297 = arith.select %292, %295, %296 : vector<32x256xi1>, vector<32x256xbf16>
    %298 = vector.extract_strided_slice %287 {offsets = [0, 1], sizes = [32, 256], strides = [1, 1]} : vector<32x290xbf16> to vector<32x256xbf16>
    %299 = vector.extract_strided_slice %287 {offsets = [0, 2], sizes = [32, 256], strides = [1, 1]} : vector<32x290xbf16> to vector<32x256xbf16>
    %cst_156 = arith.constant 0.000000e+00 : bf16
    %300 = vector.broadcast %cst_156 : bf16 to vector<32x256xbf16>
    %301 = arith.select %294, %299, %300 : vector<32x256xi1>, vector<32x256xbf16>
    %302 = vector.extract_strided_slice %287 {offsets = [0, 16], sizes = [32, 256], strides = [1, 1]} : vector<32x290xbf16> to vector<32x256xbf16>
    %cst_157 = arith.constant 0.000000e+00 : bf16
    %303 = vector.broadcast %cst_157 : bf16 to vector<32x256xbf16>
    %304 = arith.select %292, %302, %303 : vector<32x256xi1>, vector<32x256xbf16>
    %305 = vector.extract_strided_slice %287 {offsets = [0, 17], sizes = [32, 256], strides = [1, 1]} : vector<32x290xbf16> to vector<32x256xbf16>
    %306 = vector.extract_strided_slice %287 {offsets = [0, 18], sizes = [32, 256], strides = [1, 1]} : vector<32x290xbf16> to vector<32x256xbf16>
    %cst_158 = arith.constant 0.000000e+00 : bf16
    %307 = vector.broadcast %cst_158 : bf16 to vector<32x256xbf16>
    %308 = arith.select %294, %306, %307 : vector<32x256xi1>, vector<32x256xbf16>
    %309 = vector.extract_strided_slice %287 {offsets = [0, 32], sizes = [32, 256], strides = [1, 1]} : vector<32x290xbf16> to vector<32x256xbf16>
    %cst_159 = arith.constant 0.000000e+00 : bf16
    %310 = vector.broadcast %cst_159 : bf16 to vector<32x256xbf16>
    %311 = arith.select %292, %309, %310 : vector<32x256xi1>, vector<32x256xbf16>
    %312 = vector.extract_strided_slice %287 {offsets = [0, 33], sizes = [32, 256], strides = [1, 1]} : vector<32x290xbf16> to vector<32x256xbf16>
    %313 = vector.extract_strided_slice %287 {offsets = [0, 34], sizes = [32, 256], strides = [1, 1]} : vector<32x290xbf16> to vector<32x256xbf16>
    %cst_160 = arith.constant 0.000000e+00 : bf16
    %314 = vector.broadcast %cst_160 : bf16 to vector<32x256xbf16>
    %315 = arith.select %294, %313, %314 : vector<32x256xi1>, vector<32x256xbf16>
    %316 = tpu.concatenate %297, %298, %301, %304, %305, %308, %311, %312, %315 in 0 : vector<32x256xbf16>, vector<32x256xbf16>, vector<32x256xbf16>, vector<32x256xbf16>, vector<32x256xbf16>, vector<32x256xbf16>, vector<32x256xbf16>, vector<32x256xbf16>, vector<32x256xbf16> -> vector<288x256xbf16>
    %c0_161 = arith.constant 0 : index
    %c0_162 = arith.constant 0 : index
    %317 = vector.load %arg9[%c0_161, %c0_162] : memref<3x288xbf16, #tpu.memory_space<vmem>>, vector<3x288xbf16>
    %cst_163 = arith.constant dense<0.000000e+00> : vector<3x256xf32>
    %318 = tpu.matmul %317, %316, %cst_163 {dimension_numbers = #tpu.dot_dimension_numbers<[1], [0], [0], [1], [0, 0, 1, 1], [], []>} : vector<3x288xbf16>, vector<288x256xbf16>, vector<3x256xf32> -> vector<3x256xf32>
    %c0_164 = arith.constant 0 : index
    %c0_165 = arith.constant 0 : index
    %319 = vector.load %arg17[%c0_164, %c0_165] : memref<3x1xf32, #tpu.memory_space<vmem>>, vector<3x1xf32>
    %320 = vector.broadcast %319 : vector<3x1xf32> to vector<3x256xf32>
    %321 = arith.addf %318, %320 : vector<3x256xf32>
    %cst_166 = arith.constant 0.000000e+00 : f32
    %322 = vector.broadcast %cst_166 : f32 to vector<3x256xf32>
    %323 = arith.subf %322, %321 : vector<3x256xf32>
    %324 = math.exp %323 : vector<3x256xf32>
    %cst_167 = arith.constant 1.000000e+00 : f32
    %325 = vector.broadcast %cst_167 : f32 to vector<3x256xf32>
    %326 = arith.addf %325, %324 : vector<3x256xf32>
    %cst_168 = arith.constant 1.000000e+00 : f32
    %327 = vector.broadcast %cst_168 : f32 to vector<3x256xf32>
    %328 = arith.divf %327, %326 : vector<3x256xf32>
    %c0_169 = arith.constant 0 : index
    %c0_170 = arith.constant 0 : index
    %c0_171 = arith.constant 0 : index
    %329 = vector.load %arg22[%c0_169, %c0_170, %c0_171] : memref<1x3x256xf32, #tpu.memory_space<vmem>>, vector<1x3x256xf32>
    %330 = vector.shape_cast %329 : vector<1x3x256xf32> to vector<3x256xf32>
    %331 = vector.shape_cast %328 : vector<3x256xf32> to vector<1x3x256xf32>
    tpu.vector_store %arg22[%c0_169, %c0_170, %c0_171], %331 {strides = array<i32>} : memref<1x3x256xf32, #tpu.memory_space<vmem>>, vector<1x3x256xf32>,
    return
  }
  func.func @transform_0(%arg0: i32) -> (i32, i32, i32) {
    %c0_i32 = arith.constant 0 : i32
    %c0_i32_0 = arith.constant 0 : i32
    %c0_i32_1 = arith.constant 0 : i32
    return %arg0, %c0_i32, %c0_i32_0 : i32, i32, i32
  }
  func.func @transform_1(%arg0: i32) -> (i32, i32) {
    %c0_i32 = arith.constant 0 : i32
    %c0_i32_0 = arith.constant 0 : i32
    %c0_i32_1 = arith.constant 0 : i32
    return %c0_i32, %c0_i32_0 : i32, i32
  }
  func.func @transform_2(%arg0: i32) -> (i32, i32) {
    %c0_i32 = arith.constant 0 : i32
    %c0_i32_0 = arith.constant 0 : i32
    %c0_i32_1 = arith.constant 0 : i32
    return %c0_i32, %c0_i32_0 : i32, i32
  }
  func.func @transform_3(%arg0: i32) -> (i32, i32) {
    %c0_i32 = arith.constant 0 : i32
    %c0_i32_0 = arith.constant 0 : i32
    %c0_i32_1 = arith.constant 0 : i32
    return %c0_i32, %c0_i32_0 : i32, i32
  }
  func.func @transform_4(%arg0: i32) -> (i32, i32) {
    %c0_i32 = arith.constant 0 : i32
    %c0_i32_0 = arith.constant 0 : i32
    %c0_i32_1 = arith.constant 0 : i32
    return %c0_i32, %c0_i32_0 : i32, i32
  }
  func.func @transform_5(%arg0: i32) -> (i32, i32) {
    %c0_i32 = arith.constant 0 : i32
    %c0_i32_0 = arith.constant 0 : i32
    %c0_i32_1 = arith.constant 0 : i32
    return %c0_i32, %c0_i32_0 : i32, i32
  }
  func.func @transform_6(%arg0: i32) -> (i32, i32) {
    %c0_i32 = arith.constant 0 : i32
    %c0_i32_0 = arith.constant 0 : i32
    %c0_i32_1 = arith.constant 0 : i32
    return %c0_i32, %c0_i32_0 : i32, i32
  }
  func.func @transform_7(%arg0: i32) -> (i32, i32) {
    %c0_i32 = arith.constant 0 : i32
    %c0_i32_0 = arith.constant 0 : i32
    %c0_i32_1 = arith.constant 0 : i32
    return %c0_i32, %c0_i32_0 : i32, i32
  }
  func.func @transform_8(%arg0: i32) -> (i32, i32) {
    %c0_i32 = arith.constant 0 : i32
    %c0_i32_0 = arith.constant 0 : i32
    %c0_i32_1 = arith.constant 0 : i32
    return %c0_i32, %c0_i32_0 : i32, i32
  }
  func.func @transform_9(%arg0: i32) -> (i32, i32) {
    %c0_i32 = arith.constant 0 : i32
    %c0_i32_0 = arith.constant 0 : i32
    %c0_i32_1 = arith.constant 0 : i32
    return %c0_i32, %c0_i32_0 : i32, i32
  }
  func.func @transform_10(%arg0: i32) -> (i32, i32) {
    %c0_i32 = arith.constant 0 : i32
    %c0_i32_0 = arith.constant 0 : i32
    %c0_i32_1 = arith.constant 0 : i32
    return %c0_i32, %c0_i32_0 : i32, i32
  }
  func.func @transform_11(%arg0: i32) -> (i32, i32) {
    %c0_i32 = arith.constant 0 : i32
    %c0_i32_0 = arith.constant 0 : i32
    %c0_i32_1 = arith.constant 0 : i32
    return %c0_i32, %c0_i32_0 : i32, i32
  }
  func.func @transform_12(%arg0: i32) -> (i32, i32) {
    %c0_i32 = arith.constant 0 : i32
    %c0_i32_0 = arith.constant 0 : i32
    %c0_i32_1 = arith.constant 0 : i32
    return %c0_i32, %c0_i32_0 : i32, i32
  }
  func.func @transform_13(%arg0: i32) -> (i32, i32) {
    %c0_i32 = arith.constant 0 : i32
    %c0_i32_0 = arith.constant 0 : i32
    %c0_i32_1 = arith.constant 0 : i32
    return %c0_i32, %c0_i32_0 : i32, i32
  }
  func.func @transform_14(%arg0: i32) -> (i32, i32) {
    %c0_i32 = arith.constant 0 : i32
    %c0_i32_0 = arith.constant 0 : i32
    %c0_i32_1 = arith.constant 0 : i32
    return %c0_i32, %c0_i32_0 : i32, i32
  }
  func.func @transform_15(%arg0: i32) -> (i32, i32) {
    %c0_i32 = arith.constant 0 : i32
    %c0_i32_0 = arith.constant 0 : i32
    %c0_i32_1 = arith.constant 0 : i32
    return %c0_i32, %c0_i32_0 : i32, i32
  }
  func.func @transform_16(%arg0: i32) -> (i32, i32) {
    %c0_i32 = arith.constant 0 : i32
    %c0_i32_0 = arith.constant 0 : i32
    %c0_i32_1 = arith.constant 0 : i32
    return %c0_i32, %c0_i32_0 : i32, i32
  }
  func.func @transform_17(%arg0: i32) -> (i32, i32, i32) {
    %c0_i32 = arith.constant 0 : i32
    %c0_i32_0 = arith.constant 0 : i32
    %c0_i32_1 = arith.constant 0 : i32
    %c0_i32_2 = arith.constant 0 : i32
    return %c0_i32, %c0_i32_0, %c0_i32_1 : i32, i32, i32
  }
  func.func @transform_18(%arg0: i32) -> (i32, i32, i32) {
    %c0_i32 = arith.constant 0 : i32
    %c0_i32_0 = arith.constant 0 : i32
    %c0_i32_1 = arith.constant 0 : i32
    %c0_i32_2 = arith.constant 0 : i32
    return %c0_i32, %c0_i32_0, %c0_i32_1 : i32, i32, i32
  }
  func.func @transform_19(%arg0: i32) -> (i32, i32, i32) {
    %c0_i32 = arith.constant 0 : i32
    %c0_i32_0 = arith.constant 0 : i32
    %c0_i32_1 = arith.constant 0 : i32
    %c0_i32_2 = arith.constant 0 : i32
    return %c0_i32, %c0_i32_0, %c0_i32_1 : i32, i32, i32
  }
  func.func @transform_20(%arg0: i32) -> (i32, i32, i32) {
    %c0_i32 = arith.constant 0 : i32
    %c0_i32_0 = arith.constant 0 : i32
    %c0_i32_1 = arith.constant 0 : i32
    %c0_i32_2 = arith.constant 0 : i32
    return %c0_i32, %c0_i32_0, %c0_i32_1 : i32, i32, i32
  }
  func.func @transform_21(%arg0: i32) -> (i32, i32, i32) {
    %c0_i32 = arith.constant 0 : i32
    %c0_i32_0 = arith.constant 0 : i32
    %c0_i32_1 = arith.constant 0 : i32
    return %arg0, %c0_i32, %c0_i32_0 : i32, i32, i32
  }
}

</mosaic_0001>

<bundles_post_ra>
// kernel: tile.13
= control target key start
LH: loop header
LB: loop body
LE: loop exit
PB: predicated region body
PF: predicated region fallthrough
CT: control target
= control target key end

     0   :  { %s22_s0 = inlined_call_operand.vmem [shape: f32[128], index: 0, kind: input, shape index: {}]   ;;  %s23_s1 = inlined_call_operand.vmem [shape: f32[4,128], index: 1, kind: output, shape index: {}]  }
   0x1   :  { %v4_v0 = vld [vmem:[%s22_s0] ss:$0 sm:$0xff] }
   0x2   :  { %5 = vst [vmem:[%s23_s1] sm:$0xf] %v4_v0 }

// kernel: tile.18
= control target key start
LH: loop header
LB: loop body
LE: loop exit
PB: predicated region body
PF: predicated region fallthrough
CT: control target
= control target key end

     0   :  { %s22_s0 = inlined_call_operand.vmem [shape: f32[64], index: 0, kind: input, shape index: {}]   ;;  %s23_s1 = inlined_call_operand.vmem [shape: f32[4,64], index: 1, kind: output, shape index: {}]  }
   0x1   :  { %v4_v0 = vld [vmem:[%s22_s0] ss:$0 sm:$0xff] }
   0x2   :  { %5 = vst [vmem:[%s23_s1] sm:$0xf] %v4_v0 }

// kernel: tile.0
= control target key start
LH: loop header
LB: loop body
LE: loop exit
PB: predicated region body
PF: predicated region fallthrough
CT: control target
= control target key end

     0   :  { %s1091_s8 = smov 125   ;;  %s1092_s9 = smov 126   ;;  %vm8_vm0 = vcmask 7168   ;;  %s2190_s0 = inlined_call_operand.vmem [shape: f32[4,64], index: 0, kind: input, shape index: {}]   ;;  %s2191_s1 = inlined_call_operand.vmem [shape: f32[256,1], index: 1, kind: output, shape index: {}]  }
   0x1   :  { %v5_v0 = vld [vmem:[%s2190_s0] sm:$0xf]  ;;  %s1090_s0 = smov 127   ;;  %s1093_s10 = smov 124  }
   0x2   :  { %6 = vst [vmem:[#allocation0] sm:$0xf] %v5_v0  ;;  %s1094_s11 = smov 123   ;;  %s1095_s12 = smov 122  }
   0x3   :  { %s1096_s13 = smov 121   ;;  %s1097_s14 = smov 120  }
   0x4   :  { %s1098_s15 = smov 119   ;;  %s1099_s16 = smov 118  }
   0x5   :  { %s1100_s17 = smov 117   ;;  %s1101_s18 = smov 116  }
   0x6   :  { %s1102_s19 = smov 115   ;;  %s1103_s20 = smov 114  }
   0x7   :  { %s1104_s21 = smov 113   ;;  %s1105_s22 = smov 112  }
   0x8   :  { %s1106_s23 = smov 111   ;;  %s1107_s24 = smov 110  }
   0x9   :  { %v16_v1 = vld [vmem:[#allocation0] sm:$0xf]   ;;  %s1108_s25 = smov 109   ;;  %s1109_s26 = smov 108  }
   0xa   :  { %v40_v2 = vld [vmem:[#allocation0] sm:$0xf]   ;;  %17 = vrot.lane.b32.xlu0 %v16_v1, %s1090_s0  ;;  %s1110_s27 = smov 107   ;;  %s1111_s28 = smov 106  }
   0xb   :  { %41 = vrot.lane.b32.xlu1 %v40_v2, %s1091_s8  ;;  %v28_v3 = vld [vmem:[#allocation0] sm:$0xf]   ;;  %s1112_s29 = smov 105   ;;  %s1113_s30 = smov 104  }
   0xc   :  { %v52_v4 = vld [vmem:[#allocation0] sm:$0xf]   ;;  %s1114_s2 = smov 103   ;;  %s1115_s3 = smov 102  }
   0xd   :  { %v64_v5 = vld [vmem:[#allocation0] sm:$0xf]   ;;  %s1116_s4 = smov 101   ;;  %s1117_s5 = smov 100  }
   0xe   :  { %29 = vrot.lane.b32.xlu0 %v28_v3, %s1092_s9  ;;  %v76_v6 = vld [vmem:[#allocation0] sm:$0xf]   ;;  %s1118_s6 = smov 99   ;;  %s1119_s7 = smov 98  }
   0xf   :  { %53 = vrot.lane.b32.xlu1 %v52_v4, %s1093_s10  ;;  %v88_v7 = vld [vmem:[#allocation0] sm:$0xf]   ;;  %s1120_s0 = smov 97   ;;  %s1121_s8 = smov 96  }
  0x10   :  { %v100_v8 = vld [vmem:[#allocation0] sm:$0xf]   ;;  %s1122_s9 = smov 95   ;;  %s1123_s10 = smov 94  }
  0x11   :  { %v112_v9 = vld [vmem:[#allocation0] sm:$0xf]  }
  0x12   :  { %65 = vrot.lane.b32.xlu0 %v64_v5, %s1094_s11  ;;  %v124_v10 = vld [vmem:[#allocation0] sm:$0xf]   ;;  %s1124_s11 = smov 93  }
  0x13   :  { %77 = vrot.lane.b32.xlu1 %v76_v6, %s1095_s12  ;;  %v136_v11 = vld [vmem:[#allocation0] sm:$0xf]   ;;  %s1125_s12 = smov 92  }
  0x14   :  { %v148_v12 = vld [vmem:[#allocation0] sm:$0xf]  }
  0x15   :  { %v160_v13 = vld [vmem:[#allocation0] sm:$0xf]  }
  0x16   :  { %89 = vrot.lane.b32.xlu0 %v88_v7, %s1096_s13  ;;  %v172_v14 = vld [vmem:[#allocation0] sm:$0xf]   ;;  %s1126_s13 = smov 91  }
  0x17   :  { %101 = vrot.lane.b32.xlu1 %v100_v8, %s1097_s14  ;;  %v184_v15 = vld [vmem:[#allocation0] sm:$0xf]   ;;  %s1127_s14 = smov 90  }
  0x18   :  { %v196_v16 = vld [vmem:[#allocation0] sm:$0xf]  }
  0x19   :  { %v208_v17 = vld [vmem:[#allocation0] sm:$0xf]  }
  0x1a   :  { %113 = vrot.lane.b32.xlu0 %v112_v9, %s1098_s15  ;;  %v220_v18 = vld [vmem:[#allocation0] sm:$0xf]   ;;  %s1128_s15 = smov 89  }
  0x1b   :  { %125 = vrot.lane.b32.xlu1 %v124_v10, %s1099_s16  ;;  %v232_v19 = vld [vmem:[#allocation0] sm:$0xf]   ;;  %s1129_s16 = smov 88  }
  0x1c   :  { %v244_v20 = vld [vmem:[#allocation0] sm:$0xf]  }
  0x1d   :  { %v256_v21 = vld [vmem:[#allocation0] sm:$0xf]  }
  0x1e   :  { %137 = vrot.lane.b32.xlu0 %v136_v11, %s1100_s17  ;;  %v268_v22 = vld [vmem:[#allocation0] sm:$0xf]   ;;  %s1130_s17 = smov 87  }
  0x1f   :  { %149 = vrot.lane.b32.xlu1 %v148_v12, %s1101_s18  ;;  %v280_v23 = vld [vmem:[#allocation0] sm:$0xf]   ;;  %s1131_s18 = smov 86  }
  0x20   :  { %v292_v24 = vld [vmem:[#allocation0] sm:$0xf]  }
  0x21   :  { %v304_v25 = vld [vmem:[#allocation0] sm:$0xf]  }
  0x22   :  { %161 = vrot.lane.b32.xlu0 %v160_v13, %s1102_s19  ;;  %v316_v26 = vld [vmem:[#allocation0] sm:$0xf]   ;;  %s1132_s19 = smov 85  }
  0x23   :  { %173 = vrot.lane.b32.xlu1 %v172_v14, %s1103_s20  ;;  %v328_v27 = vld [vmem:[#allocation0] sm:$0xf]   ;;  %s1133_s20 = smov 84  }
  0x24   :  { %v340_v28 = vld [vmem:[#allocation0] sm:$0xf]  }
  0x25   :  { %v352_v29 = vld [vmem:[#allocation0] sm:$0xf]  }
  0x26   :  { %185 = vrot.lane.b32.xlu0 %v184_v15, %s1104_s21  ;;  %v364_v30 = vld [vmem:[#allocation0] sm:$0xf]   ;;  %s1134_s21 = smov 83  }
  0x27   :  { %197 = vrot.lane.b32.xlu1 %v196_v16, %s1105_s22  ;;  %v376_v31 = vld [vmem:[#allocation0] sm:$0xf]   ;;  %s1135_s22 = smov 82  }
  0x28   :  { %v388_v32 = vld [vmem:[#allocation0] sm:$0xf]  }
  0x29   :  { %v400_v33 = vld [vmem:[#allocation0] sm:$0xf]  }
  0x2a   :  { %209 = vrot.lane.b32.xlu0 %v208_v17, %s1106_s23  ;;  %v412_v34 = vld [vmem:[#allocation0] sm:$0xf]   ;;  %s1136_s23 = smov 81  }
  0x2b   :  { %221 = vrot.lane.b32.xlu1 %v220_v18, %s1107_s24  ;;  %v424_v35 = vld [vmem:[#allocation0] sm:$0xf]   ;;  %s1137_s24 = smov 80  }
  0x2c   :  { %v436_v36 = vld [vmem:[#allocation0] sm:$0xf]  }
  0x2d   :  { %v448_v37 = vld [vmem:[#allocation0] sm:$0xf]  }
  0x2e   :  { %233 = vrot.lane.b32.xlu0 %v232_v19, %s1108_s25  ;;  %v460_v38 = vld [vmem:[#allocation0] sm:$0xf]   ;;  %s1138_s25 = smov 79  }
  0x2f   :  { %245 = vrot.lane.b32.xlu1 %v244_v20, %s1109_s26  ;;  %v472_v39 = vld [vmem:[#allocation0] sm:$0xf]   ;;  %s1139_s26 = smov 78  }
  0x30   :  { %v484_v40 = vld [vmem:[#allocation0] sm:$0xf]  }
  0x31   :  { %v496_v41 = vld [vmem:[#allocation0] sm:$0xf]  }
  0x32   :  { %257 = vrot.lane.b32.xlu0 %v256_v21, %s1110_s27  ;;  %v508_v42 = vld [vmem:[#allocation0] sm:$0xf]   ;;  %s1140_s27 = smov 77  }
  0x33   :  { %269 = vrot.lane.b32.xlu1 %v268_v22, %s1111_s28  ;;  %v520_v43 = vld [vmem:[#allocation0] sm:$0xf]   ;;  %s1141_s28 = smov 76  }
  0x34   :  { %v532_v44 = vld [vmem:[#allocation0] sm:$0xf]  }
  0x35   :  { %v544_v45 = vld [vmem:[#allocation0] sm:$0xf]  }
  0x36   :  { %281 = vrot.lane.b32.xlu0 %v280_v23, %s1112_s29  ;;  %v556_v46 = vld [vmem:[#allocation0] sm:$0xf]   ;;  %s1142_s29 = smov 75  }
  0x37   :  { %293 = vrot.lane.b32.xlu1 %v292_v24, %s1113_s30  ;;  %v568_v47 = vld [vmem:[#allocation0] sm:$0xf]   ;;  %s1143_s30 = smov 74  }
  0x38   :  { %v580_v48 = vld [vmem:[#allocation0] sm:$0xf]  }
  0x39   :  { %v592_v49 = vld [vmem:[#allocation0] sm:$0xf]  }
  0x3a   :  { %305 = vrot.lane.b32.xlu0 %v304_v25, %s1114_s2  ;;  %v604_v50 = vld [vmem:[#allocation0] sm:$0xf]   ;;  %s1144_s2 = smov 73  }
  0x3b   :  { %317 = vrot.lane.b32.xlu1 %v316_v26, %s1115_s3  ;;  %v616_v51 = vld [vmem:[#allocation0] sm:$0xf]   ;;  %s1145_s3 = smov 72  }
  0x3c   :  { %v628_v52 = vld [vmem:[#allocation0] sm:$0xf]  }
  0x3d   :  { %v640_v53 = vld [vmem:[#allocation0] sm:$0xf]  }
  0x3e   :  { %329 = vrot.lane.b32.xlu0 %v328_v27, %s1116_s4  ;;  %v652_v54 = vld [vmem:[#allocation0] sm:$0xf]  }
  0x3f   :  { %341 = vrot.lane.b32.xlu1 %v340_v28, %s1117_s5  ;;  %v664_v55 = vld [vmem:[#allocation0] sm:$0xf]  }
  0x40   :  { %v676_v56 = vld [vmem:[#allocation0] sm:$0xf]  }
  0x41   :  { %v688_v57 = vld [vmem:[#allocation0] sm:$0xf]  }
  0x42   :  { %353 = vrot.lane.b32.xlu0 %v352_v29, %s1118_s6  ;;  %v700_v58 = vld [vmem:[#allocation0] sm:$0xf]   ;;  %s1152_s6 = smov 65  }
  0x43   :  { %365 = vrot.lane.b32.xlu1 %v364_v30, %s1119_s7  ;;  %v7_v59 = vld [vmem:[#allocation0] sm:$0xf]  }
  0x44   :  { %9 = vst.msk [vmem:[%s2191_s1] sm:$0x1] %vm8_vm0, %v7_v59   ;;  %772 = vst.msk [vmem:[%s2191_s1 + $0x3f] sm:$0x2] %vm8_vm0, %v7_v59   ;;  %v712_v60 = vld [vmem:[#allocation0] sm:$0xf]  }
  0x45   :  { %773 = vst.msk [vmem:[%s2191_s1 + $0x7e] sm:$0x4] %vm8_vm0, %v7_v59   ;;  %774 = vst.msk [vmem:[%s2191_s1 + $0xbd] sm:$0x8] %vm8_vm0, %v7_v59   ;;  %v724_v61 = vld [vmem:[#allocation0] sm:$0xf]  }
  0x46   :  { %377 = vrot.lane.b32.xlu0 %v376_v31, %s1120_s0  ;;  %v736_v0 = vld [vmem:[#allocation0] sm:$0xf]  }
  0x47   :  { %389 = vrot.lane.b32.xlu1 %v388_v32, %s1121_s8  ;;  %v748_v1 = vld [vmem:[#allocation0] sm:$0xf]  }
  0x48   :  { %v760_v4 = vld [vmem:[#allocation0] sm:$0xf]  }
  0x4a   :  { %401 = vrot.lane.b32.xlu0 %v400_v33, %s1122_s9 }
  0x4b   :  { %413 = vrot.lane.b32.xlu1 %v412_v34, %s1123_s10 }
  0x4e   :  { %425 = vrot.lane.b32.xlu0 %v424_v35, %s1124_s11  ;;  %s1146_s11 = smov 71  }
  0x4f   :  { %437 = vrot.lane.b32.xlu1 %v436_v36, %s1125_s12  ;;  %s1147_s12 = smov 70  }
  0x52   :  { %449 = vrot.lane.b32.xlu0 %v448_v37, %s1126_s13 }
  0x53   :  { %461 = vrot.lane.b32.xlu1 %v460_v38, %s1127_s14 }
  0x56   :  { %473 = vrot.lane.b32.xlu0 %v472_v39, %s1128_s15 }
  0x57   :  { %485 = vrot.lane.b32.xlu1 %v484_v40, %s1129_s16 }
  0x5a   :  { %497 = vrot.lane.b32.xlu0 %v496_v41, %s1130_s17  ;;  %s1150_s17 = smov 67  }
  0x5b   :  { %509 = vrot.lane.b32.xlu1 %v508_v42, %s1131_s18  ;;  %s1151_s18 = smov 66  }
  0x5e   :  { %521 = vrot.lane.b32.xlu0 %v520_v43, %s1132_s19 }
  0x5f   :  { %533 = vrot.lane.b32.xlu1 %v532_v44, %s1133_s20 }
  0x62   :  { %545 = vrot.lane.b32.xlu0 %v544_v45, %s1134_s21 }
  0x63   :  { %557 = vrot.lane.b32.xlu1 %v556_v46, %s1135_s22 }
  0x66   :  { %569 = vrot.lane.b32.xlu0 %v568_v47, %s1136_s23 }
  0x67   :  { %581 = vrot.lane.b32.xlu1 %v580_v48, %s1137_s24 }
  0x6a   :  { %593 = vrot.lane.b32.xlu0 %v592_v49, %s1138_s25 }
  0x6b   :  { %605 = vrot.lane.b32.xlu1 %v604_v50, %s1139_s26 }
  0x6e   :  { %617 = vrot.lane.b32.xlu0 %v616_v51, %s1140_s27 }
  0x6f   :  { %629 = vrot.lane.b32.xlu1 %v628_v52, %s1141_s28 }
  0x72   :  { %641 = vrot.lane.b32.xlu0 %v640_v53, %s1142_s29  ;;  %s1148_s29 = smov 69  }
  0x73   :  { %653 = vrot.lane.b32.xlu1 %v652_v54, %s1143_s30  ;;  %s1149_s30 = smov 68  }
  0x76   :  { %665 = vrot.lane.b32.xlu0 %v664_v55, %s1144_s2 }
  0x77   :  { %677 = vrot.lane.b32.xlu1 %v676_v56, %s1145_s3 }
  0x7a   :  { %689 = vrot.lane.b32.xlu0 %v688_v57, %s1146_s11 }
  0x7b   :  { %701 = vrot.lane.b32.xlu1 %v700_v58, %s1147_s12 }
  0x7c   :  { %v18_v62 = vpop.permute.xlu0 %17  }
  0x7d   :  { %v42_v63 = vpop.permute.xlu1 %41   ;;  %775 = vst.msk [vmem:[%s2191_s1 + $0x1] sm:$0x1] %vm8_vm0, %v18_v62   ;;  %776 = vst.msk [vmem:[%s2191_s1 + $0x40] sm:$0x2] %vm8_vm0, %v18_v62  }
  0x7e   :  { %777 = vst.msk [vmem:[%s2191_s1 + $0x7f] sm:$0x4] %vm8_vm0, %v18_v62   ;;  %778 = vst.msk [vmem:[%s2191_s1 + $0xbe] sm:$0x8] %vm8_vm0, %v18_v62   ;;  %713 = vrot.lane.b32.xlu0 %v712_v60, %s1148_s29 }
  0x7f   :  { %783 = vst.msk [vmem:[%s2191_s1 + $0x3] sm:$0x1] %vm8_vm0, %v42_v63   ;;  %784 = vst.msk [vmem:[%s2191_s1 + $0x42] sm:$0x2] %vm8_vm0, %v42_v63   ;;  %725 = vrot.lane.b32.xlu1 %v724_v61, %s1149_s30 }
  0x80   :  { %785 = vst.msk [vmem:[%s2191_s1 + $0x81] sm:$0x4] %vm8_vm0, %v42_v63   ;;  %786 = vst.msk [vmem:[%s2191_s1 + $0xc0] sm:$0x8] %vm8_vm0, %v42_v63   ;;  %v30_v2 = vpop.permute.xlu0 %29  }
  0x81   :  { %v54_v3 = vpop.permute.xlu1 %53   ;;  %779 = vst.msk [vmem:[%s2191_s1 + $0x2] sm:$0x1] %vm8_vm0, %v30_v2   ;;  %780 = vst.msk [vmem:[%s2191_s1 + $0x41] sm:$0x2] %vm8_vm0, %v30_v2  }
  0x82   :  { %781 = vst.msk [vmem:[%s2191_s1 + $0x80] sm:$0x4] %vm8_vm0, %v30_v2   ;;  %782 = vst.msk [vmem:[%s2191_s1 + $0xbf] sm:$0x8] %vm8_vm0, %v30_v2   ;;  %737 = vrot.lane.b32.xlu0 %v736_v0, %s1150_s17 }
  0x83   :  { %787 = vst.msk [vmem:[%s2191_s1 + $0x4] sm:$0x1] %vm8_vm0, %v54_v3   ;;  %788 = vst.msk [vmem:[%s2191_s1 + $0x43] sm:$0x2] %vm8_vm0, %v54_v3   ;;  %749 = vrot.lane.b32.xlu1 %v748_v1, %s1151_s18 }
  0x84   :  { %789 = vst.msk [vmem:[%s2191_s1 + $0x82] sm:$0x4] %vm8_vm0, %v54_v3   ;;  %790 = vst.msk [vmem:[%s2191_s1 + $0xc1] sm:$0x8] %vm8_vm0, %v54_v3   ;;  %v66_v5 = vpop.permute.xlu0 %65  }
  0x85   :  { %v78_v6 = vpop.permute.xlu1 %77   ;;  %791 = vst.msk [vmem:[%s2191_s1 + $0x5] sm:$0x1] %vm8_vm0, %v66_v5   ;;  %792 = vst.msk [vmem:[%s2191_s1 + $0x44] sm:$0x2] %vm8_vm0, %v66_v5  }
  0x86   :  { %793 = vst.msk [vmem:[%s2191_s1 + $0x83] sm:$0x4] %vm8_vm0, %v66_v5   ;;  %794 = vst.msk [vmem:[%s2191_s1 + $0xc2] sm:$0x8] %vm8_vm0, %v66_v5   ;;  %761 = vrot.lane.b32.xlu0 %v760_v4, %s1152_s6 }
  0x87   :  { %795 = vst.msk [vmem:[%s2191_s1 + $0x6] sm:$0x1] %vm8_vm0, %v78_v6   ;;  %796 = vst.msk [vmem:[%s2191_s1 + $0x45] sm:$0x2] %vm8_vm0, %v78_v6  }
  0x88   :  { %797 = vst.msk [vmem:[%s2191_s1 + $0x84] sm:$0x4] %vm8_vm0, %v78_v6   ;;  %798 = vst.msk [vmem:[%s2191_s1 + $0xc3] sm:$0x8] %vm8_vm0, %v78_v6   ;;  %v90_v7 = vpop.permute.xlu0 %89  }
  0x89   :  { %v102_v8 = vpop.permute.xlu1 %101   ;;  %799 = vst.msk [vmem:[%s2191_s1 + $0x7] sm:$0x1] %vm8_vm0, %v90_v7   ;;  %800 = vst.msk [vmem:[%s2191_s1 + $0x46] sm:$0x2] %vm8_vm0, %v90_v7  }
  0x8a   :  { %801 = vst.msk [vmem:[%s2191_s1 + $0x85] sm:$0x4] %vm8_vm0, %v90_v7   ;;  %802 = vst.msk [vmem:[%s2191_s1 + $0xc4] sm:$0x8] %vm8_vm0, %v90_v7  }
  0x8b   :  { %803 = vst.msk [vmem:[%s2191_s1 + $0x8] sm:$0x1] %vm8_vm0, %v102_v8   ;;  %804 = vst.msk [vmem:[%s2191_s1 + $0x47] sm:$0x2] %vm8_vm0, %v102_v8  }
  0x8c   :  { %805 = vst.msk [vmem:[%s2191_s1 + $0x86] sm:$0x4] %vm8_vm0, %v102_v8   ;;  %806 = vst.msk [vmem:[%s2191_s1 + $0xc5] sm:$0x8] %vm8_vm0, %v102_v8   ;;  %v114_v9 = vpop.permute.xlu0 %113  }
  0x8d   :  { %v126_v10 = vpop.permute.xlu1 %125   ;;  %807 = vst.msk [vmem:[%s2191_s1 + $0x9] sm:$0x1] %vm8_vm0, %v114_v9   ;;  %808 = vst.msk [vmem:[%s2191_s1 + $0x48] sm:$0x2] %vm8_vm0, %v114_v9  }
  0x8e   :  { %809 = vst.msk [vmem:[%s2191_s1 + $0x87] sm:$0x4] %vm8_vm0, %v114_v9   ;;  %810 = vst.msk [vmem:[%s2191_s1 + $0xc6] sm:$0x8] %vm8_vm0, %v114_v9  }
  0x8f   :  { %811 = vst.msk [vmem:[%s2191_s1 + $0xa] sm:$0x1] %vm8_vm0, %v126_v10   ;;  %812 = vst.msk [vmem:[%s2191_s1 + $0x49] sm:$0x2] %vm8_vm0, %v126_v10  }
  0x90   :  { %813 = vst.msk [vmem:[%s2191_s1 + $0x88] sm:$0x4] %vm8_vm0, %v126_v10   ;;  %814 = vst.msk [vmem:[%s2191_s1 + $0xc7] sm:$0x8] %vm8_vm0, %v126_v10   ;;  %v138_v11 = vpop.permute.xlu0 %137  }
  0x91   :  { %v150_v12 = vpop.permute.xlu1 %149   ;;  %815 = vst.msk [vmem:[%s2191_s1 + $0xb] sm:$0x1] %vm8_vm0, %v138_v11   ;;  %816 = vst.msk [vmem:[%s2191_s1 + $0x4a] sm:$0x2] %vm8_vm0, %v138_v11  }
  0x92   :  { %817 = vst.msk [vmem:[%s2191_s1 + $0x89] sm:$0x4] %vm8_vm0, %v138_v11   ;;  %818 = vst.msk [vmem:[%s2191_s1 + $0xc8] sm:$0x8] %vm8_vm0, %v138_v11  }
  0x93   :  { %819 = vst.msk [vmem:[%s2191_s1 + $0xc] sm:$0x1] %vm8_vm0, %v150_v12   ;;  %820 = vst.msk [vmem:[%s2191_s1 + $0x4b] sm:$0x2] %vm8_vm0, %v150_v12  }
  0x94   :  { %821 = vst.msk [vmem:[%s2191_s1 + $0x8a] sm:$0x4] %vm8_vm0, %v150_v12   ;;  %822 = vst.msk [vmem:[%s2191_s1 + $0xc9] sm:$0x8] %vm8_vm0, %v150_v12   ;;  %v162_v13 = vpop.permute.xlu0 %161  }
  0x95   :  { %v174_v14 = vpop.permute.xlu1 %173   ;;  %823 = vst.msk [vmem:[%s2191_s1 + $0xd] sm:$0x1] %vm8_vm0, %v162_v13   ;;  %824 = vst.msk [vmem:[%s2191_s1 + $0x4c] sm:$0x2] %vm8_vm0, %v162_v13  }
  0x96   :  { %825 = vst.msk [vmem:[%s2191_s1 + $0x8b] sm:$0x4] %vm8_vm0, %v162_v13   ;;  %826 = vst.msk [vmem:[%s2191_s1 + $0xca] sm:$0x8] %vm8_vm0, %v162_v13  }
  0x97   :  { %827 = vst.msk [vmem:[%s2191_s1 + $0xe] sm:$0x1] %vm8_vm0, %v174_v14   ;;  %828 = vst.msk [vmem:[%s2191_s1 + $0x4d] sm:$0x2] %vm8_vm0, %v174_v14  }
  0x98   :  { %829 = vst.msk [vmem:[%s2191_s1 + $0x8c] sm:$0x4] %vm8_vm0, %v174_v14   ;;  %830 = vst.msk [vmem:[%s2191_s1 + $0xcb] sm:$0x8] %vm8_vm0, %v174_v14   ;;  %v186_v15 = vpop.permute.xlu0 %185  }
  0x99   :  { %v198_v16 = vpop.permute.xlu1 %197   ;;  %831 = vst.msk [vmem:[%s2191_s1 + $0xf] sm:$0x1] %vm8_vm0, %v186_v15   ;;  %832 = vst.msk [vmem:[%s2191_s1 + $0x4e] sm:$0x2] %vm8_vm0, %v186_v15  }
  0x9a   :  { %833 = vst.msk [vmem:[%s2191_s1 + $0x8d] sm:$0x4] %vm8_vm0, %v186_v15   ;;  %834 = vst.msk [vmem:[%s2191_s1 + $0xcc] sm:$0x8] %vm8_vm0, %v186_v15  }
  0x9b   :  { %835 = vst.msk [vmem:[%s2191_s1 + $0x10] sm:$0x1] %vm8_vm0, %v198_v16   ;;  %836 = vst.msk [vmem:[%s2191_s1 + $0x4f] sm:$0x2] %vm8_vm0, %v198_v16  }
  0x9c   :  { %837 = vst.msk [vmem:[%s2191_s1 + $0x8e] sm:$0x4] %vm8_vm0, %v198_v16   ;;  %838 = vst.msk [vmem:[%s2191_s1 + $0xcd] sm:$0x8] %vm8_vm0, %v198_v16   ;;  %v210_v17 = vpop.permute.xlu0 %209  }
  0x9d   :  { %v222_v18 = vpop.permute.xlu1 %221   ;;  %839 = vst.msk [vmem:[%s2191_s1 + $0x11] sm:$0x1] %vm8_vm0, %v210_v17   ;;  %840 = vst.msk [vmem:[%s2191_s1 + $0x50] sm:$0x2] %vm8_vm0, %v210_v17  }
  0x9e   :  { %841 = vst.msk [vmem:[%s2191_s1 + $0x8f] sm:$0x4] %vm8_vm0, %v210_v17   ;;  %842 = vst.msk [vmem:[%s2191_s1 + $0xce] sm:$0x8] %vm8_vm0, %v210_v17  }
  0x9f   :  { %843 = vst.msk [vmem:[%s2191_s1 + $0x12] sm:$0x1] %vm8_vm0, %v222_v18   ;;  %844 = vst.msk [vmem:[%s2191_s1 + $0x51] sm:$0x2] %vm8_vm0, %v222_v18  }
  0xa0   :  { %845 = vst.msk [vmem:[%s2191_s1 + $0x90] sm:$0x4] %vm8_vm0, %v222_v18   ;;  %846 = vst.msk [vmem:[%s2191_s1 + $0xcf] sm:$0x8] %vm8_vm0, %v222_v18   ;;  %v234_v19 = vpop.permute.xlu0 %233  }
  0xa1   :  { %v246_v20 = vpop.permute.xlu1 %245   ;;  %847 = vst.msk [vmem:[%s2191_s1 + $0x13] sm:$0x1] %vm8_vm0, %v234_v19   ;;  %848 = vst.msk [vmem:[%s2191_s1 + $0x52] sm:$0x2] %vm8_vm0, %v234_v19  }
  0xa2   :  { %849 = vst.msk [vmem:[%s2191_s1 + $0x91] sm:$0x4] %vm8_vm0, %v234_v19   ;;  %850 = vst.msk [vmem:[%s2191_s1 + $0xd0] sm:$0x8] %vm8_vm0, %v234_v19  }
  0xa3   :  { %851 = vst.msk [vmem:[%s2191_s1 + $0x14] sm:$0x1] %vm8_vm0, %v246_v20   ;;  %852 = vst.msk [vmem:[%s2191_s1 + $0x53] sm:$0x2] %vm8_vm0, %v246_v20  }
  0xa4   :  { %853 = vst.msk [vmem:[%s2191_s1 + $0x92] sm:$0x4] %vm8_vm0, %v246_v20   ;;  %854 = vst.msk [vmem:[%s2191_s1 + $0xd1] sm:$0x8] %vm8_vm0, %v246_v20   ;;  %v258_v21 = vpop.permute.xlu0 %257  }
  0xa5   :  { %v270_v22 = vpop.permute.xlu1 %269   ;;  %855 = vst.msk [vmem:[%s2191_s1 + $0x15] sm:$0x1] %vm8_vm0, %v258_v21   ;;  %856 = vst.msk [vmem:[%s2191_s1 + $0x54] sm:$0x2] %vm8_vm0, %v258_v21  }
  0xa6   :  { %857 = vst.msk [vmem:[%s2191_s1 + $0x93] sm:$0x4] %vm8_vm0, %v258_v21   ;;  %858 = vst.msk [vmem:[%s2191_s1 + $0xd2] sm:$0x8] %vm8_vm0, %v258_v21  }
  0xa7   :  { %859 = vst.msk [vmem:[%s2191_s1 + $0x16] sm:$0x1] %vm8_vm0, %v270_v22   ;;  %860 = vst.msk [vmem:[%s2191_s1 + $0x55] sm:$0x2] %vm8_vm0, %v270_v22  }
  0xa8   :  { %861 = vst.msk [vmem:[%s2191_s1 + $0x94] sm:$0x4] %vm8_vm0, %v270_v22   ;;  %862 = vst.msk [vmem:[%s2191_s1 + $0xd3] sm:$0x8] %vm8_vm0, %v270_v22   ;;  %v282_v23 = vpop.permute.xlu0 %281  }
  0xa9   :  { %v294_v24 = vpop.permute.xlu1 %293   ;;  %863 = vst.msk [vmem:[%s2191_s1 + $0x17] sm:$0x1] %vm8_vm0, %v282_v23   ;;  %864 = vst.msk [vmem:[%s2191_s1 + $0x56] sm:$0x2] %vm8_vm0, %v282_v23  }
  0xaa   :  { %865 = vst.msk [vmem:[%s2191_s1 + $0x95] sm:$0x4] %vm8_vm0, %v282_v23   ;;  %866 = vst.msk [vmem:[%s2191_s1 + $0xd4] sm:$0x8] %vm8_vm0, %v282_v23  }
  0xab   :  { %867 = vst.msk [vmem:[%s2191_s1 + $0x18] sm:$0x1] %vm8_vm0, %v294_v24   ;;  %868 = vst.msk [vmem:[%s2191_s1 + $0x57] sm:$0x2] %vm8_vm0, %v294_v24  }
  0xac   :  { %869 = vst.msk [vmem:[%s2191_s1 + $0x96] sm:$0x4] %vm8_vm0, %v294_v24   ;;  %870 = vst.msk [vmem:[%s2191_s1 + $0xd5] sm:$0x8] %vm8_vm0, %v294_v24   ;;  %v306_v25 = vpop.permute.xlu0 %305  }
  0xad   :  { %v318_v26 = vpop.permute.xlu1 %317   ;;  %871 = vst.msk [vmem:[%s2191_s1 + $0x19] sm:$0x1] %vm8_vm0, %v306_v25   ;;  %872 = vst.msk [vmem:[%s2191_s1 + $0x58] sm:$0x2] %vm8_vm0, %v306_v25  }
  0xae   :  { %873 = vst.msk [vmem:[%s2191_s1 + $0x97] sm:$0x4] %vm8_vm0, %v306_v25   ;;  %874 = vst.msk [vmem:[%s2191_s1 + $0xd6] sm:$0x8] %vm8_vm0, %v306_v25  }
  0xaf   :  { %875 = vst.msk [vmem:[%s2191_s1 + $0x1a] sm:$0x1] %vm8_vm0, %v318_v26   ;;  %876 = vst.msk [vmem:[%s2191_s1 + $0x59] sm:$0x2] %vm8_vm0, %v318_v26  }
  0xb0   :  { %877 = vst.msk [vmem:[%s2191_s1 + $0x98] sm:$0x4] %vm8_vm0, %v318_v26   ;;  %878 = vst.msk [vmem:[%s2191_s1 + $0xd7] sm:$0x8] %vm8_vm0, %v318_v26   ;;  %v330_v27 = vpop.permute.xlu0 %329  }
  0xb1   :  { %v342_v28 = vpop.permute.xlu1 %341   ;;  %879 = vst.msk [vmem:[%s2191_s1 + $0x1b] sm:$0x1] %vm8_vm0, %v330_v27   ;;  %880 = vst.msk [vmem:[%s2191_s1 + $0x5a] sm:$0x2] %vm8_vm0, %v330_v27  }
  0xb2   :  { %881 = vst.msk [vmem:[%s2191_s1 + $0x99] sm:$0x4] %vm8_vm0, %v330_v27   ;;  %882 = vst.msk [vmem:[%s2191_s1 + $0xd8] sm:$0x8] %vm8_vm0, %v330_v27  }
  0xb3   :  { %883 = vst.msk [vmem:[%s2191_s1 + $0x1c] sm:$0x1] %vm8_vm0, %v342_v28   ;;  %884 = vst.msk [vmem:[%s2191_s1 + $0x5b] sm:$0x2] %vm8_vm0, %v342_v28  }
  0xb4   :  { %885 = vst.msk [vmem:[%s2191_s1 + $0x9a] sm:$0x4] %vm8_vm0, %v342_v28   ;;  %886 = vst.msk [vmem:[%s2191_s1 + $0xd9] sm:$0x8] %vm8_vm0, %v342_v28   ;;  %v354_v29 = vpop.permute.xlu0 %353  }
  0xb5   :  { %v366_v30 = vpop.permute.xlu1 %365   ;;  %887 = vst.msk [vmem:[%s2191_s1 + $0x1d] sm:$0x1] %vm8_vm0, %v354_v29   ;;  %888 = vst.msk [vmem:[%s2191_s1 + $0x5c] sm:$0x2] %vm8_vm0, %v354_v29  }
  0xb6   :  { %889 = vst.msk [vmem:[%s2191_s1 + $0x9b] sm:$0x4] %vm8_vm0, %v354_v29   ;;  %890 = vst.msk [vmem:[%s2191_s1 + $0xda] sm:$0x8] %vm8_vm0, %v354_v29  }
  0xb7   :  { %891 = vst.msk [vmem:[%s2191_s1 + $0x1e] sm:$0x1] %vm8_vm0, %v366_v30   ;;  %892 = vst.msk [vmem:[%s2191_s1 + $0x5d] sm:$0x2] %vm8_vm0, %v366_v30  }
  0xb8   :  { %893 = vst.msk [vmem:[%s2191_s1 + $0x9c] sm:$0x4] %vm8_vm0, %v366_v30   ;;  %894 = vst.msk [vmem:[%s2191_s1 + $0xdb] sm:$0x8] %vm8_vm0, %v366_v30   ;;  %v378_v31 = vpop.permute.xlu0 %377  }
  0xb9   :  { %v390_v32 = vpop.permute.xlu1 %389   ;;  %895 = vst.msk [vmem:[%s2191_s1 + $0x1f] sm:$0x1] %vm8_vm0, %v378_v31   ;;  %896 = vst.msk [vmem:[%s2191_s1 + $0x5e] sm:$0x2] %vm8_vm0, %v378_v31  }
  0xba   :  { %897 = vst.msk [vmem:[%s2191_s1 + $0x9d] sm:$0x4] %vm8_vm0, %v378_v31   ;;  %898 = vst.msk [vmem:[%s2191_s1 + $0xdc] sm:$0x8] %vm8_vm0, %v378_v31  }
  0xbb   :  { %899 = vst.msk [vmem:[%s2191_s1 + $0x20] sm:$0x1] %vm8_vm0, %v390_v32   ;;  %900 = vst.msk [vmem:[%s2191_s1 + $0x5f] sm:$0x2] %vm8_vm0, %v390_v32  }
  0xbc   :  { %901 = vst.msk [vmem:[%s2191_s1 + $0x9e] sm:$0x4] %vm8_vm0, %v390_v32   ;;  %902 = vst.msk [vmem:[%s2191_s1 + $0xdd] sm:$0x8] %vm8_vm0, %v390_v32   ;;  %v402_v33 = vpop.permute.xlu0 %401  }
  0xbd   :  { %v414_v34 = vpop.permute.xlu1 %413   ;;  %903 = vst.msk [vmem:[%s2191_s1 + $0x21] sm:$0x1] %vm8_vm0, %v402_v33   ;;  %904 = vst.msk [vmem:[%s2191_s1 + $0x60] sm:$0x2] %vm8_vm0, %v402_v33  }
  0xbe   :  { %905 = vst.msk [vmem:[%s2191_s1 + $0x9f] sm:$0x4] %vm8_vm0, %v402_v33   ;;  %906 = vst.msk [vmem:[%s2191_s1 + $0xde] sm:$0x8] %vm8_vm0, %v402_v33  }
  0xbf   :  { %907 = vst.msk [vmem:[%s2191_s1 + $0x22] sm:$0x1] %vm8_vm0, %v414_v34   ;;  %908 = vst.msk [vmem:[%s2191_s1 + $0x61] sm:$0x2] %vm8_vm0, %v414_v34  }
  0xc0   :  { %909 = vst.msk [vmem:[%s2191_s1 + $0xa0] sm:$0x4] %vm8_vm0, %v414_v34   ;;  %910 = vst.msk [vmem:[%s2191_s1 + $0xdf] sm:$0x8] %vm8_vm0, %v414_v34   ;;  %v426_v35 = vpop.permute.xlu0 %425  }
  0xc1   :  { %v438_v36 = vpop.permute.xlu1 %437   ;;  %911 = vst.msk [vmem:[%s2191_s1 + $0x23] sm:$0x1] %vm8_vm0, %v426_v35   ;;  %912 = vst.msk [vmem:[%s2191_s1 + $0x62] sm:$0x2] %vm8_vm0, %v426_v35  }
  0xc2   :  { %913 = vst.msk [vmem:[%s2191_s1 + $0xa1] sm:$0x4] %vm8_vm0, %v426_v35   ;;  %914 = vst.msk [vmem:[%s2191_s1 + $0xe0] sm:$0x8] %vm8_vm0, %v426_v35  }
  0xc3   :  { %915 = vst.msk [vmem:[%s2191_s1 + $0x24] sm:$0x1] %vm8_vm0, %v438_v36   ;;  %916 = vst.msk [vmem:[%s2191_s1 + $0x63] sm:$0x2] %vm8_vm0, %v438_v36  }
  0xc4   :  { %917 = vst.msk [vmem:[%s2191_s1 + $0xa2] sm:$0x4] %vm8_vm0, %v438_v36   ;;  %918 = vst.msk [vmem:[%s2191_s1 + $0xe1] sm:$0x8] %vm8_vm0, %v438_v36   ;;  %v450_v37 = vpop.permute.xlu0 %449  }
  0xc5   :  { %v462_v38 = vpop.permute.xlu1 %461   ;;  %919 = vst.msk [vmem:[%s2191_s1 + $0x25] sm:$0x1] %vm8_vm0, %v450_v37   ;;  %920 = vst.msk [vmem:[%s2191_s1 + $0x64] sm:$0x2] %vm8_vm0, %v450_v37  }
  0xc6   :  { %921 = vst.msk [vmem:[%s2191_s1 + $0xa3] sm:$0x4] %vm8_vm0, %v450_v37   ;;  %922 = vst.msk [vmem:[%s2191_s1 + $0xe2] sm:$0x8] %vm8_vm0, %v450_v37  }
  0xc7   :  { %923 = vst.msk [vmem:[%s2191_s1 + $0x26] sm:$0x1] %vm8_vm0, %v462_v38   ;;  %924 = vst.msk [vmem:[%s2191_s1 + $0x65] sm:$0x2] %vm8_vm0, %v462_v38  }
  0xc8   :  { %925 = vst.msk [vmem:[%s2191_s1 + $0xa4] sm:$0x4] %vm8_vm0, %v462_v38   ;;  %926 = vst.msk [vmem:[%s2191_s1 + $0xe3] sm:$0x8] %vm8_vm0, %v462_v38   ;;  %v474_v39 = vpop.permute.xlu0 %473  }
  0xc9   :  { %v486_v40 = vpop.permute.xlu1 %485   ;;  %927 = vst.msk [vmem:[%s2191_s1 + $0x27] sm:$0x1] %vm8_vm0, %v474_v39   ;;  %928 = vst.msk [vmem:[%s2191_s1 + $0x66] sm:$0x2] %vm8_vm0, %v474_v39  }
  0xca   :  { %929 = vst.msk [vmem:[%s2191_s1 + $0xa5] sm:$0x4] %vm8_vm0, %v474_v39   ;;  %930 = vst.msk [vmem:[%s2191_s1 + $0xe4] sm:$0x8] %vm8_vm0, %v474_v39  }
  0xcb   :  { %931 = vst.msk [vmem:[%s2191_s1 + $0x28] sm:$0x1] %vm8_vm0, %v486_v40   ;;  %932 = vst.msk [vmem:[%s2191_s1 + $0x67] sm:$0x2] %vm8_vm0, %v486_v40  }
  0xcc   :  { %933 = vst.msk [vmem:[%s2191_s1 + $0xa6] sm:$0x4] %vm8_vm0, %v486_v40   ;;  %934 = vst.msk [vmem:[%s2191_s1 + $0xe5] sm:$0x8] %vm8_vm0, %v486_v40   ;;  %v498_v41 = vpop.permute.xlu0 %497  }
  0xcd   :  { %v510_v42 = vpop.permute.xlu1 %509   ;;  %935 = vst.msk [vmem:[%s2191_s1 + $0x29] sm:$0x1] %vm8_vm0, %v498_v41   ;;  %936 = vst.msk [vmem:[%s2191_s1 + $0x68] sm:$0x2] %vm8_vm0, %v498_v41  }
  0xce   :  { %937 = vst.msk [vmem:[%s2191_s1 + $0xa7] sm:$0x4] %vm8_vm0, %v498_v41   ;;  %938 = vst.msk [vmem:[%s2191_s1 + $0xe6] sm:$0x8] %vm8_vm0, %v498_v41  }
  0xcf   :  { %939 = vst.msk [vmem:[%s2191_s1 + $0x2a] sm:$0x1] %vm8_vm0, %v510_v42   ;;  %940 = vst.msk [vmem:[%s2191_s1 + $0x69] sm:$0x2] %vm8_vm0, %v510_v42  }
  0xd0   :  { %941 = vst.msk [vmem:[%s2191_s1 + $0xa8] sm:$0x4] %vm8_vm0, %v510_v42   ;;  %942 = vst.msk [vmem:[%s2191_s1 + $0xe7] sm:$0x8] %vm8_vm0, %v510_v42   ;;  %v522_v43 = vpop.permute.xlu0 %521  }
  0xd1   :  { %v534_v44 = vpop.permute.xlu1 %533   ;;  %943 = vst.msk [vmem:[%s2191_s1 + $0x2b] sm:$0x1] %vm8_vm0, %v522_v43   ;;  %944 = vst.msk [vmem:[%s2191_s1 + $0x6a] sm:$0x2] %vm8_vm0, %v522_v43  }
  0xd2   :  { %945 = vst.msk [vmem:[%s2191_s1 + $0xa9] sm:$0x4] %vm8_vm0, %v522_v43   ;;  %946 = vst.msk [vmem:[%s2191_s1 + $0xe8] sm:$0x8] %vm8_vm0, %v522_v43  }
  0xd3   :  { %947 = vst.msk [vmem:[%s2191_s1 + $0x2c] sm:$0x1] %vm8_vm0, %v534_v44   ;;  %948 = vst.msk [vmem:[%s2191_s1 + $0x6b] sm:$0x2] %vm8_vm0, %v534_v44  }
  0xd4   :  { %949 = vst.msk [vmem:[%s2191_s1 + $0xaa] sm:$0x4] %vm8_vm0, %v534_v44   ;;  %950 = vst.msk [vmem:[%s2191_s1 + $0xe9] sm:$0x8] %vm8_vm0, %v534_v44   ;;  %v546_v45 = vpop.permute.xlu0 %545  }
  0xd5   :  { %v558_v46 = vpop.permute.xlu1 %557   ;;  %951 = vst.msk [vmem:[%s2191_s1 + $0x2d] sm:$0x1] %vm8_vm0, %v546_v45   ;;  %952 = vst.msk [vmem:[%s2191_s1 + $0x6c] sm:$0x2] %vm8_vm0, %v546_v45  }
  0xd6   :  { %953 = vst.msk [vmem:[%s2191_s1 + $0xab] sm:$0x4] %vm8_vm0, %v546_v45   ;;  %954 = vst.msk [vmem:[%s2191_s1 + $0xea] sm:$0x8] %vm8_vm0, %v546_v45  }
  0xd7   :  { %955 = vst.msk [vmem:[%s2191_s1 + $0x2e] sm:$0x1] %vm8_vm0, %v558_v46   ;;  %956 = vst.msk [vmem:[%s2191_s1 + $0x6d] sm:$0x2] %vm8_vm0, %v558_v46  }
  0xd8   :  { %957 = vst.msk [vmem:[%s2191_s1 + $0xac] sm:$0x4] %vm8_vm0, %v558_v46   ;;  %958 = vst.msk [vmem:[%s2191_s1 + $0xeb] sm:$0x8] %vm8_vm0, %v558_v46   ;;  %v570_v47 = vpop.permute.xlu0 %569  }
  0xd9   :  { %v582_v48 = vpop.permute.xlu1 %581   ;;  %959 = vst.msk [vmem:[%s2191_s1 + $0x2f] sm:$0x1] %vm8_vm0, %v570_v47   ;;  %960 = vst.msk [vmem:[%s2191_s1 + $0x6e] sm:$0x2] %vm8_vm0, %v570_v47  }
  0xda   :  { %961 = vst.msk [vmem:[%s2191_s1 + $0xad] sm:$0x4] %vm8_vm0, %v570_v47   ;;  %962 = vst.msk [vmem:[%s2191_s1 + $0xec] sm:$0x8] %vm8_vm0, %v570_v47  }
  0xdb   :  { %963 = vst.msk [vmem:[%s2191_s1 + $0x30] sm:$0x1] %vm8_vm0, %v582_v48   ;;  %964 = vst.msk [vmem:[%s2191_s1 + $0x6f] sm:$0x2] %vm8_vm0, %v582_v48  }
  0xdc   :  { %965 = vst.msk [vmem:[%s2191_s1 + $0xae] sm:$0x4] %vm8_vm0, %v582_v48   ;;  %966 = vst.msk [vmem:[%s2191_s1 + $0xed] sm:$0x8] %vm8_vm0, %v582_v48   ;;  %v594_v49 = vpop.permute.xlu0 %593  }
  0xdd   :  { %v606_v50 = vpop.permute.xlu1 %605   ;;  %967 = vst.msk [vmem:[%s2191_s1 + $0x31] sm:$0x1] %vm8_vm0, %v594_v49   ;;  %968 = vst.msk [vmem:[%s2191_s1 + $0x70] sm:$0x2] %vm8_vm0, %v594_v49  }
  0xde   :  { %969 = vst.msk [vmem:[%s2191_s1 + $0xaf] sm:$0x4] %vm8_vm0, %v594_v49   ;;  %970 = vst.msk [vmem:[%s2191_s1 + $0xee] sm:$0x8] %vm8_vm0, %v594_v49  }
  0xdf   :  { %971 = vst.msk [vmem:[%s2191_s1 + $0x32] sm:$0x1] %vm8_vm0, %v606_v50   ;;  %972 = vst.msk [vmem:[%s2191_s1 + $0x71] sm:$0x2] %vm8_vm0, %v606_v50  }
  0xe0   :  { %973 = vst.msk [vmem:[%s2191_s1 + $0xb0] sm:$0x4] %vm8_vm0, %v606_v50   ;;  %974 = vst.msk [vmem:[%s2191_s1 + $0xef] sm:$0x8] %vm8_vm0, %v606_v50   ;;  %v618_v51 = vpop.permute.xlu0 %617  }
  0xe1   :  { %v630_v52 = vpop.permute.xlu1 %629   ;;  %975 = vst.msk [vmem:[%s2191_s1 + $0x33] sm:$0x1] %vm8_vm0, %v618_v51   ;;  %976 = vst.msk [vmem:[%s2191_s1 + $0x72] sm:$0x2] %vm8_vm0, %v618_v51  }
  0xe2   :  { %977 = vst.msk [vmem:[%s2191_s1 + $0xb1] sm:$0x4] %vm8_vm0, %v618_v51   ;;  %978 = vst.msk [vmem:[%s2191_s1 + $0xf0] sm:$0x8] %vm8_vm0, %v618_v51  }
  0xe3   :  { %979 = vst.msk [vmem:[%s2191_s1 + $0x34] sm:$0x1] %vm8_vm0, %v630_v52   ;;  %980 = vst.msk [vmem:[%s2191_s1 + $0x73] sm:$0x2] %vm8_vm0, %v630_v52  }
  0xe4   :  { %981 = vst.msk [vmem:[%s2191_s1 + $0xb2] sm:$0x4] %vm8_vm0, %v630_v52   ;;  %982 = vst.msk [vmem:[%s2191_s1 + $0xf1] sm:$0x8] %vm8_vm0, %v630_v52   ;;  %v642_v53 = vpop.permute.xlu0 %641  }
  0xe5   :  { %v654_v54 = vpop.permute.xlu1 %653   ;;  %983 = vst.msk [vmem:[%s2191_s1 + $0x35] sm:$0x1] %vm8_vm0, %v642_v53   ;;  %984 = vst.msk [vmem:[%s2191_s1 + $0x74] sm:$0x2] %vm8_vm0, %v642_v53  }
  0xe6   :  { %985 = vst.msk [vmem:[%s2191_s1 + $0xb3] sm:$0x4] %vm8_vm0, %v642_v53   ;;  %986 = vst.msk [vmem:[%s2191_s1 + $0xf2] sm:$0x8] %vm8_vm0, %v642_v53  }
  0xe7   :  { %987 = vst.msk [vmem:[%s2191_s1 + $0x36] sm:$0x1] %vm8_vm0, %v654_v54   ;;  %988 = vst.msk [vmem:[%s2191_s1 + $0x75] sm:$0x2] %vm8_vm0, %v654_v54  }
  0xe8   :  { %989 = vst.msk [vmem:[%s2191_s1 + $0xb4] sm:$0x4] %vm8_vm0, %v654_v54   ;;  %990 = vst.msk [vmem:[%s2191_s1 + $0xf3] sm:$0x8] %vm8_vm0, %v654_v54   ;;  %v666_v55 = vpop.permute.xlu0 %665  }
  0xe9   :  { %v678_v56 = vpop.permute.xlu1 %677   ;;  %991 = vst.msk [vmem:[%s2191_s1 + $0x37] sm:$0x1] %vm8_vm0, %v666_v55   ;;  %992 = vst.msk [vmem:[%s2191_s1 + $0x76] sm:$0x2] %vm8_vm0, %v666_v55  }
  0xea   :  { %993 = vst.msk [vmem:[%s2191_s1 + $0xb5] sm:$0x4] %vm8_vm0, %v666_v55   ;;  %994 = vst.msk [vmem:[%s2191_s1 + $0xf4] sm:$0x8] %vm8_vm0, %v666_v55  }
  0xeb   :  { %995 = vst.msk [vmem:[%s2191_s1 + $0x38] sm:$0x1] %vm8_vm0, %v678_v56   ;;  %996 = vst.msk [vmem:[%s2191_s1 + $0x77] sm:$0x2] %vm8_vm0, %v678_v56  }
  0xec   :  { %997 = vst.msk [vmem:[%s2191_s1 + $0xb6] sm:$0x4] %vm8_vm0, %v678_v56   ;;  %998 = vst.msk [vmem:[%s2191_s1 + $0xf5] sm:$0x8] %vm8_vm0, %v678_v56   ;;  %v690_v57 = vpop.permute.xlu0 %689  }
  0xed   :  { %v702_v58 = vpop.permute.xlu1 %701   ;;  %999 = vst.msk [vmem:[%s2191_s1 + $0x39] sm:$0x1] %vm8_vm0, %v690_v57   ;;  %1000 = vst.msk [vmem:[%s2191_s1 + $0x78] sm:$0x2] %vm8_vm0, %v690_v57  }
  0xee   :  { %1001 = vst.msk [vmem:[%s2191_s1 + $0xb7] sm:$0x4] %vm8_vm0, %v690_v57   ;;  %1002 = vst.msk [vmem:[%s2191_s1 + $0xf6] sm:$0x8] %vm8_vm0, %v690_v57  }
  0xef   :  { %1003 = vst.msk [vmem:[%s2191_s1 + $0x3a] sm:$0x1] %vm8_vm0, %v702_v58   ;;  %1004 = vst.msk [vmem:[%s2191_s1 + $0x79] sm:$0x2] %vm8_vm0, %v702_v58  }
  0xf0   :  { %1005 = vst.msk [vmem:[%s2191_s1 + $0xb8] sm:$0x4] %vm8_vm0, %v702_v58   ;;  %1006 = vst.msk [vmem:[%s2191_s1 + $0xf7] sm:$0x8] %vm8_vm0, %v702_v58   ;;  %v714_v59 = vpop.permute.xlu0 %713  }
  0xf1   :  { %v726_v60 = vpop.permute.xlu1 %725   ;;  %1007 = vst.msk [vmem:[%s2191_s1 + $0x3b] sm:$0x1] %vm8_vm0, %v714_v59   ;;  %1008 = vst.msk [vmem:[%s2191_s1 + $0x7a] sm:$0x2] %vm8_vm0, %v714_v59  }
  0xf2   :  { %1009 = vst.msk [vmem:[%s2191_s1 + $0xb9] sm:$0x4] %vm8_vm0, %v714_v59   ;;  %1010 = vst.msk [vmem:[%s2191_s1 + $0xf8] sm:$0x8] %vm8_vm0, %v714_v59  }
  0xf3   :  { %1011 = vst.msk [vmem:[%s2191_s1 + $0x3c] sm:$0x1] %vm8_vm0, %v726_v60   ;;  %1012 = vst.msk [vmem:[%s2191_s1 + $0x7b] sm:$0x2] %vm8_vm0, %v726_v60  }
  0xf4   :  { %1013 = vst.msk [vmem:[%s2191_s1 + $0xba] sm:$0x4] %vm8_vm0, %v726_v60   ;;  %1014 = vst.msk [vmem:[%s2191_s1 + $0xf9] sm:$0x8] %vm8_vm0, %v726_v60   ;;  %v738_v61 = vpop.permute.xlu0 %737  }
  0xf5   :  { %v750_v62 = vpop.permute.xlu1 %749   ;;  %1015 = vst.msk [vmem:[%s2191_s1 + $0x3d] sm:$0x1] %vm8_vm0, %v738_v61   ;;  %1016 = vst.msk [vmem:[%s2191_s1 + $0x7c] sm:$0x2] %vm8_vm0, %v738_v61  }
  0xf6   :  { %1017 = vst.msk [vmem:[%s2191_s1 + $0xbb] sm:$0x4] %vm8_vm0, %v738_v61   ;;  %1018 = vst.msk [vmem:[%s2191_s1 + $0xfa] sm:$0x8] %vm8_vm0, %v738_v61  }
  0xf7   :  { %1019 = vst.msk [vmem:[%s2191_s1 + $0x3e] sm:$0x1] %vm8_vm0, %v750_v62   ;;  %1020 = vst.msk [vmem:[%s2191_s1 + $0x7d] sm:$0x2] %vm8_vm0, %v750_v62  }
  0xf8   :  { %1021 = vst.msk [vmem:[%s2191_s1 + $0xbc] sm:$0x4] %vm8_vm0, %v750_v62   ;;  %1022 = vst.msk [vmem:[%s2191_s1 + $0xfb] sm:$0x8] %vm8_vm0, %v750_v62   ;;  %v762_v63 = vpop.permute.xlu0 %761  }
  0xf9   :  { %1023 = vst.msk [vmem:[%s2191_s1 + $0x3f] sm:$0x1] %vm8_vm0, %v762_v63   ;;  %1024 = vst.msk [vmem:[%s2191_s1 + $0x7e] sm:$0x2] %vm8_vm0, %v762_v63  }
  0xfa   :  { %1025 = vst.msk [vmem:[%s2191_s1 + $0xbd] sm:$0x4] %vm8_vm0, %v762_v63   ;;  %1026 = vst.msk [vmem:[%s2191_s1 + $0xfc] sm:$0x8] %vm8_vm0, %v762_v63  }

// kernel: color_reduction_net.1
= control target key start
LH: loop header
LB: loop body
LE: loop exit
PB: predicated region body
PF: predicated region fallthrough
CT: control target
= control target key end

     0   :  { %s18327_s0 = inlined_call_operand.vmem [shape: f32[2,3,256], index: 0, kind: input, shape index: {}]   ;;  %s18328_s1 = inlined_call_operand.vmem [shape: bf16[32,27], index: 1, kind: input, shape index: {}]   ;;  %s18329_s2 = inlined_call_operand.vmem [shape: bf16[64,288], index: 2, kind: input, shape index: {}]   ;;  %s18330_s3 = inlined_call_operand.vmem [shape: bf16[128,576], index: 3, kind: input, shape index: {}]   ;;  %s18331_s4 = inlined_call_operand.vmem [shape: bf16[256,1152], index: 4, kind: input, shape index: {}]   ;;  %s18332_s5 = inlined_call_operand.vmem [shape: bf16[512,256], index: 5, kind: input, shape index: {}]   ;;  %s18333_s6 = inlined_call_operand.vmem [shape: bf16[256,128], index: 6, kind: input, shape index: {}]   ;;  %s18334_s7 = inlined_call_operand.vmem [shape: bf16[32,576], index: 7, kind: input, shape index: {}]   ;;  %s18335_s8 = inlined_call_operand.vmem [shape: bf16[3,288], index: 8, kind: input, shape index: {}]   ;;  %s18336_s9 = inlined_call_operand.vmem [shape: f32[32,1], index: 9, kind: input, shape index: {}]   ;;  %s18337_s10 = inlined_call_operand.vmem [shape: f32[64,1], index: 10, kind: input, shape index: {}]   ;;  %s18338_s11 = inlined_call_operand.vmem [shape: f32[128,1], index: 11, kind: input, shape index: {}]   ;;  %s18339_s12 = inlined_call_operand.vmem [shape: f32[256,1], index: 12, kind: input, shape index: {}]   ;;  %s18340_s13 = inlined_call_operand.vmem [shape: f32[512,1], index: 13, kind: input, shape index: {}]   ;;  %s18341_s14 = inlined_call_operand.vmem [shape: f32[256,1], index: 14, kind: input, shape index: {}]   ;;  %s18342_s15 = inlined_call_operand.vmem [shape: f32[32,1], index: 15, kind: input, shape index: {}]   ;;  %s18343_s16 = inlined_call_operand.vmem [shape: f32[3,1], index: 16, kind: input, shape index: {}]   ;;  %s18344_s17 = inlined_call_operand.vmem [shape: bf16[4,256,64], index: 17, kind: input, shape index: {}]   ;;  %s18345_s18 = inlined_call_operand.vmem [shape: bf16[4,64,16], index: 18, kind: input, shape index: {}]   ;;  %s18346_s19 = inlined_call_operand.vmem [shape: bf16[4,16,64], index: 19, kind: input, shape index: {}]   ;;  %s18347_s20 = inlined_call_operand.vmem [shape: bf16[4,64,256], index: 20, kind: input, shape index: {}]   ;;  %s18348_s21 = inlined_call_operand.vmem [shape: f32[2,3,256], index: 21, kind: output, shape index: {}]  }
   0x1   :  { %18494 = sst [smem:[#allocation52_spill]] %s18327_s0 }
   0x2   :  { %18495 = sst [smem:[#allocation53_spill]] %s18328_s1 }
   0x3   :  { %18496 = sst [smem:[#allocation54_spill]] %s18329_s2  ;;  %s13345_s2 = smov 0  }
   0x4   :  { %18497 = sst [smem:[#allocation55_spill]] %s18330_s3 }
   0x5   :  { %18498 = sst [smem:[#allocation56_spill]] %s18331_s4 }
   0x6   :  { %18499 = sst [smem:[#allocation57_spill]] %s18332_s5 }
   0x7   :  { %18500 = sst [smem:[#allocation58_spill]] %s18336_s9 }
   0x8   :  { %18501 = sst [smem:[#allocation59_spill]] %s18337_s10 }
   0x9   :  { %18502 = sst [smem:[#allocation60_spill]] %s18338_s11 }
   0xa   :  { %18503 = sst [smem:[#allocation61_spill]] %s18339_s12 }
   0xb   :  { %18504 = sst [smem:[#allocation62_spill]] %s18344_s17 }
   0xc   :  { %18505 = sst [smem:[#allocation63_spill]] %s18348_s21 }
   0xd LB: > { %18506 = sst [smem:[#allocation2_spill]] %s13210_s2  ;;  %s10640_s25 = sadd.s32 4294967295, %s13210_s2   ;;  %s13210_s2 = sphi %s13345_s2, %s31_s2  }
   0xe   : > { %p10644_p0 = scmp.ge.s32.totalorder %s13210_s2, 1  ;;  %p587_p1 = scmp.lt.s32.totalorder %s13210_s2, 3 }
  0x10   : > { %p588_p2 = pnand %p10644_p0, %p587_p1 }
  0x12   : > { %591 = sbr.rel (%p588_p2) target bundleno = 5416 (0x1528), region = 104 }
  0x17   : > { %p647_p3 = scmp.lt.s32.totalorder %s10640_s25, 1  ;;  %v683_v0 = vlaneseq  ;;  %v18398_v1 = vmov 0   ;;  %s18508_s28 = sld [smem:[#allocation52_spill]]  ;;  %vm18383_vm6 = vcmask 138240   ;;  %vm18354_vm9 = vcmask 261120  }
  0x18   : > { %1101 = vmatprep.mubr.bf16.mxu0 %v18398_v1  ;;  %12653 = vset.pattern.permute.xlu1 %v18398_v1  ;;  %s18386_s0 = smov 17   ;;  %s18357_s4 = smov 18   ;;  %vm768_vm12 = vcmask 277504  }
  0x19   : > { %s19020_s25 = smov (!%p647_p3, %s10640_s25), 1  ;;  %v13357_v2 = vand.u32 127, %v683_v0  ;;  %12652 = vset.pattern.permute.xlu0 %v18398_v1  ;;  %v13360_v3 = vshrl.u32 %v683_v0, 7  ;;  %s13215_s30 = smov 32  }
  0x1a   : > { %s18356_s26 = sshll.u32 %s19020_s25, 3  ;;  %s18358_s5 = smov 16  }
  0x1b   : > { %18507 = vst [vmem:[#allocation3_spill] sm:$0xff] %v13360_v3  ;;  %v685_v4 = vadd.s32 128, %v13357_v2  ;;  %v686_v5 = vand.u32 15, %v13357_v2  ;;  %v13371_v10 = vsub.s32 0, %v13360_v3  ;;  %v700_v12 = vsub.s32 4, %v13360_v3  ;;  %s13217_s22 = smov 34  }
  0x1c   : > { %s18359_s23 = smov 2   ;;  %s18364_s1 = smov 111  }
  0x1d   : > { %s651_s29 = scalar_lea.vmem %s18508_s28, %s18356_s26  ;;  %v687_v7 = vand.u32 15, %v685_v4  ;;  %vm690_vm0 = vcmp.ne.s32.totalorder %v686_v5, 15  ;;  %vm688_vm1 = vcmp.ne.s32.totalorder %v686_v5, 0  ;;  %s18366_s24 = smov 95  }
  0x1e   : > { %v660_v6 = vld [vmem:[%s651_s29] sm:$0x77]  ;;  %s18362_s27 = smov 96   ;;  %s18394_s3 = smov 127  }
  0x1f   : > { %v664_v8 = vpack.c.bf16 %v660_v6, %v660_v6  ;;  %v662_v9 = vcombine.high %v660_v6, %v660_v6  ;;  %vm691_vm2 = vcmp.ne.s32.totalorder %v687_v7, 15  ;;  %vm689_vm3 = vcmp.ne.s32.totalorder %v687_v7, 0  ;;  %s18360_s28 = smov 94   ;;  %s18392_s29 = smov 126  }
  0x20   : > { %vm706_vm4 = vmpackc.low %vm691_vm2, %vm690_vm0  ;;  %vm744_vm0 = vcmask 146432   ;;  %s18526_s9 = sld [smem:[#allocation58_spill]]  ;;  %s18568_s26 = smov 94  }
  0x21   : > { %668 = vrot.lane.b32.xlu1 %v664_v8, %s18386_s0  ;;  %v665_v11 = vpack.c.bf16 %v662_v9, %v662_v9  ;;  %v707_v13 = vsel %vm706_vm4, 65537, %v18398_v1  ;;  %vm692_vm5 = vmpackc.low %vm689_vm3, %vm688_vm1  ;;  %s18577_s10 = sld [smem:[#allocation59_spill]]  ;;  %s18430_s2 = smov 9  }
  0x22   : > { %v711_v14 = vrot.slane %v707_v13, %v13371_v10  ;;  %v693_v15 = vsel %vm692_vm5, 65537, %v18398_v1  ;;  %v715_v16 = vrot.slane %v707_v13, %v700_v12  ;;  %s18586_s17 = sld [smem:[#allocation62_spill]]  ;;  %s18636_s21 = smov 9  }
  0x23   : > { %v13380_v17 = vrot.slane %v693_v15, %v700_v12  ;;  %v13385_v18 = vrot.slane %v693_v15, %v13371_v10  ;;  %s18613_s11 = sld [smem:[#allocation60_spill]] }
  0x24   : > { %740 = vrot.lane.b32.xlu0 %v711_v14, %s18357_s4  ;;  %s18647_s12 = sld [smem:[#allocation61_spill]] }
  0x25   : > { %670 = vrot.lane.b32.xlu1 %v665_v11, %s18386_s0  ;;  %18509 = vst [vmem:[#allocation4_spill] sm:$0xff] %v13380_v17  ;;  %18510 = vst [vmem:[#allocation5_spill] sm:$0xff] %v13385_v18 }
  0x28   : > { %742 = vrot.lane.b32.xlu0 %v715_v16, %s18357_s4  ;;  %s13230_s4 = smov 10  }
  0x29   : > { %754 = vrot.lane.b32.xlu1 %v13380_v17, %s13215_s30 }
  0x2c   : > { %752 = vrot.lane.b32.xlu0 %v13385_v18, %s13215_s30  ;;  %s18388_s30 = smov 110  }
  0x2d   : > { %730 = vrot.lane.b32.xlu1 %v13380_v17, %s18358_s5 }
  0x30   : > { %728 = vrot.lane.b32.xlu0 %v13385_v18, %s18358_s5  ;;  %s18535_s5 = sld [smem:[#allocation53_spill]] }
  0x31   : > { %766 = vrot.lane.b32.xlu1 %v715_v16, %s13217_s22 }
  0x34   : > { %764 = vrot.lane.b32.xlu0 %v711_v14, %s13217_s22  ;;  %s18390_s22 = smov 112  }
  0x35   : > { %718 = vrot.lane.b32.xlu1 %v715_v16, %s18359_s23 }
  0x38   : > { %716 = vrot.lane.b32.xlu0 %v711_v14, %s18359_s23  ;;  %s18603_s23 = smov 127  }
  0x93   : > { %v669_v19 = vpop.permute.xlu1 %668 }
  0x94   : > { %v13395_v20 = vsel %vm18383_vm6, 0, %v669_v19 }
  0x95   : > { %v776_v21 = vshrl.u32 %v13395_v20, 16  ;;  %v779_v22 = vshll.u32 %v13395_v20, 16 }
  0x96   : > { %v13399_v23 = vpop.permute.xlu0 %740 }
  0x97   : > { %18511 = vst [vmem:[#allocation6_spill] sm:$0xff] %v13399_v23  ;;  %v671_v24 = vpop.permute.xlu1 %670  ;;  %v928_v25 = vrot.slane %v776_v21, 5  ;;  %v929_v28 = vrot.slane %v779_v22, 6  ;;  %v778_v35 = vrot.slane %v776_v21, 6  ;;  %v781_v36 = vrot.slane %v779_v22, 7 }
  0x98   : > { %v13402_v26 = vsel %vm18383_vm6, %v669_v19, %v671_v24  ;;  %v13405_v27 = vsel %vm18383_vm6, %v671_v24, 0  ;;  %vm18372_vm11 = vcmp.ne.s16.totalorder %v13399_v23, 0  ;;  %vm854_vm6 = vcmask 916480  }
  0x99   : > { %v863_v29 = vrot.slane %v13405_v27, 2  ;;  %v862_v30 = vrot.slane %v13402_v26, 2  ;;  %v930_v33 = vor.u32 %v929_v28, %v928_v25  ;;  %v782_v40 = vor.u32 %v781_v36, %v778_v35 }
  0x9a   : > { %v13409_v31 = vpop.permute.xlu0 %742  ;;  %v791_v50 = vshrl.u32 %v13405_v27, 16  ;;  %v794_v53 = vshll.u32 %v13405_v27, 16  ;;  %v784_v54 = vshrl.u32 %v13402_v26, 16  ;;  %v787_v57 = vshll.u32 %v13402_v26, 16 }
  0x9b   : > { %18512 = vst [vmem:[#allocation7_spill] sm:$0xff] %v13409_v31  ;;  %868 = vrot.lane.b32.xlu0 %v863_v29, %s18364_s1  ;;  %866 = vrot.lane.b32.xlu1 %v862_v30, %s18364_s1  ;;  %v13413_v32 = vpop.permute.xlu1 %754  ;;  %v749_v61 = vsel %vm18372_vm11, %v13395_v20, 0  ;;  %v13484_v5 = vsel %vm744_vm0, %v13399_v23, %v13409_v31  ;;  %vm18371_vm5 = vcmp.ne.s16.totalorder %v13409_v31, 0  ;;  %vm982_vm11 = vcmask 1045504  }
  0x9c   : > { %18513 = vst [vmem:[#allocation8_spill] sm:$0xff] %v13413_v32  ;;  %vm18374_vm7 = vcmp.ne.s16.totalorder %v13413_v32, 0  ;;  %v934_v60 = vrot.slane %v791_v50, 5  ;;  %v935_v0 = vrot.slane %v794_v53, 6  ;;  %v931_v4 = vrot.slane %v784_v54, 5  ;;  %18523 = vst [vmem:[#allocation18_spill] sm:$0xff] %v13484_v5 }
  0x9d   : > { %v763_v34 = vsel %vm18374_vm7, %v13405_v27, 0  ;;  %v932_v8 = vrot.slane %v787_v57, 6  ;;  %v874_v9 = vshll.u32 %v749_v61, 16  ;;  %vm18373_vm4 = vcmp.ne.s16.totalorder %v13484_v5, 0 }
  0x9e   : > { %v918_v37 = vrot.slane %v763_v34, 7  ;;  %v13419_v38 = vpop.permute.xlu0 %752  ;;  %v936_v11 = vor.u32 %v935_v0, %v934_v60  ;;  %v786_v13 = vrot.slane %v784_v54, 6  ;;  %v789_v14 = vrot.slane %v787_v57, 7 }
  0x9f   : > { %18514 = vst [vmem:[#allocation9_spill] sm:$0xff] %v13419_v38  ;;  %937 = vrot.lane.b32.xlu0 %v930_v33, %s18366_s24  ;;  %v13422_v39 = vpop.permute.xlu1 %730  ;;  %vm18375_vm8 = vcmp.ne.s16.totalorder %v13419_v38, 0  ;;  %v13439_v45 = vsel %vm18354_vm9, %v13419_v38, %v13413_v32  ;;  %vm720_vm9 = vcmask 15360   ;;  %v933_v12 = vor.u32 %v932_v8, %v931_v4 }
  0xa0   : > { %18515 = vst [vmem:[#allocation10_spill] sm:$0xff] %v13422_v39  ;;  %923 = vrot.lane.b32.xlu1 %v918_v37, %s18362_s27  ;;  %v761_v41 = vsel %vm18375_vm8, %v13395_v20, 0  ;;  %18518 = vst [vmem:[#allocation13_spill] sm:$0xff] %v13439_v45  ;;  %vm18376_vm13 = vcmp.ne.s16.totalorder %v13439_v45, 0  ;;  %v793_v19 = vrot.slane %v791_v50, 6  ;;  %v796_v21 = vrot.slane %v794_v53, 7 }
  0xa1   : > { %v916_v42 = vrot.slane %v761_v41, 7  ;;  %v762_v59 = vsel %vm18376_vm13, %v13402_v26, 0  ;;  %v876_v22 = vrot.slane %v874_v9, 1  ;;  %v750_v28 = vsel %vm18373_vm4, %v13402_v26, 0 }
  0xa2   : > { %v13429_v43 = vpop.permute.xlu0 %728  ;;  %v917_v7 = vrot.slane %v762_v59, 7  ;;  %v751_v29 = vsel %vm18371_vm5, %v13405_v27, 0  ;;  %v790_v33 = vor.u32 %v789_v14, %v786_v13  ;;  %v885_v36 = vshrl.u32 %v749_v61, 16 }
  0xa3   : > { %18516 = vst [vmem:[#allocation11_spill] sm:$0xff] %v13429_v43  ;;  %798 = vrot.lane.b32.xlu0 %v782_v40, %s18394_s3  ;;  %v13432_v44 = vpop.permute.xlu1 %766  ;;  %vm18382_vm2 = vcmp.ne.s16.totalorder %v13429_v43, 0  ;;  %v878_v37 = vshll.u32 %v750_v28, 16  ;;  %v882_v40 = vshll.u32 %v751_v29, 16  ;;  %v797_v41 = vor.u32 %v796_v21, %v793_v19  ;;  %v1022_v19 = vld [vmem:[%s18526_s9 + $0x8] sm:$0xff]  ;;  %v1021_v21 = vld [vmem:[%s18526_s9] sm:$0xff] }
  0xa4   : > { %18517 = vst [vmem:[#allocation12_spill] sm:$0xff] %v13432_v44  ;;  %vm18368_vm10 = vcmp.ne.s16.totalorder %v13432_v44, 0  ;;  %919 = vrot.lane.b32.xlu1 %v916_v42, %s18362_s27  ;;  %v737_v16 = vsel %vm18382_vm2, %v13395_v20, 0  ;;  %v887_v42 = vor.u32 %v885_v36, %v876_v22  ;;  %v888_v60 = vshrl.u32 %v750_v28, 16 }
  0xa5   : > { %v775_v46 = vsel %vm18368_vm10, %v13405_v27, 0  ;;  %v825_v34 = vshrl.u32 %v737_v16, 16  ;;  %v828_v35 = vshll.u32 %v737_v16, 16  ;;  %v884_v53 = vrot.slane %v882_v40, 1  ;;  %v1023_v16 = vld [vmem:[%s18526_s9 + $0x10] sm:$0xff] }
  0xa6   : > { %v953_v47 = vrot.slane %v775_v46, 4  ;;  %v13445_v48 = vpop.permute.xlu0 %764  ;;  %v891_v61 = vshrl.u32 %v751_v29, 16  ;;  %vm977_vm10 = vcmask 1044480   ;;  %vm18385_vm5 = vcmask 785408  }
  0xa7   : > { %18519 = vst [vmem:[#allocation14_spill] sm:$0xff] %v13445_v48  ;;  %v13447_v49 = vpop.permute.xlu1 %718  ;;  %vm18370_vm14 = vcmp.ne.s16.totalorder %v13445_v48, 0  ;;  %v13477_v62 = vsel %vm768_vm12, %v13445_v48, %v13432_v44  ;;  %vm18355_vm12 = vcmask 130048   ;;  %v827_v46 = vrot.slane %v825_v34, 3 }
  0xa8   : > { %18520 = vst [vmem:[#allocation15_spill] sm:$0xff] %v13447_v49  ;;  %vm18379_vm15 = vcmp.ne.s16.totalorder %v13447_v49, 0  ;;  %958 = vrot.lane.b32.xlu0 %v953_v47, %s18360_s28  ;;  %v773_v51 = vsel %vm18370_vm14, %v13395_v20, 0  ;;  %18522 = vst [vmem:[#allocation17_spill] sm:$0xff] %v13477_v62  ;;  %vm18369_vm3 = vcmp.ne.s16.totalorder %v13477_v62, 0  ;;  %v13503_v24 = vsel %vm18355_vm12, %v13429_v43, %v13422_v39 }
  0xa9   : > { %v727_v52 = vsel %vm18379_vm15, %v13405_v27, 0  ;;  %v951_v55 = vrot.slane %v773_v51, 4  ;;  %v774_v15 = vsel %vm18369_vm3, %v13402_v26, 0  ;;  %18524 = vst [vmem:[#allocation19_spill] sm:$0xff] %v13503_v24  ;;  %vm18378_vm0 = vcmp.ne.s16.totalorder %v13503_v24, 0 }
  0xaa   : > { %v814_v56 = vrot.slane %v727_v52, 5  ;;  %v13463_v58 = vpop.permute.xlu0 %716  ;;  %v952_v30 = vrot.slane %v774_v15, 4  ;;  %v830_v47 = vrot.slane %v828_v35, 4  ;;  %v738_v51 = vsel %vm18378_vm0, %v13402_v26, 0  ;;  %v1024_v15 = vld [vmem:[%s18526_s9 + $0x18] sm:$0xff]  ;;  %s13228_s9 = smov 8  }
  0xab   : > { %18521 = vst [vmem:[#allocation16_spill] sm:$0xff] %v13463_v58  ;;  %vm18380_vm1 = vcmp.ne.s16.totalorder %v13463_v58, 0  ;;  %954 = vrot.lane.b32.xlu1 %v951_v55, %s18360_s28  ;;  %v13507_v25 = vsel %vm720_vm9, %v13463_v58, %v13447_v49  ;;  %vm18381_vm9 = vcmp.ne.s16.totalorder %v13422_v39, 0  ;;  %v880_v52 = vrot.slane %v878_v37, 1 }
  0xac   : > { %819 = vrot.lane.b32.xlu0 %v814_v56, %s18392_s29  ;;  %v725_v63 = vsel %vm18380_vm1, %v13395_v20, 0  ;;  %18525 = vst [vmem:[#allocation20_spill] sm:$0xff] %v13507_v25  ;;  %vm18377_vm12 = vcmp.ne.s16.totalorder %v13507_v25, 0  ;;  %v739_v54 = vsel %vm18381_vm9, %v13405_v27, 0  ;;  %v831_v55 = vor.u32 %v830_v47, %v827_v46 }
  0xad   : > { %v812_v6 = vrot.slane %v725_v63, 5  ;;  %v726_v50 = vsel %vm18377_vm12, %v13402_v26, 0  ;;  %v833_v57 = vshrl.u32 %v738_v51, 16  ;;  %v836_v59 = vshll.u32 %v738_v51, 16 }
  0xae   : > { %v813_v56 = vrot.slane %v726_v50, 5  ;;  %v890_v63 = vor.u32 %v888_v60, %v880_v52  ;;  %v841_v0 = vshrl.u32 %v739_v54, 16  ;;  %v893_v4 = vor.u32 %v891_v61, %v884_v53 }
  0xaf   : > { %815 = vrot.lane.b32.xlu1 %v812_v6, %s18392_s29  ;;  %v835_v6 = vrot.slane %v833_v57, 3  ;;  %v844_v8 = vshll.u32 %v739_v54, 16  ;;  %v861_v27 = vrot.slane %v13395_v20, 2  ;;  %v12647_v13 = vpack.i.bf16 %v884_v53, %v880_v52 }
  0xb0   : > { %921 = vrot.lane.b32.xlu0 %v917_v7, %s18362_s27  ;;  %v838_v7 = vrot.slane %v836_v59, 4  ;;  %vm1006_vm4 = vsmask.f32 2304  ;;  %vm943_vm7 = vcmask 777216   ;;  %vm804_vm8 = vcmask 1039360   ;;  %s18556_s27 = smov 96  }
  0xb1   : > { %vm963_vm13 = vcmask 1041408   ;;  %vm906_vm12 = vcmask 900096   ;;  %vm964_vm0 = vsmask.f32 1280  ;;  %vm18384_vm15 = vcmask 769024  }
  0xb2   : > { %v839_v9 = vor.u32 %v838_v7, %v835_v6  ;;  %vm968_vm1 = vcmask 1042432   ;;  %vm996_vm9 = vcmask 1040384   ;;  %vm821_vm2 = vcmask 1031168  }
  0xb3   : > { %941 = vrot.lane.b32.xlu1 %v936_v11, %s18366_s24  ;;  %v843_v11 = vrot.slane %v841_v0, 3  ;;  %vm13562_vm3 = vmand %vm968_vm1, %vm1006_vm4  ;;  %vm1010_vm14 = vcmask 1043456  }
  0xb4   : > { %939 = vrot.lane.b32.xlu0 %v933_v12, %s18366_s24  ;;  %v846_v12 = vrot.slane %v844_v8, 4  ;;  %vm13581_vm4 = vmand %vm963_vm13, %vm964_vm0  ;;  %vm18531_vm13 = vcmp.ne.s16.totalorder %v13385_v18, 0  ;;  %vm992_vm0 = vsmask.f32 7424  ;;  %s18552_s24 = smov 95  }
  0xb6   : > { %v847_v14 = vor.u32 %v846_v12, %v843_v11 }
  0xb7   : > { %956 = vrot.lane.b32.xlu1 %v952_v30, %s18360_s28  ;;  %s18564_s28 = smov 111  }
  0xb8   : > { %800 = vrot.lane.b32.xlu0 %v790_v33, %s18394_s3 }
  0xbb   : > { %802 = vrot.lane.b32.xlu1 %v797_v41, %s18394_s3 }
  0xbc   : > { %900 = vrot.lane.b32.xlu0 %v887_v42, %s18388_s30 }
  0xbf   : > { %817 = vrot.lane.b32.xlu1 %v813_v56, %s18392_s29 }
  0xc0   : > { %848 = vrot.lane.b32.xlu0 %v831_v55, %s18390_s22  ;;  %v13227_v55 = vmov 65535  }
  0xc1   : > { %v1063_v56 = vsel %vm977_vm10, 4294967295, %v13227_v55 }
  0xc2   : > { %v1064_v61 = vsel %vm982_vm11, %v1063_v56, 0 }
  0xc3   : > { %904 = vrot.lane.b32.xlu1 %v893_v4, %s18388_s30 }
  0xc4   : > { %902 = vrot.lane.b32.xlu0 %v890_v63, %s18388_s30 }
  0xc7   : > { %864 = vrot.lane.b32.xlu1 %v861_v27, %s18364_s1  ;;  %s18571_s1 = sld [smem:[#allocation54_spill]] }
  0xc8   : > { %850 = vrot.lane.b32.xlu0 %v839_v9, %s18390_s22 }
  0xcb   : > { %852 = vrot.lane.b32.xlu1 %v847_v14, %s18390_s22 }
  0xcc   : > { %12648 = vrot.lane.b32.xlu0 %v12647_v13, %s18388_s30 }
  0xcf   : > { %894 = vrot.lane.b32.xlu1 %v876_v22, %s18388_s30 }
  0xd0   : > { %1037 = vperm.xlu0 %12652, %v1023_v16  }
  0xd3   : > { %1042 = vperm.xlu1 %12653, %v1024_v15  }
  0xd4   : > { %1032 = vperm.xlu0 %12652, %v1022_v19  }
  0xd7   : > { %1027 = vperm.xlu1 %12653, %v1021_v21  }
 0x10d   : > { %v13553_v22 = vpop.permute.xlu0 %868  ;;  %v13555_v28 = vpop.permute.xlu1 %866 }
 0x111   : > { %v938_v29 = vpop.permute.xlu0 %937 }
 0x112   : > { %v924_v30 = vpop.permute.xlu1 %923 }
 0x115   : > { %v799_v33 = vpop.permute.xlu0 %798 }
 0x116   : > { %v920_v34 = vpop.permute.xlu1 %919 }
 0x11a   : > { %v959_v35 = vpop.permute.xlu0 %958 }
 0x11d   : > { %v955_v37 = vpop.permute.xlu1 %954 }
 0x11e   : > { %v820_v36 = vpop.permute.xlu0 %819 }
 0x121   : > { %v816_v41 = vpop.permute.xlu1 %815 }
 0x122   : > { %v922_v40 = vpop.permute.xlu0 %921 }
 0x123   : > { %v926_v63 = vsel %vm18385_vm5, %v920_v34, %v922_v40  ;;  %v927_v0 = vsel %vm18385_vm5, %v922_v40, %v924_v30 }
 0x125   : > { %v942_v46 = vpop.permute.xlu1 %941 }
 0x126   : > { %v940_v42 = vpop.permute.xlu0 %939 }
 0x127   : > { %v944_v7 = vsel %vm943_vm7, %v938_v29, %v940_v42  ;;  %v945_v8 = vsel %vm943_vm7, %v940_v42, %v942_v46  ;;  %v704_v42 = vsel %vm18531_vm13, %v13395_v20, 0  ;;  %vm18540_vm13 = vcmp.ne.s16.totalorder %v13463_v58, 0 }
 0x129   : > { %v957_v50 = vpop.permute.xlu1 %956 }
 0x12a   : > { %v801_v47 = vpop.permute.xlu0 %800  ;;  %v961_v11 = vsel %vm18384_vm15, %v955_v37, %v957_v50  ;;  %v962_v12 = vsel %vm18384_vm15, %v957_v50, %v959_v35  ;;  %vm870_vm15 = vcmask 908288  }
 0x12b   : > { %v805_v16 = vsel %vm804_vm8, %v799_v33, %v801_v47  ;;  %v872_v56 = vsel %vm870_vm15, %v13555_v28, %v13553_v22 }
 0x12c   : > { %v966_v33 = vsel %vm13581_vm4, %v704_v42, %v805_v16 }
 0x12d   : > { %v803_v52 = vpop.permute.xlu1 %802 }
 0x12e   : > { %v901_v51 = vpop.permute.xlu0 %900  ;;  %v806_v34 = vsel %vm804_vm8, %v801_v47, %v803_v52 }
 0x131   : > { %v818_v54 = vpop.permute.xlu1 %817 }
 0x132   : > { %v849_v53 = vpop.permute.xlu0 %848  ;;  %v822_v35 = vsel %vm821_vm2, %v816_v41, %v818_v54  ;;  %v823_v46 = vsel %vm821_vm2, %v818_v54, %v820_v36 }
 0x133   : > { %v971_v36 = vsel %vm968_vm1, %v966_v33, %v822_v35 }
 0x135   : > { %v905_v59 = vpop.permute.xlu1 %904 }
 0x136   : > { %v903_v57 = vpop.permute.xlu0 %902 }
 0x137   : > { %v909_v4 = vsel %vm906_vm12, %v901_v51, %v903_v57  ;;  %v910_v6 = vsel %vm906_vm12, %v903_v57, %v905_v59 }
 0x138   : > { %v999_v27 = vsel %vm996_vm9, %v909_v4, %v926_v63  ;;  %v1003_v9 = vsel %vm996_vm9, %v910_v6, %v927_v0  ;;  %vm978_vm9 = vsmask.f32 4352 }
 0x139   : > { %v1009_v13 = vsel %vm13562_vm3, %v1003_v9, %v945_v8  ;;  %v1008_v14 = vsel %vm13562_vm3, %v999_v27, %v944_v7  ;;  %v865_v21 = vpop.permute.xlu1 %864  ;;  %vm991_vm3 = vcmask 1047552   ;;  %vm13602_vm5 = vmand %vm977_vm10, %vm978_vm9  ;;  %v12656_v8 = vld [vmem:[%s18535_s5 + $0x8] sm:$0xff]   ;;  %vm18539_vm9 = vcmp.ne.s16.totalorder %v13422_v39, 0 }
 0x13a   : > { %v851_v19 = vpop.permute.xlu0 %850  ;;  %v1016_v29 = vsel %vm1010_vm14, %v1009_v13, %v962_v12  ;;  %v1013_v30 = vsel %vm1010_vm14, %v1008_v14, %v961_v11  ;;  %vm18532_vm14 = vcmp.ne.s16.totalorder %v13380_v17, 0  ;;  %vm993_vm10 = vmand %vm991_vm3, %vm992_vm0  ;;  %v871_v57 = vsel %vm870_vm15, %v865_v21, %v13555_v28  ;;  %v12655_v28 = vld [vmem:[%s18535_s5] sm:$0xff]   ;;  %s18601_s5 = smov 16  }
 0x13b   : > { %v1067_v37 = vand.u32 %v1064_v61, %v1016_v29  ;;  %v1065_v40 = vand.u32 %v1064_v61, %v1013_v30  ;;  %v705_v47 = vsel %vm18532_vm14, %v13402_v26, 0  ;;  %v855_v41 = vsel %vm854_vm6, %v849_v53, %v851_v19 }
 0x13c   : > { %v967_v20 = vsel %vm13581_vm4, %v705_v47, %v806_v34  ;;  %v980_v60 = vsel %vm13602_vm5, %v971_v36, %v855_v41  ;;  %vm18538_vm4 = vcmp.ne.s16.totalorder %v13429_v43, 0  ;;  %vm18541_vm3 = vcmp.ne.s16.totalorder %v13447_v49, 0 }
 0x13d   : > { %1081 = vmatprep.subr.bf16.mxu0 %v1067_v37  ;;  %v853_v52 = vpop.permute.xlu1 %852  ;;  %v975_v54 = vsel %vm968_vm1, %v967_v20, %v823_v46  ;;  %v985_v22 = vsel %vm982_vm11, %v980_v60, %v871_v57  ;;  %vm1055_vm1 = vcmask 220160  }
 0x13e   : > { %v12649_v51 = vpop.permute.xlu0 %12648  ;;  %1082 = vmatpush1.bf16.msra.mxu0 %v1065_v40  ;;  %v856_v53 = vsel %vm854_vm6, %v851_v19, %v853_v52 }
 0x13f   : > { %v12651_v26 = vunpack.i.h.bf16 %v12649_v51  ;;  %v12650_v55 = vunpack.i.l.bf16 %v12649_v51  ;;  %v981_v59 = vsel %vm13602_vm5, %v975_v54, %v856_v53 }
 0x140   : > { %v989_v63 = vsel %vm982_vm11, %v981_v59, %v872_v56  ;;  %vm18536_vm11 = vcmask 138240  }
 0x141   : > { %v908_v61 = vsel %vm906_vm12, %v12650_v55, %v12651_v26  ;;  %v895_v0 = vpop.permute.xlu1 %894  ;;  %vm18537_vm5 = vmmov %vm18536_vm11 }
 0x142   : > { %v995_v4 = vsel %vm993_vm10, %v989_v63, %v908_v61  ;;  %v907_v6 = vsel %vm906_vm12, %v895_v0, %v12650_v55  ;;  %vm18542_vm0 = vmmov %vm18537_vm5 }
 0x143   : > { %1083 = vmatprep.subr.bf16.mxu0 %v995_v4  ;;  %v994_v7 = vsel %vm993_vm10, %v985_v22, %v907_v6  ;;  %vm18543_vm14 = vmmov %vm18542_vm0  ;;  %vm18544_vm10 = vcmp.ne.s16.totalorder %v13503_v24, 0 }
 0x144   : > { %1084 = vmatpush1.bf16.msra.mxu0 %v994_v7 }
 0x147   : > { %10651 = vmatmul.mubr.msk.bf16.vlgmr.msra.gmra.mxu0 %vm1055_vm1, %v12655_v28 }
 0x148   : > { %1111 = vmatprep.mubr.bf16.mxu0 %v18398_v1 }
 0x14b   : > { %v1038_v11 = vpop.permute.xlu0 %1037 }
 0x14e   : > { %v1043_v13 = vpop.permute.xlu1 %1042 }
 0x14f   : > { %10652 = vmatmul.mubr.msk.bf16.gmra.mxu0 %vm1055_vm1, %v12656_v8  ;;  %v1033_v16 = vpop.permute.xlu0 %1032  ;;  %vm18545_vm1 = vmmov %vm18538_vm4 }
 0x150   : > { %1632 = vmatprep.mubr.bf16.mxu0 %v18398_v1 }
 0x152   : > { %v1028_v21 = vpop.permute.xlu1 %1027 }
 0x207   : > { %v1103_v27 = vpop.f32.mrf.mxu0 }
 0x208   : > { %v1104_v40 = vadd.f32 %v1103_v27, %v1028_v21 }
 0x209   : > { %v1105_v9 = vpop.f32.mrf.mxu0 }
 0x20a   : > { %v1106_v50 = vadd.f32 %v1105_v9, %v1028_v21  ;;  %v1122_v54 = vmax.f32 %v1104_v40, 0.0 }
 0x20b   : > { %v1107_v12 = vpop.f32.mrf.mxu0 }
 0x20c   : > { %v1108_v34 = vadd.f32 %v1107_v12, %v1033_v16  ;;  %v1123_v53 = vmax.f32 %v1106_v50, 0.0 }
 0x20d   : > { %v1109_v14 = vpop.f32.mrf.mxu0 }
 0x20e   : > { %v1110_v46 = vadd.f32 %v1109_v14, %v1033_v16  ;;  %v1124_v20 = vmax.f32 %v1108_v34, 0.0 }
 0x20f   : > { %v1113_v15 = vpop.f32.mrf.mxu0 }
 0x210   : > { %v1114_v29 = vadd.f32 %v1113_v15, %v1038_v11  ;;  %v1125_v26 = vmax.f32 %v1110_v46, 0.0  ;;  %v1130_v56 = vpack.c.bf16 %v1124_v20, %v1122_v54 }
 0x211   : > { %v1115_v19 = vpop.f32.mrf.mxu0 }
 0x212   : > { %v1116_v35 = vadd.f32 %v1115_v19, %v1038_v11  ;;  %v1126_v33 = vmax.f32 %v1114_v29, 0.0  ;;  %v1131_v57 = vpack.c.bf16 %v1125_v26, %v1123_v53 }
 0x213   : > { %v1117_v30 = vpop.f32.mrf.mxu0 }
 0x214   : > { %v1118_v37 = vadd.f32 %v1117_v30, %v1043_v13  ;;  %v1127_v36 = vmax.f32 %v1116_v35, 0.0 }
 0x215   : > { %v1119_v42 = vpop.f32.mrf.mxu0 }
 0x216   : > { %v1128_v47 = vmax.f32 %v1118_v37, 0.0  ;;  %v1120_v41 = vadd.f32 %v1119_v42, %v1043_v13 }
 0x218   : > { %v1132_v51 = vpack.c.bf16 %v1128_v47, %v1126_v33  ;;  %v1129_v52 = vmax.f32 %v1120_v41, 0.0 }
 0x21a   : > { %1142 = vrot.lane.b32.xlu1 %v1132_v51, %s18386_s0  ;;  %v1133_v55 = vpack.c.bf16 %v1129_v52, %v1127_v36  ;;  %v12659_v51 = vld [vmem:[%s18571_s1 + $0x4] ss:$12 sps:$4 sm:$0xff]  }
 0x21b   : > { %1559 = vmatprep.mubr.bf16.mxu1 %v12659_v51 }
 0x21c   : > { %1144 = vrot.lane.b32.xlu0 %v1133_v55, %s18386_s0 }
 0x21e   : > { %1138 = vrot.lane.b32.xlu1 %v1130_v56, %s18386_s0  ;;  %v1407_v56 = vld [vmem:[%s18577_s10 + $0x8] sm:$0xff] }
 0x220   : > { %1140 = vrot.lane.b32.xlu0 %v1131_v57, %s18386_s0  ;;  %v1406_v57 = vld [vmem:[%s18577_s10] sm:$0xff]  ;;  %s18428_s0 = smov 120  }
 0x28c   : > { %v1143_v59 = vpop.permute.xlu1 %1142 }
 0x28d   : > { %v13670_v27 = vsel %vm18543_vm14, 0, %v1143_v59 }
 0x28e   : > { %v1145_v60 = vpop.permute.xlu0 %1144  ;;  %v1175_v11 = vsel %vm18545_vm1, %v13670_v27, 0  ;;  %vm18557_vm1 = vcmp.ne.s16.totalorder %v13419_v38, 0 }
 0x28f   : > { %v1187_v34 = vsel %vm18557_vm1, %v13670_v27, 0 }
 0x290   : > { %v1139_v61 = vpop.permute.xlu1 %1138 }
 0x291   : > { %v13639_v63 = vsel %vm18536_vm11, 0, %v1139_v61  ;;  %vm18546_vm11 = vcmp.ne.s16.totalorder %v13507_v25, 0 }
 0x292   : > { %v1141_v0 = vpop.permute.xlu0 %1140  ;;  %1200 = vrot.lane.b32.xlu0 %v13639_v63, %s18394_s3  ;;  %v1172_v6 = vsel %vm18538_vm4, %v13639_v63, 0  ;;  %v1166_v7 = vsel %vm18540_vm13, %v13639_v63, 0  ;;  %vm18548_vm4 = vmmov %vm18542_vm0 }
 0x293   : > { %v13644_v4 = vsel %vm18537_vm5, %v1141_v0, 0  ;;  %v13665_v8 = vsel %vm18542_vm0, %v1139_v61, %v1141_v0  ;;  %vm18547_vm5 = vmmov %vm18540_vm13  ;;  %v1160_v14 = vsel %vm18548_vm4, %v1145_v60, 0  ;;  %vm18550_vm13 = vcmp.ne.s16.totalorder %v13422_v39, 0  ;;  %v1411_v61 = vld [vmem:[%s18577_s10 + $0x28] sm:$0xff]  ;;  %v1410_v0 = vld [vmem:[%s18577_s10 + $0x20] sm:$0xff] }
 0x294   : > { %1204 = vrot.lane.b32.xlu1 %v13644_v4, %s18394_s3  ;;  %v1174_v22 = vsel %vm18539_vm9, %v13644_v4, 0  ;;  %v1168_v28 = vsel %vm18541_vm3, %v13644_v4, 0  ;;  %v1173_v9 = vsel %vm18544_vm10, %v13665_v8, 0  ;;  %v1167_v12 = vsel %vm18546_vm11, %v13665_v8, 0  ;;  %vm18549_vm9 = vmmov %vm18542_vm0 }
 0x295   : > { %v1169_v13 = vsel %vm18547_vm5, %v13670_v27, 0  ;;  %v13693_v15 = vsel %vm18549_vm9, %v1143_v59, %v1145_v60  ;;  %v1177_v16 = vsel %vm18550_vm13, %v1160_v14, 0  ;;  %vm18551_vm3 = vmmov %vm18544_vm10  ;;  %vm18553_vm0 = vcmp.ne.s16.totalorder %v13447_v49, 0  ;;  %v1409_v59 = vld [vmem:[%s18577_s10 + $0x18] sm:$0xff]  ;;  %v1408_v60 = vld [vmem:[%s18577_s10 + $0x10] sm:$0xff] }
 0x296   : > { %1252 = vrot.lane.b32.xlu0 %v1172_v6, %s18390_s22  ;;  %v1176_v19 = vsel %vm18551_vm3, %v13693_v15, 0  ;;  %v1171_v21 = vsel %vm18553_vm0, %v1160_v14, 0  ;;  %vm18554_vm14 = vmmov %vm18546_vm11  ;;  %vm18555_vm10 = vcmp.ne.s16.totalorder %v13439_v45, 0  ;;  %vm18559_vm5 = vcmp.ne.s16.totalorder %v13413_v32, 0  ;;  %v1412_v6 = vld [vmem:[%s18577_s10 + $0x30] sm:$0xff] }
 0x297   : > { %v1170_v29 = vsel %vm18554_vm14, %v13693_v15, 0  ;;  %v1185_v30 = vsel %vm18555_vm10, %v13665_v8, 0  ;;  %vm18558_vm11 = vmmov %vm18557_vm1  ;;  %v1186_v37 = vsel %vm18559_vm5, %v13644_v4, 0  ;;  %vm18560_vm4 = vcmp.ne.s16.totalorder %v13484_v5, 0 }
 0x298   : > { %1256 = vrot.lane.b32.xlu1 %v1174_v22, %s18390_s22  ;;  %v1184_v35 = vsel %vm18558_vm11, %v13639_v63, 0  ;;  %v1179_v40 = vsel %vm18560_vm4, %v13665_v8, 0  ;;  %vm18561_vm9 = vcmp.ne.s16.totalorder %v13399_v23, 0  ;;  %vm18563_vm3 = vcmp.ne.s16.totalorder %v13409_v31, 0  ;;  %vm18565_vm0 = vmmov %vm18559_vm5 }
 0x299   : > { %v1181_v42 = vsel %vm18561_vm9, %v13670_v27, 0  ;;  %vm18562_vm13 = vmmov %vm18561_vm9  ;;  %v1180_v33 = vsel %vm18563_vm3, %v13644_v4, 0  ;;  %v1189_v47 = vsel %vm18565_vm0, %v1160_v14, 0  ;;  %vm18572_vm5 = vcmp.ne.s16.totalorder %v13477_v62, 0 }
 0x29a   : > { %1226 = vrot.lane.b32.xlu0 %v1166_v7, %s18392_s29  ;;  %v1178_v46 = vsel %vm18562_vm13, %v13639_v63, 0  ;;  %vm18566_vm14 = vmmov %vm18555_vm10  ;;  %vm18567_vm10 = vcmp.ne.s16.totalorder %v13445_v48, 0  ;;  %v1194_v52 = vsel %vm18572_vm5, %v13693_v15, 0  ;;  %vm18574_vm9 = vcmp.ne.s16.totalorder %v13432_v44, 0 }
 0x29b   : > { %v1188_v41 = vsel %vm18566_vm14, %v13693_v15, 0  ;;  %v1193_v50 = vsel %vm18567_vm10, %v13670_v27, 0  ;;  %vm18569_vm1 = vmmov %vm18563_vm3  ;;  %v1195_v26 = vsel %vm18574_vm9, %v1160_v14, 0  ;;  %vm18578_vm0 = vcmp.ne.s16.totalorder %v13380_v17, 0 }
 0x29c   : > { %1230 = vrot.lane.b32.xlu1 %v1168_v28, %s18392_s29  ;;  %v1183_v20 = vsel %vm18569_vm1, %v1160_v14, 0  ;;  %vm18570_vm11 = vmmov %vm18560_vm4  ;;  %vm18579_vm14 = vcmp.ne.s16.totalorder %v13385_v18, 0 }
 0x29d   : > { %v1182_v36 = vsel %vm18570_vm11, %v13693_v15, 0  ;;  %vm18573_vm4 = vmmov %vm18572_vm5  ;;  %vm18582_vm11 = vcmask 785408  }
 0x29e   : > { %1202 = vrot.lane.b32.xlu0 %v13665_v8, %s18394_s3  ;;  %v1191_v54 = vsel %vm18573_vm4, %v13665_v8, 0  ;;  %vm18575_vm13 = vmmov %vm18567_vm10 }
 0x29f   : > { %v1190_v55 = vsel %vm18575_vm13, %v13639_v63, 0  ;;  %vm18576_vm3 = vmmov %vm18574_vm9  ;;  %vm18587_vm13 = vcmask 769024  }
 0x2a0   : > { %1206 = vrot.lane.b32.xlu1 %v13670_v27, %s18394_s3  ;;  %v1192_v53 = vsel %vm18576_vm3, %v13644_v4, 0  ;;  %vm18580_vm10 = vmmov %vm18578_vm0 }
 0x2a1   : > { %vm18581_vm1 = vmmov %vm18579_vm14 }
 0x2a2   : > { %1254 = vrot.lane.b32.xlu0 %v1173_v9, %s18390_s22  ;;  %vm18583_vm5 = vmmov %vm18582_vm11 }
 0x2a3   : > { %vm18584_vm4 = vmmov %vm18583_vm5 }
 0x2a4   : > { %1258 = vrot.lane.b32.xlu1 %v1175_v11, %s18390_s22  ;;  %vm18585_vm9 = vmmov %vm18584_vm4 }
 0x2a5   : > { %vm18588_vm3 = vmmov %vm18587_vm13 }
 0x2a6   : > { %1228 = vrot.lane.b32.xlu0 %v1167_v12, %s18392_s29 }
 0x2a8   : > { %1232 = vrot.lane.b32.xlu1 %v1169_v13, %s18392_s29 }
 0x2aa   : > { %1210 = vrot.lane.b32.xlu0 %v1160_v14, %s18394_s3 }
 0x2ac   : > { %1208 = vrot.lane.b32.xlu1 %v13693_v15, %s18394_s3  ;;  %s18600_s3 = smov 2  }
 0x2ae   : > { %1262 = vrot.lane.b32.xlu0 %v1177_v16, %s18390_s22 }
 0x2b0   : > { %1260 = vrot.lane.b32.xlu1 %v1176_v19, %s18390_s22  ;;  %s18612_s22 = smov 110  }
 0x2b2   : > { %1354 = vrot.lane.b32.xlu0 %v1160_v14, %s18552_s24 }
 0x2b4   : > { %1352 = vrot.lane.b32.xlu1 %v13693_v15, %s18552_s24 }
 0x2b6   : > { %1236 = vrot.lane.b32.xlu0 %v1171_v21, %s18392_s29 }
 0x2b8   : > { %1234 = vrot.lane.b32.xlu1 %v1170_v29, %s18392_s29  ;;  %s18607_s29 = smov 126  }
 0x2ba   : > { %1346 = vrot.lane.b32.xlu0 %v13665_v8, %s18552_s24 }
 0x2bc   : > { %1350 = vrot.lane.b32.xlu1 %v13670_v27, %s18552_s24 }
 0x2be   : > { %1344 = vrot.lane.b32.xlu0 %v13639_v63, %s18552_s24 }
 0x2c0   : > { %1348 = vrot.lane.b32.xlu1 %v13644_v4, %s18552_s24 }
 0x2c2   : > { %1326 = vrot.lane.b32.xlu0 %v1185_v30, %s18556_s27 }
 0x2c4   : > { %1330 = vrot.lane.b32.xlu1 %v1187_v34, %s18556_s27 }
 0x2c6   : > { %1324 = vrot.lane.b32.xlu0 %v1184_v35, %s18556_s27 }
 0x2c8   : > { %1328 = vrot.lane.b32.xlu1 %v1186_v37, %s18556_s27 }
 0x2ca   : > { %1300 = vrot.lane.b32.xlu0 %v1179_v40, %s18388_s30 }
 0x2cc   : > { %1304 = vrot.lane.b32.xlu1 %v1181_v42, %s18388_s30 }
 0x2ce   : > { %1298 = vrot.lane.b32.xlu0 %v1178_v46, %s18388_s30 }
 0x2d0   : > { %1302 = vrot.lane.b32.xlu1 %v1180_v33, %s18388_s30 }
 0x2d2   : > { %1282 = vrot.lane.b32.xlu0 %v1160_v14, %s18564_s28 }
 0x2d4   : > { %1280 = vrot.lane.b32.xlu1 %v13693_v15, %s18564_s28 }
 0x2d6   : > { %1334 = vrot.lane.b32.xlu0 %v1189_v47, %s18556_s27 }
 0x2d8   : > { %1332 = vrot.lane.b32.xlu1 %v1188_v41, %s18556_s27 }
 0x2da   : > { %1376 = vrot.lane.b32.xlu0 %v1193_v50, %s18568_s26 }
 0x2dc   : > { %1278 = vrot.lane.b32.xlu1 %v13670_v27, %s18564_s28 }
 0x2de   : > { %1308 = vrot.lane.b32.xlu0 %v1183_v20, %s18388_s30 }
 0x2e0   : > { %1306 = vrot.lane.b32.xlu1 %v1182_v36, %s18388_s30  ;;  %s18605_s30 = smov 18  }
 0x2e2   : > { %1276 = vrot.lane.b32.xlu0 %v13644_v4, %s18564_s28  ;;  %v1413_v4 = vld [vmem:[%s18577_s10 + $0x38] sm:$0xff]  ;;  %s18640_s10 = sld [smem:[#allocation56_spill]] }
 0x2e4   : > { %1274 = vrot.lane.b32.xlu1 %v13665_v8, %s18564_s28 }
 0x2e6   : > { %1378 = vrot.lane.b32.xlu0 %v1194_v52, %s18568_s26 }
 0x2e8   : > { %1272 = vrot.lane.b32.xlu1 %v13639_v63, %s18564_s28 }
 0x2ea   : > { %1372 = vrot.lane.b32.xlu0 %v1191_v54, %s18568_s26 }
 0x2ec   : > { %1380 = vrot.lane.b32.xlu1 %v1195_v26, %s18568_s26 }
 0x2ee   : > { %1370 = vrot.lane.b32.xlu0 %v1190_v55, %s18568_s26 }
 0x2f0   : > { %1374 = vrot.lane.b32.xlu1 %v1192_v53, %s18568_s26 }
 0x2f2   : > { %1421 = vperm.xlu0 %12652, %v1407_v56  }
 0x2f4   : > { %1416 = vperm.xlu1 %12653, %v1406_v57  }
 0x2f6   : > { %1431 = vperm.xlu0 %12652, %v1409_v59  }
 0x2f8   : > { %1426 = vperm.xlu1 %12653, %v1408_v60  }
 0x2fa   : > { %1441 = vperm.xlu0 %12652, %v1411_v61  }
 0x2fc   : > { %1436 = vperm.xlu1 %12653, %v1410_v0  }
 0x2fe   : > { %1451 = vperm.xlu0 %12652, %v1413_v4  }
 0x300   : > { %1446 = vperm.xlu1 %12653, %v1412_v6  }
 0x304   : > { %v1201_v22 = vpop.permute.xlu0 %1200 }
 0x306   : > { %v1205_v7 = vpop.permute.xlu1 %1204 }
 0x308   : > { %v1253_v28 = vpop.permute.xlu0 %1252 }
 0x30a   : > { %v1257_v9 = vpop.permute.xlu1 %1256 }
 0x30c   : > { %v1227_v11 = vpop.permute.xlu0 %1226 }
 0x30e   : > { %v1231_v12 = vpop.permute.xlu1 %1230 }
 0x310   : > { %v1203_v13 = vpop.permute.xlu0 %1202 }
 0x311   : > { %v1213_v61 = vsel %vm804_vm8, %v1203_v13, %v1205_v7  ;;  %v1212_v6 = vsel %vm804_vm8, %v1201_v22, %v1203_v13  ;;  %v1162_v22 = vsel %vm18581_vm1, %v13639_v63, 0 }
 0x312   : > { %v1207_v14 = vpop.permute.xlu1 %1206 }
 0x314   : > { %v1255_v16 = vpop.permute.xlu0 %1254 }
 0x315   : > { %v1265_v33 = vsel %vm854_vm6, %v1255_v16, %v1257_v9  ;;  %v1264_v50 = vsel %vm854_vm6, %v1253_v28, %v1255_v16 }
 0x316   : > { %v1259_v19 = vpop.permute.xlu1 %1258 }
 0x318   : > { %v1229_v21 = vpop.permute.xlu0 %1228 }
 0x319   : > { %v1239_v54 = vsel %vm821_vm2, %v1229_v21, %v1231_v12  ;;  %v1238_v53 = vsel %vm821_vm2, %v1227_v11, %v1229_v21  ;;  %v1164_v11 = vsel %vm18579_vm14, %v13670_v27, 0 }
 0x31a   : > { %v1233_v29 = vpop.permute.xlu1 %1232 }
 0x31c   : > { %v1211_v30 = vpop.permute.xlu0 %1210 }
 0x31e   : > { %v1209_v34 = vpop.permute.xlu1 %1208 }
 0x31f   : > { %v1215_v56 = vsel %vm804_vm8, %v1209_v34, %v1211_v30  ;;  %v1214_v60 = vsel %vm804_vm8, %v1207_v14, %v1209_v34 }
 0x320   : > { %v1263_v35 = vpop.permute.xlu0 %1262 }
 0x322   : > { %v1261_v37 = vpop.permute.xlu1 %1260 }
 0x323   : > { %v1267_v40 = vsel %vm854_vm6, %v1261_v37, %v1263_v35  ;;  %v1266_v42 = vsel %vm854_vm6, %v1259_v19, %v1261_v37 }
 0x324   : > { %v1355_v46 = vpop.permute.xlu0 %1354  ;;  %1527 = vmatprep.subr.bf16.mxu1 %v1267_v40 }
 0x325   : > { %1528 = vmatpush1.bf16.msra.mxu1 %v1266_v42 }
 0x326   : > { %1529 = vmatprep.subr.bf16.mxu1 %v1265_v33  ;;  %v1353_v47 = vpop.permute.xlu1 %1352 }
 0x328   : > { %v1237_v41 = vpop.permute.xlu0 %1236 }
 0x329   : > { %1530 = vmatpush1.bf16.msra.mxu1 %v1264_v50 }
 0x32a   : > { %v1235_v20 = vpop.permute.xlu1 %1234 }
 0x32b   : > { %v1241_v36 = vsel %vm821_vm2, %v1235_v20, %v1237_v41  ;;  %v1240_v51 = vsel %vm821_vm2, %v1233_v29, %v1235_v20 }
 0x32c   : > { %v1347_v52 = vpop.permute.xlu0 %1346  ;;  %1531 = vmatprep.subr.bf16.mxu1 %v1241_v36 }
 0x32d   : > { %1532 = vmatpush1.bf16.msra.mxu1 %v1240_v51 }
 0x32e   : > { %1533 = vmatprep.subr.bf16.mxu1 %v1239_v54  ;;  %v1351_v26 = vpop.permute.xlu1 %1350 }
 0x32f   : > { %v1358_v16 = vsel %vm943_vm7, %v1351_v26, %v1353_v47 }
 0x330   : > { %v1345_v55 = vpop.permute.xlu0 %1344 }
 0x331   : > { %1534 = vmatpush1.bf16.msra.mxu1 %v1238_v53  ;;  %v1356_v21 = vsel %vm943_vm7, %v1345_v55, %v1347_v52 }
 0x332   : > { %1535 = vmatprep.subr.bf16.mxu1 %v1215_v56  ;;  %v1349_v57 = vpop.permute.xlu1 %1348 }
 0x333   : > { %v1357_v27 = vsel %vm943_vm7, %v1347_v52, %v1349_v57  ;;  %v12674_v57 = vld [vmem:[%s18586_s17 + $0x178] sm:$0xff]  }
 0x334   : > { %v1327_v59 = vpop.permute.xlu0 %1326 }
 0x335   : > { %1536 = vmatpush1.bf16.msra.mxu1 %v1214_v60 }
 0x336   : > { %1537 = vmatprep.subr.bf16.mxu1 %v1213_v61  ;;  %v1331_v0 = vpop.permute.xlu1 %1330 }
 0x338   : > { %v1325_v4 = vpop.permute.xlu0 %1324 }
 0x339   : > { %1538 = vmatpush1.bf16.msra.mxu1 %v1212_v6  ;;  %v1336_v42 = vsel %vm18585_vm9, %v1325_v4, %v1327_v59  ;;  %v12661_v6 = vld [vmem:[%s18571_s1 + $0x1c] ss:$12 sps:$4 sm:$0xff]  }
 0x33a   : > { %10665 = vmatprep.subr.msk.bf16.mxu1 %vm18578_vm0, %v13693_v15  ;;  %v1329_v28 = vpop.permute.xlu1 %1328  ;;  %v1359_v15 = vsel %vm943_vm7, %v1353_v47, %v1355_v46  ;;  %vm18589_vm0 = vmmov %vm18588_vm3 }
 0x33b   : > { %v1337_v35 = vsel %vm18584_vm4, %v1327_v59, %v1329_v28  ;;  %vm18590_vm14 = vmmov %vm18589_vm0 }
 0x33c   : > { %v1301_v9 = vpop.permute.xlu0 %1300 }
 0x33d   : > { %1540 = vmatpush1.bf16.msra.mxu1 %v1164_v11  ;;  %v12676_v11 = vld [vmem:[%s18586_s17 + $0x138] sm:$0xff]  }
 0x33e   : > { %10666 = vmatprep.subr.msk.bf16.mxu1 %vm18580_vm10, %v13665_v8  ;;  %v1305_v7 = vpop.permute.xlu1 %1304  ;;  %vm18591_vm10 = vcmask 261120  }
 0x33f   : > { %vm18592_vm1 = vmmov %vm18591_vm10 }
 0x340   : > { %v1299_v12 = vpop.permute.xlu0 %1298 }
 0x341   : > { %1542 = vmatpush1.bf16.msra.mxu1 %v1162_v22  ;;  %v1310_v51 = vsel %vm906_vm12, %v1299_v12, %v1301_v9  ;;  %v12678_v12 = vld [vmem:[%s18586_s17 + $0x170] sm:$0xff]  }
 0x342   : > { %1543 = vmatprep.subr.bf16.mxu1 %v1359_v15  ;;  %v1303_v13 = vpop.permute.xlu1 %1302  ;;  %v12660_v15 = vld [vmem:[%s18571_s1 + $0x8] ss:$12 sps:$4 sm:$0xff]  }
 0x343   : > { %v1311_v50 = vsel %vm906_vm12, %v1301_v9, %v1303_v13  ;;  %v12673_v9 = vld [vmem:[%s18586_s17 + $0x78] sm:$0xff]  }
 0x344   : > { %v1283_v14 = vpop.permute.xlu0 %1282  ;;  %v12675_v13 = vld [vmem:[%s18586_s17 + $0x38] sm:$0xff]  }
 0x345   : > { %1544 = vmatpush2.bf16.msra.mxu1 %v1358_v16  ;;  %v12680_v16 = vld [vmem:[%s18586_s17 + $0x130] sm:$0xff]  }
 0x346   : > { %1545 = vmatprep.subr.bf16.mxu1 %v1357_v27  ;;  %v1281_v19 = vpop.permute.xlu1 %1280  ;;  %v12682_v27 = vld [vmem:[%s18586_s17 + $0x168] sm:$0xff]  }
 0x347   : > { %v1287_v52 = vsel %vm870_vm15, %v1281_v19, %v1283_v14  ;;  %v12677_v14 = vld [vmem:[%s18586_s17 + $0x70] sm:$0xff]  }
 0x348   : > { %v1335_v8 = vpop.permute.xlu0 %1334 }
 0x349   : > { %1546 = vmatpush2.bf16.msra.mxu1 %v1356_v21  ;;  %v12679_v21 = vld [vmem:[%s18586_s17 + $0x30] sm:$0xff]  }
 0x34a   : > { %v1333_v29 = vpop.permute.xlu1 %1332 }
 0x34b   : > { %v1339_v63 = vsel %vm18582_vm11, %v1333_v29, %v1335_v8  ;;  %v1338_v30 = vsel %vm18583_vm5, %v1331_v0, %v1333_v29  ;;  %v12657_v0 = vld [vmem:[%s18571_s1] ss:$12 sps:$4 sm:$0xff]   ;;  %vm18593_vm11 = vmmov %vm18592_vm1 }
 0x34c   : > { %v1377_v34 = vpop.permute.xlu0 %1376  ;;  %1547 = vmatprep.subr.bf16.mxu1 %v1339_v63  ;;  %v12665_v8 = vld [vmem:[%s18571_s1 + $0x34] ss:$12 sps:$4 sm:$0xff]   ;;  %v12681_v29 = vld [vmem:[%s18586_s17 + $0x68] sm:$0xff]   ;;  %vm18594_vm5 = vmmov %vm18592_vm1 }
 0x34d   : > { %1548 = vmatpush2.bf16.msra.mxu1 %v1338_v30  ;;  %v12684_v63 = vld [vmem:[%s18586_s17 + $0x128] sm:$0xff]   ;;  %v12686_v30 = vld [vmem:[%s18586_s17 + $0x160] sm:$0xff]  }
 0x34e   : > { %1549 = vmatprep.subr.bf16.mxu1 %v1337_v35  ;;  %v1279_v37 = vpop.permute.xlu1 %1278  ;;  %v12683_v35 = vld [vmem:[%s18586_s17 + $0x28] sm:$0xff]  }
 0x34f   : > { %v1286_v55 = vsel %vm870_vm15, %v1279_v37, %v1281_v19  ;;  %v12663_v19 = vld [vmem:[%s18571_s1 + $0x18] ss:$12 sps:$4 sm:$0xff]  }
 0x350   : > { %v1309_v40 = vpop.permute.xlu0 %1308  ;;  %v12685_v37 = vld [vmem:[%s18586_s17 + $0x60] sm:$0xff]  }
 0x351   : > { %1550 = vmatpush2.bf16.msra.mxu1 %v1336_v42  ;;  %v12667_v42 = vld [vmem:[%s18571_s1 + $0x30] ss:$12 sps:$4 sm:$0xff]  }
 0x352   : > { %v1307_v46 = vpop.permute.xlu1 %1306 }
 0x353   : > { %v1313_v33 = vsel %vm906_vm12, %v1307_v46, %v1309_v40  ;;  %v1312_v47 = vsel %vm906_vm12, %v1305_v7, %v1307_v46  ;;  %v12688_v40 = vld [vmem:[%s18586_s17 + $0x120] sm:$0xff]   ;;  %v12669_v46 = vld [vmem:[%s18571_s1 + $0x4c] ss:$12 sps:$4 sm:$0xff]  }
 0x354   : > { %v1277_v41 = vpop.permute.xlu0 %1276  ;;  %1551 = vmatprep.subr.bf16.mxu1 %v1313_v33  ;;  %v12687_v33 = vld [vmem:[%s18586_s17 + $0x20] sm:$0xff]  }
 0x355   : > { %1552 = vmatpush2.bf16.msra.mxu1 %v1312_v47  ;;  %v12668_v47 = vld [vmem:[%s18571_s1 + $0x38] ss:$12 sps:$4 sm:$0xff]  }
 0x356   : > { %1553 = vmatprep.subr.bf16.mxu1 %v1311_v50  ;;  %v1275_v20 = vpop.permute.xlu1 %1274  ;;  %v12672_v50 = vld [vmem:[%s18571_s1 + $0x50] ss:$12 sps:$4 sm:$0xff]  }
 0x357   : > { %v1285_v53 = vsel %vm870_vm15, %v1275_v20, %v1277_v41  ;;  %v12671_v41 = vld [vmem:[%s18571_s1 + $0x48] ss:$12 sps:$4 sm:$0xff]  }
 0x358   : > { %v1379_v36 = vpop.permute.xlu0 %1378 }
 0x359   : > { %1554 = vmatpush2.bf16.msra.mxu1 %v1310_v51  ;;  %v1384_v61 = vsel %vm18588_vm3, %v1377_v34, %v1379_v36  ;;  %v12664_v34 = vld [vmem:[%s18571_s1 + $0x20] ss:$12 sps:$4 sm:$0xff]   ;;  %v12691_v51 = vld [vmem:[%s18586_s17 + $0x18] sm:$0xff]   ;;  %s18712_s1 = sld [smem:[#allocation57_spill]] }
 0x35a   : > { %1555 = vmatprep.subr.bf16.mxu1 %v1287_v52  ;;  %v1273_v54 = vpop.permute.xlu1 %1272  ;;  %v12692_v52 = vld [vmem:[%s18586_s17 + $0x118] sm:$0xff]  }
 0x35b   : > { %v1284_v60 = vsel %vm870_vm15, %v1273_v54, %v1275_v20  ;;  %v12689_v20 = vld [vmem:[%s18586_s17 + $0x58] sm:$0xff]   ;;  %v12693_v54 = vld [vmem:[%s18586_s17 + $0x50] sm:$0xff]  }
 0x35c   : > { %v1373_v26 = vpop.permute.xlu0 %1372 }
 0x35d   : > { %1556 = vmatpush2.bf16.msra.mxu1 %v1286_v55  ;;  %v12695_v55 = vld [vmem:[%s18586_s17 + $0x10] sm:$0xff]  }
 0x35e   : > { %1557 = vmatprep.subr.bf16.mxu1 %v1285_v53  ;;  %v1381_v56 = vpop.permute.xlu1 %1380  ;;  %v12696_v53 = vld [vmem:[%s18586_s17 + $0x110] sm:$0xff]  }
 0x35f   : > { %v1385_v59 = vsel %vm18587_vm13, %v1379_v36, %v1381_v56  ;;  %v12690_v36 = vld [vmem:[%s18586_s17 + $0x158] sm:$0xff]   ;;  %v12697_v56 = vld [vmem:[%s18586_s17 + $0x48] sm:$0xff]  }
 0x360   : > { %1612 = vmatprep.subr.bf16.mxu0 %v1385_v59  ;;  %v1371_v4 = vpop.permute.xlu0 %1370  ;;  %v12699_v59 = vld [vmem:[%s18586_s17 + $0x8] sm:$0xff]  }
 0x361   : > { %1558 = vmatpush2.bf16.msra.mxu1 %v1284_v60  ;;  %1613 = vmatpush1.bf16.msra.mxu0 %v1384_v61  ;;  %v1382_v22 = vsel %vm18590_vm14, %v1371_v4, %v1373_v26  ;;  %v12700_v60 = vld [vmem:[%s18586_s17 + $0x108] sm:$0xff]   ;;  %v12701_v61 = vld [vmem:[%s18586_s17 + $0x40] sm:$0xff]   ;;  %vm2521_vm14 = vcmask 596992  }
 0x362   : > { %v1375_v28 = vpop.permute.xlu1 %1374  ;;  %11424 = vmatprep.subr.bf16.mxu1 %v12674_v57  ;;  %v12698_v57 = vld [vmem:[%s18586_s17 + $0x148] sm:$0xff]   ;;  %v12703_v4 = vld [vmem:[%s18586_s17] sm:$0xff]  }
 0x363   : > { %v1383_v7 = vsel %vm18589_vm0, %v1373_v26, %v1375_v28  ;;  %v12694_v26 = vld [vmem:[%s18586_s17 + $0x150] sm:$0xff]   ;;  %v12705_v28 = vld [vmem:[%s18586_s17 + $0xf8] sm:$0xff]   ;;  %vm2512_vm0 = vcmask 72704  }
 0x364   : > { %1560 = vmatmul.mubr.bf16.vlgmr.msra.gmra.mxu1 %v12657_v0  ;;  %1614 = vmatprep.subr.bf16.mxu0 %v1383_v7  ;;  %v12702_v0 = vld [vmem:[%s18586_s17 + $0x140] sm:$0xff]  }
 0x365   : > { %1615 = vmatpush1.bf16.msra.mxu0 %v1382_v22  ;;  %1569 = vmatprep.mubr.bf16.mxu1 %v12661_v6  ;;  %v12704_v6 = vld [vmem:[%s18586_s17 + $0x100] sm:$0xff]  }
 0x366   : > { %11344 = vmatprep.subr.bf16.mxu0 %v12673_v9  ;;  %11425 = vmatpush3.bf16.msra.mxu1 %v12676_v11 }
 0x367   : > { %11426 = vmatprep.subr.bf16.mxu1 %v12678_v12 }
 0x368   : > { %10667 = vmatmul.mubr.msk.bf16.vlgmr.msra.gmra.mxu0 %vm18591_vm10, %v12660_v15 }
 0x369   : > { %1642 = vmatprep.mubr.bf16.mxu0 %v18398_v1  ;;  %11345 = vmatpush3.bf16.msra.mxu0 %v12675_v13 }
 0x36a   : > { %11346 = vmatprep.subr.bf16.mxu0 %v12677_v14  ;;  %11427 = vmatpush3.bf16.msra.mxu1 %v12680_v16 }
 0x36b   : > { %11428 = vmatprep.subr.bf16.mxu1 %v12682_v27 }
 0x36c   : > { %1570 = vmatmul.mubr.bf16.gmra.mxu1 %v12663_v19 }
 0x36d   : > { %1579 = vmatprep.mubr.bf16.mxu1 %v12665_v8  ;;  %11347 = vmatpush3.bf16.msra.mxu0 %v12679_v21  ;;  %v1422_v22 = vpop.permute.xlu0 %1421 }
 0x36e   : > { %11348 = vmatprep.subr.bf16.mxu0 %v12681_v29  ;;  %11429 = vmatpush3.bf16.msra.mxu1 %v12684_v63 }
 0x36f   : > { %11430 = vmatprep.subr.bf16.mxu1 %v12686_v30  ;;  %v1417_v15 = vpop.permute.xlu1 %1416 }
 0x370   : > { %10668 = vmatmul.mubr.msk.bf16.gmra.mxu0 %vm18592_vm1, %v12664_v34 }
 0x371   : > { %1652 = vmatprep.mubr.bf16.mxu0 %v18398_v1  ;;  %11349 = vmatpush3.bf16.msra.mxu0 %v12683_v35 }
 0x372   : > { %11350 = vmatprep.subr.bf16.mxu0 %v12685_v37  ;;  %11431 = vmatpush3.bf16.msra.mxu1 %v12688_v40 }
 0x373   : > { %11432 = vmatprep.subr.bf16.mxu1 %v12690_v36 }
 0x374   : > { %1580 = vmatmul.mubr.bf16.gmra.mxu1 %v12667_v42 }
 0x375   : > { %1589 = vmatprep.mubr.bf16.mxu1 %v12669_v46  ;;  %11351 = vmatpush3.bf16.msra.mxu0 %v12687_v33 }
 0x376   : > { %11352 = vmatprep.subr.bf16.mxu0 %v12689_v20  ;;  %11433 = vmatpush3.bf16.msra.mxu1 %v12692_v52 }
 0x377   : > { %11434 = vmatprep.subr.bf16.mxu1 %v12694_v26 }
 0x378   : > { %10669 = vmatmul.mubr.msk.bf16.gmra.mxu0 %vm18593_vm11, %v12668_v47  ;;  %v1432_v47 = vpop.permute.xlu0 %1431 }
 0x379   : > { %1662 = vmatprep.mubr.bf16.mxu0 %v18398_v1  ;;  %11353 = vmatpush3.bf16.msra.mxu0 %v12691_v51 }
 0x37a   : > { %11354 = vmatprep.subr.bf16.mxu0 %v12693_v54  ;;  %11435 = vmatpush3.bf16.msra.mxu1 %v12696_v53  ;;  %v12706_v53 = vld [vmem:[%s18586_s17 + $0xb8] sm:$0xff]  }
 0x37b   : > { %11436 = vmatprep.subr.bf16.mxu1 %v12698_v57 }
 0x37c   : > { %1590 = vmatmul.mubr.bf16.gmra.mxu1 %v12671_v41  ;;  %v1427_v41 = vpop.permute.xlu1 %1426 }
 0x37d   : > { %11355 = vmatpush3.bf16.msra.mxu0 %v12695_v55 }
 0x37e   : > { %11356 = vmatprep.subr.bf16.mxu0 %v12697_v56  ;;  %11437 = vmatpush3.bf16.msra.mxu1 %v12700_v60 }
 0x37f   : > { %11438 = vmatprep.subr.bf16.mxu1 %v12702_v0 }
 0x380   : > { %10670 = vmatmul.mubr.msk.bf16.gmra.mxu0 %vm18594_vm5, %v12672_v50 }
 0x381   : > { %11357 = vmatpush3.bf16.msra.mxu0 %v12699_v59 }
 0x382   : > { %11358 = vmatprep.subr.bf16.mxu0 %v12701_v61  ;;  %11439 = vmatpush3.bf16.msra.mxu1 %v12704_v6  ;;  %v12707_v61 = vld [vmem:[%s18586_s17 + $0xf0] sm:$0xff]  }
 0x385   : > { %11359 = vmatpush3.bf16.msra.mxu0 %v12703_v4 }
 0x386   : > { %11384 = vmatprep.subr.bf16.mxu0 %v12705_v28 }
 0x424   : > { %v1561_v9 = vpop.f32.mrf.mxu1 }
 0x425   : > { %v1562_v19 = vadd.f32 %v1561_v9, %v1417_v15 }
 0x426   : > { %v1563_v11 = vpop.f32.mrf.mxu1 }
 0x427   : > { %v1564_v16 = vadd.f32 %v1563_v11, %v1417_v15 }
 0x428   : > { %v1565_v7 = vpop.f32.mrf.mxu1  ;;  %v1634_v12 = vpop.f32.mrf.mxu0 }
 0x429   : > { %v1566_v27 = vadd.f32 %v1565_v7, %v1422_v22  ;;  %v1635_v34 = vadd.f32 %v1634_v12, %v1562_v19  ;;  %v12708_v12 = vld [vmem:[%s18586_s17 + $0xb0] sm:$0xff]  }
 0x42a   : > { %v1567_v13 = vpop.f32.mrf.mxu1  ;;  %v1636_v14 = vpop.f32.mrf.mxu0 }
 0x42b   : > { %v1568_v29 = vadd.f32 %v1567_v13, %v1422_v22  ;;  %v1637_v63 = vadd.f32 %v1636_v14, %v1564_v16  ;;  %v1673_v36 = vmax.f32 %v1635_v34, 0.0  ;;  %v12709_v14 = vld [vmem:[%s18586_s17 + $0xe8] sm:$0xff]   ;;  %v1442_v16 = vpop.permute.xlu0 %1441 }
 0x42c   : > { %v1571_v8 = vpop.f32.mrf.mxu1  ;;  %v1638_v21 = vpop.f32.mrf.mxu0 }
 0x42d   : > { %v1639_v30 = vadd.f32 %v1638_v21, %v1566_v27  ;;  %v1674_v50 = vmax.f32 %v1637_v63, 0.0  ;;  %v1572_v56 = vadd.f32 %v1571_v8, %v1427_v41  ;;  %v1437_v27 = vpop.permute.xlu1 %1436 }
 0x42e   : > { %v1573_v35 = vpop.f32.mrf.mxu1  ;;  %v1640_v37 = vpop.f32.mrf.mxu0 }
 0x42f   : > { %v1641_v40 = vadd.f32 %v1640_v37, %v1568_v29  ;;  %v1675_v42 = vmax.f32 %v1639_v30, 0.0  ;;  %v1574_v54 = vadd.f32 %v1573_v35, %v1427_v41  ;;  %v12710_v37 = vld [vmem:[%s18586_s17 + $0xa8] sm:$0xff]  }
 0x430   : > { %v1575_v46 = vpop.f32.mrf.mxu1  ;;  %v1644_v33 = vpop.f32.mrf.mxu0 }
 0x431   : > { %v1676_v20 = vmax.f32 %v1641_v40, 0.0  ;;  %v1576_v55 = vadd.f32 %v1575_v46, %v1432_v47  ;;  %v14017_v57 = vpack.c.bf16 %v1675_v42, %v1673_v36  ;;  %v1645_v28 = vadd.f32 %v1644_v33, %v1572_v56 }
 0x432   : > { %v1577_v51 = vpop.f32.mrf.mxu1  ;;  %v1646_v52 = vpop.f32.mrf.mxu0 }
 0x433   : > { %v14012_v26 = vpack.c.bf16 %v1676_v20, %v1674_v50  ;;  %v1578_v0 = vadd.f32 %v1577_v51, %v1432_v47  ;;  %v1647_v4 = vadd.f32 %v1646_v52, %v1574_v54  ;;  %v1677_v21 = vmax.f32 %v1645_v28, 0.0  ;;  %v12711_v47 = vld [vmem:[%s18586_s17 + $0xe0] sm:$0xff]  }
 0x434   : > { %v1581_v59 = vpop.f32.mrf.mxu1  ;;  %v1648_v60 = vpop.f32.mrf.mxu0 }
 0x435   : > { %v1649_v6 = vadd.f32 %v1648_v60, %v1576_v55  ;;  %1857 = vmatprep.mubr.bf16.mxu0 %v14012_v26  ;;  %2253 = vmatprep.mubr.bf16.mxu1 %v14012_v26  ;;  %v1678_v19 = vmax.f32 %v1647_v4, 0.0  ;;  %v1582_v40 = vadd.f32 %v1581_v59, %v1437_v27  ;;  %v12712_v55 = vld [vmem:[%s18586_s17 + $0xa0] sm:$0xff]   ;;  %v12713_v60 = vld [vmem:[%s18586_s17 + $0xd8] sm:$0xff]  }
 0x436   : > { %v1583_v9 = vpop.f32.mrf.mxu1  ;;  %v1650_v11 = vpop.f32.mrf.mxu0  ;;  %1858 = vmatmul.mubr.bf16.vlgmr.msra.gmra.mxu0 %v14017_v57  ;;  %2254 = vmatmul.mubr.bf16.vlgmr.msra.gmra.mxu1 %v14017_v57 }
 0x437   : > { %v1651_v7 = vadd.f32 %v1650_v11, %v1578_v0  ;;  %11385 = vmatpush3.bf16.msra.mxu0 %v12706_v53  ;;  %v1679_v22 = vmax.f32 %v1649_v6, 0.0  ;;  %v1584_v30 = vadd.f32 %v1583_v9, %v1437_v27  ;;  %v1447_v0 = vpop.permute.xlu1 %1446  ;;  %v12715_v27 = vld [vmem:[%s18586_s17 + $0xd0] sm:$0xff]  }
 0x438   : > { %v1585_v15 = vpop.f32.mrf.mxu1  ;;  %v1654_v13 = vpop.f32.mrf.mxu0  ;;  %11386 = vmatprep.subr.bf16.mxu0 %v12707_v61 }
 0x439   : > { %v1680_v8 = vmax.f32 %v1651_v7, 0.0  ;;  %v1586_v35 = vadd.f32 %v1585_v15, %v1442_v16  ;;  %v14037_v42 = vpack.c.bf16 %v1679_v22, %v1677_v21  ;;  %v1655_v36 = vadd.f32 %v1654_v13, %v1582_v40  ;;  %v1452_v61 = vpop.permute.xlu0 %1451  ;;  %v12714_v15 = vld [vmem:[%s18586_s17 + $0x98] sm:$0xff]   ;;  %v12717_v40 = vld [vmem:[%s18586_s17 + $0xc8] sm:$0xff]  }
 0x43a   : > { %v1587_v29 = vpop.f32.mrf.mxu1  ;;  %v1656_v63 = vpop.f32.mrf.mxu0 }
 0x43b   : > { %v14032_v34 = vpack.c.bf16 %v1680_v8, %v1678_v19  ;;  %11387 = vmatpush3.bf16.msra.mxu0 %v12708_v12  ;;  %v1588_v41 = vadd.f32 %v1587_v29, %v1442_v16  ;;  %v1657_v50 = vadd.f32 %v1656_v63, %v1584_v30  ;;  %v1681_v28 = vmax.f32 %v1655_v36, 0.0  ;;  %v12719_v36 = vld [vmem:[%s18586_s17 + $0xc0] sm:$0xff]  }
 0x43c   : > { %v1591_v46 = vpop.f32.mrf.mxu1  ;;  %v1658_v33 = vpop.f32.mrf.mxu0  ;;  %11388 = vmatprep.subr.bf16.mxu0 %v12709_v14 }
 0x43d   : > { %v1659_v20 = vadd.f32 %v1658_v33, %v1586_v35  ;;  %1865 = vmatprep.mubr.bf16.mxu0 %v14032_v34  ;;  %2261 = vmatprep.mubr.bf16.mxu1 %v14032_v34  ;;  %v1682_v4 = vmax.f32 %v1657_v50, 0.0  ;;  %v1592_v13 = vadd.f32 %v1591_v46, %v1447_v0  ;;  %v12716_v35 = vld [vmem:[%s18586_s17 + $0x90] sm:$0xff]   ;;  %v12718_v50 = vld [vmem:[%s18586_s17 + $0x88] sm:$0xff]  }
 0x43e   : > { %v1593_v51 = vpop.f32.mrf.mxu1  ;;  %v1660_v52 = vpop.f32.mrf.mxu0  ;;  %1866 = vmatmul.mubr.bf16.gmra.mxu0 %v14037_v42  ;;  %2262 = vmatmul.mubr.bf16.gmra.mxu1 %v14037_v42 }
 0x43f   : > { %v1661_v54 = vadd.f32 %v1660_v52, %v1588_v41  ;;  %11389 = vmatpush3.bf16.msra.mxu0 %v12710_v37  ;;  %v1683_v53 = vmax.f32 %v1659_v20, 0.0  ;;  %v1594_v7 = vadd.f32 %v1593_v51, %v1447_v0  ;;  %v12720_v51 = vld [vmem:[%s18586_s17 + $0x80] sm:$0xff]   ;;  %v12721_v52 = vld [vmem:[%s18586_s17 + $0x1f8] sm:$0xff]  }
 0x440   : > { %v1595_v56 = vpop.f32.mrf.mxu1  ;;  %v1664_v59 = vpop.f32.mrf.mxu0  ;;  %11390 = vmatprep.subr.bf16.mxu0 %v12711_v47  ;;  %v12729_v0 = vld [vmem:[%s18586_s17 + $0x1d8] sm:$0xff]  }
 0x441   : > { %v1684_v6 = vmax.f32 %v1661_v54, 0.0  ;;  %v1596_v22 = vadd.f32 %v1595_v56, %v1452_v61  ;;  %v14057_v14 = vpack.c.bf16 %v1683_v53, %v1681_v28  ;;  %v1665_v29 = vadd.f32 %v1664_v59, %v1592_v13  ;;  %v12722_v54 = vld [vmem:[%s18586_s17 + $0x1b8] sm:$0xff]   ;;  %v12724_v53 = vld [vmem:[%s18586_s17 + $0x1b0] sm:$0xff]   ;;  %v12725_v56 = vld [vmem:[%s18586_s17 + $0x1e8] sm:$0xff]  }
 0x442   : > { %v1597_v9 = vpop.f32.mrf.mxu1  ;;  %v1666_v11 = vpop.f32.mrf.mxu0  ;;  %v12726_v59 = vld [vmem:[%s18586_s17 + $0x1a8] sm:$0xff]   ;;  %v12732_v28 = vld [vmem:[%s18586_s17 + $0x190] sm:$0xff]  }
 0x443   : > { %v14052_v12 = vpack.c.bf16 %v1684_v6, %v1682_v4  ;;  %11391 = vmatpush3.bf16.msra.mxu0 %v12712_v55  ;;  %v1598_v19 = vadd.f32 %v1597_v9, %v1452_v61  ;;  %v1667_v8 = vadd.f32 %v1666_v11, %v1594_v7  ;;  %v1685_v47 = vmax.f32 %v1665_v29, 0.0  ;;  %v12723_v55 = vld [vmem:[%s18586_s17 + $0x1f0] sm:$0xff]   ;;  %v12728_v61 = vld [vmem:[%s18586_s17 + $0x1a0] sm:$0xff]   ;;  %v12730_v4 = vld [vmem:[%s18586_s17 + $0x198] sm:$0xff]  }
 0x444   : > { %v1668_v16 = vpop.f32.mrf.mxu0  ;;  %11392 = vmatprep.subr.bf16.mxu0 %v12713_v60  ;;  %v12727_v60 = vld [vmem:[%s18586_s17 + $0x1e0] sm:$0xff]   ;;  %v12731_v6 = vld [vmem:[%s18586_s17 + $0x1d0] sm:$0xff]   ;;  %v12733_v9 = vld [vmem:[%s18586_s17 + $0x1c8] sm:$0xff]  }
 0x445   : > { %v1669_v21 = vadd.f32 %v1668_v16, %v1596_v22  ;;  %1873 = vmatprep.mubr.bf16.mxu0 %v14052_v12  ;;  %2269 = vmatprep.mubr.bf16.mxu1 %v14052_v12  ;;  %v1686_v46 = vmax.f32 %v1667_v8, 0.0  ;;  %v12734_v11 = vld [vmem:[%s18586_s17 + $0x188] sm:$0xff]   ;;  %v12735_v7 = vld [vmem:[%s18586_s17 + $0x1c0] sm:$0xff]  }
 0x446   : > { %v1670_v63 = vpop.f32.mrf.mxu0  ;;  %1874 = vmatmul.mubr.bf16.gmra.mxu0 %v14057_v14  ;;  %2270 = vmatmul.mubr.bf16.gmra.mxu1 %v14057_v14  ;;  %v12736_v22 = vld [vmem:[%s18586_s17 + $0x180] sm:$0xff]  }
 0x447   : > { %v1671_v30 = vadd.f32 %v1670_v63, %v1598_v19  ;;  %11393 = vmatpush3.bf16.msra.mxu0 %v12714_v15  ;;  %v1687_v37 = vmax.f32 %v1669_v21, 0.0 }
 0x448   : > { %11394 = vmatprep.subr.bf16.mxu0 %v12715_v27 }
 0x449   : > { %v1688_v33 = vmax.f32 %v1671_v30, 0.0  ;;  %v1695_v20 = vpack.c.bf16 %v1687_v37, %v1685_v47 }
 0x44b   : > { %v1696_v41 = vpack.c.bf16 %v1688_v33, %v1686_v46  ;;  %11395 = vmatpush3.bf16.msra.mxu0 %v12716_v35 }
 0x44c   : > { %11396 = vmatprep.subr.bf16.mxu0 %v12717_v40 }
 0x44d   : > { %1881 = vmatprep.mubr.bf16.mxu0 %v1696_v41  ;;  %2277 = vmatprep.mubr.bf16.mxu1 %v1696_v41 }
 0x44e   : > { %1882 = vmatmul.mubr.bf16.gmra.mxu0 %v1695_v20  ;;  %2278 = vmatmul.mubr.bf16.gmra.mxu1 %v1695_v20 }
 0x44f   : > { %11397 = vmatpush3.bf16.msra.mxu0 %v12718_v50  ;;  %2051 = vmatprep.mubr.bf16.mxu0 %v14012_v26 }
 0x450   : > { %11398 = vmatprep.subr.bf16.mxu0 %v12719_v36 }
 0x453   : > { %11399 = vmatpush3.bf16.msra.mxu0 %v12720_v51 }
 0x454   : > { %11464 = vmatprep.subr.bf16.mxu0 %v12721_v52 }
 0x456   : > { %2052 = vmatmul.mubr.bf16.vlgmr.msra.gmra.mxu0 %v14017_v57 }
 0x457   : > { %2059 = vmatprep.mubr.bf16.mxu0 %v14032_v34  ;;  %11465 = vmatpush3.bf16.msra.mxu0 %v12722_v54 }
 0x458   : > { %11466 = vmatprep.subr.bf16.mxu0 %v12723_v55 }
 0x45b   : > { %11467 = vmatpush3.bf16.msra.mxu0 %v12724_v53 }
 0x45c   : > { %11468 = vmatprep.subr.bf16.mxu0 %v12725_v56 }
 0x45e   : > { %2060 = vmatmul.mubr.bf16.gmra.mxu0 %v14037_v42 }
 0x45f   : > { %2067 = vmatprep.mubr.bf16.mxu0 %v14052_v12  ;;  %11469 = vmatpush3.bf16.msra.mxu0 %v12726_v59 }
 0x460   : > { %11470 = vmatprep.subr.bf16.mxu0 %v12727_v60 }
 0x463   : > { %11471 = vmatpush3.bf16.msra.mxu0 %v12728_v61 }
 0x464   : > { %11472 = vmatprep.subr.bf16.mxu0 %v12729_v0 }
 0x466   : > { %2068 = vmatmul.mubr.bf16.gmra.mxu0 %v14057_v14 }
 0x467   : > { %2075 = vmatprep.mubr.bf16.mxu0 %v1696_v41  ;;  %11473 = vmatpush3.bf16.msra.mxu0 %v12730_v4 }
 0x468   : > { %11474 = vmatprep.subr.bf16.mxu0 %v12731_v6 }
 0x46b   : > { %11475 = vmatpush3.bf16.msra.mxu0 %v12732_v28 }
 0x46c   : > { %11476 = vmatprep.subr.bf16.mxu0 %v12733_v9 }
 0x46e   : > { %2076 = vmatmul.mubr.bf16.gmra.mxu0 %v1695_v20 }
 0x46f   : > { %11477 = vmatpush3.bf16.msra.mxu0 %v12734_v11  ;;  %2455 = vmatprep.mubr.bf16.mxu0 %v14012_v26  ;;  %v18400_v26 = vand.u32 7, %v13357_v2 }
 0x470   : > { %11478 = vmatprep.subr.bf16.mxu0 %v12735_v7 }
 0x471   : > { %vm2531_vm4 = vcmp.ne.s32.totalorder %v18400_v26, 0 }
 0x472   : > { %vm2533_vm9 = vmpackc.low %vm2531_vm4, %vm2531_vm4 }
 0x473   : > { %11479 = vmatpush3.bf16.msra.mxu0 %v12736_v22  ;;  %v2534_v15 = vsel %vm2533_vm9, 65537, %v18398_v1 }
 0x476   : > { %2456 = vmatmul.mubr.bf16.vlgmr.msra.gmra.mxu0 %v14017_v57  ;;  %v14146_v57 = vrot.slane %v2534_v15, %v13371_v10 }
 0x477   : > { %2463 = vmatprep.mubr.bf16.mxu0 %v14032_v34 }
 0x478   : > { %18595 = vst [vmem:[#allocation21_spill] sm:$0xff] %v14146_v57  ;;  %2557 = vrot.lane.b32.xlu0 %v14146_v57, %s13228_s9  ;;  %vm2539_vm9 = vcmp.ne.s16.totalorder %v14146_v57, 0  ;;  %s18642_s9 = smov 118  }
 0x47e   : > { %2464 = vmatmul.mubr.bf16.gmra.mxu0 %v14037_v42 }
 0x47f   : > { %2471 = vmatprep.mubr.bf16.mxu0 %v14052_v12 }
 0x486   : > { %2472 = vmatmul.mubr.bf16.gmra.mxu0 %v14057_v14 }
 0x487   : > { %2479 = vmatprep.mubr.bf16.mxu0 %v1696_v41 }
 0x48e   : > { %2480 = vmatmul.mubr.bf16.gmra.mxu0 %v1695_v20 }
 0x4f6   : > { %v11360_v34 = vpop.f32.mrf.mxu0  ;;  %v11440_v41 = vpop.f32.mrf.mxu1 }
 0x4f8   : > { %v11361_v42 = vpop.f32.mrf.mxu0  ;;  %v11441_v36 = vpop.f32.mrf.mxu1 }
 0x4f9   : > { %v11362_v12 = vadd.f32 %v11361_v42, %v11360_v34  ;;  %v11442_v1 = vadd.f32 %v11441_v36, %v11440_v41 }
 0x4fa   : > { %v11363_v13 = vpop.f32.mrf.mxu0  ;;  %v11443_v53 = vpop.f32.mrf.mxu1 }
 0x4fc   : > { %v11364_v14 = vpop.f32.mrf.mxu0  ;;  %v11444_v60 = vpop.f32.mrf.mxu1 }
 0x4fd   : > { %v11445_v3 = vadd.f32 %v11444_v60, %v11443_v53  ;;  %v18596_v53 = vand.u32 7, %v13357_v2 }
 0x4fe   : > { %v11366_v16 = vpop.f32.mrf.mxu0  ;;  %v11446_v4 = vpop.f32.mrf.mxu1 }
 0x4ff   : > { %vm14172_vm13 = vcmp.ne.s32.totalorder %v18596_v53, 7 }
 0x500   : > { %v11367_v27 = vpop.f32.mrf.mxu0  ;;  %v11447_v9 = vpop.f32.mrf.mxu1  ;;  %vm2544_vm3 = vmpackc.low %vm14172_vm13, %vm14172_vm13  ;;  %vm3049_vm13 = vcmask 523264  }
 0x501   : > { %v14149_v19 = vadd.f32 %v11367_v27, %v11366_v16 }
 0x502   : > { %v11369_v8 = vpop.f32.mrf.mxu0  ;;  %v11449_v22 = vpop.f32.mrf.mxu1 }
 0x504   : > { %v11370_v21 = vpop.f32.mrf.mxu0  ;;  %v11450_v42 = vpop.f32.mrf.mxu1 }
 0x505   : > { %v11371_v25 = vadd.f32 %v11370_v21, %v11369_v8 }
 0x506   : > { %v11372_v29 = vpop.f32.mrf.mxu0  ;;  %v11452_v27 = vpop.f32.mrf.mxu1 }
 0x508   : > { %v11373_v63 = vpop.f32.mrf.mxu0 }
 0x509   : > { %v14151_v30 = vadd.f32 %v11373_v63, %v11372_v29 }
 0x50a   : > { %v14153_v35 = vpop.f32.mrf.mxu0 }
 0x50c   : > { %v14155_v37 = vpop.f32.mrf.mxu0 }
 0x50d   : > { %v11377_v2 = vadd.f32 %v14155_v37, %v14153_v35 }
 0x50e   : > { %v11378_v40 = vpop.f32.mrf.mxu0 }
 0x510   : > { %v11379_v46 = vpop.f32.mrf.mxu0 }
 0x511   : > { %v14157_v33 = vadd.f32 %v11379_v46, %v11378_v40  ;;  %v11365_v46 = vadd.f32 %v11364_v14, %v11363_v13 }
 0x512   : > { %v14159_v47 = vpop.f32.mrf.mxu0 }
 0x514   : > { %v14161_v50 = vpop.f32.mrf.mxu0 }
 0x516   : > { %v11400_v20 = vpop.f32.mrf.mxu0 }
 0x518   : > { %v11401_v51 = vpop.f32.mrf.mxu0 }
 0x519   : > { %v11402_v52 = vadd.f32 %v11401_v51, %v11400_v20  ;;  %v11453_v20 = vpop.f32.mrf.mxu1 }
 0x51a   : > { %v11403_v54 = vpop.f32.mrf.mxu0 }
 0x51b   : > { %v2084_v55 = vmax.f32 %v11362_v12, %v11402_v52  ;;  %v11455_v17 = vpop.f32.mrf.mxu1 }
 0x51c   : > { %v11404_v56 = vpop.f32.mrf.mxu0 }
 0x51d   : > { %v11405_v63 = vadd.f32 %v11404_v56, %v11403_v54  ;;  %v2286_v44 = vmax.f32 %v2084_v55, %v11442_v1  ;;  %v11456_v56 = vpop.f32.mrf.mxu1  ;;  %v11448_v55 = vadd.f32 %v11447_v9, %v11446_v4  ;;  %v11454_v4 = vadd.f32 %v11453_v20, %v11452_v27 }
 0x51e   : > { %v11406_v59 = vpop.f32.mrf.mxu0 }
 0x51f   : > { %v2085_v52 = vmax.f32 %v11365_v46, %v11405_v63 }
 0x520   : > { %v11407_v61 = vpop.f32.mrf.mxu0 }
 0x521   : > { %v11408_v32 = vadd.f32 %v11407_v61, %v11406_v59  ;;  %v2287_v38 = vmax.f32 %v2085_v52, %v11445_v3  ;;  %v11451_v3 = vadd.f32 %v11450_v42, %v11449_v22  ;;  %v18599_v59 = vmov 0  }
 0x522   : > { %v11409_v0 = vpop.f32.mrf.mxu0  ;;  %v2545_v60 = vsel %vm2544_vm3, 65537, %v18599_v59  ;;  %vm18792_vm3 = vcmask 130048  }
 0x523   : > { %v2086_v14 = vmax.f32 %v14149_v19, %v11408_v32 }
 0x524   : > { %v11410_v6 = vpop.f32.mrf.mxu0 }
 0x525   : > { %v11411_v45 = vadd.f32 %v11410_v6, %v11409_v0 }
 0x526   : > { %v11412_v28 = vpop.f32.mrf.mxu0 }
 0x527   : > { %v2087_v63 = vmax.f32 %v11371_v25, %v11411_v45 }
 0x528   : > { %v11413_v11 = vpop.f32.mrf.mxu0 }
 0x529   : > { %v11414_v8 = vadd.f32 %v11413_v11, %v11412_v28  ;;  %v11457_v28 = vadd.f32 %v11456_v56, %v11455_v17  ;;  %v14185_v11 = vrot.slane %v2545_v60, %v13371_v10  ;;  %v11383_v17 = vadd.f32 %v14161_v50, %v14159_v47 }
 0x52a   : > { %v11415_v7 = vpop.f32.mrf.mxu0 }
 0x52c   : > { %v11416_v15 = vpop.f32.mrf.mxu0 }
 0x52e   : > { %v14163_v34 = vpop.f32.mrf.mxu0 }
 0x530   : > { %v14165_v16 = vpop.f32.mrf.mxu0 }
 0x532   : > { %v14167_v12 = vpop.f32.mrf.mxu0 }
 0x534   : > { %v11422_v29 = vpop.f32.mrf.mxu0 }
 0x535   : > { %v11423_v22 = vadd.f32 %v11422_v29, %v14167_v12 }
 0x536   : > { %v11480_v40 = vpop.f32.mrf.mxu0 }
 0x537   : > { %v2091_v52 = vmax.f32 %v11383_v17, %v11423_v22 }
 0x538   : > { %v11481_v51 = vpop.f32.mrf.mxu0 }
 0x539   : > { %v11482_v18 = vadd.f32 %v11481_v51, %v11480_v40 }
 0x53a   : > { %v11483_v26 = vpop.f32.mrf.mxu0 }
 0x53b   : > { %v2488_v58 = vmax.f32 %v2286_v44, %v11482_v18  ;;  %v2288_v44 = vmax.f32 %v2086_v14, %v11448_v55 }
 0x53c   : > { %v11484_v62 = vpop.f32.mrf.mxu0 }
 0x53d   : > { %v11485_v48 = vadd.f32 %v11484_v62, %v11483_v26  ;;  %v11458_v26 = vpop.f32.mrf.mxu1 }
 0x53e   : > { %v11486_v49 = vpop.f32.mrf.mxu0 }
 0x53f   : > { %v2489_v54 = vmax.f32 %v2287_v38, %v11485_v48  ;;  %v11417_v38 = vadd.f32 %v11416_v15, %v11415_v7  ;;  %v2289_v48 = vmax.f32 %v2087_v63, %v11451_v3  ;;  %v11459_v25 = vpop.f32.mrf.mxu1 }
 0x540   : > { %v11487_v13 = vpop.f32.mrf.mxu0 }
 0x541   : > { %v2496_v41 = vpack.c.bf16 %v2489_v54, %v2488_v58  ;;  %v11488_v62 = vadd.f32 %v11487_v13, %v11486_v49  ;;  %v2088_v49 = vmax.f32 %v14151_v30, %v11414_v8  ;;  %v2089_v61 = vmax.f32 %v11377_v2, %v11417_v38  ;;  %v11461_v35 = vpop.f32.mrf.mxu1 }
 0x542   : > { %v11489_v36 = vpop.f32.mrf.mxu0  ;;  %v11420_v30 = vadd.f32 %v14165_v16, %v14163_v34  ;;  %v11460_v16 = vadd.f32 %v11459_v25, %v11458_v26 }
 0x543   : > { %v2490_v45 = vmax.f32 %v2288_v44, %v11488_v62  ;;  %v2290_v37 = vmax.f32 %v2088_v49, %v11454_v4  ;;  %v2291_v15 = vmax.f32 %v2089_v61, %v11457_v28  ;;  %v11462_v10 = vpop.f32.mrf.mxu1 }
 0x544   : > { %v11490_v18 = vpop.f32.mrf.mxu0  ;;  %v2090_v51 = vmax.f32 %v14157_v33, %v11420_v30  ;;  %v11463_v12 = vadd.f32 %v11462_v10, %v11461_v35  ;;  %v14201_v33 = vpop.permute.xlu0 %2557 }
 0x545   : > { %v11491_v21 = vadd.f32 %v11490_v18, %v11489_v36  ;;  %18602 = vst [vmem:[#allocation22_spill] sm:$0xff] %v14201_v33  ;;  %vm2559_vm10 = vcmp.ne.s16.totalorder %v14201_v33, 0 }
 0x546   : > { %v11492_v32 = vpop.f32.mrf.mxu0  ;;  %v2292_v47 = vmax.f32 %v2090_v51, %v11460_v16  ;;  %v2293_v50 = vmax.f32 %v2091_v52, %v11463_v12 }
 0x547   : > { %v2491_v58 = vmax.f32 %v2289_v48, %v11491_v21 }
 0x548   : > { %v11493_v19 = vpop.f32.mrf.mxu0 }
 0x549   : > { %v2497_v0 = vpack.c.bf16 %v2491_v58, %v2490_v45  ;;  %v11494_v9 = vadd.f32 %v11493_v19, %v11492_v32 }
 0x54a   : > { %v11495_v6 = vpop.f32.mrf.mxu0 }
 0x54b   : > { %2506 = vrot.lane.b32.xlu0 %v2497_v0, %s18430_s2  ;;  %v2492_v40 = vmax.f32 %v2290_v37, %v11494_v9 }
 0x54c   : > { %v11496_v7 = vpop.f32.mrf.mxu0 }
 0x54d   : > { %v11497_v42 = vadd.f32 %v11496_v7, %v11495_v6 }
 0x54e   : > { %v11498_v27 = vpop.f32.mrf.mxu0 }
 0x54f   : > { %v2493_v46 = vmax.f32 %v2291_v15, %v11497_v42  ;;  %2550 = vrot.lane.b32.xlu0 %v14185_v11, %s18600_s3  ;;  %s18608_s3 = sld [smem:[#allocation55_spill]] }
 0x550   : > { %v11499_v20 = vpop.f32.mrf.mxu0 }
 0x551   : > { %v2498_v54 = vpack.c.bf16 %v2493_v46, %v2492_v40  ;;  %v11500_v29 = vadd.f32 %v11499_v20, %v11498_v27 }
 0x552   : > { %v11501_v34 = vpop.f32.mrf.mxu0 }
 0x553   : > { %2571 = vrot.lane.b32.xlu0 %v14146_v57, %s18601_s5  ;;  %v2494_v14 = vmax.f32 %v2292_v47, %v11500_v29  ;;  %s18426_s5 = smov 118  }
 0x554   : > { %v11502_v56 = vpop.f32.mrf.mxu0 }
 0x555   : > { %v11503_v13 = vadd.f32 %v11502_v56, %v11501_v34  ;;  %v12739_v19 = vld [vmem:[%s18608_s3 + $0x4] ss:$20 sps:$4 sm:$0xff]   ;;  %v12751_v7 = vld [vmem:[%s18608_s3 + $0xc] ss:$20 sps:$4 sm:$0xff]  }
 0x556   : > { %3106 = vmatprep.mubr.bf16.mxu1 %v12739_v19  ;;  %3203 = vmatprep.mubr.bf16.mxu0 %v12751_v7 }
 0x557   : > { %v2495_v63 = vmax.f32 %v2293_v50, %v11503_v13 }
 0x559   : > { %v2499_v36 = vpack.c.bf16 %v2495_v63, %v2494_v14  ;;  %v2767_v14 = vld [vmem:[%s18613_s11 + $0x70] sm:$0xff]  ;;  %v2768_v63 = vld [vmem:[%s18613_s11 + $0x78] sm:$0xff] }
 0x55b   : > { %2510 = vrot.lane.b32.xlu1 %v2499_v36, %s18430_s2 }
 0x55f   : > { %2508 = vrot.lane.b32.xlu1 %v2498_v54, %s18430_s2 }
 0x563   : > { %2504 = vrot.lane.b32.xlu1 %v2496_v41, %s18430_s2  ;;  %s18821_s2 = smov 17  }
 0x567   : > { %2564 = vrot.lane.b32.xlu1 %v14185_v11, %s13230_s4  ;;  %s18610_s4 = smov 112  }
 0x5bd   : > { %v2507_v55 = vpop.permute.xlu0 %2506 }
 0x5be   : > { %v2516_v26 = vsel %vm2512_vm0, 0, %v2507_v55  ;;  %v2765_v55 = vld [vmem:[%s18613_s11 + $0x60] sm:$0xff] }
 0x5bf   : > { %v14225_v44 = vsel %vm2521_vm14, %v2516_v26, 0  ;;  %v12737_v26 = vld [vmem:[%s18608_s3] ss:$20 sps:$4 sm:$0xff]  }
 0x5c0   : > { %v2561_v32 = vsel %vm2559_vm10, %v14225_v44, 0 }
 0x5c1   : > { %v14238_v45 = vpop.permute.xlu0 %2550 }
 0x5c2   : > { %18604 = vst [vmem:[#allocation23_spill] sm:$0xff] %v14238_v45  ;;  %vm2552_vm1 = vcmp.ne.s16.totalorder %v14238_v45, 0 }
 0x5c3   : > { %v2554_v60 = vsel %vm2552_vm1, %v14225_v44, 0 }
 0x5c5   : > { %v14285_v28 = vpop.permute.xlu0 %2571 }
 0x5c6   : > { %18609 = vst [vmem:[#allocation25_spill] sm:$0xff] %v14285_v28  ;;  %vm2573_vm5 = vcmp.ne.s16.totalorder %v14285_v28, 0 }
 0x5c7   : > { %v2575_v30 = vsel %vm2573_vm5, %v14225_v44, 0 }
 0x5cd   : > { %v2511_v53 = vpop.permute.xlu1 %2510 }
 0x5ce   : > { %v2520_v1 = vsel %vm2512_vm0, 0, %v2511_v53  ;;  %v2541_v53 = vsel %vm2539_vm9, %v14225_v44, 0 }
 0x5cf   : > { %v14206_v3 = vsel %vm2521_vm14, %v2520_v1, 0 }
 0x5d0   : > { %2595 = vrot.lane.b32.xlu0 %v14206_v3, %s18603_s23  ;;  %v2563_v41 = vsel %vm2559_vm10, %v14206_v3, 0  ;;  %v2556_v25 = vsel %vm2552_vm1, %v14206_v3, 0  ;;  %v2543_v16 = vsel %vm2539_vm9, %v14206_v3, 0 }
 0x5d1   : > { %2627 = vrot.lane.b32.xlu1 %v2563_v41, %s18428_s0  ;;  %v2509_v62 = vpop.permute.xlu1 %2508 }
 0x5d2   : > { %v2518_v8 = vsel %vm2512_vm0, 0, %v2509_v62 }
 0x5d3   : > { %v14217_v18 = vsel %vm2521_vm14, %v2518_v8, 0 }
 0x5d4   : > { %2593 = vrot.lane.b32.xlu0 %v14217_v18, %s18603_s23  ;;  %v2562_v38 = vsel %vm2559_vm10, %v14217_v18, 0  ;;  %v2555_v61 = vsel %vm2552_vm1, %v14217_v18, 0  ;;  %v2576_v37 = vsel %vm2573_vm5, %v14217_v18, 0  ;;  %v2542_v50 = vsel %vm2539_vm9, %v14217_v18, 0 }
 0x5d5   : > { %2625 = vrot.lane.b32.xlu1 %v2562_v38, %s18428_s0  ;;  %v2505_v48 = vpop.permute.xlu1 %2504 }
 0x5d6   : > { %v2514_v21 = vsel %vm2512_vm0, 0, %v2505_v48  ;;  %v12740_v48 = vld [vmem:[%s18608_s3 + $0x2c] ss:$20 sps:$4 sm:$0xff]  }
 0x5d7   : > { %v14235_v2 = vsel %vm2521_vm14, %v2514_v21, 0 }
 0x5d8   : > { %2591 = vrot.lane.b32.xlu0 %v14225_v44, %s18603_s23  ;;  %v2560_v58 = vsel %vm2559_vm10, %v14235_v2, 0  ;;  %v2553_v4 = vsel %vm2552_vm1, %v14235_v2, 0  ;;  %v2574_v22 = vsel %vm2573_vm5, %v14235_v2, 0  ;;  %v2540_v62 = vsel %vm2539_vm9, %v14235_v2, 0 }
 0x5d9   : > { %2623 = vrot.lane.b32.xlu1 %v2561_v32, %s18428_s0  ;;  %v14252_v49 = vpop.permute.xlu1 %2564  ;;  %v2761_v32 = vld [vmem:[%s18613_s11 + $0x40] sm:$0xff] }
 0x5da   : > { %18606 = vst [vmem:[#allocation24_spill] sm:$0xff] %v14252_v49  ;;  %vm2566_vm11 = vcmp.ne.s16.totalorder %v14252_v49, 0 }
 0x5db   : > { %v2570_v0 = vsel %vm2566_vm11, %v14206_v3, 0  ;;  %v2569_v6 = vsel %vm2566_vm11, %v14217_v18, 0  ;;  %v2568_v9 = vsel %vm2566_vm11, %v14225_v44, 0  ;;  %v2567_v35 = vsel %vm2566_vm11, %v14235_v2, 0 }
 0x5dc   : > { %2589 = vrot.lane.b32.xlu0 %v14235_v2, %s18603_s23 }
 0x5dd   : > { %2621 = vrot.lane.b32.xlu1 %v2560_v58, %s18428_s0  ;;  %v2762_v58 = vld [vmem:[%s18613_s11 + $0x48] sm:$0xff] }
 0x5e0   : > { %2578 = vrot.lane.b32.xlu0 %v14185_v11, %s18605_s30  ;;  %v2577_v11 = vsel %vm2573_vm5, %v14206_v3, 0  ;;  %s18424_s30 = smov 119  }
 0x5e1   : > { %2611 = vrot.lane.b32.xlu1 %v2556_v25, %s18607_s29  ;;  %v12742_v25 = vld [vmem:[%s18608_s3 + $0x28] ss:$20 sps:$4 sm:$0xff]  }
 0x5e4   : > { %2607 = vrot.lane.b32.xlu0 %v2554_v60, %s18607_s29  ;;  %v2759_v60 = vld [vmem:[%s18613_s11 + $0x30] sm:$0xff] }
 0x5e5   : > { %2609 = vrot.lane.b32.xlu1 %v2555_v61, %s18607_s29 }
 0x5e8   : > { %2655 = vrot.lane.b32.xlu0 %v2570_v0, %s18426_s5  ;;  %v2760_v0 = vld [vmem:[%s18613_s11 + $0x38] sm:$0xff] }
 0x5e9   : > { %2683 = vrot.lane.b32.xlu1 %v14206_v3, %s18564_s28 }
 0x5ec   : > { %2681 = vrot.lane.b32.xlu0 %v14217_v18, %s18564_s28 }
 0x5ed   : > { %2605 = vrot.lane.b32.xlu1 %v2553_v4, %s18607_s29  ;;  %v12743_v4 = vld [vmem:[%s18608_s3 + $0x54] ss:$20 sps:$4 sm:$0xff]  }
 0x5f0   : > { %2679 = vrot.lane.b32.xlu0 %v14225_v44, %s18564_s28 }
 0x5f1   : > { %2653 = vrot.lane.b32.xlu1 %v2569_v6, %s18426_s5 }
 0x5f4   : > { %2677 = vrot.lane.b32.xlu0 %v14235_v2, %s18564_s28 }
 0x5f5   : > { %2651 = vrot.lane.b32.xlu1 %v2568_v9, %s18426_s5  ;;  %v2757_v9 = vld [vmem:[%s18613_s11 + $0x20] sm:$0xff] }
 0x5f8   : > { %2671 = vrot.lane.b32.xlu0 %v2577_v11, %s18610_s4 }
 0x5f9   : > { %2649 = vrot.lane.b32.xlu1 %v2567_v35, %s18426_s5  ;;  %v2758_v35 = vld [vmem:[%s18613_s11 + $0x28] sm:$0xff]  ;;  %s18638_s5 = smov 120  }
 0x5fc   : > { %2669 = vrot.lane.b32.xlu0 %v2576_v37, %s18610_s4  ;;  %v12745_v37 = vld [vmem:[%s18608_s3 + $0x50] ss:$20 sps:$4 sm:$0xff]  }
 0x5fd   : > { %2639 = vrot.lane.b32.xlu1 %v14206_v3, %s18424_s30 }
 0x600   : > { %2667 = vrot.lane.b32.xlu0 %v2575_v30, %s18610_s4  ;;  %v2755_v30 = vld [vmem:[%s18613_s11 + $0x10] sm:$0xff] }
 0x601   : > { %2637 = vrot.lane.b32.xlu1 %v14217_v18, %s18424_s30 }
 0x604   : > { %2665 = vrot.lane.b32.xlu0 %v2574_v22, %s18610_s4 }
 0x605   : > { %2635 = vrot.lane.b32.xlu1 %v14225_v44, %s18424_s30 }
 0x609   : > { %2633 = vrot.lane.b32.xlu1 %v14235_v2, %s18424_s30 }
 0x642   : > { %v2596_v15 = vpop.permute.xlu0 %2595 }
 0x643   : > { %v2628_v42 = vpop.permute.xlu1 %2627 }
 0x644   : > { %11504 = vmatprep.subr.bf16.mxu1 %v2628_v42  ;;  %v12746_v42 = vld [vmem:[%s18608_s3 + $0x7c] ss:$20 sps:$4 sm:$0xff]  }
 0x645   : > { %11505 = vmatpush3.bf16.msra.mxu1 %v2596_v15  ;;  %v2756_v15 = vld [vmem:[%s18613_s11 + $0x18] sm:$0xff] }
 0x646   : > { %v2594_v27 = vpop.permute.xlu0 %2593 }
 0x647   : > { %v2626_v17 = vpop.permute.xlu1 %2625 }
 0x648   : > { %11506 = vmatprep.subr.bf16.mxu1 %v2626_v17 }
 0x649   : > { %11507 = vmatpush3.bf16.msra.mxu1 %v2594_v27  ;;  %v2753_v27 = vld [vmem:[%s18613_s11] sm:$0xff] }
 0x64a   : > { %v2592_v40 = vpop.permute.xlu0 %2591 }
 0x64b   : > { %v2624_v46 = vpop.permute.xlu1 %2623 }
 0x64c   : > { %11508 = vmatprep.subr.bf16.mxu1 %v2624_v46 }
 0x64d   : > { %11509 = vmatpush3.bf16.msra.mxu1 %v2592_v40  ;;  %v2754_v40 = vld [vmem:[%s18613_s11 + $0x8] sm:$0xff] }
 0x64e   : > { %v2590_v10 = vpop.permute.xlu0 %2589 }
 0x64f   : > { %v2622_v20 = vpop.permute.xlu1 %2621 }
 0x650   : > { %11510 = vmatprep.subr.bf16.mxu1 %v2622_v20  ;;  %v12752_v20 = vld [vmem:[%s18608_s3 + $0xa4] ss:$20 sps:$4 sm:$0xff]  }
 0x651   : > { %11511 = vmatpush3.bf16.msra.mxu1 %v2590_v10  ;;  %v12748_v10 = vld [vmem:[%s18608_s3 + $0x78] ss:$20 sps:$4 sm:$0xff]  }
 0x652   : > { %v14325_v51 = vpop.permute.xlu0 %2578 }
 0x653   : > { %18611 = vst [vmem:[#allocation26_spill] sm:$0xff] %v14325_v51  ;;  %vm2580_vm4 = vcmp.ne.s16.totalorder %v14325_v51, 0  ;;  %v2612_v52 = vpop.permute.xlu1 %2611 }
 0x654   : > { %11512 = vmatprep.subr.bf16.mxu1 %v2612_v52  ;;  %v2584_v54 = vsel %vm2580_vm4, %v14206_v3, 0  ;;  %v2583_v34 = vsel %vm2580_vm4, %v14217_v18, 0  ;;  %v2582_v56 = vsel %vm2580_vm4, %v14225_v44, 0  ;;  %v2581_v47 = vsel %vm2580_vm4, %v14235_v2, 0  ;;  %v2766_v3 = vld [vmem:[%s18613_s11 + $0x68] sm:$0xff]  ;;  %v2763_v18 = vld [vmem:[%s18613_s11 + $0x50] sm:$0xff] }
 0x655   : > { %2699 = vrot.lane.b32.xlu0 %v2584_v54, %s18612_s22  ;;  %2697 = vrot.lane.b32.xlu1 %v2583_v34, %s18612_s22  ;;  %v2764_v44 = vld [vmem:[%s18613_s11 + $0x58] sm:$0xff]  ;;  %v12755_v34 = vld [vmem:[%s18608_s3 + $0x34] ss:$20 sps:$4 sm:$0xff]   ;;  %s18643_s11 = smov 119  }
 0x656   : > { %11513 = vmatpush3.bf16.msra.mxu1 %v2543_v16  ;;  %v2608_v12 = vpop.permute.xlu0 %2607  ;;  %v12749_v54 = vld [vmem:[%s18608_s3 + $0x8] ss:$20 sps:$4 sm:$0xff]   ;;  %v12754_v16 = vld [vmem:[%s18608_s3 + $0xa0] ss:$20 sps:$4 sm:$0xff]  }
 0x657   : > { %v2610_v29 = vpop.permute.xlu1 %2609 }
 0x658   : > { %11514 = vmatprep.subr.bf16.mxu1 %v2610_v29  ;;  %v12757_v29 = vld [vmem:[%s18608_s3 + $0x30] ss:$20 sps:$4 sm:$0xff]  }
 0x659   : > { %2695 = vrot.lane.b32.xlu0 %v2582_v56, %s18612_s22  ;;  %2693 = vrot.lane.b32.xlu1 %v2581_v47, %s18612_s22  ;;  %v12761_v56 = vld [vmem:[%s18608_s3 + $0x5c] ss:$20 sps:$4 sm:$0xff]  }
 0x65a   : > { %11515 = vmatpush3.bf16.msra.mxu1 %v2542_v50  ;;  %v2656_v13 = vpop.permute.xlu0 %2655  ;;  %v12760_v47 = vld [vmem:[%s18608_s3 + $0xc8] ss:$20 sps:$4 sm:$0xff]  }
 0x65b   : > { %11516 = vmatprep.subr.bf16.mxu1 %v2608_v12  ;;  %v2684_v36 = vpop.permute.xlu1 %2683  ;;  %v12758_v12 = vld [vmem:[%s18608_s3 + $0xcc] ss:$20 sps:$4 sm:$0xff]   ;;  %v12764_v50 = vld [vmem:[%s18608_s3 + $0xf4] ss:$20 sps:$4 sm:$0xff]  }
 0x65c   : > { %11568 = vmatprep.subr.bf16.mxu0 %v2684_v36  ;;  %v12770_v36 = vld [vmem:[%s18608_s3 + $0x11c] ss:$20 sps:$4 sm:$0xff]  }
 0x65d   : > { %2841 = vperm.xlu0 %12652, %v2767_v14   ;;  %2846 = vperm.xlu1 %12653, %v2768_v63   ;;  %v12767_v14 = vld [vmem:[%s18608_s3 + $0x84] ss:$20 sps:$4 sm:$0xff]  }
 0x65e   : > { %11517 = vmatpush3.bf16.msra.mxu1 %v2541_v53  ;;  %11569 = vmatpush3.bf16.msra.mxu0 %v2656_v13  ;;  %v2682_v1 = vpop.permute.xlu0 %2681  ;;  %v12763_v13 = vld [vmem:[%s18608_s3 + $0x58] ss:$20 sps:$4 sm:$0xff]   ;;  %v12766_v63 = vld [vmem:[%s18608_s3 + $0xf0] ss:$20 sps:$4 sm:$0xff]   ;;  %v12769_v53 = vld [vmem:[%s18608_s3 + $0x80] ss:$20 sps:$4 sm:$0xff]  }
 0x65f   : > { %11570 = vmatprep.subr.bf16.mxu0 %v2682_v1  ;;  %v2606_v41 = vpop.permute.xlu1 %2605  ;;  %v12773_v1 = vld [vmem:[%s18608_s3 + $0xac] ss:$20 sps:$4 sm:$0xff]  }
 0x660   : > { %11518 = vmatprep.subr.bf16.mxu1 %v2606_v41  ;;  %v12775_v41 = vld [vmem:[%s18608_s3 + $0xa8] ss:$20 sps:$4 sm:$0xff]  }
 0x661   : > { %2831 = vperm.xlu0 %12652, %v2765_v55   ;;  %2836 = vperm.xlu1 %12653, %v2766_v3   ;;  %v12772_v55 = vld [vmem:[%s18608_s3 + $0x118] ss:$20 sps:$4 sm:$0xff]   ;;  %v12785_v3 = vld [vmem:[%s18608_s3 + $0x10] ss:$20 sps:$4 sm:$0xff]  }
 0x662   : > { %11519 = vmatpush3.bf16.msra.mxu1 %v2540_v62  ;;  %v2680_v8 = vpop.permute.xlu0 %2679  ;;  %v12776_v62 = vld [vmem:[%s18608_s3 + $0xd4] ss:$20 sps:$4 sm:$0xff]  }
 0x663   : > { %v2654_v38 = vpop.permute.xlu1 %2653 }
 0x664   : > { %11571 = vmatpush3.bf16.msra.mxu0 %v2654_v38  ;;  %v12782_v38 = vld [vmem:[%s18608_s3 + $0x124] ss:$20 sps:$4 sm:$0xff]  }
 0x665   : > { %3107 = vmatmul.mubr.bf16.vlgmr.msra.gmra.mxu1 %v12737_v26  ;;  %2821 = vperm.xlu0 %12652, %v2763_v18   ;;  %v12778_v26 = vld [vmem:[%s18608_s3 + $0xd0] ss:$20 sps:$4 sm:$0xff]   ;;  %v12781_v18 = vld [vmem:[%s18608_s3 + $0xf8] ss:$20 sps:$4 sm:$0xff]  }
 0x666   : > { %2826 = vperm.xlu1 %12653, %v2764_v44   ;;  %11572 = vmatprep.subr.bf16.mxu0 %v2680_v8  ;;  %v2678_v21 = vpop.permute.xlu0 %2677  ;;  %v12779_v8 = vld [vmem:[%s18608_s3 + $0xfc] ss:$20 sps:$4 sm:$0xff]   ;;  %v12784_v44 = vld [vmem:[%s18608_s3 + $0x120] ss:$20 sps:$4 sm:$0xff]  }
 0x667   : > { %v2652_v2 = vpop.permute.xlu1 %2651  ;;  %3114 = vmatprep.mubr.bf16.mxu1 %v12740_v48 }
 0x668   : > { %11573 = vmatpush3.bf16.msra.mxu0 %v2652_v2 }
 0x669   : > { %2811 = vperm.xlu0 %12652, %v2761_v32   ;;  %11574 = vmatprep.subr.bf16.mxu0 %v2678_v21 }
 0x66a   : > { %2816 = vperm.xlu1 %12653, %v2762_v58   ;;  %v2672_v19 = vpop.permute.xlu0 %2671  ;;  %v12786_v58 = vld [vmem:[%s18608_s3 + $0x38] ss:$20 sps:$4 sm:$0xff]  }
 0x66b   : > { %v2650_v61 = vpop.permute.xlu1 %2649 }
 0x66c   : > { %11575 = vmatpush3.bf16.msra.mxu0 %v2650_v61  ;;  %v12790_v61 = vld [vmem:[%s18608_s3 + $0xd8] ss:$20 sps:$4 sm:$0xff]  }
 0x66d   : > { %3115 = vmatmul.mubr.bf16.gmra.mxu1 %v12742_v25  ;;  %2801 = vperm.xlu0 %12652, %v2759_v60   ;;  %v12787_v25 = vld [vmem:[%s18608_s3 + $0x60] ss:$20 sps:$4 sm:$0xff]   ;;  %v12789_v60 = vld [vmem:[%s18608_s3 + $0xb0] ss:$20 sps:$4 sm:$0xff]  }
 0x66e   : > { %2806 = vperm.xlu1 %12653, %v2760_v0   ;;  %11576 = vmatprep.subr.bf16.mxu0 %v2672_v19  ;;  %v2670_v6 = vpop.permute.xlu0 %2669  ;;  %v12788_v19 = vld [vmem:[%s18608_s3 + $0x88] ss:$20 sps:$4 sm:$0xff]   ;;  %v12791_v0 = vld [vmem:[%s18608_s3 + $0x100] ss:$20 sps:$4 sm:$0xff]  }
 0x66f   : > { %v2640_v11 = vpop.permute.xlu1 %2639  ;;  %3122 = vmatprep.mubr.bf16.mxu1 %v12743_v4  ;;  %v12792_v4 = vld [vmem:[%s18608_s3 + $0x128] ss:$20 sps:$4 sm:$0xff]  }
 0x670   : > { %11577 = vmatpush3.bf16.msra.mxu0 %v2640_v11 }
 0x671   : > { %2791 = vperm.xlu0 %12652, %v2757_v9   ;;  %11578 = vmatprep.subr.bf16.mxu0 %v2670_v6 }
 0x672   : > { %2796 = vperm.xlu1 %12653, %v2758_v35   ;;  %v2668_v7 = vpop.permute.xlu0 %2667 }
 0x673   : > { %v2638_v22 = vpop.permute.xlu1 %2637 }
 0x674   : > { %11579 = vmatpush3.bf16.msra.mxu0 %v2638_v22 }
 0x675   : > { %3123 = vmatmul.mubr.bf16.gmra.mxu1 %v12745_v37  ;;  %2781 = vperm.xlu0 %12652, %v2755_v30  }
 0x676   : > { %2786 = vperm.xlu1 %12653, %v2756_v15   ;;  %11580 = vmatprep.subr.bf16.mxu0 %v2668_v7  ;;  %v2666_v46 = vpop.permute.xlu0 %2665 }
 0x677   : > { %v2636_v17 = vpop.permute.xlu1 %2635  ;;  %3130 = vmatprep.mubr.bf16.mxu1 %v12746_v42 }
 0x678   : > { %11581 = vmatpush3.bf16.msra.mxu0 %v2636_v17 }
 0x679   : > { %2771 = vperm.xlu0 %12652, %v2753_v27   ;;  %11582 = vmatprep.subr.bf16.mxu0 %v2666_v46 }
 0x67a   : > { %2776 = vperm.xlu1 %12653, %v2754_v40  }
 0x67b   : > { %v2634_v52 = vpop.permute.xlu1 %2633 }
 0x67c   : > { %11583 = vmatpush3.bf16.msra.mxu0 %v2634_v52 }
 0x67d   : > { %3131 = vmatmul.mubr.bf16.gmra.mxu1 %v12748_v10 }
 0x67e   : > { %3138 = vmatprep.mubr.bf16.mxu1 %v12752_v20 }
 0x67f   : > { %3204 = vmatmul.mubr.bf16.vlgmr.msra.gmra.mxu0 %v12749_v54 }
 0x680   : > { %3211 = vmatprep.mubr.bf16.mxu0 %v12755_v34 }
 0x685   : > { %3139 = vmatmul.mubr.bf16.gmra.mxu1 %v12754_v16 }
 0x686   : > { %3146 = vmatprep.mubr.bf16.mxu1 %v12758_v12 }
 0x687   : > { %3212 = vmatmul.mubr.bf16.gmra.mxu0 %v12757_v29 }
 0x688   : > { %3219 = vmatprep.mubr.bf16.mxu0 %v12761_v56 }
 0x68d   : > { %3147 = vmatmul.mubr.bf16.gmra.mxu1 %v12760_v47 }
 0x68e   : > { %3154 = vmatprep.mubr.bf16.mxu1 %v12764_v50 }
 0x68f   : > { %3220 = vmatmul.mubr.bf16.gmra.mxu0 %v12763_v13 }
 0x690   : > { %3227 = vmatprep.mubr.bf16.mxu0 %v12767_v14 }
 0x695   : > { %3155 = vmatmul.mubr.bf16.gmra.mxu1 %v12766_v63 }
 0x696   : > { %3162 = vmatprep.mubr.bf16.mxu1 %v12770_v36 }
 0x697   : > { %3228 = vmatmul.mubr.bf16.gmra.mxu0 %v12769_v53 }
 0x698   : > { %3235 = vmatprep.mubr.bf16.mxu0 %v12773_v1 }
 0x69d   : > { %3163 = vmatmul.mubr.bf16.gmra.mxu1 %v12772_v55 }
 0x69e   : > { %12264 = vmatprep.mubr.msk.bf16.mxu1 %vm3049_vm13, %v12785_v3 }
 0x69f   : > { %3236 = vmatmul.mubr.bf16.gmra.mxu0 %v12775_v41 }
 0x6a0   : > { %3243 = vmatprep.mubr.bf16.mxu0 %v12776_v62 }
 0x6a7   : > { %3244 = vmatmul.mubr.bf16.gmra.mxu0 %v12778_v26 }
 0x6a8   : > { %3251 = vmatprep.mubr.bf16.mxu0 %v12779_v8 }
 0x6af   : > { %3252 = vmatmul.mubr.bf16.gmra.mxu0 %v12781_v18 }
 0x6b0   : > { %3259 = vmatprep.mubr.bf16.mxu0 %v12782_v38 }
 0x6b7   : > { %3260 = vmatmul.mubr.bf16.gmra.mxu0 %v12784_v44 }
 0x6c7   : > { %v2700_v48 = vpop.permute.xlu0 %2699  ;;  %v2698_v21 = vpop.permute.xlu1 %2697 }
 0x6c8   : > { %12256 = vmatprep.subr.bf16.mxu1 %v2700_v48 }
 0x6c9   : > { %12257 = vmatpush3.bf16.msra.mxu1 %v2700_v48 }
 0x6ca   : > { %12258 = vmatprep.subr.bf16.mxu1 %v2698_v21 }
 0x6cb   : > { %v2696_v32 = vpop.permute.xlu0 %2695  ;;  %v2694_v2 = vpop.permute.xlu1 %2693 }
 0x6cd   : > { %12259 = vmatpush3.bf16.msra.mxu1 %v2698_v21 }
 0x6ce   : > { %12260 = vmatprep.subr.bf16.mxu1 %v2696_v32 }
 0x6d1   : > { %12261 = vmatpush3.bf16.msra.mxu1 %v2696_v32 }
 0x6d2   : > { %12262 = vmatprep.subr.bf16.mxu1 %v2694_v2 }
 0x6d5   : > { %12263 = vmatpush3.bf16.msra.mxu1 %v2694_v2 }
 0x6d8   : > { %12265 = vmatmul.mubr.msk.bf16.vlgmr.msra.gmra.mxu1 %vm3049_vm13, %v12786_v58  ;;  %v14527_v6 = vpop.permute.xlu0 %2841  ;;  %v14529_v9 = vpop.permute.xlu1 %2846 }
 0x6d9   : > { %12268 = vmatprep.mubr.msk.bf16.mxu1 %vm3049_vm13, %v12787_v25  ;;  %18614 = vst [vmem:[#allocation27_spill] sm:$0xff] %v14529_v9 }
 0x6dc   : > { %v14531_v11 = vpop.permute.xlu0 %2831  ;;  %v14533_v35 = vpop.permute.xlu1 %2836 }
 0x6dd   : > { %18615 = vst [vmem:[#allocation28_spill] sm:$0xff] %v14531_v11  ;;  %18616 = vst [vmem:[#allocation29_spill] sm:$0xff] %v14533_v35 }
 0x6e0   : > { %12269 = vmatmul.mubr.msk.bf16.gmra.mxu1 %vm3049_vm13, %v12788_v19  ;;  %v14535_v37 = vpop.permute.xlu0 %2821 }
 0x6e1   : > { %12272 = vmatprep.mubr.msk.bf16.mxu1 %vm3049_vm13, %v12789_v60  ;;  %18617 = vst [vmem:[#allocation30_spill] sm:$0xff] %v14535_v37  ;;  %v14537_v30 = vpop.permute.xlu1 %2826 }
 0x6e4   : > { %v14539_v42 = vpop.permute.xlu0 %2811 }
 0x6e5   : > { %18618 = vst [vmem:[#allocation31_spill] sm:$0xff] %v14539_v42  ;;  %v14541_v40 = vpop.permute.xlu1 %2816 }
 0x6e6   : > { %18619 = vst [vmem:[#allocation32_spill] sm:$0xff] %v14541_v40 }
 0x6e8   : > { %12273 = vmatmul.mubr.msk.bf16.gmra.mxu1 %vm3049_vm13, %v12790_v61  ;;  %v14543_v10 = vpop.permute.xlu0 %2801 }
 0x6e9   : > { %12276 = vmatprep.mubr.msk.bf16.mxu1 %vm3049_vm13, %v12791_v0  ;;  %v14547_v34 = vpop.permute.xlu1 %2806 }
 0x6ec   : > { %v14551_v12 = vpop.permute.xlu0 %2791 }
 0x6ed   : > { %v14553_v47 = vpop.permute.xlu1 %2796 }
 0x6f0   : > { %12277 = vmatmul.mubr.msk.bf16.gmra.mxu1 %vm3049_vm13, %v12792_v4  ;;  %v2782_v14 = vpop.permute.xlu0 %2781 }
 0x6f1   : > { %v14561_v53 = vpop.permute.xlu1 %2786 }
 0x6f4   : > { %v2772_v41 = vpop.permute.xlu0 %2771 }
 0x6f5   : > { %v2777_v48 = vpop.permute.xlu1 %2776 }
 0x725   : > { %v11520_v7 = vpop.f32.mrf.mxu1 }
 0x727   : > { %v11521_v22 = vpop.f32.mrf.mxu1 }
 0x728   : > { %v11522_v15 = vadd.f32 %v11521_v22, %v11520_v7 }
 0x729   : > { %v11523_v27 = vpop.f32.mrf.mxu1 }
 0x72a   : > { %v3109_v26 = vadd.f32 %v11522_v15, %v2772_v41 }
 0x72b   : > { %v11524_v17 = vpop.f32.mrf.mxu1 }
 0x72c   : > { %v11525_v8 = vadd.f32 %v11524_v17, %v11523_v27 }
 0x72d   : > { %v11526_v46 = vpop.f32.mrf.mxu1 }
 0x72e   : > { %v3112_v32 = vadd.f32 %v11525_v8, %v2777_v48 }
 0x72f   : > { %v11527_v20 = vpop.f32.mrf.mxu1 }
 0x730   : > { %v11528_v52 = vadd.f32 %v11527_v20, %v11526_v46 }
 0x731   : > { %v14545_v54 = vpop.f32.mrf.mxu1 }
 0x732   : > { %v3117_v60 = vadd.f32 %v11528_v52, %v2782_v14 }
 0x733   : > { %v14549_v16 = vpop.f32.mrf.mxu1 }
 0x734   : > { %v11531_v51 = vadd.f32 %v14549_v16, %v14545_v54 }
 0x735   : > { %v11532_v29 = vpop.f32.mrf.mxu1 }
 0x736   : > { %v3120_v42 = vadd.f32 %v11531_v51, %v14561_v53 }
 0x737   : > { %v11533_v56 = vpop.f32.mrf.mxu1 }
 0x738   : > { %v14555_v50 = vadd.f32 %v11533_v56, %v11532_v29 }
 0x739   : > { %v14557_v13 = vpop.f32.mrf.mxu1 }
 0x73b   : > { %v14559_v63 = vpop.f32.mrf.mxu1 }
 0x73c   : > { %v11537_v54 = vadd.f32 %v14559_v63, %v14557_v13 }
 0x73d   : > { %v11538_v36 = vpop.f32.mrf.mxu1 }
 0x73f   : > { %v11539_v1 = vpop.f32.mrf.mxu1  ;;  %v11584_v55 = vpop.f32.mrf.mxu0 }
 0x740   : > { %v14563_v3 = vadd.f32 %v11539_v1, %v11538_v36 }
 0x741   : > { %v11585_v62 = vpop.f32.mrf.mxu0  ;;  %v11541_v46 = vpop.f32.mrf.mxu1 }
 0x742   : > { %v11586_v18 = vadd.f32 %v11585_v62, %v11584_v55  ;;  %v3133_v16 = vadd.f32 %v14563_v3, %v14543_v10  ;;  %v3128_v3 = vadd.f32 %v11537_v54, %v14553_v47 }
 0x743   : > { %v11587_v38 = vpop.f32.mrf.mxu0  ;;  %v11542_v27 = vpop.f32.mrf.mxu1 }
 0x744   : > { %v3206_v44 = vadd.f32 %v11586_v18, %v3109_v26  ;;  %v11543_v37 = vadd.f32 %v11542_v27, %v11541_v46 }
 0x745   : > { %v11588_v21 = vpop.f32.mrf.mxu0  ;;  %v14567_v20 = vpop.f32.mrf.mxu1 }
 0x746   : > { %v11589_v2 = vadd.f32 %v11588_v21, %v11587_v38 }
 0x747   : > { %v11590_v58 = vpop.f32.mrf.mxu0  ;;  %v14569_v56 = vpop.f32.mrf.mxu1 }
 0x748   : > { %v14565_v25 = vadd.f32 %v11589_v2, %v3112_v32 }
 0x749   : > { %v11591_v19 = vpop.f32.mrf.mxu0  ;;  %v14571_v1 = vpop.f32.mrf.mxu1 }
 0x74a   : > { %v11592_v61 = vadd.f32 %v11591_v19, %v11590_v58 }
 0x74b   : > { %v11593_v0 = vpop.f32.mrf.mxu0  ;;  %v14573_v41 = vpop.f32.mrf.mxu1 }
 0x74c   : > { %v3214_v4 = vadd.f32 %v11592_v61, %v3117_v60 }
 0x74d   : > { %v11594_v7 = vpop.f32.mrf.mxu0  ;;  %v14575_v14 = vpop.f32.mrf.mxu1 }
 0x74e   : > { %v11595_v49 = vadd.f32 %v11594_v7, %v11593_v0 }
 0x74f   : > { %v11596_v22 = vpop.f32.mrf.mxu0  ;;  %v14577_v26 = vpop.f32.mrf.mxu1 }
 0x750   : > { %v3217_v35 = vadd.f32 %v11595_v49, %v3120_v42  ;;  %v3125_v49 = vadd.f32 %v14555_v50, %v14551_v12  ;;  %v3136_v42 = vadd.f32 %v11543_v37, %v14547_v34 }
 0x751   : > { %v11597_v15 = vpop.f32.mrf.mxu0  ;;  %v14581_v18 = vpop.f32.mrf.mxu1 }
 0x752   : > { %v11598_v0 = vadd.f32 %v11597_v15, %v11596_v22 }
 0x753   : > { %v11599_v17 = vpop.f32.mrf.mxu0  ;;  %v14585_v48 = vpop.f32.mrf.mxu1 }
 0x755   : > { %v11600_v29 = vpop.f32.mrf.mxu0  ;;  %v14589_v32 = vpop.f32.mrf.mxu1 }
 0x757   : > { %v11602_v36 = vpop.f32.mrf.mxu0  ;;  %v14593_v58 = vpop.f32.mrf.mxu1 }
 0x759   : > { %v11603_v55 = vpop.f32.mrf.mxu0  ;;  %v14597_v60 = vpop.f32.mrf.mxu1 }
 0x75a   : > { %v11604_v11 = vadd.f32 %v11603_v55, %v11602_v36 }
 0x75b   : > { %v11605_v52 = vpop.f32.mrf.mxu0  ;;  %v14601_v24 = vpop.f32.mrf.mxu1 }
 0x75c   : > { %v3230_v10 = vadd.f32 %v11604_v11, %v3133_v16 }
 0x75d   : > { %v11606_v62 = vpop.f32.mrf.mxu0  ;;  %v11562_v39 = vpop.f32.mrf.mxu1 }
 0x75f   : > { %v14579_v8 = vpop.f32.mrf.mxu0  ;;  %v11563_v43 = vpop.f32.mrf.mxu1 }
 0x760   : > { %18620 = vst [vmem:[#allocation33_spill] sm:$0xff] %v14579_v8 }
 0x761   : > { %v14583_v38 = vpop.f32.mrf.mxu0  ;;  %v11565_v59 = vpop.f32.mrf.mxu1 }
 0x762   : > { %18621 = vst [vmem:[#allocation34_spill] sm:$0xff] %v14583_v38 }
 0x763   : > { %v14587_v21 = vpop.f32.mrf.mxu0  ;;  %v11566_v28 = vpop.f32.mrf.mxu1 }
 0x765   : > { %v14591_v2 = vpop.f32.mrf.mxu0 }
 0x767   : > { %v14595_v19 = vpop.f32.mrf.mxu0 }
 0x768   : > { %18622 = vst [vmem:[#allocation35_spill] sm:$0xff] %v14595_v19 }
 0x769   : > { %v14599_v61 = vpop.f32.mrf.mxu0 }
 0x76a   : > { %18623 = vst [vmem:[#allocation36_spill] sm:$0xff] %v14599_v61 }
 0x76b   : > { %v14603_v5 = vpop.f32.mrf.mxu0 }
 0x76d   : > { %v14605_v31 = vpop.f32.mrf.mxu0 }
 0x76f   : > { %v14607_v23 = vpop.f32.mrf.mxu0 }
 0x771   : > { %v14609_v57 = vpop.f32.mrf.mxu0 }
 0x773   : > { %v14613_v45 = vpop.f32.mrf.mxu0 }
 0x774   : > { %18624 = vst [vmem:[#allocation37_spill] sm:$0xff] %v14613_v45  ;;  %v11607_v45 = vadd.f32 %v11606_v62, %v11605_v52 }
 0x775   : > { %v14616_v40 = vpop.f32.mrf.mxu0 }
 0x776   : > { %v3233_v27 = vadd.f32 %v11607_v45, %v3136_v42  ;;  %v11555_v45 = vadd.f32 %v14585_v48, %v14581_v18  ;;  %v11619_v18 = vadd.f32 %v14605_v31, %v14603_v5  ;;  %v11622_v48 = vadd.f32 %v14609_v57, %v14607_v23 }
 0x77b   : > { %v18629_v5 = vld [vmem:[#allocation37_spill] sm:$0xff] }
 0x77c   : > { %v11625_v23 = vadd.f32 %v14616_v40, %v18629_v5 }
 0x798   : > { %v12266_v33 = vpop.f32.mrf.mxu1 }
 0x799   : > { %v3311_v8 = vadd.f32 %v12266_v33, %v3214_v4 }
 0x79a   : > { %v3302_v38 = vpop.f32.mrf.mxu1 }
 0x79b   : > { %v3303_v61 = vadd.f32 %v3302_v38, %v3206_v44  ;;  %v3367_v51 = vmax.f32 %v3311_v8, 0.0  ;;  %v11601_v44 = vadd.f32 %v11600_v29, %v11599_v17 }
 0x79c   : > { %v12267_v9 = vpop.f32.mrf.mxu1 }
 0x79d   : > { %v3314_v19 = vadd.f32 %v12267_v9, %v3217_v35  ;;  %v11626_v9 = vpop.f32.mrf.mxu0  ;;  %v3365_v4 = vmax.f32 %v3303_v61, 0.0  ;;  %v3225_v34 = vadd.f32 %v11601_v44, %v3128_v3  ;;  %v11564_v61 = vadd.f32 %v11563_v43, %v11562_v39  ;;  %v18630_v44 = vld [vmem:[#allocation32_spill] sm:$0xff] }
 0x79e   : > { %v3305_v7 = vpop.f32.mrf.mxu1  ;;  %v11561_v39 = vadd.f32 %v14601_v24, %v14597_v60  ;;  %v18626_v24 = vld [vmem:[#allocation36_spill] sm:$0xff]  ;;  %v18628_v60 = vld [vmem:[#allocation27_spill] sm:$0xff] }
 0x79f   : > { %v3368_v53 = vmax.f32 %v3314_v19, 0.0  ;;  %v3306_v33 = vadd.f32 %v3305_v7, %v14565_v25  ;;  %v3222_v25 = vadd.f32 %v11598_v0, %v3125_v49  ;;  %v11627_v36 = vpop.f32.mrf.mxu0  ;;  %v11558_v7 = vadd.f32 %v14593_v58, %v14589_v32 }
 0x7a0   : > { %v12270_v35 = vpop.f32.mrf.mxu1  ;;  %v11552_v49 = vadd.f32 %v14577_v26, %v14575_v14  ;;  %v3165_v42 = vadd.f32 %v11564_v61, %v14527_v6  ;;  %v18625_v14 = vld [vmem:[#allocation35_spill] sm:$0xff]  ;;  %v18627_v6 = vld [vmem:[#allocation28_spill] sm:$0xff] }
 0x7a1   : > { %v14626_v13 = vpack.c.bf16 %v3368_v53, %v3367_v51  ;;  %v3366_v63 = vmax.f32 %v3306_v33, 0.0  ;;  %v3327_v15 = vadd.f32 %v12270_v35, %v3230_v10  ;;  %v11629_v62 = vpop.f32.mrf.mxu0  ;;  %v11567_v51 = vadd.f32 %v11566_v28, %v11565_v59 }
 0x7a2   : > { %v3318_v22 = vpop.f32.mrf.mxu1  ;;  %v11628_v53 = vadd.f32 %v11627_v36, %v11626_v9  ;;  %v11549_v33 = vadd.f32 %v14573_v41, %v14571_v1  ;;  %v11546_v28 = vadd.f32 %v14569_v56, %v14567_v20  ;;  %v3152_v1 = vadd.f32 %v11555_v45, %v14537_v30  ;;  %v18631_v20 = vld [vmem:[#allocation30_spill] sm:$0xff]  ;;  %v18632_v30 = vld [vmem:[#allocation29_spill] sm:$0xff] }
 0x7a3   : > { %v14629_v46 = vpack.c.bf16 %v3366_v63, %v3365_v4  ;;  %v3319_v50 = vadd.f32 %v3318_v22, %v3222_v25  ;;  %v3371_v29 = vmax.f32 %v3327_v15, 0.0  ;;  %v11630_v16 = vpop.f32.mrf.mxu0  ;;  %v11613_v41 = vadd.f32 %v14591_v2, %v14587_v21  ;;  %v18633_v4 = vld [vmem:[#allocation33_spill] sm:$0xff]  ;;  %v18634_v21 = vld [vmem:[#allocation34_spill] sm:$0xff]  ;;  %v18635_v25 = vld [vmem:[#allocation31_spill] sm:$0xff] }
 0x7a4   : > { %v12271_v12 = vpop.f32.mrf.mxu1  ;;  %v11631_v59 = vadd.f32 %v11630_v16, %v11629_v62  ;;  %v11616_v26 = vadd.f32 %v18626_v24, %v18625_v14  ;;  %v3157_v58 = vadd.f32 %v11558_v7, %v18627_v6  ;;  %v3168_v31 = vadd.f32 %v11567_v51, %v18628_v60 }
 0x7a5   : > { %v3330_v37 = vadd.f32 %v12271_v12, %v3233_v27  ;;  %v3369_v11 = vmax.f32 %v3319_v50, 0.0  ;;  %v3262_v57 = vadd.f32 %v11628_v53, %v3165_v42  ;;  %v3144_v9 = vadd.f32 %v11549_v33, %v18630_v44 }
 0x7a6   : > { %v3321_v17 = vpop.f32.mrf.mxu1  ;;  %v3149_v56 = vadd.f32 %v11552_v49, %v18631_v20  ;;  %v3160_v35 = vadd.f32 %v11561_v39, %v18632_v30  ;;  %v11610_v2 = vadd.f32 %v18634_v21, %v18633_v4  ;;  %v3249_v10 = vadd.f32 %v11619_v18, %v3152_v1 }
 0x7a7   : > { %v3372_v55 = vmax.f32 %v3330_v37, 0.0  ;;  %v3322_v52 = vadd.f32 %v3321_v17, %v3225_v34  ;;  %v3254_v22 = vadd.f32 %v11622_v48, %v3157_v58  ;;  %v3265_v15 = vadd.f32 %v11631_v59, %v3168_v31 }
 0x7a8   : > { %v12274_v8 = vpop.f32.mrf.mxu1  ;;  %v3141_v27 = vadd.f32 %v11546_v28, %v18635_v25  ;;  %v3246_v36 = vadd.f32 %v11616_v26, %v3149_v56  ;;  %v3241_v12 = vadd.f32 %v11613_v41, %v3144_v9  ;;  %v3257_v17 = vadd.f32 %v11625_v23, %v3160_v35  ;;  %v12795_v35 = vld [vmem:[%s18640_s10 + $0x4] ss:$36 sps:$4 sm:$0xff]  }
 0x7a9   : > { %v14631_v38 = vpack.c.bf16 %v3372_v55, %v3371_v29  ;;  %v3370_v47 = vmax.f32 %v3322_v52, 0.0  ;;  %4853 = vmatprep.mubr.bf16.mxu0 %v12795_v35 }
 0x7aa   : > { %v3334_v19 = vpop.f32.mrf.mxu1  ;;  %v3343_v29 = vadd.f32 %v12274_v8, %v3246_v36  ;;  %v3238_v55 = vadd.f32 %v11610_v2, %v3141_v27  ;;  %v12804_v27 = vld [vmem:[%s18640_s10 + $0xc] ss:$36 sps:$4 sm:$0xff]  }
 0x7ab   : > { %v14633_v54 = vpack.c.bf16 %v3370_v47, %v3369_v11  ;;  %5014 = vmatprep.mubr.bf16.mxu1 %v12804_v27 }
 0x7ac   : > { %v12275_v0 = vpop.f32.mrf.mxu1  ;;  %v3335_v45 = vadd.f32 %v3334_v19, %v3238_v55  ;;  %v3375_v33 = vmax.f32 %v3343_v29, 0.0 }
 0x7ad   : > { %v3346_v50 = vadd.f32 %v12275_v0, %v3249_v10 }
 0x7ae   : > { %v3337_v43 = vpop.f32.mrf.mxu1  ;;  %v3373_v0 = vmax.f32 %v3335_v45, 0.0  ;;  %v12801_v45 = vld [vmem:[%s18640_s10 + $0x94] ss:$36 sps:$4 sm:$0xff]  }
 0x7af   : > { %v3338_v62 = vadd.f32 %v3337_v43, %v3241_v12  ;;  %v3376_v16 = vmax.f32 %v3346_v50, 0.0 }
 0x7b0   : > { %v12278_v32 = vpop.f32.mrf.mxu1 }
 0x7b1   : > { %v3359_v3 = vadd.f32 %v12278_v32, %v3262_v57  ;;  %v3374_v49 = vmax.f32 %v3338_v62, 0.0  ;;  %v3386_v42 = vpack.c.bf16 %v3376_v16, %v3375_v33 }
 0x7b2   : > { %v3350_v63 = vpop.f32.mrf.mxu1 }
 0x7b3   : > { %v3351_v37 = vadd.f32 %v3350_v63, %v3254_v22  ;;  %v3379_v11 = vmax.f32 %v3359_v3, 0.0  ;;  %v3385_v8 = vpack.c.bf16 %v3374_v49, %v3373_v0 }
 0x7b4   : > { %v12279_v40 = vpop.f32.mrf.mxu1 }
 0x7b5   : > { %v3362_v34 = vadd.f32 %v12279_v40, %v3265_v15  ;;  %v3377_v7 = vmax.f32 %v3351_v37, 0.0 }
 0x7b6   : > { %v3353_v52 = vpop.f32.mrf.mxu1 }
 0x7b7   : > { %v3380_v47 = vmax.f32 %v3362_v34, 0.0  ;;  %v3354_v61 = vadd.f32 %v3353_v52, %v3257_v17  ;;  %v12796_v34 = vld [vmem:[%s18640_s10 + $0x4c] ss:$36 sps:$4 sm:$0xff]  }
 0x7b9   : > { %v3388_v51 = vpack.c.bf16 %v3380_v47, %v3379_v11  ;;  %v3378_v53 = vmax.f32 %v3354_v61, 0.0 }
 0x7bb   : > { %v3387_v39 = vpack.c.bf16 %v3378_v53, %v3377_v7  ;;  %3411 = vrot.lane.b32.xlu0 %v3388_v51, %s18636_s21 }
 0x7bd   : > { %3409 = vrot.lane.b32.xlu1 %v3387_v39, %s18636_s21 }
 0x7bf   : > { %3407 = vrot.lane.b32.xlu0 %v3386_v42, %s18636_s21 }
 0x7c1   : > { %3405 = vrot.lane.b32.xlu1 %v3385_v8, %s18636_s21 }
 0x7c3   : > { %3403 = vrot.lane.b32.xlu0 %v14631_v38, %s18636_s21 }
 0x7c5   : > { %3401 = vrot.lane.b32.xlu1 %v14633_v54, %s18636_s21 }
 0x7c7   : > { %3399 = vrot.lane.b32.xlu0 %v14626_v13, %s18636_s21 }
 0x7c9   : > { %3397 = vrot.lane.b32.xlu1 %v14629_v46, %s18636_s21 }
 0x82d   : > { %v3412_v19 = vpop.permute.xlu0 %3411 }
 0x82e   : > { %v3428_v43 = vsel %vm2512_vm0, 0, %v3412_v19 }
 0x82f   : > { %v14681_v18 = vsel %vm2521_vm14, %v3428_v43, 0  ;;  %v3410_v48 = vpop.permute.xlu1 %3409 }
 0x830   : > { %v3426_v59 = vsel %vm2512_vm0, 0, %v3410_v48  ;;  %3515 = vrot.lane.b32.xlu0 %v14681_v18, %s18603_s23  ;;  %v3468_v20 = vsel %vm2559_vm10, %v14681_v18, 0  ;;  %v3460_v30 = vsel %vm2552_vm1, %v14681_v18, 0  ;;  %v3476_v17 = vsel %vm2566_vm11, %v14681_v18, 0 }
 0x831   : > { %v14687_v38 = vsel %vm2521_vm14, %v3426_v59, 0  ;;  %v3408_v54 = vpop.permute.xlu0 %3407  ;;  %v3484_v16 = vsel %vm2573_vm5, %v14681_v18, 0  ;;  %v3492_v8 = vsel %vm2580_vm4, %v14681_v18, 0  ;;  %v3452_v59 = vsel %vm2539_vm9, %v14681_v18, 0 }
 0x832   : > { %v3424_v13 = vsel %vm2512_vm0, 0, %v3408_v54  ;;  %3513 = vrot.lane.b32.xlu1 %v14687_v38, %s18603_s23  ;;  %v3467_v4 = vsel %vm2559_vm10, %v14687_v38, 0  ;;  %v3459_v21 = vsel %vm2552_vm1, %v14687_v38, 0  ;;  %v3475_v29 = vsel %vm2566_vm11, %v14687_v38, 0 }
 0x833   : > { %v14693_v46 = vsel %vm2521_vm14, %v3424_v13, 0  ;;  %v3406_v28 = vpop.permute.xlu1 %3405  ;;  %v3483_v7 = vsel %vm2573_vm5, %v14687_v38, 0  ;;  %v3491_v19 = vsel %vm2580_vm4, %v14687_v38, 0 }
 0x834   : > { %v3422_v1 = vsel %vm2512_vm0, 0, %v3406_v28  ;;  %3511 = vrot.lane.b32.xlu0 %v14693_v46, %s18603_s23  ;;  %v3466_v2 = vsel %vm2559_vm10, %v14693_v46, 0  ;;  %v3458_v63 = vsel %vm2552_vm1, %v14693_v46, 0  ;;  %v3474_v55 = vsel %vm2566_vm11, %v14693_v46, 0 }
 0x835   : > { %v14699_v41 = vsel %vm2521_vm14, %v3422_v1, 0  ;;  %v3404_v14 = vpop.permute.xlu0 %3403  ;;  %v3482_v51 = vsel %vm2573_vm5, %v14693_v46, 0  ;;  %v3490_v54 = vsel %vm2580_vm4, %v14693_v46, 0 }
 0x836   : > { %v3420_v24 = vsel %vm2512_vm0, 0, %v3404_v14  ;;  %3509 = vrot.lane.b32.xlu1 %v14699_v41, %s18603_s23  ;;  %v3465_v10 = vsel %vm2559_vm10, %v14699_v41, 0  ;;  %v3457_v3 = vsel %vm2552_vm1, %v14699_v41, 0  ;;  %v3473_v52 = vsel %vm2566_vm11, %v14699_v41, 0 }
 0x837   : > { %v14705_v26 = vsel %vm2521_vm14, %v3420_v24, 0  ;;  %v3402_v32 = vpop.permute.xlu1 %3401  ;;  %v3481_v53 = vsel %vm2573_vm5, %v14699_v41, 0  ;;  %v3489_v28 = vsel %vm2580_vm4, %v14699_v41, 0  ;;  %v3451_v14 = vsel %vm2539_vm9, %v14687_v38, 0 }
 0x838   : > { %v3418_v6 = vsel %vm2512_vm0, 0, %v3402_v32  ;;  %3507 = vrot.lane.b32.xlu0 %v14705_v26, %s18603_s23  ;;  %v3464_v22 = vsel %vm2559_vm10, %v14705_v26, 0  ;;  %v3456_v15 = vsel %vm2552_vm1, %v14705_v26, 0  ;;  %v3472_v62 = vsel %vm2566_vm11, %v14705_v26, 0 }
 0x839   : > { %v14711_v58 = vsel %vm2521_vm14, %v3418_v6, 0  ;;  %v3400_v60 = vpop.permute.xlu0 %3399  ;;  %v3480_v33 = vsel %vm2573_vm5, %v14705_v26, 0 }
 0x83a   : > { %v3416_v31 = vsel %vm2512_vm0, 0, %v3400_v60  ;;  %3505 = vrot.lane.b32.xlu1 %v14711_v58, %s18603_s23  ;;  %v3463_v25 = vsel %vm2559_vm10, %v14711_v58, 0  ;;  %v3455_v36 = vsel %vm2552_vm1, %v14711_v58, 0  ;;  %v3471_v11 = vsel %vm2566_vm11, %v14711_v58, 0 }
 0x83b   : > { %v14717_v5 = vsel %vm2521_vm14, %v3416_v31, 0  ;;  %v3398_v23 = vpop.permute.xlu1 %3397  ;;  %v3479_v49 = vsel %vm2573_vm5, %v14711_v58, 0  ;;  %v3487_v32 = vsel %vm2580_vm4, %v14711_v58, 0 }
 0x83c   : > { %v3414_v57 = vsel %vm2512_vm0, 0, %v3398_v23  ;;  %3503 = vrot.lane.b32.xlu0 %v14717_v5, %s18603_s23  ;;  %v3462_v12 = vsel %vm2559_vm10, %v14717_v5, 0  ;;  %v3454_v40 = vsel %vm2552_vm1, %v14717_v5, 0  ;;  %v3470_v47 = vsel %vm2566_vm11, %v14717_v5, 0  ;;  %vm18793_vm0 = vmmov %vm18792_vm3 }
 0x83d   : > { %v14723_v44 = vsel %vm2521_vm14, %v3414_v57, 0  ;;  %v3478_v39 = vsel %vm2573_vm5, %v14717_v5, 0  ;;  %v3486_v60 = vsel %vm2580_vm4, %v14717_v5, 0  ;;  %v3893_v57 = vld [vmem:[%s18647_s12] sm:$0xff]  ;;  %vm18794_vm14 = vmmov %vm18793_vm0 }
 0x83e   : > { %3501 = vrot.lane.b32.xlu1 %v14723_v44, %s18603_s23  ;;  %v3461_v50 = vsel %vm2559_vm10, %v14723_v44, 0  ;;  %v3453_v37 = vsel %vm2552_vm1, %v14723_v44, 0  ;;  %v3469_v61 = vsel %vm2566_vm11, %v14723_v44, 0  ;;  %v3477_v0 = vsel %vm2573_vm5, %v14723_v44, 0  ;;  %vm18795_vm10 = vmmov %vm18793_vm0 }
 0x83f   : > { %v3485_v23 = vsel %vm2580_vm4, %v14723_v44, 0  ;;  %vm18796_vm1 = vmmov %vm18793_vm0 }
 0x840   : > { %3579 = vrot.lane.b32.xlu0 %v3468_v20, %s18638_s5  ;;  %v3894_v20 = vld [vmem:[%s18647_s12 + $0x8] sm:$0xff]  ;;  %vm18797_vm11 = vmmov %vm18793_vm0 }
 0x841   : > { %vm18798_vm5 = vmmov %vm18793_vm0 }
 0x842   : > { %3547 = vrot.lane.b32.xlu1 %v3460_v30, %s18607_s29  ;;  %v3895_v30 = vld [vmem:[%s18647_s12 + $0x10] sm:$0xff] }
 0x844   : > { %3577 = vrot.lane.b32.xlu0 %v3467_v4, %s18638_s5  ;;  %v3448_v4 = vsel %vm2539_vm9, %v14705_v26, 0 }
 0x846   : > { %3545 = vrot.lane.b32.xlu1 %v3459_v21, %s18607_s29 }
 0x848   : > { %3575 = vrot.lane.b32.xlu0 %v3466_v2, %s18638_s5  ;;  %v3897_v2 = vld [vmem:[%s18647_s12 + $0x20] sm:$0xff] }
 0x84a   : > { %3543 = vrot.lane.b32.xlu1 %v3458_v63, %s18607_s29 }
 0x84c   : > { %3573 = vrot.lane.b32.xlu0 %v3465_v10, %s18638_s5  ;;  %v3898_v10 = vld [vmem:[%s18647_s12 + $0x28] sm:$0xff] }
 0x84e   : > { %3541 = vrot.lane.b32.xlu1 %v3457_v3, %s18607_s29 }
 0x850   : > { %3571 = vrot.lane.b32.xlu0 %v3464_v22, %s18638_s5  ;;  %v3899_v22 = vld [vmem:[%s18647_s12 + $0x30] sm:$0xff] }
 0x852   : > { %3539 = vrot.lane.b32.xlu1 %v3456_v15, %s18607_s29 }
 0x854   : > { %3569 = vrot.lane.b32.xlu0 %v3463_v25, %s18638_s5  ;;  %v3900_v25 = vld [vmem:[%s18647_s12 + $0x38] sm:$0xff] }
 0x856   : > { %3537 = vrot.lane.b32.xlu1 %v3455_v36, %s18607_s29  ;;  %v3901_v36 = vld [vmem:[%s18647_s12 + $0x40] sm:$0xff] }
 0x858   : > { %3567 = vrot.lane.b32.xlu0 %v3462_v12, %s18638_s5 }
 0x85a   : > { %3535 = vrot.lane.b32.xlu1 %v3454_v40, %s18607_s29  ;;  %v12793_v40 = vld [vmem:[%s18640_s10] ss:$36 sps:$4 sm:$0xff]  }
 0x85c   : > { %3565 = vrot.lane.b32.xlu0 %v3461_v50, %s18638_s5  ;;  %v3902_v50 = vld [vmem:[%s18647_s12 + $0x48] sm:$0xff] }
 0x85e   : > { %3533 = vrot.lane.b32.xlu1 %v3453_v37, %s18607_s29 }
 0x860   : > { %3635 = vrot.lane.b32.xlu0 %v3476_v17, %s18642_s9 }
 0x862   : > { %3603 = vrot.lane.b32.xlu1 %v14681_v18, %s18643_s11 }
 0x864   : > { %3633 = vrot.lane.b32.xlu0 %v3475_v29, %s18642_s9  ;;  %v3904_v29 = vld [vmem:[%s18647_s12 + $0x58] sm:$0xff] }
 0x866   : > { %3601 = vrot.lane.b32.xlu1 %v14687_v38, %s18643_s11 }
 0x868   : > { %3631 = vrot.lane.b32.xlu0 %v3474_v55, %s18642_s9 }
 0x86a   : > { %3599 = vrot.lane.b32.xlu1 %v14693_v46, %s18643_s11 }
 0x86c   : > { %3629 = vrot.lane.b32.xlu0 %v3473_v52, %s18642_s9  ;;  %v3905_v52 = vld [vmem:[%s18647_s12 + $0x60] sm:$0xff] }
 0x86e   : > { %3597 = vrot.lane.b32.xlu1 %v14699_v41, %s18643_s11 }
 0x870   : > { %3627 = vrot.lane.b32.xlu0 %v3472_v62, %s18642_s9 }
 0x872   : > { %3595 = vrot.lane.b32.xlu1 %v14705_v26, %s18643_s11 }
 0x874   : > { %3625 = vrot.lane.b32.xlu0 %v3471_v11, %s18642_s9  ;;  %v3906_v11 = vld [vmem:[%s18647_s12 + $0x68] sm:$0xff] }
 0x876   : > { %3593 = vrot.lane.b32.xlu1 %v14711_v58, %s18643_s11 }
 0x878   : > { %3623 = vrot.lane.b32.xlu0 %v3470_v47, %s18642_s9  ;;  %v12798_v47 = vld [vmem:[%s18640_s10 + $0x48] ss:$36 sps:$4 sm:$0xff]  }
 0x87a   : > { %3591 = vrot.lane.b32.xlu1 %v14717_v5, %s18643_s11 }
 0x87c   : > { %3621 = vrot.lane.b32.xlu0 %v3469_v61, %s18642_s9 }
 0x87e   : > { %3589 = vrot.lane.b32.xlu1 %v14723_v44, %s18643_s11 }
 0x880   : > { %3691 = vrot.lane.b32.xlu0 %v14681_v18, %s18564_s28  ;;  %v3488_v18 = vsel %vm2580_vm4, %v14705_v26, 0  ;;  %vm18799_vm4 = vmmov %vm18793_vm0 }
 0x882   : > { %3667 = vrot.lane.b32.xlu1 %v3484_v16, %s18610_s4  ;;  %v3907_v16 = vld [vmem:[%s18647_s12 + $0x70] sm:$0xff] }
 0x884   : > { %3689 = vrot.lane.b32.xlu0 %v14687_v38, %s18564_s28  ;;  %v3450_v38 = vsel %vm2539_vm9, %v14693_v46, 0 }
 0x886   : > { %3665 = vrot.lane.b32.xlu1 %v3483_v7, %s18610_s4 }
 0x888   : > { %3687 = vrot.lane.b32.xlu0 %v14693_v46, %s18564_s28  ;;  %v3449_v46 = vsel %vm2539_vm9, %v14699_v41, 0 }
 0x88a   : > { %3663 = vrot.lane.b32.xlu1 %v3482_v51, %s18610_s4  ;;  %v3908_v51 = vld [vmem:[%s18647_s12 + $0x78] sm:$0xff] }
 0x88c   : > { %3685 = vrot.lane.b32.xlu0 %v14699_v41, %s18564_s28  ;;  %v3896_v41 = vld [vmem:[%s18647_s12 + $0x18] sm:$0xff] }
 0x88e   : > { %3661 = vrot.lane.b32.xlu1 %v3481_v53, %s18610_s4 }
 0x890   : > { %3683 = vrot.lane.b32.xlu0 %v14705_v26, %s18564_s28  ;;  %v3447_v26 = vsel %vm2539_vm9, %v14711_v58, 0 }
 0x892   : > { %3659 = vrot.lane.b32.xlu1 %v3480_v33, %s18610_s4  ;;  %v3909_v33 = vld [vmem:[%s18647_s12 + $0x80] sm:$0xff] }
 0x894   : > { %3681 = vrot.lane.b32.xlu0 %v14711_v58, %s18564_s28  ;;  %v3446_v58 = vsel %vm2539_vm9, %v14717_v5, 0 }
 0x896   : > { %3657 = vrot.lane.b32.xlu1 %v3479_v49, %s18610_s4 }
 0x898   : > { %3679 = vrot.lane.b32.xlu0 %v14717_v5, %s18564_s28  ;;  %v3445_v5 = vsel %vm2539_vm9, %v14723_v44, 0  ;;  %vm18800_vm9 = vmmov %vm18793_vm0 }
 0x89a   : > { %3655 = vrot.lane.b32.xlu1 %v3478_v39, %s18610_s4  ;;  %v3910_v39 = vld [vmem:[%s18647_s12 + $0x88] sm:$0xff] }
 0x89c   : > { %3677 = vrot.lane.b32.xlu0 %v14723_v44, %s18564_s28  ;;  %v3903_v44 = vld [vmem:[%s18647_s12 + $0x50] sm:$0xff] }
 0x89e   : > { %3653 = vrot.lane.b32.xlu1 %v3477_v0, %s18610_s4  ;;  %v12799_v0 = vld [vmem:[%s18640_s10 + $0x90] ss:$36 sps:$4 sm:$0xff]  }
 0x8a0   : > { %3723 = vrot.lane.b32.xlu0 %v3492_v8, %s18612_s22  ;;  %v12802_v8 = vld [vmem:[%s18640_s10 + $0x8] ss:$36 sps:$4 sm:$0xff]  }
 0x8a2   : > { %v3516_v43 = vpop.permute.xlu0 %3515  ;;  %3721 = vrot.lane.b32.xlu1 %v3491_v19, %s18612_s22  ;;  %v3911_v19 = vld [vmem:[%s18647_s12 + $0x90] sm:$0xff] }
 0x8a3   : > { %11644 = vmatprep.subr.bf16.mxu0 %v3516_v43  ;;  %v12807_v43 = vld [vmem:[%s18640_s10 + $0xdc] ss:$36 sps:$4 sm:$0xff]  }
 0x8a4   : > { %11645 = vmatpush3.bf16.msra.mxu0 %v3452_v59  ;;  %3719 = vrot.lane.b32.xlu0 %v3490_v54, %s18612_s22  ;;  %v3514_v13 = vpop.permute.xlu1 %3513  ;;  %v12808_v59 = vld [vmem:[%s18640_s10 + $0x54] ss:$36 sps:$4 sm:$0xff]  }
 0x8a5   : > { %11646 = vmatprep.subr.bf16.mxu0 %v3514_v13  ;;  %v3912_v54 = vld [vmem:[%s18647_s12 + $0x98] sm:$0xff] }
 0x8a6   : > { %v3512_v1 = vpop.permute.xlu0 %3511  ;;  %3717 = vrot.lane.b32.xlu1 %v3489_v28, %s18612_s22  ;;  %v3913_v28 = vld [vmem:[%s18647_s12 + $0xa0] sm:$0xff] }
 0x8a8   : > { %3715 = vrot.lane.b32.xlu0 %v3488_v18, %s18612_s22  ;;  %11647 = vmatpush3.bf16.msra.mxu0 %v3451_v14  ;;  %v3510_v24 = vpop.permute.xlu1 %3509  ;;  %v3914_v18 = vld [vmem:[%s18647_s12 + $0xa8] sm:$0xff]  ;;  %v12805_v14 = vld [vmem:[%s18640_s10 + $0xd8] ss:$36 sps:$4 sm:$0xff]  }
 0x8a9   : > { %11648 = vmatprep.subr.bf16.mxu0 %v3512_v1 }
 0x8aa   : > { %v3508_v6 = vpop.permute.xlu0 %3507  ;;  %3713 = vrot.lane.b32.xlu1 %v3487_v32, %s18612_s22  ;;  %v12810_v32 = vld [vmem:[%s18640_s10 + $0x50] ss:$36 sps:$4 sm:$0xff]  }
 0x8ac   : > { %3711 = vrot.lane.b32.xlu0 %v3486_v60, %s18612_s22  ;;  %11649 = vmatpush3.bf16.msra.mxu0 %v3450_v38  ;;  %v3506_v31 = vpop.permute.xlu1 %3505  ;;  %v12813_v60 = vld [vmem:[%s18640_s10 + $0x124] ss:$36 sps:$4 sm:$0xff]  }
 0x8ad   : > { %11650 = vmatprep.subr.bf16.mxu0 %v3510_v24 }
 0x8ae   : > { %v3504_v9 = vpop.permute.xlu0 %3503  ;;  %3709 = vrot.lane.b32.xlu1 %v3485_v23, %s18612_s22  ;;  %v3916_v23 = vld [vmem:[%s18647_s12 + $0xb8] sm:$0xff] }
 0x8b0   : > { %3927 = vperm.xlu0 %12652, %v3893_v57   ;;  %11651 = vmatpush3.bf16.msra.mxu0 %v3449_v46  ;;  %v3502_v56 = vpop.permute.xlu1 %3501 }
 0x8b1   : > { %11652 = vmatprep.subr.bf16.mxu0 %v3508_v6  ;;  %v3915_v6 = vld [vmem:[%s18647_s12 + $0xb0] sm:$0xff] }
 0x8b2   : > { %v3580_v35 = vpop.permute.xlu0 %3579  ;;  %3932 = vperm.xlu1 %12653, %v3894_v20   ;;  %v3918_v20 = vld [vmem:[%s18647_s12 + $0xc8] sm:$0xff] }
 0x8b3   : > { %11756 = vmatprep.subr.bf16.mxu1 %v3580_v35  ;;  %v12816_v35 = vld [vmem:[%s18640_s10 + $0x98] ss:$36 sps:$4 sm:$0xff]  }
 0x8b4   : > { %3937 = vperm.xlu0 %12652, %v3895_v30   ;;  %11653 = vmatpush3.bf16.msra.mxu0 %v3448_v4  ;;  %v3548_v21 = vpop.permute.xlu1 %3547  ;;  %v3919_v4 = vld [vmem:[%s18647_s12 + $0xd0] sm:$0xff] }
 0x8b5   : > { %11654 = vmatprep.subr.bf16.mxu0 %v3506_v31  ;;  %11757 = vmatpush3.bf16.msra.mxu1 %v3548_v21  ;;  %v12814_v31 = vld [vmem:[%s18640_s10 + $0x9c] ss:$36 sps:$4 sm:$0xff]  }
 0x8b6   : > { %v3578_v63 = vpop.permute.xlu0 %3577  ;;  %3942 = vperm.xlu1 %12653, %v3896_v41   ;;  %v12819_v41 = vld [vmem:[%s18640_s10 + $0x16c] ss:$36 sps:$4 sm:$0xff]  }
 0x8b7   : > { %11758 = vmatprep.subr.bf16.mxu1 %v3578_v63  ;;  %v3920_v63 = vld [vmem:[%s18647_s12 + $0xd8] sm:$0xff] }
 0x8b8   : > { %3947 = vperm.xlu0 %12652, %v3897_v2   ;;  %11655 = vmatpush3.bf16.msra.mxu0 %v3447_v26  ;;  %v3546_v3 = vpop.permute.xlu1 %3545  ;;  %v12820_v2 = vld [vmem:[%s18640_s10 + $0xe4] ss:$36 sps:$4 sm:$0xff]  }
 0x8b9   : > { %11656 = vmatprep.subr.bf16.mxu0 %v3504_v9  ;;  %11759 = vmatpush3.bf16.msra.mxu1 %v3546_v3  ;;  %v3917_v9 = vld [vmem:[%s18647_s12 + $0xc0] sm:$0xff] }
 0x8ba   : > { %v3576_v15 = vpop.permute.xlu0 %3575  ;;  %3952 = vperm.xlu1 %12653, %v3898_v10   ;;  %v3921_v10 = vld [vmem:[%s18647_s12 + $0xe0] sm:$0xff] }
 0x8bb   : > { %11760 = vmatprep.subr.bf16.mxu1 %v3576_v15  ;;  %v12817_v15 = vld [vmem:[%s18640_s10 + $0x168] ss:$36 sps:$4 sm:$0xff]  }
 0x8bc   : > { %3957 = vperm.xlu0 %12652, %v3899_v22   ;;  %11657 = vmatpush3.bf16.msra.mxu0 %v3446_v58  ;;  %v3544_v27 = vpop.permute.xlu1 %3543  ;;  %v3922_v22 = vld [vmem:[%s18647_s12 + $0xe8] sm:$0xff] }
 0x8bd   : > { %11658 = vmatprep.subr.bf16.mxu0 %v3502_v56  ;;  %11761 = vmatpush3.bf16.msra.mxu1 %v3544_v27  ;;  %v12811_v56 = vld [vmem:[%s18640_s10 + $0x120] ss:$36 sps:$4 sm:$0xff]   ;;  %v3923_v27 = vld [vmem:[%s18647_s12 + $0xf0] sm:$0xff] }
 0x8be   : > { %v3574_v12 = vpop.permute.xlu0 %3573  ;;  %3962 = vperm.xlu1 %12653, %v3900_v25   ;;  %v12822_v25 = vld [vmem:[%s18640_s10 + $0xe0] ss:$36 sps:$4 sm:$0xff]  }
 0x8bf   : > { %11762 = vmatprep.subr.bf16.mxu1 %v3574_v12 }
 0x8c0   : > { %3967 = vperm.xlu0 %12652, %v3901_v36   ;;  %11659 = vmatpush3.bf16.msra.mxu0 %v3445_v5  ;;  %v3542_v37 = vpop.permute.xlu1 %3541  ;;  %v12825_v36 = vld [vmem:[%s18640_s10 + $0x1b4] ss:$36 sps:$4 sm:$0xff]   ;;  %v12826_v5 = vld [vmem:[%s18640_s10 + $0x12c] ss:$36 sps:$4 sm:$0xff]  }
 0x8c1   : > { %11763 = vmatpush3.bf16.msra.mxu1 %v3542_v37  ;;  %v6689_v37 = vld [vmem:[%s18340_s13 + $0x80] sm:$0xff] }
 0x8c2   : > { %v3572_v17 = vpop.permute.xlu0 %3571  ;;  %3972 = vperm.xlu1 %12653, %v3902_v50  }
 0x8c3   : > { %4854 = vmatmul.mubr.bf16.vlgmr.msra.gmra.mxu0 %v12793_v40  ;;  %11764 = vmatprep.subr.bf16.mxu1 %v3572_v17  ;;  %v3924_v40 = vld [vmem:[%s18647_s12 + $0xf8] sm:$0xff]  ;;  %v12823_v17 = vld [vmem:[%s18640_s10 + $0x1b0] ss:$36 sps:$4 sm:$0xff]  }
 0x8c4   : > { %3977 = vperm.xlu0 %12652, %v3903_v44   ;;  %v3540_v55 = vpop.permute.xlu1 %3539  ;;  %4861 = vmatprep.mubr.bf16.mxu0 %v12796_v34  ;;  %v6690_v44 = vld [vmem:[%s18340_s13 + $0x88] sm:$0xff] }
 0x8c5   : > { %11765 = vmatpush3.bf16.msra.mxu1 %v3540_v55  ;;  %v12828_v55 = vld [vmem:[%s18640_s10 + $0x128] ss:$36 sps:$4 sm:$0xff]  }
 0x8c6   : > { %v3570_v62 = vpop.permute.xlu0 %3569  ;;  %3982 = vperm.xlu1 %12653, %v3904_v29  }
 0x8c7   : > { %11766 = vmatprep.subr.bf16.mxu1 %v3570_v62  ;;  %v12831_v62 = vld [vmem:[%s18640_s10 + $0x1fc] ss:$36 sps:$4 sm:$0xff]  }
 0x8c8   : > { %3987 = vperm.xlu0 %12652, %v3905_v52   ;;  %v3538_v61 = vpop.permute.xlu1 %3537  ;;  %v6691_v52 = vld [vmem:[%s18340_s13 + $0x90] sm:$0xff] }
 0x8c9   : > { %11767 = vmatpush3.bf16.msra.mxu1 %v3538_v61  ;;  %v6692_v61 = vld [vmem:[%s18340_s13 + $0x98] sm:$0xff] }
 0x8ca   : > { %v3568_v7 = vpop.permute.xlu0 %3567  ;;  %3992 = vperm.xlu1 %12653, %v3906_v11  }
 0x8cb   : > { %4862 = vmatmul.mubr.bf16.gmra.mxu0 %v12798_v47  ;;  %11768 = vmatprep.subr.bf16.mxu1 %v3568_v7  ;;  %v12832_v47 = vld [vmem:[%s18640_s10 + $0x174] ss:$36 sps:$4 sm:$0xff]  }
 0x8cc   : > { %3997 = vperm.xlu0 %12652, %v3907_v16   ;;  %v3536_v53 = vpop.permute.xlu1 %3535  ;;  %4869 = vmatprep.mubr.bf16.mxu0 %v12801_v45  ;;  %v6693_v16 = vld [vmem:[%s18340_s13 + $0xa0] sm:$0xff] }
 0x8cd   : > { %11769 = vmatpush3.bf16.msra.mxu1 %v3536_v53  ;;  %v12829_v53 = vld [vmem:[%s18640_s10 + $0x1f8] ss:$36 sps:$4 sm:$0xff]  }
 0x8ce   : > { %v3566_v49 = vpop.permute.xlu0 %3565  ;;  %4002 = vperm.xlu1 %12653, %v3908_v51   ;;  %v6694_v51 = vld [vmem:[%s18340_s13 + $0xa8] sm:$0xff] }
 0x8cf   : > { %11770 = vmatprep.subr.bf16.mxu1 %v3566_v49  ;;  %v12834_v49 = vld [vmem:[%s18640_s10 + $0x170] ss:$36 sps:$4 sm:$0xff]  }
 0x8d0   : > { %4007 = vperm.xlu0 %12652, %v3909_v33   ;;  %v3534_v42 = vpop.permute.xlu1 %3533 }
 0x8d1   : > { %11771 = vmatpush3.bf16.msra.mxu1 %v3534_v42 }
 0x8d2   : > { %v3636_v48 = vpop.permute.xlu0 %3635  ;;  %4012 = vperm.xlu1 %12653, %v3910_v39   ;;  %v6695_v39 = vld [vmem:[%s18340_s13 + $0xb0] sm:$0xff] }
 0x8d3   : > { %4870 = vmatmul.mubr.bf16.gmra.mxu0 %v12799_v0  ;;  %11868 = vmatprep.subr.bf16.mxu0 %v3636_v48  ;;  %v12837_v0 = vld [vmem:[%s18640_s10 + $0x244] ss:$36 sps:$4 sm:$0xff]  }
 0x8d4   : > { %4017 = vperm.xlu0 %12652, %v3911_v19   ;;  %5015 = vmatmul.mubr.bf16.vlgmr.msra.gmra.mxu1 %v12802_v8  ;;  %v3604_v13 = vpop.permute.xlu1 %3603  ;;  %v12838_v8 = vld [vmem:[%s18640_s10 + $0x1bc] ss:$36 sps:$4 sm:$0xff]  }
 0x8d5   : > { %11869 = vmatpush3.bf16.msra.mxu0 %v3604_v13  ;;  %4877 = vmatprep.mubr.bf16.mxu0 %v12807_v43  ;;  %v6696_v19 = vld [vmem:[%s18340_s13 + $0xb8] sm:$0xff]  ;;  %v6697_v48 = vld [vmem:[%s18340_s13 + $0xc0] sm:$0xff]  ;;  %v6698_v13 = vld [vmem:[%s18340_s13 + $0xc8] sm:$0xff] }
 0x8d6   : > { %v3634_v1 = vpop.permute.xlu0 %3633  ;;  %4022 = vperm.xlu1 %12653, %v3912_v54   ;;  %5022 = vmatprep.mubr.bf16.mxu1 %v12808_v59  ;;  %v12835_v54 = vld [vmem:[%s18640_s10 + $0x240] ss:$36 sps:$4 sm:$0xff]  }
 0x8d7   : > { %11870 = vmatprep.subr.bf16.mxu0 %v3634_v1  ;;  %v12840_v1 = vld [vmem:[%s18640_s10 + $0x1b8] ss:$36 sps:$4 sm:$0xff]  }
 0x8d8   : > { %4027 = vperm.xlu0 %12652, %v3913_v28   ;;  %v3602_v24 = vpop.permute.xlu1 %3601 }
 0x8d9   : > { %11871 = vmatpush3.bf16.msra.mxu0 %v3602_v24 }
 0x8da   : > { %v3632_v38 = vpop.permute.xlu0 %3631  ;;  %4032 = vperm.xlu1 %12653, %v3914_v18   ;;  %v6699_v18 = vld [vmem:[%s18340_s13 + $0xd0] sm:$0xff] }
 0x8db   : > { %4878 = vmatmul.mubr.bf16.gmra.mxu0 %v12805_v14  ;;  %11872 = vmatprep.subr.bf16.mxu0 %v3632_v38  ;;  %v12843_v14 = vld [vmem:[%s18640_s10 + $0x28c] ss:$36 sps:$4 sm:$0xff]   ;;  %v6701_v38 = vld [vmem:[%s18340_s13 + $0xe0] sm:$0xff] }
 0x8dc   : > { %4037 = vperm.xlu0 %12652, %v3915_v6   ;;  %5023 = vmatmul.mubr.bf16.gmra.mxu1 %v12810_v32  ;;  %v3600_v57 = vpop.permute.xlu1 %3599  ;;  %v12844_v32 = vld [vmem:[%s18640_s10 + $0x204] ss:$36 sps:$4 sm:$0xff]   ;;  %v6700_v6 = vld [vmem:[%s18340_s13 + $0xd8] sm:$0xff] }
 0x8dd   : > { %11873 = vmatpush3.bf16.msra.mxu0 %v3600_v57  ;;  %4885 = vmatprep.mubr.bf16.mxu0 %v12813_v60  ;;  %v6702_v57 = vld [vmem:[%s18340_s13 + $0xe8] sm:$0xff] }
 0x8de   : > { %v3630_v46 = vpop.permute.xlu0 %3629  ;;  %4042 = vperm.xlu1 %12653, %v3916_v23   ;;  %5030 = vmatprep.mubr.bf16.mxu1 %v12814_v31  ;;  %v12841_v23 = vld [vmem:[%s18640_s10 + $0x288] ss:$36 sps:$4 sm:$0xff]  }
 0x8df   : > { %11874 = vmatprep.subr.bf16.mxu0 %v3630_v46  ;;  %v12846_v46 = vld [vmem:[%s18640_s10 + $0x200] ss:$36 sps:$4 sm:$0xff]  }
 0x8e0   : > { %4047 = vperm.xlu0 %12652, %v3917_v9   ;;  %v3598_v30 = vpop.permute.xlu1 %3597 }
 0x8e1   : > { %11875 = vmatpush3.bf16.msra.mxu0 %v3598_v30 }
 0x8e2   : > { %v3628_v21 = vpop.permute.xlu0 %3627  ;;  %4052 = vperm.xlu1 %12653, %v3918_v20   ;;  %v6703_v20 = vld [vmem:[%s18340_s13 + $0xf0] sm:$0xff] }
 0x8e3   : > { %4886 = vmatmul.mubr.bf16.gmra.mxu0 %v12811_v56  ;;  %11876 = vmatprep.subr.bf16.mxu0 %v3628_v21  ;;  %v12849_v56 = vld [vmem:[%s18640_s10 + $0x2d4] ss:$36 sps:$4 sm:$0xff]   ;;  %v6673_v21 = vld [vmem:[%s18340_s13] sm:$0xff] }
 0x8e4   : > { %4057 = vperm.xlu0 %12652, %v3919_v4   ;;  %5031 = vmatmul.mubr.bf16.gmra.mxu1 %v12816_v35  ;;  %v3596_v26 = vpop.permute.xlu1 %3595  ;;  %v12852_v35 = vld [vmem:[%s18640_s10 + $0x24c] ss:$36 sps:$4 sm:$0xff]   ;;  %v6704_v4 = vld [vmem:[%s18340_s13 + $0xf8] sm:$0xff] }
 0x8e5   : > { %11877 = vmatpush3.bf16.msra.mxu0 %v3596_v26  ;;  %4893 = vmatprep.mubr.bf16.mxu0 %v12819_v41  ;;  %v6674_v26 = vld [vmem:[%s18340_s13 + $0x8] sm:$0xff] }
 0x8e6   : > { %v3626_v3 = vpop.permute.xlu0 %3625  ;;  %4062 = vperm.xlu1 %12653, %v3920_v63   ;;  %5038 = vmatprep.mubr.bf16.mxu1 %v12820_v2  ;;  %v12847_v63 = vld [vmem:[%s18640_s10 + $0x2d0] ss:$36 sps:$4 sm:$0xff]  }
 0x8e7   : > { %11878 = vmatprep.subr.bf16.mxu0 %v3626_v3  ;;  %v12850_v3 = vld [vmem:[%s18640_s10 + $0x248] ss:$36 sps:$4 sm:$0xff]  }
 0x8e8   : > { %4067 = vperm.xlu0 %12652, %v3921_v10   ;;  %v3594_v58 = vpop.permute.xlu1 %3593 }
 0x8e9   : > { %11879 = vmatpush3.bf16.msra.mxu0 %v3594_v58  ;;  %v12858_v58 = vld [vmem:[%s18640_s10 + $0x294] ss:$36 sps:$4 sm:$0xff]  }
 0x8ea   : > { %v3624_v12 = vpop.permute.xlu0 %3623  ;;  %4072 = vperm.xlu1 %12653, %v3922_v22   ;;  %v6675_v22 = vld [vmem:[%s18340_s13 + $0x10] sm:$0xff] }
 0x8eb   : > { %4894 = vmatmul.mubr.bf16.gmra.mxu0 %v12817_v15  ;;  %11880 = vmatprep.subr.bf16.mxu0 %v3624_v12  ;;  %v12855_v15 = vld [vmem:[%s18640_s10 + $0x31c] ss:$36 sps:$4 sm:$0xff]  }
 0x8ec   : > { %4077 = vperm.xlu0 %12652, %v3923_v27   ;;  %5039 = vmatmul.mubr.bf16.gmra.mxu1 %v12822_v25  ;;  %v3592_v50 = vpop.permute.xlu1 %3591  ;;  %v6676_v27 = vld [vmem:[%s18340_s13 + $0x18] sm:$0xff] }
 0x8ed   : > { %11881 = vmatpush3.bf16.msra.mxu0 %v3592_v50  ;;  %4901 = vmatprep.mubr.bf16.mxu0 %v12825_v36  ;;  %v6677_v36 = vld [vmem:[%s18340_s13 + $0x20] sm:$0xff]  ;;  %v12853_v12 = vld [vmem:[%s18640_s10 + $0x318] ss:$36 sps:$4 sm:$0xff]   ;;  %v6679_v50 = vld [vmem:[%s18340_s13 + $0x30] sm:$0xff] }
 0x8ee   : > { %v3622_v34 = vpop.permute.xlu0 %3621  ;;  %4082 = vperm.xlu1 %12653, %v3924_v40   ;;  %5046 = vmatprep.mubr.bf16.mxu1 %v12826_v5  ;;  %v6678_v5 = vld [vmem:[%s18340_s13 + $0x28] sm:$0xff]  ;;  %v12856_v40 = vld [vmem:[%s18640_s10 + $0x290] ss:$36 sps:$4 sm:$0xff]  }
 0x8ef   : > { %11882 = vmatprep.subr.bf16.mxu0 %v3622_v34  ;;  %v12864_v34 = vld [vmem:[%s18640_s10 + $0x2dc] ss:$36 sps:$4 sm:$0xff]  }
 0x8f0   : > { %6819 = vperm.xlu0 %12652, %v6689_v37   ;;  %v3590_v29 = vpop.permute.xlu1 %3589  ;;  %v12861_v37 = vld [vmem:[%s18640_s10 + $0x364] ss:$36 sps:$4 sm:$0xff]  }
 0x8f1   : > { %11883 = vmatpush3.bf16.msra.mxu0 %v3590_v29  ;;  %v12859_v29 = vld [vmem:[%s18640_s10 + $0x360] ss:$36 sps:$4 sm:$0xff]  }
 0x8f2   : > { %v3692_v11 = vpop.permute.xlu0 %3691  ;;  %6824 = vperm.xlu1 %12653, %v6690_v44   ;;  %v6680_v44 = vld [vmem:[%s18340_s13 + $0x38] sm:$0xff] }
 0x8f3   : > { %4902 = vmatmul.mubr.bf16.gmra.mxu0 %v12823_v17  ;;  %11980 = vmatprep.subr.bf16.mxu1 %v3692_v11  ;;  %v6681_v17 = vld [vmem:[%s18340_s13 + $0x40] sm:$0xff]  ;;  %v12867_v11 = vld [vmem:[%s18640_s10 + $0x3ac] ss:$36 sps:$4 sm:$0xff]  }
 0x8f4   : > { %6829 = vperm.xlu0 %12652, %v6691_v52   ;;  %5047 = vmatmul.mubr.bf16.gmra.mxu1 %v12828_v55  ;;  %v3668_v45 = vpop.permute.xlu1 %3667  ;;  %v6682_v55 = vld [vmem:[%s18340_s13 + $0x48] sm:$0xff]  ;;  %v12862_v52 = vld [vmem:[%s18640_s10 + $0x2d8] ss:$36 sps:$4 sm:$0xff]  }
 0x8f5   : > { %11981 = vmatpush3.bf16.msra.mxu1 %v3668_v45  ;;  %4909 = vmatprep.mubr.bf16.mxu0 %v12831_v62  ;;  %v6683_v62 = vld [vmem:[%s18340_s13 + $0x50] sm:$0xff]  ;;  %v6685_v45 = vld [vmem:[%s18340_s13 + $0x60] sm:$0xff] }
 0x8f6   : > { %v3690_v7 = vpop.permute.xlu0 %3689  ;;  %6834 = vperm.xlu1 %12653, %v6692_v61   ;;  %5054 = vmatprep.mubr.bf16.mxu1 %v12832_v47  ;;  %v12870_v47 = vld [vmem:[%s18640_s10 + $0x324] ss:$36 sps:$4 sm:$0xff]   ;;  %v6684_v61 = vld [vmem:[%s18340_s13 + $0x58] sm:$0xff] }
 0x8f7   : > { %11982 = vmatprep.subr.bf16.mxu1 %v3690_v7  ;;  %v6686_v7 = vld [vmem:[%s18340_s13 + $0x68] sm:$0xff] }
 0x8f8   : > { %6839 = vperm.xlu0 %12652, %v6693_v16   ;;  %v3666_v33 = vpop.permute.xlu1 %3665  ;;  %v12865_v16 = vld [vmem:[%s18640_s10 + $0x3a8] ss:$36 sps:$4 sm:$0xff]  }
 0x8f9   : > { %11983 = vmatpush3.bf16.msra.mxu1 %v3666_v33  ;;  %v12873_v33 = vld [vmem:[%s18640_s10 + $0x3f4] ss:$36 sps:$4 sm:$0xff]  }
 0x8fa   : > { %v3688_v42 = vpop.permute.xlu0 %3687  ;;  %6844 = vperm.xlu1 %12653, %v6694_v51   ;;  %v12868_v51 = vld [vmem:[%s18640_s10 + $0x320] ss:$36 sps:$4 sm:$0xff]  }
 0x8fb   : > { %4910 = vmatmul.mubr.bf16.gmra.mxu0 %v12829_v53  ;;  %11984 = vmatprep.subr.bf16.mxu1 %v3688_v42  ;;  %v6687_v53 = vld [vmem:[%s18340_s13 + $0x70] sm:$0xff] }
 0x8fc   : > { %6849 = vperm.xlu0 %12652, %v6695_v39   ;;  %5055 = vmatmul.mubr.bf16.gmra.mxu1 %v12834_v49  ;;  %v3664_v43 = vpop.permute.xlu1 %3663  ;;  %v12876_v49 = vld [vmem:[%s18640_s10 + $0x36c] ss:$36 sps:$4 sm:$0xff]   ;;  %v6688_v39 = vld [vmem:[%s18340_s13 + $0x78] sm:$0xff] }
 0x8fd   : > { %11985 = vmatpush3.bf16.msra.mxu1 %v3664_v43  ;;  %4917 = vmatprep.mubr.bf16.mxu0 %v12837_v0  ;;  %v6705_v0 = vld [vmem:[%s18340_s13 + $0x100] sm:$0xff]  ;;  %v12871_v42 = vld [vmem:[%s18640_s10 + $0x3f0] ss:$36 sps:$4 sm:$0xff]  }
 0x8fe   : > { %v3686_v59 = vpop.permute.xlu0 %3685  ;;  %6854 = vperm.xlu1 %12653, %v6696_v19   ;;  %5062 = vmatprep.mubr.bf16.mxu1 %v12838_v8  ;;  %v6706_v8 = vld [vmem:[%s18340_s13 + $0x108] sm:$0xff]  ;;  %v6707_v43 = vld [vmem:[%s18340_s13 + $0x110] sm:$0xff] }
 0x8ff   : > { %11986 = vmatprep.subr.bf16.mxu1 %v3686_v59  ;;  %v12874_v19 = vld [vmem:[%s18640_s10 + $0x368] ss:$36 sps:$4 sm:$0xff]   ;;  %v12882_v59 = vld [vmem:[%s18640_s10 + $0x3b4] ss:$36 sps:$4 sm:$0xff]  }
 0x900   : > { %6859 = vperm.xlu0 %12652, %v6697_v48   ;;  %v3662_v28 = vpop.permute.xlu1 %3661  ;;  %v12879_v48 = vld [vmem:[%s18640_s10 + $0x43c] ss:$36 sps:$4 sm:$0xff]  }
 0x901   : > { %11987 = vmatpush3.bf16.msra.mxu1 %v3662_v28  ;;  %v12877_v28 = vld [vmem:[%s18640_s10 + $0x438] ss:$36 sps:$4 sm:$0xff]  }
 0x902   : > { %v3684_v24 = vpop.permute.xlu0 %3683  ;;  %6864 = vperm.xlu1 %12653, %v6698_v13   ;;  %v6709_v13 = vld [vmem:[%s18340_s13 + $0x120] sm:$0xff] }
 0x903   : > { %4918 = vmatmul.mubr.bf16.gmra.mxu0 %v12835_v54  ;;  %11988 = vmatprep.subr.bf16.mxu1 %v3684_v24  ;;  %v6708_v54 = vld [vmem:[%s18340_s13 + $0x118] sm:$0xff] }
 0x904   : > { %6869 = vperm.xlu0 %12652, %v6699_v18   ;;  %5063 = vmatmul.mubr.bf16.gmra.mxu1 %v12840_v1  ;;  %v3660_v60 = vpop.permute.xlu1 %3659  ;;  %v6710_v1 = vld [vmem:[%s18340_s13 + $0x128] sm:$0xff]  ;;  %v12880_v18 = vld [vmem:[%s18640_s10 + $0x3b0] ss:$36 sps:$4 sm:$0xff]  }
 0x905   : > { %11989 = vmatpush3.bf16.msra.mxu1 %v3660_v60  ;;  %4925 = vmatprep.mubr.bf16.mxu0 %v12843_v14  ;;  %v6711_v14 = vld [vmem:[%s18340_s13 + $0x130] sm:$0xff]  ;;  %v6713_v60 = vld [vmem:[%s18340_s13 + $0x140] sm:$0xff] }
 0x906   : > { %v3682_v31 = vpop.permute.xlu0 %3681  ;;  %6874 = vperm.xlu1 %12653, %v6700_v6   ;;  %5070 = vmatprep.mubr.bf16.mxu1 %v12844_v32  ;;  %v12885_v24 = vld [vmem:[%s18640_s10 + $0x14] ss:$36 sps:$4 sm:$0xff]   ;;  %v12888_v32 = vld [vmem:[%s18640_s10 + $0x3fc] ss:$36 sps:$4 sm:$0xff]  }
 0x907   : > { %11990 = vmatprep.subr.bf16.mxu1 %v3682_v31  ;;  %v6712_v6 = vld [vmem:[%s18340_s13 + $0x138] sm:$0xff]  ;;  %v6714_v31 = vld [vmem:[%s18340_s13 + $0x148] sm:$0xff] }
 0x908   : > { %6879 = vperm.xlu0 %12652, %v6701_v38   ;;  %v3658_v9 = vpop.permute.xlu1 %3657  ;;  %v12883_v38 = vld [vmem:[%s18640_s10 + $0x10] ss:$36 sps:$4 sm:$0xff]  }
 0x909   : > { %11991 = vmatpush3.bf16.msra.mxu1 %v3658_v9  ;;  %v12891_v9 = vld [vmem:[%s18640_s10 + $0x5c] ss:$36 sps:$4 sm:$0xff]  }
 0x90a   : > { %v3680_v30 = vpop.permute.xlu0 %3679  ;;  %6884 = vperm.xlu1 %12653, %v6702_v57   ;;  %v6715_v57 = vld [vmem:[%s18340_s13 + $0x150] sm:$0xff] }
 0x90b   : > { %4926 = vmatmul.mubr.bf16.gmra.mxu0 %v12841_v23  ;;  %11992 = vmatprep.subr.bf16.mxu1 %v3680_v30  ;;  %v12886_v23 = vld [vmem:[%s18640_s10 + $0x3f8] ss:$36 sps:$4 sm:$0xff]   ;;  %v6717_v30 = vld [vmem:[%s18340_s13 + $0x160] sm:$0xff] }
 0x90c   : > { %6889 = vperm.xlu0 %12652, %v6703_v20   ;;  %5071 = vmatmul.mubr.bf16.gmra.mxu1 %v12846_v46  ;;  %v3656_v41 = vpop.permute.xlu1 %3655  ;;  %v6716_v46 = vld [vmem:[%s18340_s13 + $0x158] sm:$0xff]  ;;  %v12894_v20 = vld [vmem:[%s18640_s10 + $0x444] ss:$36 sps:$4 sm:$0xff]  }
 0x90d   : > { %11993 = vmatpush3.bf16.msra.mxu1 %v3656_v41  ;;  %4933 = vmatprep.mubr.bf16.mxu0 %v12849_v56 }
 0x90e   : > { %v3678_v2 = vpop.permute.xlu0 %3677  ;;  %6894 = vperm.xlu1 %12653, %v6704_v4   ;;  %5078 = vmatprep.mubr.bf16.mxu1 %v12852_v35  ;;  %v12889_v35 = vld [vmem:[%s18640_s10 + $0x58] ss:$36 sps:$4 sm:$0xff]   ;;  %v6718_v4 = vld [vmem:[%s18340_s13 + $0x168] sm:$0xff] }
 0x90f   : > { %11994 = vmatprep.subr.bf16.mxu1 %v3678_v2  ;;  %v6719_v2 = vld [vmem:[%s18340_s13 + $0x170] sm:$0xff] }
 0x910   : > { %6739 = vperm.xlu0 %12652, %v6673_v21   ;;  %v3654_v10 = vpop.permute.xlu1 %3653  ;;  %v12892_v21 = vld [vmem:[%s18640_s10 + $0x440] ss:$36 sps:$4 sm:$0xff]  }
 0x911   : > { %11995 = vmatpush3.bf16.msra.mxu1 %v3654_v10  ;;  %v6720_v10 = vld [vmem:[%s18340_s13 + $0x178] sm:$0xff] }
 0x912   : > { %v15222_v25 = vpop.permute.xlu0 %3723  ;;  %6744 = vperm.xlu1 %12653, %v6674_v26   ;;  %v12897_v26 = vld [vmem:[%s18640_s10 + $0xa4] ss:$36 sps:$4 sm:$0xff]  }
 0x913   : > { %4934 = vmatmul.mubr.bf16.gmra.mxu0 %v12847_v63  ;;  %12280 = vmatprep.subr.bf16.mxu0 %v15222_v25 }
 0x914   : > { %6749 = vperm.xlu0 %12652, %v6675_v22   ;;  %5079 = vmatmul.mubr.bf16.gmra.mxu1 %v12850_v3  ;;  %v3722_v56 = vpop.permute.xlu1 %3721  ;;  %v12900_v3 = vld [vmem:[%s18640_s10 + $0x1c] ss:$36 sps:$4 sm:$0xff]  }
 0x915   : > { %4941 = vmatprep.mubr.bf16.mxu0 %v12855_v15  ;;  %5086 = vmatprep.mubr.bf16.mxu1 %v12858_v58  ;;  %v6721_v22 = vld [vmem:[%s18340_s13 + $0x180] sm:$0xff] }
 0x916   : > { %6754 = vperm.xlu1 %12653, %v6676_v27   ;;  %v3720_v41 = vpop.permute.xlu0 %3719  ;;  %v12895_v58 = vld [vmem:[%s18640_s10 + $0xa0] ss:$36 sps:$4 sm:$0xff]  }
 0x918   : > { %6759 = vperm.xlu0 %12652, %v6677_v36   ;;  %v3718_v63 = vpop.permute.xlu1 %3717  ;;  %v12898_v36 = vld [vmem:[%s18640_s10 + $0x18] ss:$36 sps:$4 sm:$0xff]  }
 0x91a   : > { %6764 = vperm.xlu1 %12653, %v6678_v5   ;;  %v3716_v15 = vpop.permute.xlu0 %3715  ;;  %v12903_v5 = vld [vmem:[%s18640_s10 + $0xec] ss:$36 sps:$4 sm:$0xff]  }
 0x91b   : > { %4942 = vmatmul.mubr.bf16.gmra.mxu0 %v12853_v12  ;;  %v6723_v12 = vld [vmem:[%s18340_s13 + $0x190] sm:$0xff] }
 0x91c   : > { %6769 = vperm.xlu0 %12652, %v6679_v50   ;;  %5087 = vmatmul.mubr.bf16.gmra.mxu1 %v12856_v40  ;;  %v3714_v27 = vpop.permute.xlu1 %3713  ;;  %v6724_v40 = vld [vmem:[%s18340_s13 + $0x198] sm:$0xff]  ;;  %v12906_v50 = vld [vmem:[%s18640_s10 + $0x64] ss:$36 sps:$4 sm:$0xff]  }
 0x91d   : > { %4949 = vmatprep.mubr.bf16.mxu0 %v12861_v37  ;;  %5094 = vmatprep.mubr.bf16.mxu1 %v12864_v34  ;;  %v6725_v34 = vld [vmem:[%s18340_s13 + $0x1a0] sm:$0xff] }
 0x91e   : > { %6774 = vperm.xlu1 %12653, %v6680_v44   ;;  %v3712_v37 = vpop.permute.xlu0 %3711 }
 0x920   : > { %6779 = vperm.xlu0 %12652, %v6681_v17   ;;  %v3710_v44 = vpop.permute.xlu1 %3709  ;;  %v12901_v17 = vld [vmem:[%s18640_s10 + $0xe8] ss:$36 sps:$4 sm:$0xff]  }
 0x922   : > { %6784 = vperm.xlu1 %12653, %v6682_v55  }
 0x923   : > { %4950 = vmatmul.mubr.bf16.gmra.mxu0 %v12859_v29  ;;  %v6726_v29 = vld [vmem:[%s18340_s13 + $0x1a8] sm:$0xff] }
 0x924   : > { %6789 = vperm.xlu0 %12652, %v6683_v62   ;;  %5095 = vmatmul.mubr.bf16.gmra.mxu1 %v12862_v52  ;;  %v12904_v52 = vld [vmem:[%s18640_s10 + $0x60] ss:$36 sps:$4 sm:$0xff]   ;;  %v6727_v62 = vld [vmem:[%s18340_s13 + $0x1b0] sm:$0xff] }
 0x925   : > { %4957 = vmatprep.mubr.bf16.mxu0 %v12867_v11  ;;  %5102 = vmatprep.mubr.bf16.mxu1 %v12870_v47  ;;  %v12909_v47 = vld [vmem:[%s18640_s10 + $0x134] ss:$36 sps:$4 sm:$0xff]  }
 0x926   : > { %6794 = vperm.xlu1 %12653, %v6684_v61   ;;  %v6728_v61 = vld [vmem:[%s18340_s13 + $0x1b8] sm:$0xff] }
 0x928   : > { %6799 = vperm.xlu0 %12652, %v6685_v45   ;;  %v12912_v45 = vld [vmem:[%s18640_s10 + $0xac] ss:$36 sps:$4 sm:$0xff]  }
 0x92a   : > { %6804 = vperm.xlu1 %12653, %v6686_v7  }
 0x92b   : > { %4958 = vmatmul.mubr.bf16.gmra.mxu0 %v12865_v16  ;;  %v15430_v55 = vpop.permute.xlu0 %3927  ;;  %v6729_v16 = vld [vmem:[%s18340_s13 + $0x1c0] sm:$0xff] }
 0x92c   : > { %6809 = vperm.xlu0 %12652, %v6687_v53   ;;  %5103 = vmatmul.mubr.bf16.gmra.mxu1 %v12868_v51  ;;  %v12907_v51 = vld [vmem:[%s18640_s10 + $0x130] ss:$36 sps:$4 sm:$0xff]   ;;  %v6730_v53 = vld [vmem:[%s18340_s13 + $0x1c8] sm:$0xff] }
 0x92d   : > { %4965 = vmatprep.mubr.bf16.mxu0 %v12873_v33  ;;  %5110 = vmatprep.mubr.bf16.mxu1 %v12876_v49  ;;  %v15438_v11 = vpop.permute.xlu1 %3932  ;;  %v12915_v49 = vld [vmem:[%s18640_s10 + $0x17c] ss:$36 sps:$4 sm:$0xff]  }
 0x92e   : > { %6814 = vperm.xlu1 %12653, %v6688_v39   ;;  %v12910_v39 = vld [vmem:[%s18640_s10 + $0xa8] ss:$36 sps:$4 sm:$0xff]  }
 0x92f   : > { %v15452_v7 = vpop.permute.xlu0 %3937 }
 0x930   : > { %6899 = vperm.xlu0 %12652, %v6705_v0   ;;  %v6731_v0 = vld [vmem:[%s18340_s13 + $0x1d0] sm:$0xff] }
 0x931   : > { %v15460_v33 = vpop.permute.xlu1 %3942 }
 0x932   : > { %6904 = vperm.xlu1 %12653, %v6706_v8   ;;  %v6732_v8 = vld [vmem:[%s18340_s13 + $0x1d8] sm:$0xff] }
 0x933   : > { %4966 = vmatmul.mubr.bf16.gmra.mxu0 %v12871_v42  ;;  %v12918_v42 = vld [vmem:[%s18640_s10 + $0xf4] ss:$36 sps:$4 sm:$0xff]  }
 0x934   : > { %6909 = vperm.xlu0 %12652, %v6707_v43   ;;  %5111 = vmatmul.mubr.bf16.gmra.mxu1 %v12874_v19  ;;  %v15477_v19 = vpop.permute.xlu0 %3947  ;;  %v6733_v43 = vld [vmem:[%s18340_s13 + $0x1e0] sm:$0xff] }
 0x935   : > { %4973 = vmatprep.mubr.bf16.mxu0 %v12879_v48  ;;  %5118 = vmatprep.mubr.bf16.mxu1 %v12882_v59  ;;  %v15482_v48 = vpop.permute.xlu1 %3952  ;;  %v12913_v59 = vld [vmem:[%s18640_s10 + $0x178] ss:$36 sps:$4 sm:$0xff]  }
 0x936   : > { %6914 = vperm.xlu1 %12653, %v6708_v54   ;;  %v6734_v54 = vld [vmem:[%s18340_s13 + $0x1e8] sm:$0xff] }
 0x938   : > { %6919 = vperm.xlu0 %12652, %v6709_v13   ;;  %v12921_v13 = vld [vmem:[%s18640_s10 + $0x1c4] ss:$36 sps:$4 sm:$0xff]  }
 0x93a   : > { %6924 = vperm.xlu1 %12653, %v6710_v1   ;;  %v6735_v1 = vld [vmem:[%s18340_s13 + $0x1f0] sm:$0xff] }
 0x93b   : > { %4974 = vmatmul.mubr.bf16.gmra.mxu0 %v12877_v28  ;;  %v12916_v28 = vld [vmem:[%s18640_s10 + $0xf0] ss:$36 sps:$4 sm:$0xff]  }
 0x93c   : > { %6929 = vperm.xlu0 %12652, %v6711_v14   ;;  %5119 = vmatmul.mubr.bf16.gmra.mxu1 %v12880_v18  ;;  %v15499_v18 = vpop.permute.xlu0 %3957  ;;  %v12924_v14 = vld [vmem:[%s18640_s10 + $0x13c] ss:$36 sps:$4 sm:$0xff]  }
 0x93d   : > { %5175 = vmatprep.mubr.bf16.mxu0 %v12885_v24  ;;  %5126 = vmatprep.mubr.bf16.mxu1 %v12888_v32  ;;  %v6736_v24 = vld [vmem:[%s18340_s13 + $0x1f8] sm:$0xff]  ;;  %v15507_v32 = vpop.permute.xlu1 %3962 }
 0x93e   : > { %6934 = vperm.xlu1 %12653, %v6712_v6   ;;  %v8362_v6 = vld [vmem:[%s18341_s14 + $0x40] sm:$0xff] }
 0x940   : > { %6939 = vperm.xlu0 %12652, %v6713_v60   ;;  %v12919_v60 = vld [vmem:[%s18640_s10 + $0x1c0] ss:$36 sps:$4 sm:$0xff]  }
 0x942   : > { %6944 = vperm.xlu1 %12653, %v6714_v31   ;;  %v15518_v31 = vpop.permute.xlu0 %3967 }
 0x943   : > { %5176 = vmatmul.mubr.bf16.vlgmr.msra.gmra.mxu0 %v12883_v38  ;;  %v8363_v38 = vld [vmem:[%s18341_s14 + $0x48] sm:$0xff] }
 0x944   : > { %12281 = vmatpush3.bf16.msra.mxu0 %v15222_v25  ;;  %6949 = vperm.xlu0 %12652, %v6715_v57   ;;  %v6722_v25 = vld [vmem:[%s18340_s13 + $0x188] sm:$0xff]  ;;  %v12922_v57 = vld [vmem:[%s18640_s10 + $0x138] ss:$36 sps:$4 sm:$0xff]  }
 0x945   : > { %5127 = vmatmul.mubr.bf16.gmra.mxu1 %v12886_v23  ;;  %12282 = vmatprep.subr.bf16.mxu0 %v3722_v56  ;;  %v12927_v23 = vld [vmem:[%s18640_s10 + $0x20c] ss:$36 sps:$4 sm:$0xff]  }
 0x946   : > { %6954 = vperm.xlu1 %12653, %v6716_v46   ;;  %5183 = vmatprep.mubr.bf16.mxu0 %v12891_v9  ;;  %v8354_v9 = vld [vmem:[%s18341_s14] sm:$0xff]  ;;  %v15529_v46 = vpop.permute.xlu1 %3972 }
 0x947   : > { %5134 = vmatprep.mubr.bf16.mxu1 %v12894_v20  ;;  %v12930_v20 = vld [vmem:[%s18640_s10 + $0x184] ss:$36 sps:$4 sm:$0xff]  }
 0x948   : > { %12283 = vmatpush3.bf16.msra.mxu0 %v3722_v56  ;;  %6959 = vperm.xlu0 %12652, %v6717_v30   ;;  %v8355_v56 = vld [vmem:[%s18341_s14 + $0x8] sm:$0xff]  ;;  %v8364_v30 = vld [vmem:[%s18341_s14 + $0x50] sm:$0xff] }
 0x949   : > { %12284 = vmatprep.subr.bf16.mxu0 %v3720_v41 }
 0x94a   : > { %6964 = vperm.xlu1 %12653, %v6718_v4   ;;  %v12925_v4 = vld [vmem:[%s18640_s10 + $0x208] ss:$36 sps:$4 sm:$0xff]  }
 0x94b   : > { %5184 = vmatmul.mubr.bf16.gmra.mxu0 %v12889_v35  ;;  %v15540_v35 = vpop.permute.xlu0 %3977 }
 0x94c   : > { %12285 = vmatpush3.bf16.msra.mxu0 %v3720_v41  ;;  %6969 = vperm.xlu0 %12652, %v6719_v2   ;;  %v8365_v41 = vld [vmem:[%s18341_s14 + $0x58] sm:$0xff] }
 0x94d   : > { %5135 = vmatmul.mubr.bf16.gmra.mxu1 %v12892_v21  ;;  %12286 = vmatprep.subr.bf16.mxu0 %v3718_v63  ;;  %v15548_v21 = vpop.permute.xlu1 %3982  ;;  %v12933_v2 = vld [vmem:[%s18640_s10 + $0x254] ss:$36 sps:$4 sm:$0xff]  }
 0x94e   : > { %6974 = vperm.xlu1 %12653, %v6720_v10   ;;  %5191 = vmatprep.mubr.bf16.mxu0 %v12897_v26  ;;  %v8356_v26 = vld [vmem:[%s18341_s14 + $0x10] sm:$0xff] }
 0x94f   : > { %5336 = vmatprep.mubr.bf16.mxu1 %v12900_v3  ;;  %v12936_v10 = vld [vmem:[%s18640_s10 + $0x1cc] ss:$36 sps:$4 sm:$0xff]   ;;  %v8357_v3 = vld [vmem:[%s18341_s14 + $0x18] sm:$0xff] }
 0x950   : > { %12287 = vmatpush3.bf16.msra.mxu0 %v3718_v63  ;;  %6979 = vperm.xlu0 %12652, %v6721_v22   ;;  %v12928_v63 = vld [vmem:[%s18640_s10 + $0x180] ss:$36 sps:$4 sm:$0xff]   ;;  %v15565_v22 = vpop.permute.xlu0 %3987 }
 0x951   : > { %12288 = vmatprep.subr.bf16.mxu0 %v3716_v15 }
 0x952   : > { %6984 = vperm.xlu1 %12653, %v6722_v25   ;;  %v12931_v25 = vld [vmem:[%s18640_s10 + $0x250] ss:$36 sps:$4 sm:$0xff]  }
 0x953   : > { %5192 = vmatmul.mubr.bf16.gmra.mxu0 %v12895_v58  ;;  %v15570_v58 = vpop.permute.xlu1 %3992 }
 0x954   : > { %12289 = vmatpush3.bf16.msra.mxu0 %v3716_v15  ;;  %6989 = vperm.xlu0 %12652, %v6723_v12   ;;  %v8366_v15 = vld [vmem:[%s18341_s14 + $0x60] sm:$0xff]  ;;  %v12934_v12 = vld [vmem:[%s18640_s10 + $0x1c8] ss:$36 sps:$4 sm:$0xff]  }
 0x955   : > { %5337 = vmatmul.mubr.bf16.vlgmr.msra.gmra.mxu1 %v12898_v36  ;;  %12290 = vmatprep.subr.bf16.mxu0 %v3714_v27  ;;  %v12939_v36 = vld [vmem:[%s18640_s10 + $0x29c] ss:$36 sps:$4 sm:$0xff]  }
 0x956   : > { %6994 = vperm.xlu1 %12653, %v6724_v40   ;;  %5199 = vmatprep.mubr.bf16.mxu0 %v12903_v5  ;;  %v8358_v5 = vld [vmem:[%s18341_s14 + $0x20] sm:$0xff]  ;;  %v15587_v40 = vpop.permute.xlu0 %3997 }
 0x957   : > { %5344 = vmatprep.mubr.bf16.mxu1 %v12906_v50  ;;  %v12942_v50 = vld [vmem:[%s18640_s10 + $0x214] ss:$36 sps:$4 sm:$0xff]  }
 0x958   : > { %12291 = vmatpush3.bf16.msra.mxu0 %v3714_v27  ;;  %6999 = vperm.xlu0 %12652, %v6725_v34   ;;  %v8367_v27 = vld [vmem:[%s18341_s14 + $0x68] sm:$0xff] }
 0x959   : > { %12292 = vmatprep.subr.bf16.mxu0 %v3712_v37  ;;  %v8359_v34 = vld [vmem:[%s18341_s14 + $0x28] sm:$0xff] }
 0x95a   : > { %7004 = vperm.xlu1 %12653, %v6726_v29   ;;  %v8368_v29 = vld [vmem:[%s18341_s14 + $0x70] sm:$0xff] }
 0x95b   : > { %5200 = vmatmul.mubr.bf16.gmra.mxu0 %v12901_v17 }
 0x95c   : > { %12293 = vmatpush3.bf16.msra.mxu0 %v3712_v37  ;;  %7009 = vperm.xlu0 %12652, %v6727_v62  }
 0x95d   : > { %5345 = vmatmul.mubr.bf16.gmra.mxu1 %v12904_v52  ;;  %12294 = vmatprep.subr.bf16.mxu0 %v3710_v44 }
 0x95e   : > { %7014 = vperm.xlu1 %12653, %v6728_v61   ;;  %5207 = vmatprep.mubr.bf16.mxu0 %v12909_v47  ;;  %v12937_v47 = vld [vmem:[%s18640_s10 + $0x298] ss:$36 sps:$4 sm:$0xff]  }
 0x95f   : > { %5352 = vmatprep.mubr.bf16.mxu1 %v12912_v45  ;;  %v8369_v61 = vld [vmem:[%s18341_s14 + $0x78] sm:$0xff]  ;;  %v15606_v45 = vpop.permute.xlu0 %4007 }
 0x960   : > { %12295 = vmatpush3.bf16.msra.mxu0 %v3710_v44  ;;  %7019 = vperm.xlu0 %12652, %v6729_v16   ;;  %v15595_v44 = vpop.permute.xlu1 %4002  ;;  %v12945_v16 = vld [vmem:[%s18640_s10 + $0x2e4] ss:$36 sps:$4 sm:$0xff]  }
 0x962   : > { %7024 = vperm.xlu1 %12653, %v6730_v53   ;;  %v12940_v53 = vld [vmem:[%s18640_s10 + $0x210] ss:$36 sps:$4 sm:$0xff]  }
 0x963   : > { %5208 = vmatmul.mubr.bf16.gmra.mxu0 %v12907_v51 }
 0x964   : > { %7029 = vperm.xlu0 %12652, %v6731_v0   ;;  %5215 = vmatprep.mubr.bf16.mxu0 %v12915_v49  ;;  %v8360_v49 = vld [vmem:[%s18341_s14 + $0x30] sm:$0xff] }
 0x965   : > { %5353 = vmatmul.mubr.bf16.gmra.mxu1 %v12910_v39  ;;  %v15617_v39 = vpop.permute.xlu1 %4012 }
 0x966   : > { %7034 = vperm.xlu1 %12653, %v6732_v8   ;;  %5360 = vmatprep.mubr.bf16.mxu1 %v12918_v42  ;;  %v12948_v42 = vld [vmem:[%s18640_s10 + $0x25c] ss:$36 sps:$4 sm:$0xff]  }
 0x968   : > { %7039 = vperm.xlu0 %12652, %v6733_v43   ;;  %v8361_v43 = vld [vmem:[%s18341_s14 + $0x38] sm:$0xff] }
 0x96a   : > { %7044 = vperm.xlu1 %12653, %v6734_v54   ;;  %v8370_v54 = vld [vmem:[%s18341_s14 + $0x80] sm:$0xff] }
 0x96b   : > { %5216 = vmatmul.mubr.bf16.gmra.mxu0 %v12913_v59 }
 0x96c   : > { %7049 = vperm.xlu0 %12652, %v6735_v1   ;;  %5223 = vmatprep.mubr.bf16.mxu0 %v12921_v13  ;;  %v15628_v13 = vpop.permute.xlu0 %4017 }
 0x96d   : > { %5361 = vmatmul.mubr.bf16.gmra.mxu1 %v12916_v28 }
 0x96e   : > { %7054 = vperm.xlu1 %12653, %v6736_v24   ;;  %5368 = vmatprep.mubr.bf16.mxu1 %v12924_v14  ;;  %v12943_v14 = vld [vmem:[%s18640_s10 + $0x2e0] ss:$36 sps:$4 sm:$0xff]   ;;  %v8371_v24 = vld [vmem:[%s18341_s14 + $0x88] sm:$0xff] }
 0x970   : > { %8428 = vperm.xlu0 %12652, %v8362_v6   ;;  %v15638_v6 = vpop.permute.xlu1 %4022 }
 0x972   : > { %8433 = vperm.xlu1 %12653, %v8363_v38  }
 0x973   : > { %5224 = vmatmul.mubr.bf16.gmra.mxu0 %v12919_v60  ;;  %v12951_v60 = vld [vmem:[%s18640_s10 + $0x32c] ss:$36 sps:$4 sm:$0xff]  }
 0x974   : > { %8388 = vperm.xlu0 %12652, %v8354_v9   ;;  %5231 = vmatprep.mubr.bf16.mxu0 %v12927_v23  ;;  %v12946_v23 = vld [vmem:[%s18640_s10 + $0x258] ss:$36 sps:$4 sm:$0xff]  }
 0x975   : > { %5369 = vmatmul.mubr.bf16.gmra.mxu1 %v12922_v57  ;;  %v8378_v57 = vld [vmem:[%s18341_s14 + $0xc0] sm:$0xff] }
 0x976   : > { %8393 = vperm.xlu1 %12653, %v8355_v56   ;;  %5376 = vmatprep.mubr.bf16.mxu1 %v12930_v20  ;;  %v12954_v20 = vld [vmem:[%s18640_s10 + $0x2a4] ss:$36 sps:$4 sm:$0xff]  }
 0x978   : > { %8438 = vperm.xlu0 %12652, %v8364_v30   ;;  %v8379_v30 = vld [vmem:[%s18341_s14 + $0xc8] sm:$0xff] }
 0x97a   : > { %8443 = vperm.xlu1 %12653, %v8365_v41  }
 0x97b   : > { %5232 = vmatmul.mubr.bf16.gmra.mxu0 %v12925_v4  ;;  %v15657_v4 = vpop.permute.xlu0 %4027 }
 0x97c   : > { %8398 = vperm.xlu0 %12652, %v8356_v26   ;;  %5239 = vmatprep.mubr.bf16.mxu0 %v12933_v2  ;;  %v15662_v26 = vpop.permute.xlu1 %4032 }
 0x97d   : > { %5377 = vmatmul.mubr.bf16.gmra.mxu1 %v12928_v63  ;;  %v8372_v63 = vld [vmem:[%s18341_s14 + $0x90] sm:$0xff] }
 0x97e   : > { %8403 = vperm.xlu1 %12653, %v8357_v3   ;;  %5384 = vmatprep.mubr.bf16.mxu1 %v12936_v10 }
 0x980   : > { %8448 = vperm.xlu0 %12652, %v8366_v15  }
 0x982   : > { %8453 = vperm.xlu1 %12653, %v8367_v27  }
 0x983   : > { %v11660_v37 = vpop.f32.mrf.mxu0  ;;  %5240 = vmatmul.mubr.bf16.gmra.mxu0 %v12931_v25 }
 0x984   : > { %8408 = vperm.xlu0 %12652, %v8358_v5   ;;  %5247 = vmatprep.mubr.bf16.mxu0 %v12939_v36  ;;  %v12949_v36 = vld [vmem:[%s18640_s10 + $0x328] ss:$36 sps:$4 sm:$0xff]  }
 0x985   : > { %5385 = vmatmul.mubr.bf16.gmra.mxu1 %v12934_v12  ;;  %v11661_v17 = vpop.f32.mrf.mxu0  ;;  %v8373_v12 = vld [vmem:[%s18341_s14 + $0x98] sm:$0xff] }
 0x986   : > { %v11662_v52 = vadd.f32 %v11661_v17, %v11660_v37  ;;  %8413 = vperm.xlu1 %12653, %v8359_v34   ;;  %5392 = vmatprep.mubr.bf16.mxu1 %v12942_v50  ;;  %v12957_v50 = vld [vmem:[%s18640_s10 + $0x374] ss:$36 sps:$4 sm:$0xff]  }
 0x987   : > { %v11663_v62 = vpop.f32.mrf.mxu0  ;;  %v8380_v17 = vld [vmem:[%s18341_s14 + $0xd0] sm:$0xff] }
 0x988   : > { %8458 = vperm.xlu0 %12652, %v8368_v29   ;;  %v4856_v15 = vadd.f32 %v11662_v52, %v15430_v55  ;;  %v12952_v55 = vld [vmem:[%s18640_s10 + $0x2a0] ss:$36 sps:$4 sm:$0xff]   ;;  %v15684_v29 = vpop.permute.xlu0 %4037 }
 0x989   : > { %v11664_v51 = vpop.f32.mrf.mxu0 }
 0x98a   : > { %v11665_v0 = vadd.f32 %v11664_v51, %v11663_v62  ;;  %8463 = vperm.xlu1 %12653, %v8369_v61  }
 0x98b   : > { %v11666_v8 = vpop.f32.mrf.mxu0  ;;  %5248 = vmatmul.mubr.bf16.gmra.mxu0 %v12937_v47  ;;  %v12960_v47 = vld [vmem:[%s18640_s10 + $0x2ec] ss:$36 sps:$4 sm:$0xff]  }
 0x98c   : > { %8418 = vperm.xlu0 %12652, %v8360_v49   ;;  %5255 = vmatprep.mubr.bf16.mxu0 %v12945_v16  ;;  %v4859_v61 = vadd.f32 %v11665_v0, %v15438_v11  ;;  %v15695_v49 = vpop.permute.xlu1 %4042  ;;  %v8374_v11 = vld [vmem:[%s18341_s14 + $0xa0] sm:$0xff] }
 0x98d   : > { %5393 = vmatmul.mubr.bf16.gmra.mxu1 %v12940_v53  ;;  %v11667_v59 = vpop.f32.mrf.mxu0  ;;  %v8381_v53 = vld [vmem:[%s18341_s14 + $0xd8] sm:$0xff] }
 0x98e   : > { %v15630_v28 = vadd.f32 %v11667_v59, %v11666_v8  ;;  %8423 = vperm.xlu1 %12653, %v8361_v43   ;;  %5400 = vmatprep.mubr.bf16.mxu1 %v12948_v42 }
 0x98f   : > { %v11669_v1 = vpop.f32.mrf.mxu0 }
 0x990   : > { %8468 = vperm.xlu0 %12652, %v8370_v54   ;;  %v4864_v54 = vadd.f32 %v15630_v28, %v15452_v7  ;;  %v12958_v28 = vld [vmem:[%s18640_s10 + $0x2e8] ss:$36 sps:$4 sm:$0xff]  }
 0x991   : > { %v11670_v38 = vpop.f32.mrf.mxu0 }
 0x992   : > { %v15649_v9 = vadd.f32 %v11670_v38, %v11669_v1  ;;  %8473 = vperm.xlu1 %12653, %v8371_v24   ;;  %v12955_v24 = vld [vmem:[%s18640_s10 + $0x370] ss:$36 sps:$4 sm:$0xff]   ;;  %v15712_v38 = vpop.permute.xlu0 %4047 }
 0x993   : > { %v11672_v56 = vpop.f32.mrf.mxu0  ;;  %5256 = vmatmul.mubr.bf16.gmra.mxu0 %v12943_v14 }
 0x994   : > { %8508 = vperm.xlu0 %12652, %v8378_v57   ;;  %v11772_v41 = vpop.f32.mrf.mxu1  ;;  %5263 = vmatprep.mubr.bf16.mxu0 %v12951_v60  ;;  %v8375_v60 = vld [vmem:[%s18341_s14 + $0xa8] sm:$0xff]  ;;  %v12963_v57 = vld [vmem:[%s18640_s10 + $0x3bc] ss:$36 sps:$4 sm:$0xff]  }
 0x995   : > { %5401 = vmatmul.mubr.bf16.gmra.mxu1 %v12946_v23  ;;  %v11673_v2 = vpop.f32.mrf.mxu0 }
 0x996   : > { %v15664_v10 = vadd.f32 %v11673_v2, %v11672_v56  ;;  %v11773_v3 = vpop.f32.mrf.mxu1  ;;  %8513 = vperm.xlu1 %12653, %v8379_v30   ;;  %5408 = vmatprep.mubr.bf16.mxu1 %v12954_v20  ;;  %v8382_v56 = vld [vmem:[%s18341_s14 + $0xe0] sm:$0xff]  ;;  %v15725_v30 = vpop.permute.xlu1 %4052 }
 0x997   : > { %v11774_v25 = vadd.f32 %v11773_v3, %v11772_v41  ;;  %v11675_v27 = vpop.f32.mrf.mxu0  ;;  %v4867_v3 = vadd.f32 %v15649_v9, %v15460_v33 }
 0x998   : > { %8478 = vperm.xlu0 %12652, %v8372_v63   ;;  %v11775_v5 = vpop.f32.mrf.mxu1  ;;  %v12966_v63 = vld [vmem:[%s18640_s10 + $0x334] ss:$36 sps:$4 sm:$0xff]  }
 0x999   : > { %v15676_v37 = vadd.f32 %v11774_v25, %v4856_v15  ;;  %v11676_v34 = vpop.f32.mrf.mxu0 }
 0x99a   : > { %v15686_v52 = vadd.f32 %v11676_v34, %v11675_v27  ;;  %v11776_v62 = vpop.f32.mrf.mxu1  ;;  %8483 = vperm.xlu1 %12653, %v8373_v12   ;;  %v8383_v27 = vld [vmem:[%s18341_s14 + $0xe8] sm:$0xff]  ;;  %v15742_v34 = vpop.permute.xlu0 %4057 }
 0x99b   : > { %v11777_v16 = vadd.f32 %v11776_v62, %v11775_v5  ;;  %v11678_v51 = vpop.f32.mrf.mxu0  ;;  %5264 = vmatmul.mubr.bf16.gmra.mxu0 %v12949_v36 }
 0x99c   : > { %8518 = vperm.xlu0 %12652, %v8380_v17   ;;  %v11778_v42 = vpop.f32.mrf.mxu1  ;;  %5271 = vmatprep.mubr.bf16.mxu0 %v12957_v50  ;;  %v8376_v50 = vld [vmem:[%s18341_s14 + $0xb0] sm:$0xff] }
 0x99d   : > { %v15697_v8 = vadd.f32 %v11777_v16, %v4859_v61  ;;  %5409 = vmatmul.mubr.bf16.gmra.mxu1 %v12952_v55  ;;  %v11679_v43 = vpop.f32.mrf.mxu0  ;;  %v4872_v55 = vadd.f32 %v15664_v10, %v15477_v19  ;;  %v8377_v61 = vld [vmem:[%s18341_s14 + $0xb8] sm:$0xff]  ;;  %v15752_v16 = vpop.permute.xlu1 %4062  ;;  %v12964_v10 = vld [vmem:[%s18640_s10 + $0x330] ss:$36 sps:$4 sm:$0xff]  }
 0x99e   : > { %v15702_v0 = vadd.f32 %v11679_v43, %v11678_v51  ;;  %v11779_v59 = vpop.f32.mrf.mxu1  ;;  %8523 = vperm.xlu1 %12653, %v8381_v53   ;;  %5416 = vmatprep.mubr.bf16.mxu1 %v12960_v47  ;;  %v12961_v47 = vld [vmem:[%s18640_s10 + $0x3b8] ss:$36 sps:$4 sm:$0xff]   ;;  %v12969_v53 = vld [vmem:[%s18640_s10 + $0x404] ss:$36 sps:$4 sm:$0xff]   ;;  %v8384_v43 = vld [vmem:[%s18341_s14 + $0xf0] sm:$0xff] }
 0x99f   : > { %v11780_v1 = vadd.f32 %v11779_v59, %v11778_v42  ;;  %v11681_v14 = vpop.f32.mrf.mxu0 }
 0x9a0   : > { %8488 = vperm.xlu0 %12652, %v8374_v11   ;;  %v11781_v23 = vpop.f32.mrf.mxu1 }
 0x9a1   : > { %v15717_v20 = vadd.f32 %v11780_v1, %v4864_v54  ;;  %v11682_v7 = vpop.f32.mrf.mxu0  ;;  %v12972_v54 = vld [vmem:[%s18640_s10 + $0x37c] ss:$36 sps:$4 sm:$0xff]   ;;  %v4875_v1 = vadd.f32 %v15686_v52, %v15482_v48  ;;  %v4880_v52 = vadd.f32 %v15702_v0, %v15499_v18  ;;  %v12978_v0 = vld [vmem:[%s18640_s10 + $0x3c4] ss:$36 sps:$4 sm:$0xff]  }
 0x9a2   : > { %v15727_v41 = vadd.f32 %v11682_v7, %v11681_v14  ;;  %v11782_v2 = vpop.f32.mrf.mxu1  ;;  %8493 = vperm.xlu1 %12653, %v8375_v60   ;;  %v8385_v60 = vld [vmem:[%s18341_s14 + $0xf8] sm:$0xff] }
 0x9a3   : > { %v11783_v15 = vadd.f32 %v11782_v2, %v11781_v23  ;;  %v11684_v25 = vpop.f32.mrf.mxu0  ;;  %5272 = vmatmul.mubr.bf16.gmra.mxu0 %v12955_v24  ;;  %v15773_v23 = vpop.permute.xlu0 %4067 }
 0x9a4   : > { %8528 = vperm.xlu0 %12652, %v8382_v56   ;;  %v11784_v36 = vpop.f32.mrf.mxu1  ;;  %5279 = vmatprep.mubr.bf16.mxu0 %v12963_v57  ;;  %v15777_v56 = vpop.permute.xlu1 %4072 }
 0x9a5   : > { %v15737_v12 = vadd.f32 %v11783_v15, %v4867_v3  ;;  %5417 = vmatmul.mubr.bf16.gmra.mxu1 %v12958_v28  ;;  %v11685_v5 = vpop.f32.mrf.mxu0  ;;  %v12967_v15 = vld [vmem:[%s18640_s10 + $0x400] ss:$36 sps:$4 sm:$0xff]  }
 0x9a6   : > { %v11686_v33 = vadd.f32 %v11685_v5, %v11684_v25  ;;  %v11785_v9 = vpop.f32.mrf.mxu1  ;;  %8533 = vperm.xlu1 %12653, %v8383_v27   ;;  %5424 = vmatprep.mubr.bf16.mxu1 %v12966_v63  ;;  %v12975_v27 = vld [vmem:[%s18640_s10 + $0x44c] ss:$36 sps:$4 sm:$0xff]  }
 0x9a7   : > { %v11786_v17 = vadd.f32 %v11785_v9, %v11784_v36  ;;  %v11687_v62 = vpop.f32.mrf.mxu0 }
 0x9a8   : > { %8498 = vperm.xlu0 %12652, %v8376_v50   ;;  %v11787_v51 = vpop.f32.mrf.mxu1  ;;  %v12970_v50 = vld [vmem:[%s18640_s10 + $0x378] ss:$36 sps:$4 sm:$0xff]  }
 0x9a9   : > { %v15757_v42 = vadd.f32 %v11786_v17, %v4872_v55  ;;  %v11688_v19 = vpop.f32.mrf.mxu0  ;;  %v4883_v55 = vadd.f32 %v15727_v41, %v15507_v32  ;;  %v12973_v32 = vld [vmem:[%s18640_s10 + $0x448] ss:$36 sps:$4 sm:$0xff]  }
 0x9aa   : > { %v11689_v11 = vadd.f32 %v11688_v19, %v11687_v62  ;;  %v11788_v59 = vpop.f32.mrf.mxu1  ;;  %8503 = vperm.xlu1 %12653, %v8377_v61  }
 0x9ab   : > { %v11789_v14 = vadd.f32 %v11788_v59, %v11787_v51  ;;  %v11690_v24 = vpop.f32.mrf.mxu0  ;;  %5280 = vmatmul.mubr.bf16.gmra.mxu0 %v12961_v47 }
 0x9ac   : > { %8538 = vperm.xlu0 %12652, %v8384_v43   ;;  %v11790_v57 = vpop.f32.mrf.mxu1  ;;  %5287 = vmatprep.mubr.bf16.mxu0 %v12969_v53 }
 0x9ad   : > { %v15775_v7 = vadd.f32 %v11789_v14, %v4875_v1  ;;  %5425 = vmatmul.mubr.bf16.gmra.mxu1 %v12964_v10  ;;  %v11691_v28 = vpop.f32.mrf.mxu0  ;;  %v4888_v10 = vadd.f32 %v11686_v33, %v15518_v31  ;;  %v12982_v33 = vld [vmem:[%s18640_s10 + $0x40c] ss:$36 sps:$4 sm:$0xff]  }
 0x9ae   : > { %v11692_v2 = vadd.f32 %v11691_v28, %v11690_v24  ;;  %v11791_v48 = vpop.f32.mrf.mxu1  ;;  %8543 = vperm.xlu1 %12653, %v8385_v60   ;;  %5432 = vmatprep.mubr.bf16.mxu1 %v12972_v54  ;;  %v12979_v54 = vld [vmem:[%s18640_s10 + $0x20] ss:$36 sps:$4 sm:$0xff]  }
 0x9af   : > { %v11792_v63 = vadd.f32 %v11791_v48, %v11790_v57  ;;  %v11693_v3 = vpop.f32.mrf.mxu0  ;;  %v12976_v24 = vld [vmem:[%s18640_s10 + $0x3c0] ss:$36 sps:$4 sm:$0xff]   ;;  %v4891_v57 = vadd.f32 %v11689_v11, %v15529_v46  ;;  %v12983_v46 = vld [vmem:[%s18640_s10 + $0x68] ss:$36 sps:$4 sm:$0xff]  }
 0x9b0   : > { %v11793_v25 = vpop.f32.mrf.mxu1 }
 0x9b1   : > { %v15787_v36 = vadd.f32 %v11792_v63, %v4880_v52  ;;  %v11694_v5 = vpop.f32.mrf.mxu0 }
 0x9b2   : > { %v11695_v9 = vadd.f32 %v11694_v5, %v11693_v3  ;;  %v11794_v18 = vpop.f32.mrf.mxu1 }
 0x9b3   : > { %v11795_v17 = vadd.f32 %v11794_v18, %v11793_v25  ;;  %v11696_v62 = vpop.f32.mrf.mxu0  ;;  %5288 = vmatmul.mubr.bf16.gmra.mxu0 %v12967_v15  ;;  %v12984_v18 = vld [vmem:[%s18640_s10 + $0xb0] ss:$36 sps:$4 sm:$0xff]  }
 0x9b4   : > { %v11796_v47 = vpop.f32.mrf.mxu1  ;;  %5295 = vmatprep.mubr.bf16.mxu0 %v12975_v27  ;;  %v4896_v27 = vadd.f32 %v11692_v2, %v15540_v35  ;;  %v12987_v2 = vld [vmem:[%s18640_s10 + $0x454] ss:$36 sps:$4 sm:$0xff]  }
 0x9b5   : > { %v15797_v61 = vadd.f32 %v11795_v17, %v4883_v55  ;;  %5433 = vmatmul.mubr.bf16.gmra.mxu1 %v12970_v50  ;;  %v11697_v51 = vpop.f32.mrf.mxu0  ;;  %v12980_v17 = vld [vmem:[%s18640_s10 + $0x408] ss:$36 sps:$4 sm:$0xff]  }
 0x9b6   : > { %v11698_v53 = vadd.f32 %v11697_v51, %v11696_v62  ;;  %v11797_v19 = vpop.f32.mrf.mxu1  ;;  %5440 = vmatprep.mubr.bf16.mxu1 %v12978_v0 }
 0x9b7   : > { %v11798_v43 = vadd.f32 %v11797_v19, %v11796_v47  ;;  %v11699_v59 = vpop.f32.mrf.mxu0  ;;  %v4899_v47 = vadd.f32 %v11695_v9, %v15548_v21  ;;  %v12988_v21 = vld [vmem:[%s18640_s10 + $0xf8] ss:$36 sps:$4 sm:$0xff]  }
 0x9b8   : > { %v11799_v41 = vpop.f32.mrf.mxu1 }
 0x9b9   : > { %v15806_v1 = vadd.f32 %v11798_v43, %v4888_v10  ;;  %v11700_v14 = vpop.f32.mrf.mxu0 }
 0x9ba   : > { %v11701_v60 = vadd.f32 %v11700_v14, %v11699_v59  ;;  %v11800_v31 = vpop.f32.mrf.mxu1 }
 0x9bb   : > { %v11801_v28 = vadd.f32 %v11800_v31, %v11799_v41  ;;  %v11702_v48 = vpop.f32.mrf.mxu0  ;;  %5296 = vmatmul.mubr.bf16.gmra.mxu0 %v12973_v32  ;;  %v12989_v31 = vld [vmem:[%s18640_s10 + $0x140] ss:$36 sps:$4 sm:$0xff]  }
 0x9bc   : > { %v11802_v52 = vpop.f32.mrf.mxu1  ;;  %12296 = vmatprep.mubr.bf16.mxu0 %v12979_v54  ;;  %v4904_v54 = vadd.f32 %v11698_v53, %v15565_v22  ;;  %v4907_v53 = vadd.f32 %v11701_v60, %v15570_v58  ;;  %v12991_v60 = vld [vmem:[%s18640_s10 + $0x1d0] ss:$36 sps:$4 sm:$0xff]  }
 0x9bd   : > { %v15815_v63 = vadd.f32 %v11801_v28, %v4891_v57  ;;  %5441 = vmatmul.mubr.bf16.gmra.mxu1 %v12976_v24  ;;  %v11703_v3 = vpop.f32.mrf.mxu0  ;;  %v12985_v28 = vld [vmem:[%s18640_s10 + $0x450] ss:$36 sps:$4 sm:$0xff]  }
 0x9be   : > { %v11704_v15 = vadd.f32 %v11703_v3, %v11702_v48  ;;  %v11803_v25 = vpop.f32.mrf.mxu1  ;;  %5448 = vmatprep.mubr.bf16.mxu1 %v12982_v33 }
 0x9bf   : > { %v11804_v5 = vadd.f32 %v11803_v25, %v11802_v52  ;;  %v11705_v50 = vpop.f32.mrf.mxu0 }
 0x9c0   : > { %v11805_v11 = vpop.f32.mrf.mxu1 }
 0x9c1   : > { %v15824_v0 = vadd.f32 %v11804_v5, %v4896_v27  ;;  %v11706_v55 = vpop.f32.mrf.mxu0 }
 0x9c2   : > { %v11707_v62 = vadd.f32 %v11706_v55, %v11705_v50  ;;  %v11806_v35 = vpop.f32.mrf.mxu1 }
 0x9c3   : > { %v11807_v51 = vadd.f32 %v11806_v35, %v11805_v11  ;;  %v11708_v19 = vpop.f32.mrf.mxu0  ;;  %12297 = vmatmul.mubr.bf16.vlgmr.msra.gmra.mxu0 %v12983_v46  ;;  %v4912_v11 = vadd.f32 %v11704_v15, %v15587_v40 }
 0x9c4   : > { %v11808_v10 = vpop.f32.mrf.mxu1  ;;  %12300 = vmatprep.mubr.bf16.mxu0 %v12984_v18 }
 0x9c5   : > { %v15833_v43 = vadd.f32 %v11807_v51, %v4899_v47  ;;  %5449 = vmatmul.mubr.bf16.gmra.mxu1 %v12980_v17  ;;  %v11709_v59 = vpop.f32.mrf.mxu0  ;;  %v12990_v17 = vld [vmem:[%s18640_s10 + $0x188] ss:$36 sps:$4 sm:$0xff]  }
 0x9c6   : > { %v11710_v32 = vadd.f32 %v11709_v59, %v11708_v19  ;;  %v11809_v41 = vpop.f32.mrf.mxu1  ;;  %5456 = vmatprep.mubr.bf16.mxu1 %v12987_v2  ;;  %v4915_v19 = vadd.f32 %v11707_v62, %v15595_v44  ;;  %v12993_v44 = vld [vmem:[%s18640_s10 + $0x260] ss:$36 sps:$4 sm:$0xff]  }
 0x9c7   : > { %v11810_v14 = vadd.f32 %v11809_v41, %v11808_v10  ;;  %v11711_v24 = vpop.f32.mrf.mxu0 }
 0x9c8   : > { %v11811_v9 = vpop.f32.mrf.mxu1 }
 0x9c9   : > { %v15842_v33 = vadd.f32 %v11810_v14, %v4904_v54  ;;  %v11712_v57 = vpop.f32.mrf.mxu0 }
 0x9ca   : > { %v11713_v48 = vadd.f32 %v11712_v57, %v11711_v24  ;;  %v11812_v22 = vpop.f32.mrf.mxu1  ;;  %v4920_v24 = vadd.f32 %v11710_v32, %v15606_v45 }
 0x9cb   : > { %v11813_v52 = vadd.f32 %v11812_v22, %v11811_v9  ;;  %v11714_v3 = vpop.f32.mrf.mxu0  ;;  %12301 = vmatmul.mubr.bf16.gmra.mxu0 %v12988_v21 }
 0x9cc   : > { %v11814_v25 = vpop.f32.mrf.mxu1  ;;  %12304 = vmatprep.mubr.bf16.mxu0 %v12989_v31  ;;  %v12992_v31 = vld [vmem:[%s18640_s10 + $0x218] ss:$36 sps:$4 sm:$0xff]  }
 0x9cd   : > { %v15848_v27 = vadd.f32 %v11813_v52, %v4907_v53  ;;  %5457 = vmatmul.mubr.bf16.gmra.mxu1 %v12985_v28  ;;  %v11715_v5 = vpop.f32.mrf.mxu0  ;;  %v4923_v52 = vadd.f32 %v11713_v48, %v15617_v39  ;;  %v12995_v39 = vld [vmem:[%s18640_s10 + $0x2f0] ss:$36 sps:$4 sm:$0xff]  }
 0x9ce   : > { %v11716_v50 = vadd.f32 %v11715_v5, %v11714_v3  ;;  %v11815_v46 = vpop.f32.mrf.mxu1 }
 0x9cf   : > { %v11816_v18 = vadd.f32 %v11815_v46, %v11814_v25  ;;  %v11717_v55 = vpop.f32.mrf.mxu0 }
 0x9d0   : > { %v11817_v58 = vpop.f32.mrf.mxu1 }
 0x9d1   : > { %v15857_v35 = vadd.f32 %v11816_v18, %v4912_v11  ;;  %v11718_v2 = vpop.f32.mrf.mxu0  ;;  %v4928_v18 = vadd.f32 %v11716_v50, %v15628_v13 }
 0x9d2   : > { %v11719_v47 = vadd.f32 %v11718_v2, %v11717_v55  ;;  %v11818_v51 = vpop.f32.mrf.mxu1 }
 0x9d3   : > { %v11819_v10 = vadd.f32 %v11818_v51, %v11817_v58  ;;  %v11720_v40 = vpop.f32.mrf.mxu0  ;;  %12305 = vmatmul.mubr.bf16.gmra.mxu0 %v12990_v17  ;;  %v12994_v58 = vld [vmem:[%s18640_s10 + $0x2a8] ss:$36 sps:$4 sm:$0xff]   ;;  %v13001_v51 = vld [vmem:[%s18345_s18 + $0x18] sm:$0xff]  }
 0x9d4   : > { %v11820_v15 = vpop.f32.mrf.mxu1  ;;  %12308 = vmatprep.mubr.bf16.mxu0 %v12991_v60  ;;  %v4931_v50 = vadd.f32 %v11719_v47, %v15638_v6  ;;  %12608 = vmatprep.subr.bf16.mxu1 %v13001_v51  ;;  %v12996_v6 = vld [vmem:[%s18640_s10 + $0x338] ss:$36 sps:$4 sm:$0xff]  }
 0x9d5   : > { %v15860_v59 = vadd.f32 %v11819_v10, %v4915_v19  ;;  %v11721_v41 = vpop.f32.mrf.mxu0  ;;  %12612 = vmatpush3.bf16.msra.mxu1 %v13001_v51  ;;  %12328 = vmatprep.subr.bf16.mxu0 %v13001_v51 }
 0x9d6   : > { %v11722_v54 = vadd.f32 %v11721_v41, %v11720_v40  ;;  %v11821_v14 = vpop.f32.mrf.mxu1  ;;  %12329 = vmatpush3.bf16.msra.mxu0 %v13001_v51 }
 0x9d7   : > { %v11822_v21 = vadd.f32 %v11821_v14, %v11820_v15  ;;  %v11723_v9 = vpop.f32.mrf.mxu0 }
 0x9d8   : > { %v11823_v57 = vpop.f32.mrf.mxu1 }
 0x9d9   : > { %v15869_v62 = vadd.f32 %v11822_v21, %v4920_v24  ;;  %v11724_v28 = vpop.f32.mrf.mxu0 }
 0x9da   : > { %v11725_v22 = vadd.f32 %v11724_v28, %v11723_v9  ;;  %v11824_v53 = vpop.f32.mrf.mxu1  ;;  %v4936_v9 = vadd.f32 %v11722_v54, %v15657_v4 }
 0x9db   : > { %v11825_v3 = vadd.f32 %v11824_v53, %v11823_v57  ;;  %v11726_v45 = vpop.f32.mrf.mxu0  ;;  %12309 = vmatmul.mubr.bf16.gmra.mxu0 %v12992_v31 }
 0x9dc   : > { %v11826_v32 = vpop.f32.mrf.mxu1  ;;  %12312 = vmatprep.mubr.bf16.mxu0 %v12993_v44  ;;  %v12997_v44 = vld [vmem:[%s18640_s10 + $0x380] ss:$36 sps:$4 sm:$0xff]  }
 0x9dd   : > { %v15872_v25 = vadd.f32 %v11825_v3, %v4923_v52  ;;  %v11727_v5 = vpop.f32.mrf.mxu0  ;;  %v4939_v3 = vadd.f32 %v11725_v22, %v15662_v26  ;;  %v12999_v26 = vld [vmem:[%s18640_s10 + $0x410] ss:$36 sps:$4 sm:$0xff]  }
 0x9de   : > { %v11728_v46 = vadd.f32 %v11727_v5, %v11726_v45  ;;  %v11827_v11 = vpop.f32.mrf.mxu1 }
 0x9df   : > { %v11828_v55 = vadd.f32 %v11827_v11, %v11826_v32  ;;  %v11729_v17 = vpop.f32.mrf.mxu0 }
 0x9e0   : > { %v11829_v60 = vpop.f32.mrf.mxu1 }
 0x9e1   : > { %v15881_v48 = vadd.f32 %v11828_v55, %v4928_v18  ;;  %v11730_v2 = vpop.f32.mrf.mxu0  ;;  %v4944_v55 = vadd.f32 %v11728_v46, %v15684_v29 }
 0x9e2   : > { %v11731_v19 = vadd.f32 %v11730_v2, %v11729_v17  ;;  %v11830_v13 = vpop.f32.mrf.mxu1 }
 0x9e3   : > { %v11831_v10 = vadd.f32 %v11830_v13, %v11829_v60  ;;  %v11732_v40 = vpop.f32.mrf.mxu0  ;;  %12313 = vmatmul.mubr.bf16.gmra.mxu0 %v12994_v58  ;;  %v12998_v60 = vld [vmem:[%s18640_s10 + $0x3c8] ss:$36 sps:$4 sm:$0xff]  }
 0x9e4   : > { %v11832_v15 = vpop.f32.mrf.mxu1  ;;  %12316 = vmatprep.mubr.bf16.mxu0 %v12995_v39  ;;  %v4947_v13 = vadd.f32 %v11731_v19, %v15695_v49 }
 0x9e5   : > { %v15887_v41 = vadd.f32 %v11831_v10, %v4931_v50  ;;  %v11733_v14 = vpop.f32.mrf.mxu0 }
 0x9e6   : > { %v11734_v24 = vadd.f32 %v11733_v14, %v11732_v40  ;;  %v11833_v21 = vpop.f32.mrf.mxu1 }
 0x9e7   : > { %v11834_v31 = vadd.f32 %v11833_v21, %v11832_v15  ;;  %v11735_v57 = vpop.f32.mrf.mxu0 }
 0x9e8   : > { %v11835_v47 = vpop.f32.mrf.mxu1  ;;  %v4952_v21 = vadd.f32 %v11734_v24, %v15712_v38 }
 0x9e9   : > { %v15896_v28 = vadd.f32 %v11834_v31, %v4936_v9  ;;  %v11736_v53 = vpop.f32.mrf.mxu0 }
 0x9ea   : > { %v11836_v52 = vpop.f32.mrf.mxu1  ;;  %v11737_v9 = vadd.f32 %v11736_v53, %v11735_v57 }
 0x9eb   : > { %v11837_v45 = vadd.f32 %v11836_v52, %v11835_v47  ;;  %v11738_v32 = vpop.f32.mrf.mxu0  ;;  %12317 = vmatmul.mubr.bf16.gmra.mxu0 %v12996_v6  ;;  %v13000_v47 = vld [vmem:[%s18640_s10 + $0x458] ss:$36 sps:$4 sm:$0xff]  }
 0x9ec   : > { %v11838_v4 = vpop.f32.mrf.mxu1  ;;  %12320 = vmatprep.mubr.bf16.mxu0 %v12997_v44 }
 0x9ed   : > { %v15899_v54 = vadd.f32 %v11837_v45, %v4939_v3  ;;  %v11739_v5 = vpop.f32.mrf.mxu0  ;;  %v4955_v3 = vadd.f32 %v11737_v9, %v15725_v30  ;;  %v13002_v30 = vld [vmem:[%s18345_s18 + $0x10] sm:$0xff]  }
 0x9ee   : > { %v11740_v11 = vadd.f32 %v11739_v5, %v11738_v32  ;;  %v11839_v18 = vpop.f32.mrf.mxu1  ;;  %12609 = vmatprep.subr.bf16.mxu1 %v13002_v30  ;;  %12330 = vmatprep.subr.bf16.mxu0 %v13002_v30 }
 0x9ef   : > { %v11840_v17 = vadd.f32 %v11839_v18, %v11838_v4  ;;  %v11741_v58 = vpop.f32.mrf.mxu0  ;;  %12613 = vmatpush3.bf16.msra.mxu1 %v13002_v30  ;;  %12331 = vmatpush3.bf16.msra.mxu0 %v13002_v30 }
 0x9f0   : > { %v11841_v39 = vpop.f32.mrf.mxu1  ;;  %v4960_v53 = vadd.f32 %v11740_v11, %v15742_v34 }
 0x9f1   : > { %v15908_v22 = vadd.f32 %v11840_v17, %v4944_v55  ;;  %v11742_v2 = vpop.f32.mrf.mxu0 }
 0x9f2   : > { %v11842_v51 = vpop.f32.mrf.mxu1  ;;  %v11743_v18 = vadd.f32 %v11742_v2, %v11741_v58 }
 0x9f3   : > { %v11843_v50 = vadd.f32 %v11842_v51, %v11841_v39  ;;  %v11744_v10 = vpop.f32.mrf.mxu0  ;;  %12321 = vmatmul.mubr.bf16.gmra.mxu0 %v12998_v60 }
 0x9f4   : > { %v11844_v29 = vpop.f32.mrf.mxu1  ;;  %12324 = vmatprep.mubr.bf16.mxu0 %v12999_v26 }
 0x9f5   : > { %v15911_v46 = vadd.f32 %v11843_v50, %v4947_v13  ;;  %v11745_v40 = vpop.f32.mrf.mxu0  ;;  %v4963_v13 = vadd.f32 %v11743_v18, %v15752_v16 }
 0x9f6   : > { %v11746_v15 = vadd.f32 %v11745_v40, %v11744_v10  ;;  %v11845_v14 = vpop.f32.mrf.mxu1 }
 0x9f7   : > { %v11846_v31 = vadd.f32 %v11845_v14, %v11844_v29  ;;  %v11747_v6 = vpop.f32.mrf.mxu0 }
 0x9f8   : > { %v11847_v49 = vpop.f32.mrf.mxu1  ;;  %v4968_v40 = vadd.f32 %v11746_v15, %v15773_v23  ;;  %v4078_v15 = vpop.permute.xlu0 %4077 }
 0x9f9   : > { %v15917_v19 = vadd.f32 %v11846_v31, %v4952_v21  ;;  %v11748_v44 = vpop.f32.mrf.mxu0 }
 0x9fa   : > { %v11848_v52 = vpop.f32.mrf.mxu1  ;;  %v11749_v14 = vadd.f32 %v11748_v44, %v11747_v6  ;;  %v13003_v44 = vld [vmem:[%s18345_s18 + $0x8] sm:$0xff]  }
 0x9fb   : > { %v11849_v45 = vadd.f32 %v11848_v52, %v11847_v49  ;;  %v11750_v32 = vpop.f32.mrf.mxu0  ;;  %12325 = vmatmul.mubr.bf16.gmra.mxu0 %v13000_v47  ;;  %12332 = vmatprep.subr.bf16.mxu0 %v13003_v44 }
 0x9fc   : > { %v11850_v4 = vpop.f32.mrf.mxu1  ;;  %12610 = vmatprep.subr.bf16.mxu1 %v13003_v44  ;;  %12333 = vmatpush3.bf16.msra.mxu0 %v13003_v44 }
 0x9fd   : > { %v15920_v5 = vadd.f32 %v11849_v45, %v4955_v3  ;;  %v11751_v38 = vpop.f32.mrf.mxu0  ;;  %v4971_v45 = vadd.f32 %v11749_v14, %v15777_v56  ;;  %12614 = vmatpush3.bf16.msra.mxu1 %v13003_v44 }
 0x9fe   : > { %v11752_v24 = vadd.f32 %v11751_v38, %v11750_v32  ;;  %v11851_v57 = vpop.f32.mrf.mxu1 }
 0x9ff   : > { %v11852_v55 = vadd.f32 %v11851_v57, %v11850_v4  ;;  %v11753_v17 = vpop.f32.mrf.mxu0 }
 0xa00   : > { %v11853_v60 = vpop.f32.mrf.mxu1  ;;  %v4976_v18 = vadd.f32 %v11752_v24, %v4078_v15 }
 0xa01   : > { %v15923_v39 = vadd.f32 %v11852_v55, %v4960_v53  ;;  %v11754_v26 = vpop.f32.mrf.mxu0 }
 0xa02   : > { %v11854_v51 = vpop.f32.mrf.mxu1  ;;  %v11755_v55 = vadd.f32 %v11754_v26, %v11753_v17 }
 0xa03   : > { %v11855_v50 = vadd.f32 %v11854_v51, %v11853_v60  ;;  %v11884_v10 = vpop.f32.mrf.mxu0 }
 0xa05   : > { %v15929_v34 = vadd.f32 %v11855_v50, %v4963_v13  ;;  %v11856_v11 = vpop.f32.mrf.mxu1  ;;  %v11885_v58 = vpop.f32.mrf.mxu0 }
 0xa06   : > { %v11886_v2 = vadd.f32 %v11885_v58, %v11884_v10  ;;  %v4083_v10 = vpop.permute.xlu1 %4082 }
 0xa07   : > { %v11857_v29 = vpop.f32.mrf.mxu1  ;;  %v11887_v31 = vpop.f32.mrf.mxu0  ;;  %v4979_v26 = vadd.f32 %v11755_v55, %v4083_v10 }
 0xa08   : > { %v5178_v21 = vadd.f32 %v11886_v2, %v15676_v37  ;;  %v11858_v9 = vadd.f32 %v11857_v29, %v11856_v11 }
 0xa09   : > { %v11859_v16 = vpop.f32.mrf.mxu1  ;;  %v11888_v49 = vpop.f32.mrf.mxu0 }
 0xa0a   : > { %v15933_v47 = vadd.f32 %v11858_v9, %v4968_v40  ;;  %v11889_v52 = vadd.f32 %v11888_v49, %v11887_v31  ;;  %v15958_v31 = vld [vmem:[%s18345_s18 + $0x38] sm:$0xff]  }
 0xa0b   : > { %v11860_v3 = vpop.f32.mrf.mxu1  ;;  %v11890_v4 = vpop.f32.mrf.mxu0 }
 0xa0c   : > { %v11861_v32 = vadd.f32 %v11860_v3, %v11859_v16  ;;  %v5181_v38 = vadd.f32 %v11889_v52, %v15697_v8  ;;  %v13004_v8 = vld [vmem:[%s18345_s18] sm:$0xff]  }
 0xa0d   : > { %v11862_v57 = vpop.f32.mrf.mxu1  ;;  %v11891_v23 = vpop.f32.mrf.mxu0  ;;  %12334 = vmatprep.subr.bf16.mxu0 %v13004_v8  ;;  %12611 = vmatprep.subr.bf16.mxu1 %v13004_v8 }
 0xa0e   : > { %v15937_v53 = vadd.f32 %v11861_v32, %v4971_v45  ;;  %v11892_v37 = vadd.f32 %v11891_v23, %v11890_v4  ;;  %12335 = vmatpush3.bf16.msra.mxu0 %v13004_v8  ;;  %12615 = vmatpush3.bf16.msra.mxu1 %v13004_v8 }
 0xa0f   : > { %v11863_v6 = vpop.f32.mrf.mxu1  ;;  %v11893_v30 = vpop.f32.mrf.mxu0  ;;  %12368 = vmatprep.subr.bf16.mxu0 %v15958_v31 }
 0xa10   : > { %v11864_v60 = vadd.f32 %v11863_v6, %v11862_v57  ;;  %v15943_v56 = vadd.f32 %v11892_v37, %v15717_v20 }
 0xa11   : > { %v11865_v51 = vpop.f32.mrf.mxu1  ;;  %v11894_v50 = vpop.f32.mrf.mxu0 }
 0xa12   : > { %v15948_v13 = vadd.f32 %v11864_v60, %v4976_v18  ;;  %v11895_v24 = vadd.f32 %v11894_v50, %v11893_v30 }
 0xa13   : > { %v11866_v17 = vpop.f32.mrf.mxu1  ;;  %v11896_v11 = vpop.f32.mrf.mxu0 }
 0xa14   : > { %v11867_v20 = vadd.f32 %v11866_v17, %v11865_v51  ;;  %v15951_v58 = vadd.f32 %v11895_v24, %v15737_v12 }
 0xa15   : > { %v11996_v2 = vpop.f32.mrf.mxu1  ;;  %v11897_v40 = vpop.f32.mrf.mxu0 }
 0xa16   : > { %v15953_v29 = vadd.f32 %v11867_v20, %v4979_v26  ;;  %v11898_v14 = vadd.f32 %v11897_v40, %v11896_v11 }
 0xa17   : > { %v11997_v9 = vpop.f32.mrf.mxu1  ;;  %v11899_v49 = vpop.f32.mrf.mxu0 }
 0xa18   : > { %18648 = vst [vmem:[#allocation35_spill] sm:$0xff] %v15953_v29  ;;  %v11998_v16 = vadd.f32 %v11997_v9, %v11996_v2  ;;  %v15961_v52 = vadd.f32 %v11898_v14, %v15757_v42 }
 0xa19   : > { %v11999_v12 = vpop.f32.mrf.mxu1  ;;  %v11900_v3 = vpop.f32.mrf.mxu0 }
 0xa1a   : > { %v15964_v45 = vadd.f32 %v11998_v16, %v5178_v21  ;;  %v11901_v32 = vadd.f32 %v11900_v3, %v11899_v49 }
 0xa1b   : > { %v12000_v4 = vpop.f32.mrf.mxu1  ;;  %v11902_v23 = vpop.f32.mrf.mxu0 }
 0xa1c   : > { %v12001_v57 = vadd.f32 %v12000_v4, %v11999_v12  ;;  %v15967_v15 = vadd.f32 %v11901_v32, %v15775_v7 }
 0xa1d   : > { %v15969_v37 = vpop.f32.mrf.mxu1  ;;  %v11903_v6 = vpop.f32.mrf.mxu0 }
 0xa1e   : > { %v15971_v44 = vadd.f32 %v12001_v57, %v5181_v38  ;;  %v11904_v42 = vadd.f32 %v11903_v6, %v11902_v23 }
 0xa1f   : > { %v15973_v18 = vpop.f32.mrf.mxu1  ;;  %v11905_v55 = vpop.f32.mrf.mxu0 }
 0xa20   : > { %v15976_v60 = vadd.f32 %v11904_v42, %v15787_v36 }
 0xa21   : > { %v15978_v21 = vpop.f32.mrf.mxu1  ;;  %v11906_v30 = vpop.f32.mrf.mxu0 }
 0xa22   : > { %v11907_v51 = vadd.f32 %v11906_v30, %v11905_v55 }
 0xa23   : > { %v15980_v8 = vpop.f32.mrf.mxu1  ;;  %v11908_v7 = vpop.f32.mrf.mxu0 }
 0xa24   : > { %v15983_v50 = vadd.f32 %v11907_v51, %v15797_v61 }
 0xa25   : > { %v15985_v10 = vpop.f32.mrf.mxu1  ;;  %v11909_v38 = vpop.f32.mrf.mxu0 }
 0xa26   : > { %v11910_v24 = vadd.f32 %v11909_v38, %v11908_v7 }
 0xa27   : > { %v15987_v17 = vpop.f32.mrf.mxu1  ;;  %v11911_v26 = vpop.f32.mrf.mxu0 }
 0xa28   : > { %v15990_v36 = vadd.f32 %v11910_v24, %v15806_v1 }
 0xa29   : > { %v15992_v20 = vpop.f32.mrf.mxu1  ;;  %v11912_v11 = vpop.f32.mrf.mxu0 }
 0xa2a   : > { %v11913_v2 = vadd.f32 %v11912_v11, %v11911_v26 }
 0xa2b   : > { %v15994_v40 = vpop.f32.mrf.mxu1  ;;  %v11914_v14 = vpop.f32.mrf.mxu0 }
 0xa2c   : > { %v15997_v61 = vadd.f32 %v11913_v2, %v15815_v63 }
 0xa2d   : > { %v15999_v9 = vpop.f32.mrf.mxu1  ;;  %v11915_v16 = vpop.f32.mrf.mxu0 }
 0xa2e   : > { %v11916_v49 = vadd.f32 %v11915_v16, %v11914_v14 }
 0xa2f   : > { %v16001_v12 = vpop.f32.mrf.mxu1  ;;  %v11917_v3 = vpop.f32.mrf.mxu0 }
 0xa30   : > { %v16004_v1 = vadd.f32 %v11916_v49, %v15824_v0 }
 0xa31   : > { %v16006_v32 = vpop.f32.mrf.mxu1  ;;  %v11918_v4 = vpop.f32.mrf.mxu0 }
 0xa32   : > { %v11919_v57 = vadd.f32 %v11918_v4, %v11917_v3 }
 0xa33   : > { %v16008_v23 = vpop.f32.mrf.mxu1  ;;  %v11920_v6 = vpop.f32.mrf.mxu0 }
 0xa34   : > { %v16011_v63 = vadd.f32 %v11919_v57, %v15833_v43 }
 0xa35   : > { %v16013_v42 = vpop.f32.mrf.mxu1  ;;  %v11921_v55 = vpop.f32.mrf.mxu0 }
 0xa36   : > { %v11922_v30 = vadd.f32 %v11921_v55, %v11920_v6 }
 0xa37   : > { %v16015_v51 = vpop.f32.mrf.mxu1  ;;  %v11923_v7 = vpop.f32.mrf.mxu0 }
 0xa38   : > { %v16018_v0 = vadd.f32 %v11922_v30, %v15842_v33 }
 0xa39   : > { %v16020_v38 = vpop.f32.mrf.mxu1  ;;  %v11924_v24 = vpop.f32.mrf.mxu0 }
 0xa3a   : > { %18649 = vst [vmem:[#allocation36_spill] sm:$0xff] %v16018_v0  ;;  %v11925_v26 = vadd.f32 %v11924_v24, %v11923_v7 }
 0xa3b   : > { %v16022_v11 = vpop.f32.mrf.mxu1  ;;  %v11926_v2 = vpop.f32.mrf.mxu0 }
 0xa3c   : > { %v16025_v43 = vadd.f32 %v11925_v26, %v15848_v27 }
 0xa3d   : > { %v16027_v14 = vpop.f32.mrf.mxu1  ;;  %v11927_v16 = vpop.f32.mrf.mxu0 }
 0xa3e   : > { %18650 = vst [vmem:[#allocation28_spill] sm:$0xff] %v16025_v43  ;;  %v11928_v49 = vadd.f32 %v11927_v16, %v11926_v2 }
 0xa3f   : > { %v16029_v3 = vpop.f32.mrf.mxu1  ;;  %v11929_v4 = vpop.f32.mrf.mxu0 }
 0xa40   : > { %v16032_v33 = vadd.f32 %v11928_v49, %v15857_v35  ;;  %v16048_v35 = vld [vmem:[%s18345_s18 + $0x58] sm:$0xff]  }
 0xa41   : > { %v16034_v57 = vpop.f32.mrf.mxu1  ;;  %v11930_v6 = vpop.f32.mrf.mxu0  ;;  %18653 = vst [vmem:[#allocation32_spill] sm:$0xff] %v16048_v35  ;;  %12408 = vmatprep.subr.bf16.mxu1 %v16048_v35 }
 0xa42   : > { %18651 = vst [vmem:[#allocation27_spill] sm:$0xff] %v16032_v33  ;;  %v11931_v55 = vadd.f32 %v11930_v6, %v11929_v4 }
 0xa43   : > { %v16036_v30 = vpop.f32.mrf.mxu1  ;;  %v11932_v7 = vpop.f32.mrf.mxu0 }
 0xa44   : > { %v16039_v27 = vadd.f32 %v11931_v55, %v15860_v59 }
 0xa45   : > { %v16041_v24 = vpop.f32.mrf.mxu1  ;;  %v11933_v26 = vpop.f32.mrf.mxu0 }
 0xa46   : > { %18652 = vst [vmem:[#allocation37_spill] sm:$0xff] %v16039_v27  ;;  %v11934_v2 = vadd.f32 %v11933_v26, %v11932_v7 }
 0xa47   : > { %v16043_v16 = vpop.f32.mrf.mxu1  ;;  %v11935_v49 = vpop.f32.mrf.mxu0 }
 0xa48   : > { %v16051_v4 = vadd.f32 %v11934_v2, %v15869_v62 }
 0xa49   : > { %v16053_v6 = vpop.f32.mrf.mxu1  ;;  %v11936_v59 = vpop.f32.mrf.mxu0 }
 0xa4a   : > { %18654 = vst [vmem:[#allocation30_spill] sm:$0xff] %v16051_v4  ;;  %18655 = vst [vmem:[#allocation29_spill] sm:$0xff] %v16053_v6  ;;  %v11937_v55 = vadd.f32 %v11936_v59, %v11935_v49 }
 0xa4b   : > { %v16056_v29 = vpop.f32.mrf.mxu1  ;;  %v11938_v7 = vpop.f32.mrf.mxu0 }
 0xa4c   : > { %18656 = vst [vmem:[#allocation33_spill] sm:$0xff] %v16056_v29  ;;  %v16059_v26 = vadd.f32 %v11937_v55, %v15872_v25 }
 0xa4d   : > { %v16061_v43 = vpop.f32.mrf.mxu1  ;;  %v11939_v27 = vpop.f32.mrf.mxu0 }
 0xa4e   : > { %18657 = vst [vmem:[#allocation34_spill] sm:$0xff] %v16059_v26  ;;  %v11940_v0 = vadd.f32 %v11939_v27, %v11938_v7 }
 0xa4f   : > { %v16063_v33 = vpop.f32.mrf.mxu1  ;;  %v11941_v62 = vpop.f32.mrf.mxu0 }
 0xa50   : > { %v16066_v2 = vadd.f32 %v11940_v0, %v15881_v48 }
 0xa51   : > { %v16068_v4 = vpop.f32.mrf.mxu1  ;;  %v11942_v35 = vpop.f32.mrf.mxu0 }
 0xa52   : > { %18658 = vst [vmem:[#allocation31_spill] sm:$0xff] %v16066_v2  ;;  %v11943_v49 = vadd.f32 %v11942_v35, %v11941_v62 }
 0xa53   : > { %v16070_v59 = vpop.f32.mrf.mxu1  ;;  %v11944_v29 = vpop.f32.mrf.mxu0 }
 0xa54   : > { %18659 = vst [vmem:[#allocation22_spill] sm:$0xff] %v16070_v59  ;;  %v16073_v25 = vadd.f32 %v11943_v49, %v15887_v41 }
 0xa55   : > { %v16075_v55 = vpop.f32.mrf.mxu1  ;;  %v11945_v26 = vpop.f32.mrf.mxu0 }
 0xa56   : > { %18660 = vst [vmem:[#allocation23_spill] sm:$0xff] %v16073_v25  ;;  %v11946_v27 = vadd.f32 %v11945_v26, %v11944_v29 }
 0xa57   : > { %v16077_v7 = vpop.f32.mrf.mxu1  ;;  %v11947_v6 = vpop.f32.mrf.mxu0 }
 0xa58   : > { %18661 = vst [vmem:[#allocation24_spill] sm:$0xff] %v16077_v7  ;;  %v16080_v48 = vadd.f32 %v11946_v27, %v15896_v28 }
 0xa59   : > { %v16082_v0 = vpop.f32.mrf.mxu1  ;;  %v11948_v2 = vpop.f32.mrf.mxu0 }
 0xa5a   : > { %18662 = vst [vmem:[#allocation25_spill] sm:$0xff] %v16080_v48  ;;  %18663 = vst [vmem:[#allocation26_spill] sm:$0xff] %v16082_v0  ;;  %v11949_v35 = vadd.f32 %v11948_v2, %v11947_v6 }
 0xa5b   : > { %v16084_v62 = vpop.f32.mrf.mxu1  ;;  %v11950_v59 = vpop.f32.mrf.mxu0 }
 0xa5c   : > { %18664 = vst [vmem:[#allocation21_spill] sm:$0xff] %v16084_v62  ;;  %v16087_v41 = vadd.f32 %v11949_v35, %v15899_v54 }
 0xa5d   : > { %v16089_v49 = vpop.f32.mrf.mxu1  ;;  %v11951_v25 = vpop.f32.mrf.mxu0 }
 0xa5e   : > { %18665 = vst [vmem:[#allocation38_spill] sm:$0xff] %v16087_v41  ;;  %v11952_v29 = vadd.f32 %v11951_v25, %v11950_v59 }
 0xa5f   : > { %v16091_v26 = vpop.f32.mrf.mxu1  ;;  %v11953_v7 = vpop.f32.mrf.mxu0 }
 0xa60   : > { %v16094_v28 = vadd.f32 %v11952_v29, %v15908_v22 }
 0xa61   : > { %v16096_v27 = vpop.f32.mrf.mxu1  ;;  %v11954_v48 = vpop.f32.mrf.mxu0 }
 0xa62   : > { %18666 = vst [vmem:[#allocation39_spill] sm:$0xff] %v16094_v28  ;;  %v11955_v6 = vadd.f32 %v11954_v48, %v11953_v7 }
 0xa63   : > { %v16098_v2 = vpop.f32.mrf.mxu1  ;;  %v11956_v62 = vpop.f32.mrf.mxu0 }
 0xa64   : > { %18667 = vst [vmem:[#allocation40_spill] sm:$0xff] %v16098_v2  ;;  %v16101_v54 = vadd.f32 %v11955_v6, %v15911_v46 }
 0xa65   : > { %v16103_v35 = vpop.f32.mrf.mxu1  ;;  %v11957_v41 = vpop.f32.mrf.mxu0 }
 0xa66   : > { %18668 = vst [vmem:[#allocation41_spill] sm:$0xff] %v16101_v54  ;;  %18669 = vst [vmem:[#allocation42_spill] sm:$0xff] %v16103_v35  ;;  %v11958_v59 = vadd.f32 %v11957_v41, %v11956_v62 }
 0xa67   : > { %v16105_v25 = vpop.f32.mrf.mxu1  ;;  %v11959_v0 = vpop.f32.mrf.mxu0 }
 0xa68   : > { %18670 = vst [vmem:[#allocation43_spill] sm:$0xff] %v16105_v25  ;;  %v16108_v22 = vadd.f32 %v11958_v59, %v15917_v19 }
 0xa69   : > { %v16110_v29 = vpop.f32.mrf.mxu1  ;;  %v11960_v28 = vpop.f32.mrf.mxu0 }
 0xa6a   : > { %18671 = vst [vmem:[#allocation44_spill] sm:$0xff] %v16108_v22  ;;  %18672 = vst [vmem:[#allocation45_spill] sm:$0xff] %v16110_v29  ;;  %v11961_v7 = vadd.f32 %v11960_v28, %v11959_v0 }
 0xa6b   : > { %v16112_v48 = vpop.f32.mrf.mxu1  ;;  %v11962_v2 = vpop.f32.mrf.mxu0 }
 0xa6c   : > { %18673 = vst [vmem:[#allocation46_spill] sm:$0xff] %v16112_v48  ;;  %v16115_v46 = vadd.f32 %v11961_v7, %v15920_v5 }
 0xa6d   : > { %v16117_v6 = vpop.f32.mrf.mxu1  ;;  %v11963_v54 = vpop.f32.mrf.mxu0 }
 0xa6e   : > { %18674 = vst [vmem:[#allocation47_spill] sm:$0xff] %v16115_v46  ;;  %v11964_v62 = vadd.f32 %v11963_v54, %v11962_v2 }
 0xa6f   : > { %v16119_v41 = vpop.f32.mrf.mxu1  ;;  %v11965_v25 = vpop.f32.mrf.mxu0 }
 0xa70   : > { %v16122_v19 = vadd.f32 %v11964_v62, %v15923_v39 }
 0xa71   : > { %v11966_v59 = vpop.f32.mrf.mxu0  ;;  %v16124_v29 = vpop.f32.mrf.mxu1 }
 0xa72   : > { %18675 = vst [vmem:[#allocation48_spill] sm:$0xff] %v16122_v19  ;;  %v11967_v22 = vadd.f32 %v11966_v59, %v11965_v25 }
 0xa73   : > { %v11968_v0 = vpop.f32.mrf.mxu0  ;;  %v16129_v46 = vpop.f32.mrf.mxu1 }
 0xa74   : > { %v16127_v28 = vadd.f32 %v11967_v22, %v15929_v34 }
 0xa75   : > { %v11969_v5 = vpop.f32.mrf.mxu0  ;;  %v16134_v39 = vpop.f32.mrf.mxu1 }
 0xa76   : > { %v11970_v7 = vadd.f32 %v11969_v5, %v11968_v0  ;;  %v12004_v0 = vadd.f32 %v15973_v18, %v15969_v37 }
 0xa77   : > { %v11971_v48 = vpop.f32.mrf.mxu0  ;;  %v16139_v34 = vpop.f32.mrf.mxu1 }
 0xa78   : > { %v16132_v2 = vadd.f32 %v11970_v7, %v15933_v47 }
 0xa79   : > { %v11972_v54 = vpop.f32.mrf.mxu0  ;;  %v16152_v7 = vpop.f32.mrf.mxu1 }
 0xa7a   : > { %v11973_v35 = vadd.f32 %v11972_v54, %v11971_v48  ;;  %v12007_v48 = vadd.f32 %v15980_v8, %v15978_v21  ;;  %v12010_v21 = vadd.f32 %v15987_v17, %v15985_v10 }
 0xa7b   : > { %v11974_v62 = vpop.f32.mrf.mxu0 }
 0xa7c   : > { %v16137_v25 = vadd.f32 %v11973_v35, %v15937_v53  ;;  %v5347_v35 = vadd.f32 %v12004_v0, %v15943_v56  ;;  %v12019_v56 = vadd.f32 %v16008_v23, %v16006_v32  ;;  %v5355_v23 = vadd.f32 %v12010_v21, %v15961_v52 }
 0xa7d   : > { %v11975_v59 = vpop.f32.mrf.mxu0  ;;  %v12022_v52 = vadd.f32 %v16015_v51, %v16013_v42  ;;  %v13007_v42 = vld [vmem:[%s18345_s18 + $0x28] sm:$0xff]  }
 0xa7e   : > { %18676 = vst [vmem:[#allocation49_spill] sm:$0xff] %v16137_v25  ;;  %v11976_v19 = vadd.f32 %v11975_v59, %v11974_v62  ;;  %v5350_v59 = vadd.f32 %v12007_v48, %v15951_v58  ;;  %v16156_v25 = vpop.f32.mrf.mxu1  ;;  %v12013_v48 = vadd.f32 %v15994_v40, %v15992_v20  ;;  %v13006_v40 = vld [vmem:[%s18345_s18 + $0x30] sm:$0xff]  }
 0xa7f   : > { %v16141_v22 = vpop.f32.mrf.mxu0 }
 0xa80   : > { %v16146_v47 = vadd.f32 %v11976_v19, %v15948_v13  ;;  %v12016_v13 = vadd.f32 %v16001_v12, %v15999_v9 }
 0xa81   : > { %v16148_v5 = vpop.f32.mrf.mxu0 }
 0xa82   : > { %v5363_v10 = vadd.f32 %v12016_v13, %v15976_v60  ;;  %v5358_v13 = vadd.f32 %v12013_v48, %v15967_v15 }
 0xa83   : > { %v12298_v53 = vpop.f32.mrf.mxu0 }
 0xa84   : > { %v5508_v62 = vadd.f32 %v12298_v53, %v5347_v35  ;;  %v16168_v35 = vpop.f32.mrf.mxu1 }
 0xa85   : > { %v5499_v54 = vpop.f32.mrf.mxu0 }
 0xa86   : > { %v5500_v18 = vadd.f32 %v5499_v54, %v15964_v45  ;;  %v5628_v0 = vmax.f32 %v5508_v62, 0.0  ;;  %v16177_v62 = vpop.f32.mrf.mxu1 }
 0xa87   : > { %v12299_v37 = vpop.f32.mrf.mxu0 }
 0xa88   : > { %v5511_v19 = vadd.f32 %v12299_v37, %v5350_v59  ;;  %v5626_v12 = vmax.f32 %v5500_v18, 0.0  ;;  %v12028_v37 = vadd.f32 %v16029_v3, %v16027_v14  ;;  %v12025_v3 = vadd.f32 %v16022_v11, %v16020_v38 }
 0xa89   : > { %v5502_v8 = vpop.f32.mrf.mxu0  ;;  %v5371_v38 = vadd.f32 %v12022_v52, %v15990_v36 }
 0xa8a   : > { %v5629_v53 = vmax.f32 %v5511_v19, 0.0  ;;  %v5503_v58 = vadd.f32 %v5502_v8, %v15971_v44  ;;  %v5366_v44 = vadd.f32 %v12019_v56, %v15983_v50  ;;  %v12031_v19 = vadd.f32 %v16036_v30, %v16034_v57  ;;  %v16196_v56 = vpop.f32.mrf.mxu1 }
 0xa8b   : > { %v12302_v9 = vpop.f32.mrf.mxu0  ;;  %v5379_v30 = vadd.f32 %v12028_v37, %v16004_v1  ;;  %v12040_v1 = vadd.f32 %v16063_v33, %v16061_v43  ;;  %v5374_v36 = vadd.f32 %v12025_v3, %v15997_v61  ;;  %v18678_v33 = vld [vmem:[#allocation29_spill] sm:$0xff] }
 0xa8c   : > { %v16170_v45 = vpack.c.bf16 %v5629_v53, %v5628_v0  ;;  %v5627_v54 = vmax.f32 %v5503_v58, 0.0  ;;  %v5524_v32 = vadd.f32 %v12302_v9, %v5363_v10  ;;  %v5382_v11 = vadd.f32 %v12031_v19, %v16011_v63  ;;  %v16208_v48 = vpop.f32.mrf.mxu1  ;;  %v18682_v3 = vld [vmem:[#allocation37_spill] sm:$0xff] }
 0xa8d   : > { %v5515_v17 = vpop.f32.mrf.mxu0  ;;  %v12034_v63 = vadd.f32 %v16043_v16, %v16041_v24  ;;  %v13013_v16 = vld [vmem:[%s18345_s18 + $0x78] sm:$0xff]  }
 0xa8e   : > { %v16173_v59 = vpack.c.bf16 %v5627_v54, %v5626_v12  ;;  %v5516_v18 = vadd.f32 %v5515_v17, %v5355_v23  ;;  %v5632_v21 = vmax.f32 %v5524_v32, 0.0  ;;  %v13008_v12 = vld [vmem:[%s18345_s18 + $0x20] sm:$0xff]   ;;  %v18677_v32 = vld [vmem:[#allocation22_spill] sm:$0xff]  ;;  %v16228_v37 = vpop.f32.mrf.mxu1 }
 0xa8f   : > { %v12303_v20 = vpop.f32.mrf.mxu0  ;;  %v12043_v23 = vadd.f32 %v18677_v32, %v16068_v4  ;;  %v18687_v32 = vld [vmem:[#allocation26_spill] sm:$0xff] }
 0xa90   : > { %v5527_v60 = vadd.f32 %v12303_v20, %v5366_v44  ;;  %12336 = vmatprep.mubr.msk.bf16.mxu0 %vm3049_vm13, %v16173_v59  ;;  %v5630_v51 = vmax.f32 %v5516_v18, 0.0 }
 0xa91   : > { %v5518_v50 = vpop.f32.mrf.mxu0  ;;  %12337 = vmatmul.mubr.msk.bf16.vlgmr.msra.gmra.mxu0 %vm3049_vm13, %v16170_v45 }
 0xa92   : > { %v5633_v8 = vmax.f32 %v5527_v60, 0.0  ;;  %v5519_v14 = vadd.f32 %v5518_v50, %v5358_v13  ;;  %12369 = vmatpush3.bf16.msra.mxu0 %v15958_v31  ;;  %v18680_v13 = vld [vmem:[#allocation27_spill] sm:$0xff] }
 0xa93   : > { %v12306_v15 = vpop.f32.mrf.mxu0  ;;  %12370 = vmatprep.subr.bf16.mxu0 %v13006_v40  ;;  %v5395_v52 = vadd.f32 %v12040_v1, %v18680_v13 }
 0xa94   : > { %v16201_v0 = vpack.c.bf16 %v5633_v8, %v5632_v21  ;;  %v5631_v57 = vmax.f32 %v5519_v14, 0.0  ;;  %v5540_v31 = vadd.f32 %v12306_v15, %v5379_v30  ;;  %v18681_v8 = vld [vmem:[#allocation36_spill] sm:$0xff]  ;;  %v5398_v15 = vadd.f32 %v12043_v23, %v18682_v3 }
 0xa95   : > { %v5531_v53 = vpop.f32.mrf.mxu0  ;;  %v5387_v14 = vadd.f32 %v12034_v63, %v18681_v8  ;;  %v12052_v30 = vadd.f32 %v16091_v26, %v16089_v49  ;;  %v18685_v49 = vld [vmem:[#allocation40_spill] sm:$0xff]  ;;  %v18691_v8 = vld [vmem:[#allocation23_spill] sm:$0xff] }
 0xa96   : > { %v16204_v58 = vpack.c.bf16 %v5631_v57, %v5630_v51  ;;  %12371 = vmatpush3.bf16.msra.mxu0 %v13006_v40  ;;  %v5532_v54 = vadd.f32 %v5531_v53, %v5371_v38  ;;  %v5636_v44 = vmax.f32 %v5540_v31, 0.0  ;;  %v18679_v40 = vld [vmem:[#allocation33_spill] sm:$0xff]  ;;  %v18683_v38 = vld [vmem:[#allocation28_spill] sm:$0xff]  ;;  %v12055_v26 = vadd.f32 %v18685_v49, %v16096_v27 }
 0xa97   : > { %v12307_v9 = vpop.f32.mrf.mxu0  ;;  %12372 = vmatprep.subr.bf16.mxu0 %v13007_v42  ;;  %v12037_v61 = vadd.f32 %v18679_v40, %v18678_v33  ;;  %v13010_v57 = vld [vmem:[%s18345_s18 + $0x50] sm:$0xff]  }
 0xa98   : > { %v5543_v10 = vadd.f32 %v12307_v9, %v5382_v11  ;;  %12340 = vmatprep.mubr.msk.bf16.mxu0 %vm3049_vm13, %v16204_v58  ;;  %v5634_v18 = vmax.f32 %v5532_v54, 0.0  ;;  %v13014_v9 = vld [vmem:[%s18345_s18 + $0x70] sm:$0xff]  }
 0xa99   : > { %v5534_v17 = vpop.f32.mrf.mxu0  ;;  %12341 = vmatmul.mubr.msk.bf16.gmra.mxu0 %vm3049_vm13, %v16201_v0  ;;  %v5390_v11 = vadd.f32 %v12037_v61, %v18683_v38  ;;  %v18689_v61 = vld [vmem:[#allocation31_spill] sm:$0xff] }
 0xa9a   : > { %v5637_v20 = vmax.f32 %v5543_v10, 0.0  ;;  %v5535_v43 = vadd.f32 %v5534_v17, %v5374_v36  ;;  %12373 = vmatpush3.bf16.msra.mxu0 %v13007_v42  ;;  %12376 = vmatprep.mubr.msk.bf16.mxu0 %vm3049_vm13, %v16173_v59  ;;  %v16240_v42 = vpop.f32.mrf.mxu1  ;;  %v18686_v17 = vld [vmem:[#allocation32_spill] sm:$0xff] }
 0xa9b   : > { %v12310_v24 = vpop.f32.mrf.mxu0  ;;  %12374 = vmatprep.subr.bf16.mxu0 %v13008_v12 }
 0xa9c   : > { %v16233_v4 = vpack.c.bf16 %v5637_v20, %v5636_v44  ;;  %v5635_v60 = vmax.f32 %v5535_v43, 0.0  ;;  %v5556_v21 = vadd.f32 %v12310_v24, %v5395_v52  ;;  %v16266_v44 = vpop.f32.mrf.mxu1  ;;  %v13011_v43 = vld [vmem:[%s18345_s18 + $0x48] sm:$0xff]   ;;  %v5411_v24 = vadd.f32 %v12052_v30, %v18689_v61  ;;  %v13012_v30 = vld [vmem:[%s18345_s18 + $0x40] sm:$0xff]   ;;  %v18698_v61 = vld [vmem:[#allocation25_spill] sm:$0xff] }
 0xa9d   : > { %v5547_v50 = vpop.f32.mrf.mxu0 }
 0xa9e   : > { %v16236_v19 = vpack.c.bf16 %v5635_v60, %v5634_v18  ;;  %12375 = vmatpush3.bf16.msra.mxu0 %v13008_v12  ;;  %v5548_v53 = vadd.f32 %v5547_v50, %v5387_v14  ;;  %v18684_v12 = vld [vmem:[#allocation24_spill] sm:$0xff]  ;;  %v5640_v10 = vmax.f32 %v5556_v21, 0.0  ;;  %v18690_v50 = vld [vmem:[#allocation30_spill] sm:$0xff]  ;;  %v5414_v14 = vadd.f32 %v12055_v26, %v18691_v8  ;;  %v18695_v26 = vld [vmem:[#allocation45_spill] sm:$0xff] }
 0xa9f   : > { %v12311_v51 = vpop.f32.mrf.mxu0  ;;  %12448 = vmatprep.subr.bf16.mxu0 %v13013_v16  ;;  %v12046_v1 = vadd.f32 %v18684_v12, %v16075_v55  ;;  %v18688_v55 = vld [vmem:[#allocation21_spill] sm:$0xff]  ;;  %v13015_v18 = vld [vmem:[%s18345_s18 + $0x68] sm:$0xff]   ;;  %v18694_v12 = vld [vmem:[#allocation43_spill] sm:$0xff] }
 0xaa0   : > { %v5559_v31 = vadd.f32 %v12311_v51, %v5398_v15  ;;  %12344 = vmatprep.mubr.msk.bf16.mxu1 %vm3049_vm13, %v16236_v19  ;;  %v12049_v23 = vadd.f32 %v18688_v55, %v18687_v32  ;;  %v5638_v27 = vmax.f32 %v5548_v53, 0.0  ;;  %v18692_v15 = vld [vmem:[#allocation34_spill] sm:$0xff]  ;;  %v12064_v53 = vadd.f32 %v16119_v41, %v16117_v6 }
 0xaa1   : > { %v5550_v54 = vpop.f32.mrf.mxu0  ;;  %12345 = vmatmul.mubr.msk.bf16.vlgmr.msra.gmra.mxu1 %vm3049_vm13, %v16233_v4  ;;  %12377 = vmatmul.mubr.msk.bf16.vlgmr.msra.gmra.mxu0 %vm3049_vm13, %v16170_v45  ;;  %v5403_v21 = vadd.f32 %v12046_v1, %v18690_v50  ;;  %v12067_v6 = vadd.f32 %v16129_v46, %v16124_v29 }
 0xaa2   : > { %v5641_v36 = vmax.f32 %v5559_v31, 0.0  ;;  %v5551_v63 = vadd.f32 %v5550_v54, %v5390_v11  ;;  %12380 = vmatprep.mubr.msk.bf16.mxu0 %vm3049_vm13, %v16204_v58  ;;  %12409 = vmatpush3.bf16.msra.mxu1 %v18686_v17  ;;  %v5406_v51 = vadd.f32 %v12049_v23, %v18692_v15  ;;  %v18693_v11 = vld [vmem:[#allocation42_spill] sm:$0xff] }
 0xaa3   : > { %v12314_v20 = vpop.f32.mrf.mxu0  ;;  %12410 = vmatprep.subr.bf16.mxu1 %v13010_v57  ;;  %12449 = vmatpush3.bf16.msra.mxu0 %v13013_v16  ;;  %v16281_v16 = vpop.f32.mrf.mxu1  ;;  %v12058_v1 = vadd.f32 %v18694_v12, %v18693_v11 }
 0xaa4   : > { %v16271_v33 = vpack.c.bf16 %v5641_v36, %v5640_v10  ;;  %v5639_v40 = vmax.f32 %v5551_v63, 0.0  ;;  %12450 = vmatprep.subr.bf16.mxu0 %v13014_v9  ;;  %v5572_v52 = vadd.f32 %v12314_v20, %v5411_v24  ;;  %v18696_v10 = vld [vmem:[#allocation46_spill] sm:$0xff]  ;;  %v18697_v20 = vld [vmem:[#allocation39_spill] sm:$0xff]  ;;  %v18699_v24 = vld [vmem:[#allocation41_spill] sm:$0xff] }
 0xaa5   : > { %v5563_v60 = vpop.f32.mrf.mxu0  ;;  %v12061_v36 = vadd.f32 %v18696_v10, %v18695_v26  ;;  %v12086_v63 = vpop.f32.mrf.mxu1  ;;  %v5427_v29 = vadd.f32 %v12064_v53, %v18697_v20  ;;  %v11979_v26 = vadd.f32 %v16148_v5, %v16141_v22  ;;  %v12082_v20 = vadd.f32 %v16240_v42, %v16228_v37 }
 0xaa6   : > { %v16277_v13 = vpack.c.bf16 %v5639_v40, %v5638_v27  ;;  %12411 = vmatpush3.bf16.msra.mxu1 %v13010_v57  ;;  %v5564_v31 = vadd.f32 %v5563_v60, %v5403_v21  ;;  %v13016_v57 = vld [vmem:[%s18345_s18 + $0x60] sm:$0xff]   ;;  %v5644_v41 = vmax.f32 %v5572_v52, 0.0  ;;  %v5430_v60 = vadd.f32 %v12067_v6, %v18699_v24 }
 0xaa7   : > { %v12315_v3 = vpop.f32.mrf.mxu0  ;;  %12412 = vmatprep.subr.bf16.mxu1 %v13011_v43  ;;  %12451 = vmatpush3.bf16.msra.mxu0 %v13014_v9  ;;  %v12087_v52 = vpop.f32.mrf.mxu1  ;;  %v12076_v21 = vadd.f32 %v16177_v62, %v16168_v35  ;;  %v12079_v35 = vadd.f32 %v16208_v48, %v16196_v56  ;;  %v18703_v48 = vld [vmem:[#allocation44_spill] sm:$0xff] }
 0xaa8   : > { %v5575_v38 = vadd.f32 %v12315_v3, %v5414_v14  ;;  %12348 = vmatprep.mubr.msk.bf16.mxu1 %vm3049_vm13, %v16277_v13  ;;  %12452 = vmatprep.subr.bf16.mxu0 %v13015_v18  ;;  %v5642_v32 = vmax.f32 %v5564_v31, 0.0  ;;  %v18701_v3 = vld [vmem:[#allocation38_spill] sm:$0xff]  ;;  %v12088_v10 = vadd.f32 %v12087_v52, %v12086_v63 }
 0xaa9   : > { %v5566_v54 = vpop.f32.mrf.mxu0  ;;  %12349 = vmatmul.mubr.msk.bf16.gmra.mxu1 %vm3049_vm13, %v16271_v33  ;;  %12381 = vmatmul.mubr.msk.bf16.gmra.mxu0 %vm3049_vm13, %v16201_v0  ;;  %v5422_v15 = vadd.f32 %v12061_v36, %v18701_v3 }
 0xaaa   : > { %v5645_v9 = vmax.f32 %v5575_v38, 0.0  ;;  %v5567_v49 = vadd.f32 %v5566_v54, %v5406_v51  ;;  %12384 = vmatprep.mubr.msk.bf16.mxu0 %vm3049_vm13, %v16236_v19  ;;  %12413 = vmatpush3.bf16.msra.mxu1 %v13011_v43  ;;  %v5419_v43 = vadd.f32 %v12058_v1, %v18698_v61  ;;  %v12070_v51 = vadd.f32 %v16139_v34, %v16134_v39  ;;  %v12089_v39 = vpop.f32.mrf.mxu1  ;;  %v18702_v1 = vld [vmem:[#allocation48_spill] sm:$0xff] }
 0xaab   : > { %v12318_v17 = vpop.f32.mrf.mxu0  ;;  %12414 = vmatprep.subr.bf16.mxu1 %v13012_v30  ;;  %12453 = vmatpush3.bf16.msra.mxu0 %v13015_v18  ;;  %v18700_v18 = vmov 0   ;;  %v12073_v38 = vadd.f32 %v16156_v25, %v16152_v7  ;;  %v5443_v54 = vadd.f32 %v12076_v21, %v18702_v1  ;;  %v12085_v61 = vadd.f32 %v16281_v16, %v16266_v44 }
 0xaac   : > { %v16306_v55 = vpack.c.bf16 %v5645_v9, %v5644_v41  ;;  %v5643_v23 = vmax.f32 %v5567_v49, 0.0  ;;  %12454 = vmatprep.subr.bf16.mxu0 %v13016_v57  ;;  %v5588_v40 = vadd.f32 %v12318_v17, %v5427_v29  ;;  %v5435_v9 = vadd.f32 %v12070_v51, %v18703_v48  ;;  %v12090_v25 = vpop.f32.mrf.mxu1 }
 0xaad   : > { %v5579_v46 = vpop.f32.mrf.mxu0  ;;  %v5446_v49 = vadd.f32 %v12079_v35, %v16127_v28  ;;  %v12091_v28 = vadd.f32 %v12090_v25, %v12089_v39 }
 0xaae   : > { %v16309_v27 = vpack.c.bf16 %v5643_v23, %v5642_v32  ;;  %12415 = vmatpush3.bf16.msra.mxu1 %v13012_v30  ;;  %v5580_v8 = vadd.f32 %v5579_v46, %v5419_v43  ;;  %v5648_v62 = vmax.f32 %v5588_v40, 0.0  ;;  %v18704_v32 = vld [vmem:[#allocation47_spill] sm:$0xff] }
 0xaaf   : > { %v12319_v50 = vpop.f32.mrf.mxu0  ;;  %12455 = vmatpush3.bf16.msra.mxu0 %v13016_v57  ;;  %7377 = vmatprep.subr.bf16.mxu1 %v18700_v18  ;;  %v5438_v23 = vadd.f32 %v12073_v38, %v18704_v32  ;;  %v18705_v46 = vld [vmem:[#allocation35_spill] sm:$0xff] }
 0xab0   : > { %v5591_v14 = vadd.f32 %v12319_v50, %v5430_v60  ;;  %12352 = vmatprep.mubr.msk.bf16.mxu1 %vm3049_vm13, %v16309_v27  ;;  %v5646_v57 = vmax.f32 %v5580_v8, 0.0  ;;  %v5301_v40 = vadd.f32 %v11979_v26, %v18705_v46  ;;  %v5459_v60 = vadd.f32 %v12088_v10, %v16146_v47 }
 0xab1   : > { %v5582_v53 = vpop.f32.mrf.mxu0  ;;  %12353 = vmatmul.mubr.msk.bf16.gmra.mxu1 %vm3049_vm13, %v16306_v55  ;;  %12385 = vmatmul.mubr.msk.bf16.gmra.mxu0 %vm3049_vm13, %v16233_v4  ;;  %v5451_v8 = vadd.f32 %v12082_v20, %v16132_v2 }
 0xab2   : > { %v5649_v30 = vmax.f32 %v5591_v14, 0.0  ;;  %v5583_v31 = vadd.f32 %v5582_v53, %v5422_v15  ;;  %12388 = vmatprep.mubr.msk.bf16.mxu0 %vm3049_vm13, %v16277_v13  ;;  %v5462_v14 = vadd.f32 %v12091_v28, %v5301_v40  ;;  %v18706_v53 = vld [vmem:[#allocation49_spill] sm:$0xff] }
 0xab3   : > { %v12322_v34 = vpop.f32.mrf.mxu0  ;;  %v5454_v35 = vadd.f32 %v12085_v61, %v18706_v53 }
 0xab4   : > { %v16331_v11 = vpack.c.bf16 %v5649_v30, %v5648_v62  ;;  %v5647_v12 = vmax.f32 %v5583_v31, 0.0  ;;  %v5604_v56 = vadd.f32 %v12322_v34, %v5443_v54 }
 0xab5   : > { %v5595_v6 = vpop.f32.mrf.mxu0 }
 0xab6   : > { %v16334_v41 = vpack.c.bf16 %v5647_v12, %v5646_v57  ;;  %v5596_v36 = vadd.f32 %v5595_v6, %v5435_v9  ;;  %v5652_v22 = vmax.f32 %v5604_v56, 0.0 }
 0xab7   : > { %v12323_v7 = vpop.f32.mrf.mxu0 }
 0xab8   : > { %v5607_v17 = vadd.f32 %v12323_v7, %v5446_v49  ;;  %12356 = vmatprep.mubr.msk.bf16.mxu1 %vm3049_vm13, %v16334_v41  ;;  %v5650_v42 = vmax.f32 %v5596_v36, 0.0 }
 0xab9   : > { %v5598_v29 = vpop.f32.mrf.mxu0  ;;  %12357 = vmatmul.mubr.msk.bf16.gmra.mxu1 %vm3049_vm13, %v16331_v11  ;;  %12389 = vmatmul.mubr.msk.bf16.gmra.mxu0 %vm3049_vm13, %v16271_v33 }
 0xaba   : > { %v5653_v5 = vmax.f32 %v5607_v17, 0.0  ;;  %v5599_v63 = vadd.f32 %v5598_v29, %v5438_v23  ;;  %12392 = vmatprep.mubr.msk.bf16.mxu0 %vm3049_vm13, %v16309_v27 }
 0xabb   : > { %v12326_v37 = vpop.f32.mrf.mxu0 }
 0xabc   : > { %v5671_v43 = vpack.c.bf16 %v5653_v5, %v5652_v22  ;;  %v5651_v24 = vmax.f32 %v5599_v63, 0.0  ;;  %v5620_v21 = vadd.f32 %v12326_v37, %v5459_v60 }
 0xabd   : > { %v5611_v52 = vpop.f32.mrf.mxu0 }
 0xabe   : > { %v5670_v50 = vpack.c.bf16 %v5651_v24, %v5650_v42  ;;  %v5612_v15 = vadd.f32 %v5611_v52, %v5451_v8  ;;  %v5656_v47 = vmax.f32 %v5620_v21, 0.0 }
 0xabf   : > { %v12327_v3 = vpop.f32.mrf.mxu0 }
 0xac0   : > { %v5623_v51 = vadd.f32 %v12327_v3, %v5462_v14  ;;  %12360 = vmatprep.mubr.msk.bf16.mxu1 %vm3049_vm13, %v5670_v50  ;;  %v5654_v2 = vmax.f32 %v5612_v15, 0.0  ;;  %v13019_v14 = vld [vmem:[%s18712_s1 + $0x4] ss:$8 sps:$4 sm:$0xff]  }
 0xac1   : > { %v5614_v44 = vpop.f32.mrf.mxu0  ;;  %12361 = vmatmul.mubr.msk.bf16.gmra.mxu1 %vm3049_vm13, %v5671_v43  ;;  %12393 = vmatmul.mubr.msk.bf16.gmra.mxu0 %vm3049_vm13, %v16306_v55 }
 0xac2   : > { %v5657_v16 = vmax.f32 %v5623_v51, 0.0  ;;  %v5615_v62 = vadd.f32 %v5614_v44, %v5454_v35  ;;  %12396 = vmatprep.mubr.msk.bf16.mxu0 %vm3049_vm13, %v16334_v41 }
 0xac4   : > { %v5673_v30 = vpack.c.bf16 %v5657_v16, %v5656_v47  ;;  %v5655_v31 = vmax.f32 %v5615_v62, 0.0 }
 0xac6   : > { %v5672_v38 = vpack.c.bf16 %v5655_v31, %v5654_v2 }
 0xac8   : > { %12364 = vmatprep.mubr.msk.bf16.mxu1 %vm3049_vm13, %v5672_v38 }
 0xac9   : > { %12365 = vmatmul.mubr.msk.bf16.gmra.mxu1 %vm3049_vm13, %v5673_v30  ;;  %12397 = vmatmul.mubr.msk.bf16.gmra.mxu0 %vm3049_vm13, %v16331_v11 }
 0xaca   : > { %12400 = vmatprep.mubr.msk.bf16.mxu0 %vm3049_vm13, %v5670_v50  ;;  %12416 = vmatprep.mubr.msk.bf16.mxu1 %vm3049_vm13, %v16173_v59 }
 0xad1   : > { %12401 = vmatmul.mubr.msk.bf16.gmra.mxu0 %vm3049_vm13, %v5671_v43  ;;  %12417 = vmatmul.mubr.msk.bf16.vlgmr.msra.gmra.mxu1 %vm3049_vm13, %v16170_v45 }
 0xad2   : > { %12404 = vmatprep.mubr.msk.bf16.mxu0 %vm3049_vm13, %v5672_v38  ;;  %12420 = vmatprep.mubr.msk.bf16.mxu1 %vm3049_vm13, %v16204_v58 }
 0xad9   : > { %12405 = vmatmul.mubr.msk.bf16.gmra.mxu0 %vm3049_vm13, %v5673_v30  ;;  %12421 = vmatmul.mubr.msk.bf16.gmra.mxu1 %vm3049_vm13, %v16201_v0 }
 0xada   : > { %12424 = vmatprep.mubr.msk.bf16.mxu1 %vm3049_vm13, %v16236_v19  ;;  %12456 = vmatprep.mubr.msk.bf16.mxu0 %vm3049_vm13, %v16173_v59 }
 0xae1   : > { %12425 = vmatmul.mubr.msk.bf16.gmra.mxu1 %vm3049_vm13, %v16233_v4  ;;  %12457 = vmatmul.mubr.msk.bf16.vlgmr.msra.gmra.mxu0 %vm3049_vm13, %v16170_v45 }
 0xae2   : > { %12428 = vmatprep.mubr.msk.bf16.mxu1 %vm3049_vm13, %v16277_v13  ;;  %12460 = vmatprep.mubr.msk.bf16.mxu0 %vm3049_vm13, %v16204_v58 }
 0xae9   : > { %12429 = vmatmul.mubr.msk.bf16.gmra.mxu1 %vm3049_vm13, %v16271_v33  ;;  %12461 = vmatmul.mubr.msk.bf16.gmra.mxu0 %vm3049_vm13, %v16201_v0 }
 0xaea   : > { %12432 = vmatprep.mubr.msk.bf16.mxu1 %vm3049_vm13, %v16309_v27  ;;  %12464 = vmatprep.mubr.msk.bf16.mxu0 %vm3049_vm13, %v16236_v19 }
 0xaf1   : > { %12433 = vmatmul.mubr.msk.bf16.gmra.mxu1 %vm3049_vm13, %v16306_v55  ;;  %12465 = vmatmul.mubr.msk.bf16.gmra.mxu0 %vm3049_vm13, %v16233_v4 }
 0xaf2   : > { %12436 = vmatprep.mubr.msk.bf16.mxu1 %vm3049_vm13, %v16334_v41  ;;  %12468 = vmatprep.mubr.msk.bf16.mxu0 %vm3049_vm13, %v16277_v13 }
 0xaf9   : > { %12437 = vmatmul.mubr.msk.bf16.gmra.mxu1 %vm3049_vm13, %v16331_v11  ;;  %12469 = vmatmul.mubr.msk.bf16.gmra.mxu0 %vm3049_vm13, %v16271_v33 }
 0xafa   : > { %12440 = vmatprep.mubr.msk.bf16.mxu1 %vm3049_vm13, %v5670_v50  ;;  %12472 = vmatprep.mubr.msk.bf16.mxu0 %vm3049_vm13, %v16309_v27 }
 0xb01   : > { %12441 = vmatmul.mubr.msk.bf16.gmra.mxu1 %vm3049_vm13, %v5671_v43  ;;  %12473 = vmatmul.mubr.msk.bf16.gmra.mxu0 %vm3049_vm13, %v16306_v55 }
 0xb02   : > { %12444 = vmatprep.mubr.msk.bf16.mxu1 %vm3049_vm13, %v5672_v38  ;;  %12476 = vmatprep.mubr.msk.bf16.mxu0 %vm3049_vm13, %v16334_v41 }
 0xb09   : > { %12445 = vmatmul.mubr.msk.bf16.gmra.mxu1 %vm3049_vm13, %v5673_v30  ;;  %12477 = vmatmul.mubr.msk.bf16.gmra.mxu0 %vm3049_vm13, %v16331_v11 }
 0xb0a   : > { %12480 = vmatprep.mubr.msk.bf16.mxu0 %vm3049_vm13, %v5670_v50  ;;  %7409 = vmatprep.mubr.bf16.mxu1 %v13019_v14 }
 0xb11   : > { %12481 = vmatmul.mubr.msk.bf16.gmra.mxu0 %vm3049_vm13, %v5671_v43 }
 0xb12   : > { %12484 = vmatprep.mubr.msk.bf16.mxu0 %vm3049_vm13, %v5672_v38 }
 0xb19   : > { %12485 = vmatmul.mubr.msk.bf16.gmra.mxu0 %vm3049_vm13, %v5673_v30 }
 0xb51   : > { %v16427_v45 = vpop.f32.mrf.mxu0 }
 0xb53   : > { %v16429_v59 = vpop.f32.mrf.mxu0 }
 0xb54   : > { %18707 = vst [vmem:[#allocation22_spill] sm:$0xff] %v16429_v59 }
 0xb55   : > { %v16431_v0 = vpop.f32.mrf.mxu0 }
 0xb57   : > { %v16433_v58 = vpop.f32.mrf.mxu0 }
 0xb59   : > { %v16435_v4 = vpop.f32.mrf.mxu0 }
 0xb5b   : > { %v16437_v19 = vpop.f32.mrf.mxu0 }
 0xb5d   : > { %v16439_v33 = vpop.f32.mrf.mxu0 }
 0xb5f   : > { %v16441_v13 = vpop.f32.mrf.mxu0 }
 0xb61   : > { %v16443_v55 = vpop.f32.mrf.mxu1  ;;  %v16445_v27 = vpop.f32.mrf.mxu0 }
 0xb63   : > { %v16449_v34 = vpop.f32.mrf.mxu1  ;;  %v16451_v57 = vpop.f32.mrf.mxu0 }
 0xb64   : > { %18708 = vst [vmem:[#allocation29_spill] sm:$0xff] %v16451_v57 }
 0xb65   : > { %v16455_v12 = vpop.f32.mrf.mxu1  ;;  %v16457_v1 = vpop.f32.mrf.mxu0 }
 0xb66   : > { %v18737_v39 = vmax.f32 %v16431_v0, %v16457_v1 }
 0xb67   : > { %v16461_v6 = vpop.f32.mrf.mxu1  ;;  %v16463_v41 = vpop.f32.mrf.mxu0 }
 0xb69   : > { %v16465_v56 = vpop.f32.mrf.mxu1  ;;  %v16467_v48 = vpop.f32.mrf.mxu0 }
 0xb6b   : > { %v16471_v49 = vpop.f32.mrf.mxu1  ;;  %v16473_v26 = vpop.f32.mrf.mxu0 }
 0xb6d   : > { %v16477_v7 = vpop.f32.mrf.mxu1  ;;  %v16479_v10 = vpop.f32.mrf.mxu0 }
 0xb6e   : > { %v18740_v0 = vmax.f32 %v16439_v33, %v16479_v10 }
 0xb6f   : > { %v16483_v17 = vpop.f32.mrf.mxu1  ;;  %v16485_v32 = vpop.f32.mrf.mxu0 }
 0xb71   : > { %v16487_v23 = vpop.f32.mrf.mxu1  ;;  %v16489_v20 = vpop.f32.mrf.mxu0 }
 0xb73   : > { %v16493_v28 = vpop.f32.mrf.mxu1  ;;  %v16495_v22 = vpop.f32.mrf.mxu0 }
 0xb74   : > { %18709 = vst [vmem:[#allocation33_spill] sm:$0xff] %v16493_v28 }
 0xb75   : > { %v16499_v63 = vpop.f32.mrf.mxu1  ;;  %v16501_v46 = vpop.f32.mrf.mxu0 }
 0xb76   : > { %v18743_v33 = vmax.f32 %v16455_v12, %v16501_v46 }
 0xb77   : > { %v16505_v61 = vpop.f32.mrf.mxu1  ;;  %v16507_v37 = vpop.f32.mrf.mxu0 }
 0xb78   : > { %18710 = vst [vmem:[#allocation27_spill] sm:$0xff] %v16505_v61 }
 0xb79   : > { %v16509_v42 = vpop.f32.mrf.mxu1  ;;  %v16511_v43 = vpop.f32.mrf.mxu0 }
 0xb7b   : > { %v16515_v60 = vpop.f32.mrf.mxu1  ;;  %v16517_v52 = vpop.f32.mrf.mxu0 }
 0xb7c   : > { %18711 = vst [vmem:[#allocation36_spill] sm:$0xff] %v16515_v60  ;;  %v18736_v60 = vmax.f32 %v16427_v45, %v16445_v27  ;;  %v18739_v45 = vmax.f32 %v16435_v4, %v16467_v48  ;;  %v18742_v4 = vmax.f32 %v16443_v55, %v16489_v20  ;;  %v18745_v20 = vmax.f32 %v16465_v56, %v16511_v43 }
 0xb7d   : > { %v16521_v21 = vpop.f32.mrf.mxu1  ;;  %v16523_v8 = vpop.f32.mrf.mxu0 }
 0xb7f   : > { %v16528_v3 = vpop.f32.mrf.mxu1  ;;  %v16530_v15 = vpop.f32.mrf.mxu0 }
 0xb80   : > { %18713 = vst [vmem:[#allocation37_spill] sm:$0xff] %v16528_v3  ;;  %v6122_v12 = vmax.f32 %v16483_v17, %v16530_v15 }
 0xb81   : > { %v16532_v51 = vpop.f32.mrf.mxu1  ;;  %v16534_v53 = vpop.f32.mrf.mxu0 }
 0xb83   : > { %v16538_v44 = vpop.f32.mrf.mxu1  ;;  %v16540_v47 = vpop.f32.mrf.mxu0 }
 0xb84   : > { %18714 = vst [vmem:[#allocation28_spill] sm:$0xff] %v16538_v44  ;;  %18715 = vst [vmem:[#allocation24_spill] sm:$0xff] %v16540_v47 }
 0xb85   : > { %v16544_v62 = vpop.f32.mrf.mxu1  ;;  %v16546_v2 = vpop.f32.mrf.mxu0 }
 0xb86   : > { %18716 = vst [vmem:[#allocation40_spill] sm:$0xff] %v16544_v62 }
 0xb87   : > { %v16550_v31 = vpop.f32.mrf.mxu1  ;;  %v16552_v38 = vpop.f32.mrf.mxu0 }
 0xb88   : > { %18717 = vst [vmem:[#allocation32_spill] sm:$0xff] %v16550_v31  ;;  %18718 = vst [vmem:[#allocation26_spill] sm:$0xff] %v16552_v38 }
 0xb89   : > { %v16554_v14 = vpop.f32.mrf.mxu1  ;;  %v16556_v11 = vpop.f32.mrf.mxu0 }
 0xb8a   : > { %18719 = vst [vmem:[#allocation21_spill] sm:$0xff] %v16554_v14 }
 0xb8b   : > { %v16560_v5 = vpop.f32.mrf.mxu1  ;;  %v16562_v16 = vpop.f32.mrf.mxu0 }
 0xb8c   : > { %18720 = vst [vmem:[#allocation31_spill] sm:$0xff] %v16560_v5  ;;  %18721 = vst [vmem:[#allocation30_spill] sm:$0xff] %v16562_v16 }
 0xb8d   : > { %v16566_v50 = vpop.f32.mrf.mxu1  ;;  %v16568_v30 = vpop.f32.mrf.mxu0 }
 0xb8e   : > { %18722 = vst [vmem:[#allocation23_spill] sm:$0xff] %v16566_v50 }
 0xb8f   : > { %v16572_v40 = vpop.f32.mrf.mxu1  ;;  %v16574_v29 = vpop.f32.mrf.mxu0 }
 0xb90   : > { %18723 = vst [vmem:[#allocation34_spill] sm:$0xff] %v16572_v40  ;;  %18724 = vst [vmem:[#allocation42_spill] sm:$0xff] %v16574_v29 }
 0xb91   : > { %v16576_v36 = vpop.f32.mrf.mxu0  ;;  %v12418_v25 = vpop.f32.mrf.mxu1 }
 0xb92   : > { %18725 = vst [vmem:[#allocation43_spill] sm:$0xff] %v16576_v36 }
 0xb93   : > { %v16580_v54 = vpop.f32.mrf.mxu0  ;;  %v16582_v35 = vpop.f32.mrf.mxu1 }
 0xb94   : > { %18726 = vst [vmem:[#allocation45_spill] sm:$0xff] %v16580_v54  ;;  %18727 = vst [vmem:[#allocation46_spill] sm:$0xff] %v16582_v35 }
 0xb95   : > { %v16586_v47 = vpop.f32.mrf.mxu0  ;;  %v12419_v24 = vpop.f32.mrf.mxu1 }
 0xb96   : > { %18728 = vst [vmem:[#allocation39_spill] sm:$0xff] %v16586_v47 }
 0xb97   : > { %v16590_v61 = vpop.f32.mrf.mxu0  ;;  %v16592_v38 = vpop.f32.mrf.mxu1 }
 0xb98   : > { %18729 = vst [vmem:[#allocation25_spill] sm:$0xff] %v16590_v61  ;;  %18730 = vst [vmem:[#allocation41_spill] sm:$0xff] %v16592_v38 }
 0xb99   : > { %v16594_v16 = vpop.f32.mrf.mxu0  ;;  %v12422_v9 = vpop.f32.mrf.mxu1 }
 0xb9a   : > { %18731 = vst [vmem:[#allocation38_spill] sm:$0xff] %v16594_v16  ;;  %v6337_v16 = vmax.f32 %v18736_v60, %v12418_v25  ;;  %v6341_v27 = vmax.f32 %v18739_v45, %v12422_v9 }
 0xb9b   : > { %v16598_v3 = vpop.f32.mrf.mxu0  ;;  %v16600_v29 = vpop.f32.mrf.mxu1 }
 0xb9c   : > { %18732 = vst [vmem:[#allocation48_spill] sm:$0xff] %v16598_v3  ;;  %v6338_v3 = vmax.f32 %v18737_v39, %v12419_v24 }
 0xb9d   : > { %v16604_v54 = vpop.f32.mrf.mxu0  ;;  %v12423_v28 = vpop.f32.mrf.mxu1 }
 0xb9e   : > { %18733 = vst [vmem:[#allocation44_spill] sm:$0xff] %v16604_v54  ;;  %v6342_v39 = vmax.f32 %v18740_v0, %v12423_v28 }
 0xb9f   : > { %v16606_v44 = vpop.f32.mrf.mxu0  ;;  %v16608_v31 = vpop.f32.mrf.mxu1 }
 0xba0   : > { %18734 = vst [vmem:[#allocation47_spill] sm:$0xff] %v16606_v44 }
 0xba1   : > { %v12426_v61 = vpop.f32.mrf.mxu1  ;;  %v12458_v40 = vpop.f32.mrf.mxu0 }
 0xba2   : > { %v6563_v54 = vmax.f32 %v6337_v16, %v12458_v40  ;;  %v6345_v48 = vmax.f32 %v18742_v4, %v12426_v61 }
 0xba3   : > { %v16610_v50 = vpop.f32.mrf.mxu1  ;;  %v16612_v57 = vpop.f32.mrf.mxu0 }
 0xba4   : > { %18735 = vst [vmem:[#allocation35_spill] sm:$0xff] %v16612_v57 }
 0xba5   : > { %v12427_v5 = vpop.f32.mrf.mxu1  ;;  %v12459_v14 = vpop.f32.mrf.mxu0 }
 0xba6   : > { %v6564_v44 = vmax.f32 %v6338_v3, %v12459_v14  ;;  %v6346_v9 = vmax.f32 %v18743_v33, %v12427_v5 }
 0xba7   : > { %v6243_v59 = vpop.f32.mrf.mxu1  ;;  %v16620_v35 = vpop.f32.mrf.mxu0 }
 0xba8   : > { %v16622_v38 = vpack.c.bf16 %v6564_v44, %v6563_v54 }
 0xba9   : > { %v12430_v47 = vpop.f32.mrf.mxu1  ;;  %v12462_v62 = vpop.f32.mrf.mxu0 }
 0xbaa   : > { %18738 = vst [vmem:[#allocation49_spill] sm:$0xff] %v16622_v38  ;;  %v6567_v40 = vmax.f32 %v6341_v27, %v12462_v62  ;;  %v6349_v5 = vmax.f32 %v18745_v20, %v12430_v47  ;;  %v6118_v47 = vmax.f32 %v16461_v6, %v16507_v37  ;;  %v18749_v6 = vmax.f32 %v16449_v34, %v16495_v22 }
 0xbab   : > { %v6256_v57 = vpop.f32.mrf.mxu1  ;;  %v16624_v36 = vpop.f32.mrf.mxu0  ;;  %v18750_v34 = vmax.f32 %v16509_v42, %v16556_v11 }
 0xbad   : > { %v12431_v1 = vpop.f32.mrf.mxu1  ;;  %v12463_v25 = vpop.f32.mrf.mxu0 }
 0xbae   : > { %v6568_v24 = vmax.f32 %v6342_v39, %v12463_v25 }
 0xbaf   : > { %v6259_v60 = vpop.f32.mrf.mxu1  ;;  %v16632_v54 = vpop.f32.mrf.mxu0 }
 0xbb0   : > { %v16634_v3 = vpack.c.bf16 %v6568_v24, %v6567_v40  ;;  %v6124_v24 = vmax.f32 %v16477_v7, %v16523_v8  ;;  %v6348_v4 = vmax.f32 %v6122_v12, %v6259_v60  ;;  %v18746_v7 = vmax.f32 %v16471_v49, %v16517_v52 }
 0xbb1   : > { %v12434_v44 = vpop.f32.mrf.mxu1  ;;  %v12466_v16 = vpop.f32.mrf.mxu0 }
 0xbb2   : > { %v6571_v62 = vmax.f32 %v6345_v48, %v12466_v16  ;;  %v6350_v46 = vmax.f32 %v6124_v24, %v12431_v1  ;;  %v6347_v8 = vmax.f32 %v18746_v7, %v6256_v57  ;;  %v18747_v1 = vmax.f32 %v16487_v23, %v16534_v53 }
 0xbb3   : > { %v16636_v14 = vpop.f32.mrf.mxu1  ;;  %v6466_v38 = vpop.f32.mrf.mxu0  ;;  %v18748_v57 = vmax.f32 %v16499_v63, %v16546_v2  ;;  %v6344_v24 = vmax.f32 %v6118_v47, %v6243_v59  ;;  %v6343_v23 = vmax.f32 %v18749_v6, %v16610_v50  ;;  %v18751_v50 = vmax.f32 %v16521_v21, %v16568_v30  ;;  %v18766_v6 = vld [vmem:[#allocation49_spill] sm:$0xff] }
 0xbb4   : > { %18741 = vst [vmem:[#allocation50_spill] sm:$0xff] %v16636_v14  ;;  %v6353_v49 = vmax.f32 %v18747_v1, %v12434_v44 }
 0xbb5   : > { %v12435_v10 = vpop.f32.mrf.mxu1  ;;  %v12467_v28 = vpop.f32.mrf.mxu0  ;;  %v6569_v2 = vmax.f32 %v6343_v23, %v6466_v38 }
 0xbb6   : > { %v6572_v45 = vmax.f32 %v6346_v9, %v12467_v28  ;;  %v6354_v52 = vmax.f32 %v18748_v57, %v12435_v10  ;;  %v6114_v10 = vmax.f32 %v16441_v13, %v16485_v32  ;;  %v18752_v13 = vmax.f32 %v16437_v19, %v16473_v26  ;;  %v18753_v19 = vld [vmem:[#allocation43_spill] sm:$0xff] }
 0xbb7   : > { %v16644_v27 = vpop.f32.mrf.mxu1  ;;  %v6469_v0 = vpop.f32.mrf.mxu0  ;;  %v18754_v26 = vmax.f32 %v16532_v51, %v18753_v19 }
 0xbb8   : > { %18744 = vst [vmem:[#allocation51_spill] sm:$0xff] %v16644_v27  ;;  %v6598_v39 = vpack.c.bf16 %v6572_v45, %v6571_v62  ;;  %v6570_v37 = vmax.f32 %v6344_v24, %v6469_v0  ;;  %v6339_v11 = vmax.f32 %v18752_v13, %v16600_v29  ;;  %v18764_v24 = vld [vmem:[#allocation23_spill] sm:$0xff] }
 0xbb9   : > { %v12438_v25 = vpop.f32.mrf.mxu1  ;;  %v12470_v40 = vpop.f32.mrf.mxu0 }
 0xbba   : > { %v6575_v48 = vmax.f32 %v6349_v5, %v12470_v40  ;;  %v6357_v22 = vmax.f32 %v18750_v34, %v12438_v25  ;;  %v6565_v30 = vmax.f32 %v6339_v11, %v16624_v36  ;;  %v18758_v36 = vld [vmem:[#allocation41_spill] sm:$0xff]  ;;  %v18772_v11 = vld [vmem:[#allocation31_spill] sm:$0xff] }
 0xbbb   : > { %v16648_v14 = vpop.f32.mrf.mxu1  ;;  %v6482_v55 = vpop.f32.mrf.mxu0  ;;  %v18769_v34 = vld [vmem:[#allocation21_spill] sm:$0xff] }
 0xbbc   : > { %v6573_v27 = vmax.f32 %v6347_v8, %v6482_v55 }
 0xbbd   : > { %v12439_v61 = vpop.f32.mrf.mxu1  ;;  %v12471_v16 = vpop.f32.mrf.mxu0 }
 0xbbe   : > { %v6576_v33 = vmax.f32 %v6350_v46, %v12471_v16  ;;  %v6358_v0 = vmax.f32 %v18751_v50, %v12439_v61  ;;  %v6110_v61 = vmax.f32 %v16433_v58, %v16463_v41  ;;  %v18759_v58 = vld [vmem:[#allocation46_spill] sm:$0xff] }
 0xbbf   : > { %v16655_v9 = vpop.f32.mrf.mxu1  ;;  %v6485_v28 = vpop.f32.mrf.mxu0  ;;  %v18760_v41 = vld [vmem:[#allocation22_spill] sm:$0xff] }
 0xbc0   : > { %v6600_v62 = vpack.c.bf16 %v6576_v33, %v6575_v48  ;;  %v6574_v45 = vmax.f32 %v6348_v4, %v6485_v28  ;;  %v18756_v28 = vld [vmem:[#allocation39_spill] sm:$0xff] }
 0xbc1   : > { %v12442_v17 = vpop.f32.mrf.mxu1  ;;  %v12474_v15 = vpop.f32.mrf.mxu0 }
 0xbc2   : > { %7378 = vmatpush1.bf16.msra.mxu1 %v6600_v62  ;;  %v6599_v60 = vpack.c.bf16 %v6574_v45, %v6573_v27  ;;  %v6579_v55 = vmax.f32 %v6353_v49, %v12474_v15  ;;  %v6597_v27 = vpack.c.bf16 %v6570_v37, %v6569_v2  ;;  %v6361_v29 = vmax.f32 %v18754_v26, %v12442_v17  ;;  %v18761_v49 = vld [vmem:[#allocation29_spill] sm:$0xff]  ;;  %v18768_v2 = vld [vmem:[#allocation34_spill] sm:$0xff]  ;;  %v18776_v26 = vld [vmem:[#allocation32_spill] sm:$0xff] }
 0xbc3   : > { %v16660_v56 = vpop.f32.mrf.mxu1  ;;  %v16662_v43 = vpop.f32.mrf.mxu0  ;;  %7379 = vmatprep.subr.bf16.mxu1 %v18700_v18  ;;  %v6336_v45 = vmax.f32 %v6110_v61, %v18758_v36  ;;  %v18762_v57 = vmax.f32 %v18760_v41, %v18761_v49  ;;  %v18783_v49 = vld [vmem:[#allocation30_spill] sm:$0xff] }
 0xbc5   : > { %v12475_v40 = vpop.f32.mrf.mxu0  ;;  %v12443_v20 = vpop.f32.mrf.mxu1  ;;  %v6335_v51 = vmax.f32 %v18762_v57, %v18759_v58  ;;  %v6562_v17 = vmax.f32 %v6336_v45, %v16620_v35 }
 0xbc6   : > { %v6580_v12 = vmax.f32 %v6354_v52, %v12475_v40  ;;  %7380 = vmatpush1.bf16.msra.mxu1 %v6599_v60  ;;  %v18763_v40 = vld [vmem:[#allocation44_spill] sm:$0xff] }
 0xbc7   : > { %v16673_v5 = vpop.f32.mrf.mxu0  ;;  %7381 = vmatprep.subr.bf16.mxu1 %v18700_v18  ;;  %v16682_v59 = vpop.f32.mrf.mxu1 }
 0xbc8   : > { %v16680_v53 = vpack.c.bf16 %v6580_v12, %v6579_v55  ;;  %v6140_v55 = vmax.f32 %v18764_v24, %v18763_v40  ;;  %v18765_v12 = vld [vmem:[#allocation35_spill] sm:$0xff]  ;;  %v18788_v24 = vld [vmem:[#allocation50_spill] sm:$0xff] }
 0xbc9   : > { %v12478_v63 = vpop.f32.mrf.mxu0  ;;  %v12446_v4 = vpop.f32.mrf.mxu1 }
 0xbca   : > { %7382 = vmatpush1.bf16.msra.mxu1 %v6598_v39  ;;  %v6340_v39 = vmax.f32 %v6114_v10, %v16608_v31  ;;  %v6583_v46 = vmax.f32 %v6357_v22, %v12478_v63  ;;  %v18767_v63 = vld [vmem:[#allocation47_spill] sm:$0xff]  ;;  %v18770_v22 = vld [vmem:[#allocation38_spill] sm:$0xff] }
 0xbcb   : > { %v16684_v44 = vpop.f32.mrf.mxu0  ;;  %7383 = vmatprep.subr.bf16.mxu1 %v18700_v18  ;;  %v6320_v31 = vpop.f32.mrf.mxu1  ;;  %v6138_v10 = vmax.f32 %v18768_v2, %v18767_v63  ;;  %v18771_v35 = vmax.f32 %v18769_v34, %v18770_v22  ;;  %v13026_v63 = vld [vmem:[%s18712_s1 + $0x30] ss:$8 sps:$4 sm:$0xff]   ;;  %v13031_v2 = vld [vmem:[%s18712_s1 + $0x44] ss:$8 sps:$4 sm:$0xff]  }
 0xbcc   : > { %v6566_v32 = vmax.f32 %v6340_v39, %v16632_v54  ;;  %v18755_v54 = vld [vmem:[#allocation40_spill] sm:$0xff]  ;;  %v13032_v34 = vld [vmem:[%s18712_s1 + $0x50] ss:$8 sps:$4 sm:$0xff]  }
 0xbcd   : > { %v12479_v38 = vpop.f32.mrf.mxu0  ;;  %v18757_v7 = vmax.f32 %v18755_v54, %v18756_v28  ;;  %v12447_v47 = vpop.f32.mrf.mxu1  ;;  %v6365_v50 = vmax.f32 %v18771_v35, %v12446_v4  ;;  %v18775_v4 = vld [vmem:[#allocation25_spill] sm:$0xff]  ;;  %v13037_v22 = vld [vmem:[%s18712_s1 + $0x64] ss:$8 sps:$4 sm:$0xff]   ;;  %v13035_v35 = vld [vmem:[%s18712_s1 + $0x60] ss:$8 sps:$4 sm:$0xff]  }
 0xbce   : > { %v6584_v16 = vmax.f32 %v6358_v0, %v12479_v38  ;;  %7384 = vmatpush1.bf16.msra.mxu1 %v6597_v27  ;;  %v6595_v33 = vpack.c.bf16 %v6566_v32, %v6565_v30  ;;  %v6366_v0 = vmax.f32 %v6140_v55, %v12447_v47  ;;  %v18773_v32 = vld [vmem:[#allocation48_spill] sm:$0xff]  ;;  %v18789_v55 = vld [vmem:[#allocation33_spill] sm:$0xff] }
 0xbcf   : > { %v16696_v48 = vpop.f32.mrf.mxu0  ;;  %7385 = vmatprep.subr.bf16.mxu1 %v18700_v18  ;;  %v6362_v8 = vmax.f32 %v18757_v7, %v12443_v20  ;;  %v6561_v20 = vmax.f32 %v6335_v51, %v18765_v12  ;;  %v6323_v23 = vpop.f32.mrf.mxu1  ;;  %v18777_v7 = vld [vmem:[#allocation28_spill] sm:$0xff] }
 0xbd0   : > { %v16704_v42 = vpack.c.bf16 %v6584_v16, %v6583_v46  ;;  %v6364_v39 = vmax.f32 %v6138_v10, %v6323_v23  ;;  %v13022_v23 = vld [vmem:[%s18712_s1 + $0x14] ss:$8 sps:$4 sm:$0xff]   ;;  %v13029_v10 = vld [vmem:[%s18712_s1 + $0x40] ss:$8 sps:$4 sm:$0xff]  }
 0xbd1   : > { %v12482_v21 = vpop.f32.mrf.mxu0  ;;  %v6593_v27 = vpack.c.bf16 %v6562_v17, %v6561_v20  ;;  %v18786_v17 = vld [vmem:[#allocation27_spill] sm:$0xff] }
 0xbd2   : > { %7386 = vmatpush1.bf16.msra.mxu1 %v16634_v3  ;;  %v6587_v3 = vmax.f32 %v6361_v29, %v12482_v21  ;;  %v18774_v21 = vmax.f32 %v18772_v11, %v18773_v32  ;;  %v6134_v29 = vmax.f32 %v18776_v26, %v18775_v4  ;;  %v13047_v11 = vld [vmem:[%s18712_s1 + $0xa0] ss:$8 sps:$4 sm:$0xff]   ;;  %v13052_v32 = vld [vmem:[%s18712_s1 + $0xb4] ss:$8 sps:$4 sm:$0xff]   ;;  %v13061_v4 = vld [vmem:[%s18712_s1 + $0xe4] ss:$8 sps:$4 sm:$0xff]  }
 0xbd3   : > { %v6530_v25 = vpop.f32.mrf.mxu0  ;;  %7387 = vmatprep.subr.bf16.mxu1 %v18700_v18  ;;  %v13059_v26 = vld [vmem:[%s18712_s1 + $0xe0] ss:$8 sps:$4 sm:$0xff]  }
 0xbd4   : > { %v6363_v30 = vmax.f32 %v18774_v21, %v6320_v31  ;;  %v6360_v28 = vmax.f32 %v6134_v29, %v16682_v59  ;;  %v18782_v59 = vld [vmem:[#allocation36_spill] sm:$0xff]  ;;  %v13050_v21 = vld [vmem:[%s18712_s1 + $0xb0] ss:$8 sps:$4 sm:$0xff]   ;;  %v13064_v29 = vld [vmem:[%s18712_s1 + $0xf4] ss:$8 sps:$4 sm:$0xff]  }
 0xbd5   : > { %v12483_v62 = vpop.f32.mrf.mxu0  ;;  %v18784_v57 = vmax.f32 %v18782_v59, %v18783_v49 }
 0xbd6   : > { %v6588_v15 = vmax.f32 %v6362_v8, %v12483_v62  ;;  %7388 = vmatpush1.bf16.msra.mxu1 %v6595_v33  ;;  %v18778_v8 = vld [vmem:[#allocation45_spill] sm:$0xff] }
 0xbd7   : > { %v6533_v1 = vpop.f32.mrf.mxu0  ;;  %7389 = vmatprep.subr.bf16.mxu1 %v18700_v18  ;;  %v18779_v62 = vmax.f32 %v18777_v7, %v18778_v8  ;;  %v6355_v51 = vmax.f32 %v18784_v57, %v16648_v14  ;;  %v18790_v14 = vld [vmem:[#allocation24_spill] sm:$0xff]  ;;  %v13070_v8 = vld [vmem:[%s18712_s1 + $0x114] ss:$8 sps:$4 sm:$0xff]  }
 0xbd8   : > { %v6606_v52 = vpack.c.bf16 %v6588_v15, %v6587_v3  ;;  %v6586_v36 = vmax.f32 %v6360_v28, %v6533_v1  ;;  %v18780_v3 = vld [vmem:[#allocation42_spill] sm:$0xff]  ;;  %v18781_v15 = vld [vmem:[#allocation37_spill] sm:$0xff]  ;;  %v18791_v12 = vmax.f32 %v18789_v55, %v18790_v14  ;;  %v13067_v28 = vld [vmem:[%s18712_s1 + $0x104] ss:$8 sps:$4 sm:$0xff]  }
 0xbd9   : > { %v12486_v60 = vpop.f32.mrf.mxu0  ;;  %v6359_v31 = vmax.f32 %v18779_v62, %v16660_v56  ;;  %v6130_v47 = vmax.f32 %v18781_v15, %v18780_v3  ;;  %v18785_v1 = vld [vmem:[#allocation26_spill] sm:$0xff]  ;;  %v13065_v7 = vld [vmem:[%s18712_s1 + $0x100] ss:$8 sps:$4 sm:$0xff]   ;;  %v16889_v15 = vpop.permute.xlu0 %6819 }
 0xbda   : > { %7390 = vmatpush1.bf16.msra.mxu1 %v18766_v6  ;;  %v6591_v46 = vmax.f32 %v6365_v50, %v12486_v60  ;;  %v18787_v60 = vld [vmem:[#allocation51_spill] sm:$0xff]  ;;  %v13040_v50 = vld [vmem:[%s18712_s1 + $0x74] ss:$8 sps:$4 sm:$0xff]   ;;  %v13068_v62 = vld [vmem:[%s18712_s1 + $0x110] ss:$8 sps:$4 sm:$0xff]  }
 0xbdb   : > { %v6546_v37 = vpop.f32.mrf.mxu0  ;;  %7391 = vmatprep.subr.bf16.mxu1 %v18700_v18  ;;  %v6585_v45 = vmax.f32 %v6359_v31, %v6530_v25  ;;  %v6356_v41 = vmax.f32 %v6130_v47, %v16655_v9  ;;  %v6581_v25 = vmax.f32 %v6355_v51, %v16684_v44  ;;  %v13017_v6 = vld [vmem:[%s18712_s1] ss:$8 sps:$4 sm:$0xff]   ;;  %v13073_v31 = vld [vmem:[%s18712_s1 + $0x124] ss:$8 sps:$4 sm:$0xff]   ;;  %v16891_v47 = vpop.permute.xlu1 %6824  ;;  %v13082_v51 = vld [vmem:[%s18712_s1 + $0x154] ss:$8 sps:$4 sm:$0xff]  }
 0xbdc   : > { %v6589_v19 = vmax.f32 %v6363_v30, %v6546_v37  ;;  %v13028_v37 = vld [vmem:[%s18712_s1 + $0x34] ss:$8 sps:$4 sm:$0xff]   ;;  %v13055_v30 = vld [vmem:[%s18712_s1 + $0xc4] ss:$8 sps:$4 sm:$0xff]   ;;  %v13077_v57 = vld [vmem:[%s18712_s1 + $0x140] ss:$8 sps:$4 sm:$0xff]  }
 0xbdd   : > { %v12487_v38 = vpop.f32.mrf.mxu0  ;;  %v6605_v58 = vpack.c.bf16 %v6586_v36, %v6585_v45  ;;  %v6582_v56 = vmax.f32 %v6356_v41, %v16696_v48  ;;  %v6351_v48 = vmax.f32 %v18791_v12, %v18788_v24  ;;  %v13071_v36 = vld [vmem:[%s18712_s1 + $0x120] ss:$8 sps:$4 sm:$0xff]   ;;  %v13076_v45 = vld [vmem:[%s18712_s1 + $0x134] ss:$8 sps:$4 sm:$0xff]   ;;  %v13079_v41 = vld [vmem:[%s18712_s1 + $0x144] ss:$8 sps:$4 sm:$0xff]   ;;  %v16899_v59 = vpop.permute.xlu0 %6829 }
 0xbde   : > { %v6592_v16 = vmax.f32 %v6366_v0, %v12487_v38  ;;  %7392 = vmatpush1.bf16.msra.mxu1 %v6593_v27  ;;  %v13034_v27 = vld [vmem:[%s18712_s1 + $0x54] ss:$8 sps:$4 sm:$0xff]   ;;  %v13038_v0 = vld [vmem:[%s18712_s1 + $0x70] ss:$8 sps:$4 sm:$0xff]   ;;  %v13043_v38 = vld [vmem:[%s18712_s1 + $0x84] ss:$8 sps:$4 sm:$0xff]  }
 0xbdf   : > { %v6549_v13 = vpop.f32.mrf.mxu0  ;;  %7393 = vmatprep.subr.bf16.mxu1 %v18700_v18  ;;  %v6603_v9 = vpack.c.bf16 %v6582_v56, %v6581_v25  ;;  %v13113_v3 = vld [vmem:[%s18346_s19 + $0x8] sm:$0xff]   ;;  %v16901_v49 = vpop.permute.xlu1 %6834  ;;  %v13088_v55 = vld [vmem:[%s18712_s1 + $0x174] ss:$8 sps:$4 sm:$0xff]  }
 0xbe0   : > { %v6608_v61 = vpack.c.bf16 %v6592_v16, %v6591_v46  ;;  %v6590_v33 = vmax.f32 %v6364_v39, %v6549_v13  ;;  %v13041_v39 = vld [vmem:[%s18712_s1 + $0x80] ss:$8 sps:$4 sm:$0xff]   ;;  %v13046_v46 = vld [vmem:[%s18712_s1 + $0x94] ss:$8 sps:$4 sm:$0xff]   ;;  %v13044_v16 = vld [vmem:[%s18712_s1 + $0x90] ss:$8 sps:$4 sm:$0xff]   ;;  %12488 = vmatprep.subr.bf16.mxu0 %v13113_v3 }
 0xbe1   : > { %v13049_v13 = vld [vmem:[%s18712_s1 + $0xa4] ss:$8 sps:$4 sm:$0xff]   ;;  %12489 = vmatpush3.bf16.msra.mxu0 %v13113_v3  ;;  %v16909_v56 = vpop.permute.xlu0 %6839  ;;  %v13083_v24 = vld [vmem:[%s18712_s1 + $0x160] ss:$8 sps:$4 sm:$0xff]  }
 0xbe2   : > { %7394 = vmatpush2.bf16.msra.mxu1 %v6608_v61  ;;  %v6607_v54 = vpack.c.bf16 %v6590_v33, %v6589_v19  ;;  %v13053_v61 = vld [vmem:[%s18712_s1 + $0xc0] ss:$8 sps:$4 sm:$0xff]   ;;  %v13058_v33 = vld [vmem:[%s18712_s1 + $0xd4] ss:$8 sps:$4 sm:$0xff]   ;;  %v13056_v19 = vld [vmem:[%s18712_s1 + $0xd0] ss:$8 sps:$4 sm:$0xff]  }
 0xbe3   : > { %7395 = vmatprep.subr.bf16.mxu1 %v18700_v18  ;;  %v16911_v25 = vpop.permute.xlu1 %6844 }
 0xbe6   : > { %7396 = vmatpush2.bf16.msra.mxu1 %v6607_v54  ;;  %v13062_v54 = vld [vmem:[%s18712_s1 + $0xf0] ss:$8 sps:$4 sm:$0xff]  }
 0xbe7   : > { %7397 = vmatprep.subr.bf16.mxu1 %v18700_v18 }
 0xbea   : > { %7398 = vmatpush2.bf16.msra.mxu1 %v6606_v52  ;;  %v6126_v52 = vmax.f32 %v18786_v17, %v18785_v1  ;;  %v16913_v1 = vpop.permute.xlu0 %6849  ;;  %v13080_v17 = vld [vmem:[%s18712_s1 + $0x150] ss:$8 sps:$4 sm:$0xff]  }
 0xbeb   : > { %7399 = vmatprep.subr.bf16.mxu1 %v18700_v18 }
 0xbec   : > { %v6352_v40 = vmax.f32 %v6126_v52, %v18787_v60  ;;  %v13085_v52 = vld [vmem:[%s18712_s1 + $0x164] ss:$8 sps:$4 sm:$0xff]  }
 0xbee   : > { %7400 = vmatpush2.bf16.msra.mxu1 %v6605_v58  ;;  %v6578_v44 = vmax.f32 %v6352_v40, %v16673_v5  ;;  %v13025_v5 = vld [vmem:[%s18712_s1 + $0x24] ss:$8 sps:$4 sm:$0xff]   ;;  %v13074_v58 = vld [vmem:[%s18712_s1 + $0x130] ss:$8 sps:$4 sm:$0xff]   ;;  %v16923_v60 = vpop.permute.xlu0 %6859 }
 0xbef   : > { %7401 = vmatprep.subr.bf16.mxu1 %v18700_v18 }
 0xbf2   : > { %7402 = vmatpush2.bf16.msra.mxu1 %v16704_v42  ;;  %v6577_v42 = vmax.f32 %v6351_v48, %v16662_v43  ;;  %v13020_v43 = vld [vmem:[%s18712_s1 + $0x10] ss:$8 sps:$4 sm:$0xff]   ;;  %v16933_v14 = vpop.permute.xlu0 %6869 }
 0xbf3   : > { %7403 = vmatprep.subr.bf16.mxu1 %v18700_v18  ;;  %v13086_v48 = vld [vmem:[%s18712_s1 + $0x170] ss:$8 sps:$4 sm:$0xff]  }
 0xbf4   : > { %v6601_v20 = vpack.c.bf16 %v6578_v44, %v6577_v42  ;;  %v13091_v44 = vld [vmem:[%s18712_s1 + $0x184] ss:$8 sps:$4 sm:$0xff]  }
 0xbf6   : > { %7404 = vmatpush2.bf16.msra.mxu1 %v6603_v9  ;;  %v16921_v9 = vpop.permute.xlu1 %6854  ;;  %v16943_v42 = vpop.permute.xlu0 %6879 }
 0xbf7   : > { %7405 = vmatprep.subr.bf16.mxu1 %v18700_v18 }
 0xbfa   : > { %7406 = vmatpush2.bf16.msra.mxu1 %v16680_v53  ;;  %v13023_v53 = vld [vmem:[%s18712_s1 + $0x20] ss:$8 sps:$4 sm:$0xff]   ;;  %v16925_v40 = vpop.permute.xlu1 %6864 }
 0xbfb   : > { %7407 = vmatprep.subr.bf16.mxu1 %v18700_v18 }
 0xbfe   : > { %7408 = vmatpush2.bf16.msra.mxu1 %v6601_v20  ;;  %v16935_v12 = vpop.permute.xlu1 %6874 }
 0xc01   : > { %7410 = vmatmul.mubr.bf16.vlgmr.msra.gmra.mxu1 %v13017_v6  ;;  %v16947_v6 = vpop.permute.xlu0 %6889 }
 0xc02   : > { %7417 = vmatprep.mubr.bf16.mxu1 %v13022_v23  ;;  %v16945_v20 = vpop.permute.xlu1 %6884  ;;  %v13089_v23 = vld [vmem:[%s18712_s1 + $0x180] ss:$8 sps:$4 sm:$0xff]  }
 0xc09   : > { %7418 = vmatmul.mubr.bf16.gmra.mxu1 %v13020_v43  ;;  %v13094_v43 = vld [vmem:[%s18712_s1 + $0x194] ss:$8 sps:$4 sm:$0xff]  }
 0xc0a   : > { %7425 = vmatprep.mubr.bf16.mxu1 %v13025_v5  ;;  %v16955_v5 = vpop.permute.xlu1 %6894 }
 0xc11   : > { %7426 = vmatmul.mubr.bf16.gmra.mxu1 %v13023_v53 }
 0xc12   : > { %7433 = vmatprep.mubr.bf16.mxu1 %v13028_v37  ;;  %v6740_v37 = vpop.permute.xlu0 %6739 }
 0xc19   : > { %7434 = vmatmul.mubr.bf16.gmra.mxu1 %v13026_v63 }
 0xc1a   : > { %7441 = vmatprep.mubr.bf16.mxu1 %v13031_v2 }
 0xc21   : > { %7442 = vmatmul.mubr.bf16.gmra.mxu1 %v13029_v10  ;;  %v6745_v10 = vpop.permute.xlu1 %6744 }
 0xc22   : > { %7449 = vmatprep.mubr.bf16.mxu1 %v13034_v27 }
 0xc29   : > { %7450 = vmatmul.mubr.bf16.gmra.mxu1 %v13032_v34  ;;  %v13092_v34 = vld [vmem:[%s18712_s1 + $0x190] ss:$8 sps:$4 sm:$0xff]  }
 0xc2a   : > { %7457 = vmatprep.mubr.bf16.mxu1 %v13037_v22 }
 0xc31   : > { %7458 = vmatmul.mubr.bf16.gmra.mxu1 %v13035_v35  ;;  %v13097_v35 = vld [vmem:[%s18712_s1 + $0x1a4] ss:$8 sps:$4 sm:$0xff]  }
 0xc32   : > { %7465 = vmatprep.mubr.bf16.mxu1 %v13040_v50 }
 0xc39   : > { %7466 = vmatmul.mubr.bf16.gmra.mxu1 %v13038_v0 }
 0xc3a   : > { %7473 = vmatprep.mubr.bf16.mxu1 %v13043_v38 }
 0xc41   : > { %7474 = vmatmul.mubr.bf16.gmra.mxu1 %v13041_v39 }
 0xc42   : > { %7481 = vmatprep.mubr.bf16.mxu1 %v13046_v46 }
 0xc49   : > { %7482 = vmatmul.mubr.bf16.gmra.mxu1 %v13044_v16  ;;  %v16968_v16 = vld [vmem:[%s18346_s19] sm:$0xff]  }
 0xc4a   : > { %7489 = vmatprep.mubr.bf16.mxu1 %v13049_v13  ;;  %v6750_v13 = vpop.permute.xlu0 %6749  ;;  %12506 = vmatprep.subr.bf16.mxu0 %v16968_v16 }
 0xc51   : > { %7490 = vmatmul.mubr.bf16.gmra.mxu1 %v13047_v11 }
 0xc52   : > { %7497 = vmatprep.mubr.bf16.mxu1 %v13052_v32 }
 0xc59   : > { %7498 = vmatmul.mubr.bf16.gmra.mxu1 %v13050_v21  ;;  %v6755_v21 = vpop.permute.xlu1 %6754 }
 0xc5a   : > { %7505 = vmatprep.mubr.bf16.mxu1 %v13055_v30 }
 0xc61   : > { %7506 = vmatmul.mubr.bf16.gmra.mxu1 %v13053_v61  ;;  %v13095_v61 = vld [vmem:[%s18712_s1 + $0x1a0] ss:$8 sps:$4 sm:$0xff]  }
 0xc62   : > { %7513 = vmatprep.mubr.bf16.mxu1 %v13058_v33 }
 0xc69   : > { %7514 = vmatmul.mubr.bf16.gmra.mxu1 %v13056_v19  ;;  %v13100_v19 = vld [vmem:[%s18712_s1 + $0x1b4] ss:$8 sps:$4 sm:$0xff]  }
 0xc6a   : > { %7521 = vmatprep.mubr.bf16.mxu1 %v13061_v4 }
 0xc71   : > { %7522 = vmatmul.mubr.bf16.gmra.mxu1 %v13059_v26 }
 0xc72   : > { %7529 = vmatprep.mubr.bf16.mxu1 %v13064_v29 }
 0xc79   : > { %7530 = vmatmul.mubr.bf16.gmra.mxu1 %v13062_v54 }
 0xc7a   : > { %7537 = vmatprep.mubr.bf16.mxu1 %v13067_v28 }
 0xc81   : > { %7538 = vmatmul.mubr.bf16.gmra.mxu1 %v13065_v7  ;;  %v6760_v7 = vpop.permute.xlu0 %6759 }
 0xc82   : > { %7545 = vmatprep.mubr.bf16.mxu1 %v13070_v8 }
 0xc89   : > { %7546 = vmatmul.mubr.bf16.gmra.mxu1 %v13068_v62 }
 0xc8a   : > { %7553 = vmatprep.mubr.bf16.mxu1 %v13073_v31  ;;  %v6765_v31 = vpop.permute.xlu1 %6764 }
 0xc91   : > { %7554 = vmatmul.mubr.bf16.gmra.mxu1 %v13071_v36 }
 0xc92   : > { %7561 = vmatprep.mubr.bf16.mxu1 %v13076_v45  ;;  %v13098_v45 = vld [vmem:[%s18712_s1 + $0x1b0] ss:$8 sps:$4 sm:$0xff]  }
 0xc99   : > { %7562 = vmatmul.mubr.bf16.gmra.mxu1 %v13074_v58  ;;  %v13103_v58 = vld [vmem:[%s18712_s1 + $0x1c4] ss:$8 sps:$4 sm:$0xff]  }
 0xc9a   : > { %7569 = vmatprep.mubr.bf16.mxu1 %v13079_v41 }
 0xca1   : > { %7570 = vmatmul.mubr.bf16.gmra.mxu1 %v13077_v57 }
 0xca2   : > { %7577 = vmatprep.mubr.bf16.mxu1 %v13082_v51 }
 0xca9   : > { %7578 = vmatmul.mubr.bf16.gmra.mxu1 %v13080_v17 }
 0xcaa   : > { %7585 = vmatprep.mubr.bf16.mxu1 %v13085_v52 }
 0xcb1   : > { %7586 = vmatmul.mubr.bf16.gmra.mxu1 %v13083_v24  ;;  %v6770_v24 = vpop.permute.xlu0 %6769 }
 0xcb2   : > { %7593 = vmatprep.mubr.bf16.mxu1 %v13088_v55 }
 0xcb9   : > { %7594 = vmatmul.mubr.bf16.gmra.mxu1 %v13086_v48 }
 0xcba   : > { %7601 = vmatprep.mubr.bf16.mxu1 %v13091_v44  ;;  %v6775_v44 = vpop.permute.xlu1 %6774 }
 0xcc1   : > { %v7411_v53 = vpop.f32.mrf.mxu1  ;;  %7602 = vmatmul.mubr.bf16.gmra.mxu1 %v13089_v23 }
 0xcc2   : > { %7609 = vmatprep.mubr.bf16.mxu1 %v13094_v43  ;;  %v7412_v2 = vadd.f32 %v7411_v53, %v6740_v37  ;;  %v13101_v43 = vld [vmem:[%s18712_s1 + $0x1c0] ss:$8 sps:$4 sm:$0xff]   ;;  %v13106_v37 = vld [vmem:[%s18712_s1 + $0x1d4] ss:$8 sps:$4 sm:$0xff]  }
 0xcc3   : > { %v7413_v63 = vpop.f32.mrf.mxu1 }
 0xcc4   : > { %v7666_v0 = vmax.f32 %v7412_v2, 0.0 }
 0xcc5   : > { %v7414_v27 = vpop.f32.mrf.mxu1 }
 0xcc6   : > { %v7415_v22 = vadd.f32 %v7414_v27, %v6745_v10 }
 0xcc7   : > { %v7416_v50 = vpop.f32.mrf.mxu1 }
 0xcc8   : > { %v7667_v38 = vmax.f32 %v7415_v22, 0.0  ;;  %v6780_v22 = vpop.permute.xlu0 %6779 }
 0xcc9   : > { %v7419_v39 = vpop.f32.mrf.mxu1  ;;  %7610 = vmatmul.mubr.bf16.gmra.mxu1 %v13092_v34 }
 0xcca   : > { %v16963_v46 = vpack.c.bf16 %v7667_v38, %v7666_v0  ;;  %7617 = vmatprep.mubr.bf16.mxu1 %v13097_v35  ;;  %v7420_v32 = vadd.f32 %v7419_v39, %v6750_v13  ;;  %v6785_v0 = vpop.permute.xlu1 %6784  ;;  %v13104_v39 = vld [vmem:[%s18712_s1 + $0x1d0] ss:$8 sps:$4 sm:$0xff]  }
 0xccb   : > { %v7421_v11 = vpop.f32.mrf.mxu1 }
 0xccc   : > { %v7668_v26 = vmax.f32 %v7420_v32, 0.0  ;;  %v13109_v11 = vld [vmem:[%s18712_s1 + $0x1e4] ss:$8 sps:$4 sm:$0xff]  }
 0xccd   : > { %v7422_v30 = vpop.f32.mrf.mxu1 }
 0xcce   : > { %v7423_v33 = vadd.f32 %v7422_v30, %v6755_v21 }
 0xccf   : > { %v7424_v4 = vpop.f32.mrf.mxu1 }
 0xcd0   : > { %v7669_v29 = vmax.f32 %v7423_v33, 0.0 }
 0xcd1   : > { %v7427_v54 = vpop.f32.mrf.mxu1  ;;  %7618 = vmatmul.mubr.bf16.gmra.mxu1 %v13095_v61 }
 0xcd2   : > { %v16977_v28 = vpack.c.bf16 %v7669_v29, %v7668_v26  ;;  %7625 = vmatprep.mubr.bf16.mxu1 %v13100_v19  ;;  %v7428_v62 = vadd.f32 %v7427_v54, %v6760_v7  ;;  %v6790_v19 = vpop.permute.xlu0 %6789  ;;  %v6795_v29 = vpop.permute.xlu1 %6794  ;;  %v13107_v7 = vld [vmem:[%s18712_s1 + $0x1e0] ss:$8 sps:$4 sm:$0xff]  }
 0xcd3   : > { %v7429_v8 = vpop.f32.mrf.mxu1 }
 0xcd4   : > { %v7670_v57 = vmax.f32 %v7428_v62, 0.0  ;;  %v13112_v62 = vld [vmem:[%s18712_s1 + $0x1f4] ss:$8 sps:$4 sm:$0xff]  }
 0xcd5   : > { %v7430_v36 = vpop.f32.mrf.mxu1 }
 0xcd6   : > { %v7431_v3 = vadd.f32 %v7430_v36, %v6765_v31 }
 0xcd7   : > { %v7432_v41 = vpop.f32.mrf.mxu1 }
 0xcd8   : > { %v7671_v51 = vmax.f32 %v7431_v3, 0.0  ;;  %v6800_v41 = vpop.permute.xlu0 %6799 }
 0xcd9   : > { %v7435_v17 = vpop.f32.mrf.mxu1  ;;  %7626 = vmatmul.mubr.bf16.gmra.mxu1 %v13098_v45 }
 0xcda   : > { %v16985_v52 = vpack.c.bf16 %v7671_v51, %v7670_v57  ;;  %7633 = vmatprep.mubr.bf16.mxu1 %v13103_v58  ;;  %v7436_v48 = vadd.f32 %v7435_v17, %v6770_v24  ;;  %v6805_v17 = vpop.permute.xlu1 %6804 }
 0xcdb   : > { %v7437_v55 = vpop.f32.mrf.mxu1 }
 0xcdc   : > { %v7672_v2 = vmax.f32 %v7436_v48, 0.0  ;;  %v13110_v55 = vld [vmem:[%s18712_s1 + $0x1f0] ss:$8 sps:$4 sm:$0xff]  }
 0xcdd   : > { %v7438_v23 = vpop.f32.mrf.mxu1 }
 0xcde   : > { %v7439_v53 = vadd.f32 %v7438_v23, %v6775_v44 }
 0xcdf   : > { %v7440_v63 = vpop.f32.mrf.mxu1 }
 0xce0   : > { %v7673_v10 = vmax.f32 %v7439_v53, 0.0  ;;  %v6810_v63 = vpop.permute.xlu0 %6809 }
 0xce1   : > { %v7443_v27 = vpop.f32.mrf.mxu1  ;;  %7634 = vmatmul.mubr.bf16.gmra.mxu1 %v13101_v43 }
 0xce2   : > { %v16993_v34 = vpack.c.bf16 %v7673_v10, %v7672_v2  ;;  %7641 = vmatprep.mubr.bf16.mxu1 %v13106_v37  ;;  %v7444_v50 = vadd.f32 %v7443_v27, %v6780_v22  ;;  %v6815_v27 = vpop.permute.xlu1 %6814 }
 0xce3   : > { %v7445_v35 = vpop.f32.mrf.mxu1 }
 0xce4   : > { %v7674_v21 = vmax.f32 %v7444_v50, 0.0 }
 0xce5   : > { %v7446_v38 = vpop.f32.mrf.mxu1 }
 0xce6   : > { %v7447_v13 = vadd.f32 %v7446_v38, %v6785_v0 }
 0xce7   : > { %v7448_v32 = vpop.f32.mrf.mxu1 }
 0xce8   : > { %v7675_v30 = vmax.f32 %v7447_v13, 0.0 }
 0xce9   : > { %v7451_v61 = vpop.f32.mrf.mxu1  ;;  %7642 = vmatmul.mubr.bf16.gmra.mxu1 %v13104_v39 }
 0xcea   : > { %v17001_v33 = vpack.c.bf16 %v7675_v30, %v7674_v21  ;;  %7649 = vmatprep.mubr.bf16.mxu1 %v13109_v11  ;;  %v7452_v26 = vadd.f32 %v7451_v61, %v6790_v19 }
 0xceb   : > { %v7453_v4 = vpop.f32.mrf.mxu1 }
 0xcec   : > { %v7676_v36 = vmax.f32 %v7452_v26, 0.0 }
 0xced   : > { %v7454_v54 = vpop.f32.mrf.mxu1 }
 0xcee   : > { %v7455_v8 = vadd.f32 %v7454_v54, %v6795_v29 }
 0xcef   : > { %v7456_v31 = vpop.f32.mrf.mxu1 }
 0xcf0   : > { %v7677_v45 = vmax.f32 %v7455_v8, 0.0 }
 0xcf1   : > { %v7459_v3 = vpop.f32.mrf.mxu1  ;;  %7650 = vmatmul.mubr.bf16.gmra.mxu1 %v13107_v7 }
 0xcf2   : > { %v17009_v58 = vpack.c.bf16 %v7677_v45, %v7676_v36  ;;  %7657 = vmatprep.mubr.bf16.mxu1 %v13112_v62  ;;  %v7460_v51 = vadd.f32 %v7459_v3, %v6800_v41 }
 0xcf3   : > { %v7461_v57 = vpop.f32.mrf.mxu1 }
 0xcf4   : > { %v7678_v23 = vmax.f32 %v7460_v51, 0.0 }
 0xcf5   : > { %v7462_v24 = vpop.f32.mrf.mxu1 }
 0xcf6   : > { %v7463_v48 = vadd.f32 %v7462_v24, %v6805_v17 }
 0xcf7   : > { %v7464_v44 = vpop.f32.mrf.mxu1 }
 0xcf8   : > { %v7679_v43 = vmax.f32 %v7463_v48, 0.0 }
 0xcf9   : > { %v7467_v53 = vpop.f32.mrf.mxu1  ;;  %7658 = vmatmul.mubr.bf16.gmra.mxu1 %v13110_v55 }
 0xcfa   : > { %v17014_v37 = vpack.c.bf16 %v7679_v43, %v7678_v23  ;;  %9077 = vmatprep.mubr.bf16.mxu1 %v18700_v18  ;;  %v7468_v10 = vadd.f32 %v7467_v53, %v6810_v63 }
 0xcfb   : > { %v7469_v2 = vpop.f32.mrf.mxu1 }
 0xcfc   : > { %v7680_v0 = vmax.f32 %v7468_v10, 0.0 }
 0xcfd   : > { %v7470_v22 = vpop.f32.mrf.mxu1 }
 0xcfe   : > { %v7471_v35 = vadd.f32 %v7470_v22, %v6815_v27 }
 0xcff   : > { %v7472_v50 = vpop.f32.mrf.mxu1 }
 0xd00   : > { %v7681_v38 = vmax.f32 %v7471_v35, 0.0 }
 0xd01   : > { %v7475_v39 = vpop.f32.mrf.mxu1 }
 0xd02   : > { %v17017_v13 = vpack.c.bf16 %v7681_v38, %v7680_v0  ;;  %v7476_v32 = vadd.f32 %v7475_v39, %v16889_v15 }
 0xd03   : > { %v7477_v11 = vpop.f32.mrf.mxu1 }
 0xd04   : > { %v7682_v19 = vmax.f32 %v7476_v32, 0.0 }
 0xd05   : > { %v7478_v21 = vpop.f32.mrf.mxu1 }
 0xd06   : > { %v7479_v30 = vadd.f32 %v7478_v21, %v16891_v47  ;;  %v17027_v47 = vld [vmem:[%s18346_s19 + $0x10] sm:$0xff]  }
 0xd07   : > { %v7480_v61 = vpop.f32.mrf.mxu1 }
 0xd08   : > { %v7683_v4 = vmax.f32 %v7479_v30, 0.0 }
 0xd09   : > { %v7483_v26 = vpop.f32.mrf.mxu1 }
 0xd0a   : > { %v7738_v29 = vpack.c.bf16 %v7683_v4, %v7682_v19  ;;  %v7484_v7 = vadd.f32 %v7483_v26, %v16899_v59 }
 0xd0b   : > { %v7485_v54 = vpop.f32.mrf.mxu1 }
 0xd0c   : > { %12490 = vmatprep.mubr.msk.bf16.mxu0 %vm18792_vm3, %v7738_v29  ;;  %v7684_v36 = vmax.f32 %v7484_v7, 0.0  ;;  %vm18801_vm3 = vmmov %vm18793_vm0 }
 0xd0d   : > { %v7486_v8 = vpop.f32.mrf.mxu1 }
 0xd0e   : > { %v7487_v62 = vadd.f32 %v7486_v8, %v16901_v49 }
 0xd0f   : > { %v7488_v31 = vpop.f32.mrf.mxu1 }
 0xd10   : > { %v7685_v45 = vmax.f32 %v7487_v62, 0.0 }
 0xd11   : > { %v7491_v15 = vpop.f32.mrf.mxu1 }
 0xd12   : > { %v7739_v3 = vpack.c.bf16 %v7685_v45, %v7684_v36  ;;  %v7492_v57 = vadd.f32 %v7491_v15, %v16909_v56 }
 0xd13   : > { %v7493_v41 = vpop.f32.mrf.mxu1 }
 0xd14   : > { %12491 = vmatmul.mubr.msk.bf16.vlgmr.msra.gmra.mxu0 %vm18793_vm0, %v7739_v3  ;;  %v7686_v17 = vmax.f32 %v7492_v57, 0.0 }
 0xd15   : > { %v7494_v59 = vpop.f32.mrf.mxu1  ;;  %12507 = vmatpush3.bf16.msra.mxu0 %v16968_v16 }
 0xd16   : > { %v7495_v49 = vadd.f32 %v7494_v59, %v16911_v25  ;;  %12524 = vmatprep.subr.bf16.mxu0 %v17027_v47 }
 0xd17   : > { %v7496_v51 = vpop.f32.mrf.mxu1 }
 0xd18   : > { %v7687_v24 = vmax.f32 %v7495_v49, 0.0 }
 0xd19   : > { %v7499_v55 = vpop.f32.mrf.mxu1 }
 0xd1a   : > { %v7740_v48 = vpack.c.bf16 %v7687_v24, %v7686_v17  ;;  %v7500_v23 = vadd.f32 %v7499_v55, %v16913_v1  ;;  %v6900_v55 = vpop.permute.xlu0 %6899 }
 0xd1b   : > { %v7501_v44 = vpop.f32.mrf.mxu1 }
 0xd1c   : > { %12494 = vmatprep.mubr.msk.bf16.mxu0 %vm18794_vm14, %v7740_v48  ;;  %v7688_v63 = vmax.f32 %v7500_v23, 0.0  ;;  %vm18802_vm14 = vmmov %vm18793_vm0 }
 0xd1d   : > { %v7502_v56 = vpop.f32.mrf.mxu1 }
 0xd1e   : > { %v7503_v43 = vadd.f32 %v7502_v56, %v16921_v9  ;;  %v6910_v56 = vpop.permute.xlu0 %6909 }
 0xd1f   : > { %v7504_v53 = vpop.f32.mrf.mxu1 }
 0xd20   : > { %v7689_v16 = vmax.f32 %v7503_v43, 0.0 }
 0xd21   : > { %v7507_v2 = vpop.f32.mrf.mxu1 }
 0xd22   : > { %v7741_v25 = vpack.c.bf16 %v7689_v16, %v7688_v63  ;;  %v7508_v27 = vadd.f32 %v7507_v2, %v16923_v60 }
 0xd23   : > { %v7509_v10 = vpop.f32.mrf.mxu1 }
 0xd24   : > { %12495 = vmatmul.mubr.msk.bf16.gmra.mxu0 %vm18795_vm10, %v7741_v25  ;;  %v7690_v1 = vmax.f32 %v7508_v27, 0.0  ;;  %vm18803_vm10 = vmmov %vm18793_vm0 }
 0xd25   : > { %v7510_v22 = vpop.f32.mrf.mxu1 }
 0xd26   : > { %v7511_v35 = vadd.f32 %v7510_v22, %v16925_v40 }
 0xd27   : > { %v7512_v50 = vpop.f32.mrf.mxu1 }
 0xd28   : > { %v7691_v0 = vmax.f32 %v7511_v35, 0.0 }
 0xd29   : > { %v7515_v38 = vpop.f32.mrf.mxu1 }
 0xd2a   : > { %v7742_v39 = vpack.c.bf16 %v7691_v0, %v7690_v1  ;;  %v7516_v9 = vadd.f32 %v7515_v38, %v16933_v14 }
 0xd2b   : > { %v7517_v11 = vpop.f32.mrf.mxu1 }
 0xd2c   : > { %12498 = vmatprep.mubr.msk.bf16.mxu0 %vm18796_vm1, %v7742_v39  ;;  %v7692_v60 = vmax.f32 %v7516_v9, 0.0  ;;  %vm18804_vm1 = vmmov %vm18793_vm0 }
 0xd2d   : > { %v7518_v32 = vpop.f32.mrf.mxu1 }
 0xd2e   : > { %v7519_v21 = vadd.f32 %v7518_v32, %v16935_v12 }
 0xd2f   : > { %v7520_v30 = vpop.f32.mrf.mxu1 }
 0xd30   : > { %v7693_v61 = vmax.f32 %v7519_v21, 0.0 }
 0xd31   : > { %v7523_v19 = vpop.f32.mrf.mxu1 }
 0xd32   : > { %v7743_v4 = vpack.c.bf16 %v7693_v61, %v7692_v60  ;;  %v7524_v40 = vadd.f32 %v7523_v19, %v16943_v42 }
 0xd33   : > { %v7525_v26 = vpop.f32.mrf.mxu1 }
 0xd34   : > { %12499 = vmatmul.mubr.msk.bf16.gmra.mxu0 %vm18797_vm11, %v7743_v4  ;;  %v7694_v14 = vmax.f32 %v7524_v40, 0.0  ;;  %vm18805_vm11 = vmmov %vm18793_vm0 }
 0xd35   : > { %v7526_v29 = vpop.f32.mrf.mxu1 }
 0xd36   : > { %v7527_v54 = vadd.f32 %v7526_v29, %v16945_v20 }
 0xd37   : > { %v7528_v7 = vpop.f32.mrf.mxu1 }
 0xd38   : > { %v7695_v8 = vmax.f32 %v7527_v54, 0.0 }
 0xd39   : > { %v7531_v62 = vpop.f32.mrf.mxu1 }
 0xd3a   : > { %v7744_v31 = vpack.c.bf16 %v7695_v8, %v7694_v14  ;;  %v7532_v12 = vadd.f32 %v7531_v62, %v16947_v6  ;;  %v13116_v6 = vld [vmem:[%s18346_s19 + $0x18] sm:$0xff]  }
 0xd3b   : > { %v7533_v36 = vpop.f32.mrf.mxu1 }
 0xd3c   : > { %12502 = vmatprep.mubr.msk.bf16.mxu0 %vm18798_vm5, %v7744_v31  ;;  %v7696_v42 = vmax.f32 %v7532_v12, 0.0  ;;  %vm18806_vm5 = vmmov %vm18793_vm0 }
 0xd3d   : > { %v7534_v45 = vpop.f32.mrf.mxu1 }
 0xd3e   : > { %v7535_v15 = vadd.f32 %v7534_v45, %v16955_v5 }
 0xd3f   : > { %v7536_v3 = vpop.f32.mrf.mxu1 }
 0xd40   : > { %v7697_v41 = vmax.f32 %v7535_v15, 0.0 }
 0xd41   : > { %v7539_v57 = vpop.f32.mrf.mxu1 }
 0xd42   : > { %v7745_v59 = vpack.c.bf16 %v7697_v41, %v7696_v42  ;;  %v7540_v25 = vadd.f32 %v7539_v57, %v6900_v55 }
 0xd43   : > { %v7541_v49 = vpop.f32.mrf.mxu1 }
 0xd44   : > { %12503 = vmatmul.mubr.msk.bf16.gmra.mxu0 %vm18799_vm4, %v7745_v59  ;;  %v7698_v35 = vmax.f32 %v7540_v25, 0.0  ;;  %vm18807_vm4 = vmmov %vm18793_vm0 }
 0xd45   : > { %v7542_v20 = vpop.f32.mrf.mxu1  ;;  %12508 = vmatprep.mubr.msk.bf16.mxu0 %vm18800_vm9, %v16963_v46  ;;  %v6905_v46 = vpop.permute.xlu1 %6904  ;;  %vm18808_vm9 = vmmov %vm18793_vm0 }
 0xd46   : > { %v7543_v16 = vadd.f32 %v7542_v20, %v6905_v46 }
 0xd47   : > { %v7544_v51 = vpop.f32.mrf.mxu1 }
 0xd49   : > { %v7547_v17 = vpop.f32.mrf.mxu1 }
 0xd4a   : > { %v7548_v11 = vadd.f32 %v7547_v17, %v6910_v56 }
 0xd4b   : > { %v7549_v24 = vpop.f32.mrf.mxu1 }
 0xd4c   : > { %12509 = vmatmul.mubr.msk.bf16.vlgmr.msra.gmra.mxu0 %vm18801_vm3, %v16977_v28  ;;  %v6915_v28 = vpop.permute.xlu1 %6914  ;;  %v7700_v60 = vmax.f32 %v7548_v11, 0.0  ;;  %vm18809_vm3 = vmmov %vm18793_vm0 }
 0xd4d   : > { %v7550_v5 = vpop.f32.mrf.mxu1  ;;  %12512 = vmatprep.mubr.msk.bf16.mxu0 %vm18793_vm0, %v16985_v52  ;;  %12525 = vmatpush3.bf16.msra.mxu0 %v17027_v47  ;;  %v6920_v52 = vpop.permute.xlu0 %6919 }
 0xd4e   : > { %12542 = vmatprep.subr.bf16.mxu0 %v13116_v6  ;;  %v7551_v50 = vadd.f32 %v7550_v5, %v6915_v28 }
 0xd4f   : > { %v7552_v48 = vpop.f32.mrf.mxu1 }
 0xd50   : > { %v6925_v2 = vpop.permute.xlu1 %6924  ;;  %v7701_v32 = vmax.f32 %v7551_v50, 0.0 }
 0xd51   : > { %v7555_v44 = vpop.f32.mrf.mxu1  ;;  %v6930_v22 = vpop.permute.xlu0 %6929 }
 0xd52   : > { %v7747_v26 = vpack.c.bf16 %v7701_v32, %v7700_v60 }
 0xd53   : > { %v7557_v23 = vpop.f32.mrf.mxu1 }
 0xd54   : > { %12513 = vmatmul.mubr.msk.bf16.gmra.mxu0 %vm18802_vm14, %v16993_v34  ;;  %v7699_v34 = vmax.f32 %v7543_v16, 0.0  ;;  %v6935_v1 = vpop.permute.xlu1 %6934  ;;  %vm18810_vm14 = vmmov %vm18793_vm0 }
 0xd55   : > { %v7558_v43 = vpop.f32.mrf.mxu1  ;;  %12516 = vmatprep.mubr.msk.bf16.mxu0 %vm18803_vm10, %v17001_v33  ;;  %vm18811_vm10 = vmmov %vm18793_vm0 }
 0xd56   : > { %v7746_v0 = vpack.c.bf16 %v7699_v34, %v7698_v35  ;;  %v7559_v38 = vadd.f32 %v7558_v43, %v6925_v2 }
 0xd57   : > { %v7560_v53 = vpop.f32.mrf.mxu1 }
 0xd58   : > { %v7703_v21 = vmax.f32 %v7559_v38, 0.0  ;;  %v6945_v61 = vpop.permute.xlu1 %6944 }
 0xd59   : > { %v7563_v63 = vpop.f32.mrf.mxu1 }
 0xd5a   : > { %v7564_v14 = vadd.f32 %v7563_v63, %v6930_v22 }
 0xd5b   : > { %v7565_v47 = vpop.f32.mrf.mxu1 }
 0xd5c   : > { %12517 = vmatmul.mubr.msk.bf16.gmra.mxu0 %vm18804_vm1, %v17009_v58  ;;  %v7556_v58 = vadd.f32 %v7555_v44, %v6920_v52  ;;  %v6955_v36 = vpop.permute.xlu1 %6954  ;;  %v7704_v15 = vmax.f32 %v7564_v14, 0.0  ;;  %vm18812_vm1 = vmmov %vm18793_vm0 }
 0xd5d   : > { %v7566_v10 = vpop.f32.mrf.mxu1  ;;  %12520 = vmatprep.mubr.msk.bf16.mxu0 %vm18805_vm11, %v17014_v37  ;;  %v6940_v37 = vpop.permute.xlu0 %6939  ;;  %vm18813_vm11 = vmmov %vm18793_vm0 }
 0xd5e   : > { %v7702_v19 = vmax.f32 %v7556_v58, 0.0  ;;  %v7567_v40 = vadd.f32 %v7566_v10, %v6935_v1 }
 0xd5f   : > { %v7568_v27 = vpop.f32.mrf.mxu1 }
 0xd60   : > { %v7748_v29 = vpack.c.bf16 %v7703_v21, %v7702_v19  ;;  %v7705_v31 = vmax.f32 %v7567_v40, 0.0  ;;  %v6965_v24 = vpop.permute.xlu1 %6964 }
 0xd61   : > { %v7571_v33 = vpop.f32.mrf.mxu1 }
 0xd62   : > { %v7572_v8 = vadd.f32 %v7571_v33, %v6940_v37  ;;  %v7749_v41 = vpack.c.bf16 %v7705_v31, %v7704_v15 }
 0xd63   : > { %v7573_v39 = vpop.f32.mrf.mxu1 }
 0xd64   : > { %12521 = vmatmul.mubr.msk.bf16.gmra.mxu0 %vm18806_vm5, %v17017_v13  ;;  %v6950_v13 = vpop.permute.xlu0 %6949  ;;  %v7706_v3 = vmax.f32 %v7572_v8, 0.0  ;;  %v6975_v16 = vpop.permute.xlu1 %6974  ;;  %vm18814_vm5 = vmmov %vm18793_vm0 }
 0xd65   : > { %v7574_v9 = vpop.f32.mrf.mxu1  ;;  %12526 = vmatprep.mubr.msk.bf16.mxu0 %vm18807_vm4, %v7746_v0  ;;  %vm18815_vm4 = vmmov %vm18793_vm0 }
 0xd66   : > { %v7575_v54 = vadd.f32 %v7574_v9, %v6945_v61 }
 0xd67   : > { %v7576_v30 = vpop.f32.mrf.mxu1 }
 0xd68   : > { %v7707_v12 = vmax.f32 %v7575_v54, 0.0  ;;  %v6960_v59 = vpop.permute.xlu0 %6959  ;;  %v6985_v1 = vpop.permute.xlu1 %6984 }
 0xd69   : > { %v7579_v4 = vpop.f32.mrf.mxu1 }
 0xd6a   : > { %v7750_v49 = vpack.c.bf16 %v7707_v12, %v7706_v3  ;;  %v7580_v51 = vadd.f32 %v7579_v4, %v6950_v13 }
 0xd6b   : > { %v7581_v7 = vpop.f32.mrf.mxu1 }
 0xd6c   : > { %12527 = vmatmul.mubr.msk.bf16.vlgmr.msra.gmra.mxu0 %vm18808_vm9, %v7747_v26  ;;  %v7708_v46 = vmax.f32 %v7580_v51, 0.0  ;;  %v6970_v53 = vpop.permute.xlu0 %6969  ;;  %v6995_v60 = vpop.permute.xlu1 %6994  ;;  %vm18816_vm9 = vmmov %vm18793_vm0 }
 0xd6d   : > { %v7582_v62 = vpop.f32.mrf.mxu1  ;;  %12530 = vmatprep.mubr.msk.bf16.mxu0 %vm18809_vm3, %v7748_v29  ;;  %12543 = vmatpush3.bf16.msra.mxu0 %v13116_v6  ;;  %vm18817_vm3 = vmmov %vm18793_vm0 }
 0xd6e   : > { %v7583_v57 = vadd.f32 %v7582_v62, %v6955_v36 }
 0xd6f   : > { %v7584_v45 = vpop.f32.mrf.mxu1 }
 0xd70   : > { %v7709_v6 = vmax.f32 %v7583_v57, 0.0  ;;  %v6980_v35 = vpop.permute.xlu0 %6979  ;;  %v7005_v8 = vpop.permute.xlu1 %7004 }
 0xd71   : > { %v7587_v42 = vpop.f32.mrf.mxu1 }
 0xd72   : > { %v7588_v17 = vadd.f32 %v7587_v42, %v6960_v59  ;;  %v7751_v43 = vpack.c.bf16 %v7709_v6, %v7708_v46 }
 0xd73   : > { %v7589_v20 = vpop.f32.mrf.mxu1 }
 0xd74   : > { %12531 = vmatmul.mubr.msk.bf16.gmra.mxu0 %vm18793_vm0, %v7749_v41  ;;  %v7710_v44 = vmax.f32 %v7588_v17, 0.0  ;;  %v6990_v37 = vpop.permute.xlu0 %6989  ;;  %v7015_v59 = vpop.permute.xlu1 %7014 }
 0xd75   : > { %v7590_v5 = vpop.f32.mrf.mxu1  ;;  %12534 = vmatprep.mubr.msk.bf16.mxu0 %vm18810_vm14, %v7750_v49  ;;  %vm18818_vm14 = vmmov %vm18793_vm0 }
 0xd76   : > { %v7591_v55 = vadd.f32 %v7590_v5, %v6965_v24 }
 0xd77   : > { %v7592_v48 = vpop.f32.mrf.mxu1 }
 0xd78   : > { %v7711_v23 = vmax.f32 %v7591_v55, 0.0  ;;  %v7000_v7 = vpop.permute.xlu0 %6999 }
 0xd79   : > { %v7595_v56 = vpop.f32.mrf.mxu1 }
 0xd7a   : > { %v7752_v28 = vpack.c.bf16 %v7711_v23, %v7710_v44  ;;  %v7596_v52 = vadd.f32 %v7595_v56, %v6970_v53  ;;  %v7025_v44 = vpop.permute.xlu1 %7024 }
 0xd7b   : > { %v7597_v63 = vpop.f32.mrf.mxu1 }
 0xd7c   : > { %12535 = vmatmul.mubr.msk.bf16.gmra.mxu0 %vm18811_vm10, %v7751_v43  ;;  %v7712_v10 = vmax.f32 %v7596_v52, 0.0  ;;  %v7010_v42 = vpop.permute.xlu0 %7009  ;;  %vm18819_vm10 = vmmov %vm18793_vm0 }
 0xd7d   : > { %v7598_v47 = vpop.f32.mrf.mxu1  ;;  %12538 = vmatprep.mubr.msk.bf16.mxu0 %vm18812_vm1, %v7752_v28  ;;  %vm18820_vm1 = vmmov %vm18793_vm0 }
 0xd7e   : > { %v7599_v2 = vadd.f32 %v7598_v47, %v6975_v16 }
 0xd7f   : > { %v7600_v25 = vpop.f32.mrf.mxu1 }
 0xd80   : > { %v7713_v34 = vmax.f32 %v7599_v2, 0.0  ;;  %v7020_v55 = vpop.permute.xlu0 %7019  ;;  %v7035_v25 = vpop.permute.xlu1 %7034 }
 0xd81   : > { %v7603_v27 = vpop.f32.mrf.mxu1 }
 0xd82   : > { %v7753_v22 = vpack.c.bf16 %v7713_v34, %v7712_v10  ;;  %v7604_v50 = vadd.f32 %v7603_v27, %v6980_v35 }
 0xd83   : > { %v7605_v33 = vpop.f32.mrf.mxu1 }
 0xd84   : > { %12539 = vmatmul.mubr.msk.bf16.gmra.mxu0 %vm18813_vm11, %v7753_v22  ;;  %v7714_v11 = vmax.f32 %v7604_v50, 0.0  ;;  %v7030_v16 = vpop.permute.xlu0 %7029  ;;  %vm18822_vm11 = vcmask 138240  }
 0xd85   : > { %v7606_v0 = vpop.f32.mrf.mxu1 }
 0xd86   : > { %v7607_v38 = vadd.f32 %v7606_v0, %v6985_v1 }
 0xd87   : > { %v7608_v39 = vpop.f32.mrf.mxu1 }
 0xd88   : > { %v7715_v58 = vmax.f32 %v7607_v38, 0.0  ;;  %v7040_v1 = vpop.permute.xlu0 %7039  ;;  %v7045_v39 = vpop.permute.xlu1 %7044 }
 0xd89   : > { %v7611_v9 = vpop.f32.mrf.mxu1 }
 0xd8a   : > { %v7754_v32 = vpack.c.bf16 %v7715_v58, %v7714_v11  ;;  %v7612_v30 = vadd.f32 %v7611_v9, %v6990_v37 }
 0xd8b   : > { %v7613_v21 = vpop.f32.mrf.mxu1 }
 0xd8c   : > { %12544 = vmatprep.mubr.msk.bf16.mxu0 %vm18814_vm5, %v7754_v32  ;;  %v7716_v26 = vmax.f32 %v7612_v30, 0.0  ;;  %vm18823_vm5 = vmmov %vm18822_vm11 }
 0xd8d   : > { %v7614_v61 = vpop.f32.mrf.mxu1 }
 0xd8e   : > { %v7615_v19 = vadd.f32 %v7614_v61, %v6995_v60  ;;  %v7050_v60 = vpop.permute.xlu0 %7049 }
 0xd8f   : > { %v7616_v4 = vpop.f32.mrf.mxu1 }
 0xd90   : > { %v7717_v40 = vmax.f32 %v7615_v19, 0.0  ;;  %v7055_v4 = vpop.permute.xlu1 %7054 }
 0xd91   : > { %v7619_v29 = vpop.f32.mrf.mxu1 }
 0xd92   : > { %v7755_v54 = vpack.c.bf16 %v7717_v40, %v7716_v26  ;;  %v7620_v13 = vadd.f32 %v7619_v29, %v7000_v7 }
 0xd93   : > { %v7621_v14 = vpop.f32.mrf.mxu1 }
 0xd94   : > { %12545 = vmatmul.mubr.msk.bf16.vlgmr.msra.gmra.mxu0 %vm18815_vm4, %v7755_v54  ;;  %v7718_v12 = vmax.f32 %v7620_v13, 0.0 }
 0xd95   : > { %v7622_v62 = vpop.f32.mrf.mxu1 }
 0xd96   : > { %v7623_v31 = vadd.f32 %v7622_v62, %v7005_v8 }
 0xd97   : > { %v7624_v36 = vpop.f32.mrf.mxu1 }
 0xd98   : > { %v7719_v45 = vmax.f32 %v7623_v31, 0.0 }
 0xd99   : > { %v7627_v15 = vpop.f32.mrf.mxu1 }
 0xd9a   : > { %v7756_v3 = vpack.c.bf16 %v7719_v45, %v7718_v12  ;;  %v7628_v57 = vadd.f32 %v7627_v15, %v7010_v42 }
 0xd9b   : > { %v7629_v41 = vpop.f32.mrf.mxu1 }
 0xd9c   : > { %12548 = vmatprep.mubr.msk.bf16.mxu0 %vm18816_vm9, %v7756_v3  ;;  %v7720_v17 = vmax.f32 %v7628_v57, 0.0  ;;  %vm18826_vm9 = vmmov %vm18823_vm5 }
 0xd9d   : > { %v7630_v49 = vpop.f32.mrf.mxu1 }
 0xd9e   : > { %v7631_v20 = vadd.f32 %v7630_v49, %v7015_v59 }
 0xd9f   : > { %v7632_v51 = vpop.f32.mrf.mxu1 }
 0xda0   : > { %v7721_v24 = vmax.f32 %v7631_v20, 0.0 }
 0xda1   : > { %v7635_v5 = vpop.f32.mrf.mxu1 }
 0xda2   : > { %v7757_v6 = vpack.c.bf16 %v7721_v24, %v7720_v17  ;;  %v7636_v46 = vadd.f32 %v7635_v5, %v7020_v55 }
 0xda3   : > { %v7637_v48 = vpop.f32.mrf.mxu1 }
 0xda4   : > { %12549 = vmatmul.mubr.msk.bf16.gmra.mxu0 %vm18817_vm3, %v7757_v6  ;;  %v7722_v28 = vmax.f32 %v7636_v46, 0.0 }
 0xda5   : > { %v7638_v23 = vpop.f32.mrf.mxu1 }
 0xda6   : > { %v7639_v56 = vadd.f32 %v7638_v23, %v7025_v44 }
 0xda7   : > { %v7640_v43 = vpop.f32.mrf.mxu1 }
 0xda8   : > { %v7723_v53 = vmax.f32 %v7639_v56, 0.0 }
 0xda9   : > { %v7643_v63 = vpop.f32.mrf.mxu1 }
 0xdaa   : > { %v7758_v52 = vpack.c.bf16 %v7723_v53, %v7722_v28  ;;  %v7644_v2 = vadd.f32 %v7643_v63, %v7030_v16 }
 0xdab   : > { %v7645_v47 = vpop.f32.mrf.mxu1 }
 0xdac   : > { %12552 = vmatprep.mubr.msk.bf16.mxu0 %vm18793_vm0, %v7758_v52  ;;  %v7724_v22 = vmax.f32 %v7644_v2, 0.0 }
 0xdad   : > { %v7646_v10 = vpop.f32.mrf.mxu1 }
 0xdae   : > { %v7647_v34 = vadd.f32 %v7646_v10, %v7035_v25 }
 0xdaf   : > { %v7648_v27 = vpop.f32.mrf.mxu1 }
 0xdb0   : > { %v7725_v35 = vmax.f32 %v7647_v34, 0.0 }
 0xdb1   : > { %v7651_v33 = vpop.f32.mrf.mxu1 }
 0xdb2   : > { %v7759_v50 = vpack.c.bf16 %v7725_v35, %v7724_v22  ;;  %v7652_v38 = vadd.f32 %v7651_v33, %v7040_v1 }
 0xdb3   : > { %v7653_v0 = vpop.f32.mrf.mxu1 }
 0xdb4   : > { %12553 = vmatmul.mubr.msk.bf16.gmra.mxu0 %vm18818_vm14, %v7759_v50  ;;  %v7726_v32 = vmax.f32 %v7652_v38, 0.0  ;;  %v13117_v0 = vld [vmem:[%s18333_s6] sm:$0xff]  }
 0xdb5   : > { %v7654_v11 = vpop.f32.mrf.mxu1 }
 0xdb6   : > { %v7655_v58 = vadd.f32 %v7654_v11, %v7045_v39 }
 0xdb7   : > { %v7656_v9 = vpop.f32.mrf.mxu1 }
 0xdb8   : > { %v7727_v37 = vmax.f32 %v7655_v58, 0.0 }
 0xdb9   : > { %v7659_v21 = vpop.f32.mrf.mxu1 }
 0xdba   : > { %v7760_v30 = vpack.c.bf16 %v7727_v37, %v7726_v32  ;;  %v7660_v19 = vadd.f32 %v7659_v21, %v7050_v60 }
 0xdbb   : > { %v7661_v61 = vpop.f32.mrf.mxu1 }
 0xdbc   : > { %12556 = vmatprep.mubr.msk.bf16.mxu0 %vm18819_vm10, %v7760_v30  ;;  %v7728_v54 = vmax.f32 %v7660_v19, 0.0  ;;  %v13122_v61 = vld [vmem:[%s18347_s20 + $0x30] ss:$8 sps:$4 sm:$0xff]   ;;  %v13124_v19 = vld [vmem:[%s18347_s20 + $0x34] ss:$8 sps:$4 sm:$0xff]  }
 0xdbd   : > { %v7662_v26 = vpop.f32.mrf.mxu1  ;;  %9053 = vmatprep.subr.bf16.mxu1 %v13124_v19 }
 0xdbe   : > { %v7663_v40 = vadd.f32 %v7662_v26, %v7055_v4  ;;  %9054 = vmatpush1.bf16.msra.mxu1 %v13122_v61 }
 0xdbf   : > { %v7664_v29 = vpop.f32.mrf.mxu1 }
 0xdc0   : > { %v7729_v7 = vmax.f32 %v7663_v40, 0.0 }
 0xdc2   : > { %v7761_v14 = vpack.c.bf16 %v7729_v7, %v7728_v54 }
 0xdc4   : > { %12557 = vmatmul.mubr.msk.bf16.gmra.mxu0 %vm18820_vm1, %v7761_v14  ;;  %vm18835_vm1 = vmmov %vm18823_vm5 }
 0xdc5   : > { %12576 = vmatprep.mubr.bf16.mxu0 %v13117_v0 }
 0xdd4   : > { %v12492_v13 = vpop.f32.mrf.mxu0 }
 0xdd6   : > { %v7832_v8 = vpop.f32.mrf.mxu0 }
 0xdd8   : > { %v12493_v62 = vpop.f32.mrf.mxu0 }
 0xdda   : > { %v17086_v31 = vpop.f32.mrf.mxu0 }
 0xde4   : > { %v12496_v36 = vpop.f32.mrf.mxu0 }
 0xde6   : > { %v7848_v12 = vpop.f32.mrf.mxu0 }
 0xde8   : > { %v12497_v45 = vpop.f32.mrf.mxu0 }
 0xdea   : > { %v17088_v15 = vpop.f32.mrf.mxu0 }
 0xdf4   : > { %v12500_v3 = vpop.f32.mrf.mxu0 }
 0xdf6   : > { %v7864_v42 = vpop.f32.mrf.mxu0 }
 0xdf8   : > { %v12501_v41 = vpop.f32.mrf.mxu0 }
 0xdfa   : > { %v17090_v57 = vpop.f32.mrf.mxu0 }
 0xe04   : > { %v12504_v59 = vpop.f32.mrf.mxu0 }
 0xe06   : > { %v7880_v49 = vpop.f32.mrf.mxu0 }
 0xe08   : > { %v17092_v20 = vpop.f32.mrf.mxu0 }
 0xe0a   : > { %v17094_v51 = vpop.f32.mrf.mxu0 }
 0xe0c   : > { %v12510_v17 = vpop.f32.mrf.mxu0 }
 0xe0d   : > { %v7968_v24 = vadd.f32 %v12510_v17, %v12492_v13 }
 0xe0e   : > { %v7959_v5 = vpop.f32.mrf.mxu0 }
 0xe0f   : > { %v7960_v6 = vadd.f32 %v7959_v5, %v7832_v8  ;;  %v13138_v5 = vld [vmem:[%s18347_s20 + $0x24] ss:$8 sps:$4 sm:$0xff]  }
 0xe10   : > { %v12511_v55 = vpop.f32.mrf.mxu0  ;;  %9055 = vmatprep.subr.bf16.mxu1 %v13138_v5  ;;  %v13133_v5 = vld [vmem:[%s18333_s6 + $0x68] sm:$0xff]  }
 0xe11   : > { %v7971_v48 = vadd.f32 %v12511_v55, %v12493_v62  ;;  %v13141_v55 = vld [vmem:[%s18347_s20 + $0x14] ss:$8 sps:$4 sm:$0xff]  }
 0xe12   : > { %v17096_v46 = vpop.f32.mrf.mxu0 }
 0xe14   : > { %v12514_v44 = vpop.f32.mrf.mxu0 }
 0xe15   : > { %v7984_v23 = vadd.f32 %v12514_v44, %v12496_v36 }
 0xe16   : > { %v7975_v56 = vpop.f32.mrf.mxu0 }
 0xe17   : > { %v7976_v43 = vadd.f32 %v7975_v56, %v7848_v12 }
 0xe18   : > { %v12515_v28 = vpop.f32.mrf.mxu0 }
 0xe19   : > { %v7987_v53 = vadd.f32 %v12515_v28, %v12497_v45 }
 0xe1a   : > { %v17098_v63 = vpop.f32.mrf.mxu0 }
 0xe1c   : > { %v12518_v52 = vpop.f32.mrf.mxu0 }
 0xe1d   : > { %v17100_v16 = vadd.f32 %v12518_v52, %v12500_v3 }
 0xe1e   : > { %v7991_v47 = vpop.f32.mrf.mxu0 }
 0xe1f   : > { %v17102_v2 = vadd.f32 %v7991_v47, %v7864_v42 }
 0xe20   : > { %v12519_v25 = vpop.f32.mrf.mxu0 }
 0xe21   : > { %v8003_v10 = vadd.f32 %v12519_v25, %v12501_v41 }
 0xe22   : > { %v17104_v34 = vpop.f32.mrf.mxu0 }
 0xe24   : > { %v12522_v27 = vpop.f32.mrf.mxu0 }
 0xe25   : > { %v17106_v22 = vadd.f32 %v12522_v27, %v12504_v59 }
 0xe26   : > { %v8007_v35 = vpop.f32.mrf.mxu0 }
 0xe27   : > { %v17108_v33 = vadd.f32 %v8007_v35, %v7880_v49 }
 0xe28   : > { %v12523_v50 = vpop.f32.mrf.mxu0 }
 0xe2a   : > { %v17110_v1 = vpop.f32.mrf.mxu0 }
 0xe2c   : > { %v12528_v38 = vpop.f32.mrf.mxu0 }
 0xe2d   : > { %v8154_v39 = vadd.f32 %v12528_v38, %v7968_v24  ;;  %v13136_v24 = vld [vmem:[%s18347_s20 + $0x20] ss:$8 sps:$4 sm:$0xff]  }
 0xe2e   : > { %v8089_v11 = vpop.f32.mrf.mxu0  ;;  %9056 = vmatpush1.bf16.msra.mxu1 %v13136_v24  ;;  %v13132_v24 = vld [vmem:[%s18333_s6 + $0x60] sm:$0xff]  }
 0xe2f   : > { %v17115_v58 = vadd.f32 %v8089_v11, %v7960_v6  ;;  %9057 = vmatprep.subr.bf16.mxu1 %v13141_v55  ;;  %v13135_v55 = vld [vmem:[%s18333_s6 + $0x78] sm:$0xff]  }
 0xe30   : > { %v12529_v9 = vpop.f32.mrf.mxu0 }
 0xe31   : > { %v8155_v32 = vadd.f32 %v12529_v9, %v7971_v48 }
 0xe32   : > { %v17117_v37 = vpop.f32.mrf.mxu0 }
 0xe34   : > { %v12532_v21 = vpop.f32.mrf.mxu0 }
 0xe35   : > { %v8158_v30 = vadd.f32 %v12532_v21, %v7984_v23  ;;  %v13139_v23 = vld [vmem:[%s18347_s20 + $0x10] ss:$8 sps:$4 sm:$0xff]  }
 0xe36   : > { %v8105_v60 = vpop.f32.mrf.mxu0  ;;  %9058 = vmatpush1.bf16.msra.mxu1 %v13139_v23  ;;  %v13145_v23 = vld [vmem:[%s18347_s20 + $0x70] ss:$8 sps:$4 sm:$0xff]  }
 0xe37   : > { %v17125_v4 = vadd.f32 %v8105_v60, %v7976_v43 }
 0xe38   : > { %v12533_v26 = vpop.f32.mrf.mxu0 }
 0xe39   : > { %v8159_v48 = vadd.f32 %v12533_v26, %v7987_v53 }
 0xe3a   : > { %v17127_v40 = vpop.f32.mrf.mxu0 }
 0xe3c   : > { %v12536_v29 = vpop.f32.mrf.mxu0 }
 0xe3d   : > { %v8162_v27 = vadd.f32 %v12536_v29, %v17100_v16 }
 0xe3e   : > { %v8121_v54 = vpop.f32.mrf.mxu0 }
 0xe40   : > { %v12537_v7 = vpop.f32.mrf.mxu0 }
 0xe41   : > { %v8163_v35 = vadd.f32 %v12537_v7, %v8003_v10 }
 0xe42   : > { %v8124_v14 = vpop.f32.mrf.mxu0 }
 0xe44   : > { %v12540_v13 = vpop.f32.mrf.mxu0 }
 0xe45   : > { %v8166_v60 = vadd.f32 %v12540_v13, %v17106_v22  ;;  %v8160_v22 = vadd.f32 %v8121_v54, %v17102_v2  ;;  %v7979_v13 = vadd.f32 %v17098_v63, %v17088_v15  ;;  %v7963_v2 = vadd.f32 %v17096_v46, %v17086_v31  ;;  %v13118_v31 = vld [vmem:[%s18333_s6 + $0x8] sm:$0xff]   ;;  %v13119_v46 = vld [vmem:[%s18333_s6 + $0x10] sm:$0xff]  }
 0xe46   : > { %v8137_v8 = vpop.f32.mrf.mxu0 }
 0xe47   : > { %v8164_v26 = vadd.f32 %v8137_v8, %v17108_v33 }
 0xe48   : > { %v12541_v62 = vpop.f32.mrf.mxu0 }
 0xe4a   : > { %v8140_v36 = vpop.f32.mrf.mxu0 }
 0xe54   : > { %v12546_v12 = vpop.f32.mrf.mxu0 }
 0xe55   : > { %v8300_v42 = vadd.f32 %v12546_v12, %v8154_v39 }
 0xe56   : > { %v17129_v45 = vpop.f32.mrf.mxu0 }
 0xe57   : > { %v8298_v63 = vadd.f32 %v17129_v45, %v17115_v58  ;;  %v13120_v58 = vld [vmem:[%s18333_s6 + $0x18] sm:$0xff]  }
 0xe58   : > { %v12547_v3 = vpop.f32.mrf.mxu0  ;;  %v13127_v45 = vld [vmem:[%s18333_s6 + $0x38] sm:$0xff]  }
 0xe59   : > { %v8301_v41 = vadd.f32 %v12547_v3, %v8155_v32  ;;  %v8019_v32 = vadd.f32 %v12523_v50, %v17092_v20  ;;  %v7995_v20 = vadd.f32 %v17104_v34, %v17090_v57 }
 0xe5a   : > { %v17133_v49 = vpop.f32.mrf.mxu0 }
 0xe5b   : > { %v17131_v59 = vpack.c.bf16 %v8301_v41, %v8300_v42  ;;  %v8167_v61 = vadd.f32 %v12541_v62, %v8019_v32  ;;  %v8157_v62 = vadd.f32 %v17127_v40, %v7979_v13  ;;  %v13128_v41 = vld [vmem:[%s18333_s6 + $0x40] sm:$0xff]  }
 0xe64   : > { %v12550_v17 = vpop.f32.mrf.mxu0 }
 0xe65   : > { %v8304_v56 = vadd.f32 %v12550_v17, %v8158_v30  ;;  %v8011_v30 = vadd.f32 %v17110_v1, %v17094_v51  ;;  %v8161_v51 = vadd.f32 %v8124_v14, %v7995_v20  ;;  %v8153_v14 = vadd.f32 %v17117_v37, %v7963_v2  ;;  %v13121_v37 = vld [vmem:[%s18333_s6 + $0x20] sm:$0xff]   ;;  %v13131_v17 = vld [vmem:[%s18333_s6 + $0x58] sm:$0xff]  }
 0xe66   : > { %v8251_v6 = vpop.f32.mrf.mxu0  ;;  %v13174_v2 = vld [vmem:[%s18347_s20 + $0xd4] ss:$8 sps:$4 sm:$0xff]  }
 0xe67   : > { %v8165_v16 = vadd.f32 %v8140_v36, %v8011_v30  ;;  %v8302_v34 = vadd.f32 %v8251_v6, %v17125_v4  ;;  %v8299_v15 = vadd.f32 %v17133_v49, %v8153_v14  ;;  %v13125_v4 = vld [vmem:[%s18333_s6 + $0x28] sm:$0xff]   ;;  %v13126_v36 = vld [vmem:[%s18333_s6 + $0x30] sm:$0xff]  }
 0xe68   : > { %v12551_v44 = vpop.f32.mrf.mxu0  ;;  %v13130_v49 = vld [vmem:[%s18333_s6 + $0x50] sm:$0xff]  }
 0xe69   : > { %v8305_v43 = vadd.f32 %v12551_v44, %v8159_v48  ;;  %v8314_v40 = vpack.c.bf16 %v8299_v15, %v8298_v63  ;;  %v13134_v6 = vld [vmem:[%s18333_s6 + $0x70] sm:$0xff]   ;;  %v13142_v48 = vld [vmem:[%s18347_s20] ss:$8 sps:$4 sm:$0xff]   ;;  %v13144_v44 = vld [vmem:[%s18347_s20 + $0x4] ss:$8 sps:$4 sm:$0xff]  }
 0xe6a   : > { %v8254_v52 = vpop.f32.mrf.mxu0  ;;  %9059 = vmatprep.subr.bf16.mxu1 %v13144_v44 }
 0xe6b   : > { %v8317_v28 = vpack.c.bf16 %v8305_v43, %v8304_v56  ;;  %v8303_v57 = vadd.f32 %v8254_v52, %v8157_v62  ;;  %9060 = vmatpush1.bf16.msra.mxu1 %v13142_v48  ;;  %v13147_v56 = vld [vmem:[%s18347_s20 + $0x74] ss:$8 sps:$4 sm:$0xff]   ;;  %v13150_v43 = vld [vmem:[%s18347_s20 + $0x64] ss:$8 sps:$4 sm:$0xff]   ;;  %v13151_v52 = vld [vmem:[%s18347_s20 + $0x50] ss:$8 sps:$4 sm:$0xff]  }
 0xe6d   : > { %v8316_v54 = vpack.c.bf16 %v8303_v57, %v8302_v34  ;;  %v13166_v57 = vld [vmem:[%s18347_s20 + $0xe0] ss:$8 sps:$4 sm:$0xff]  }
 0xe74   : > { %v12554_v47 = vpop.f32.mrf.mxu0 }
 0xe75   : > { %v8308_v53 = vadd.f32 %v12554_v47, %v8162_v27  ;;  %v13153_v47 = vld [vmem:[%s18347_s20 + $0x54] ss:$8 sps:$4 sm:$0xff]   ;;  %v13154_v27 = vld [vmem:[%s18347_s20 + $0x40] ss:$8 sps:$4 sm:$0xff]  }
 0xe76   : > { %v8267_v25 = vpop.f32.mrf.mxu0 }
 0xe77   : > { %v8306_v33 = vadd.f32 %v8267_v25, %v8160_v22  ;;  %v13156_v25 = vld [vmem:[%s18347_s20 + $0x44] ss:$8 sps:$4 sm:$0xff]  }
 0xe78   : > { %v12555_v0 = vpop.f32.mrf.mxu0 }
 0xe79   : > { %v8309_v38 = vadd.f32 %v12555_v0, %v8163_v35  ;;  %v13159_v35 = vld [vmem:[%s18347_s20 + $0xb4] ss:$8 sps:$4 sm:$0xff]  }
 0xe7a   : > { %v8270_v11 = vpop.f32.mrf.mxu0  ;;  %v13162_v0 = vld [vmem:[%s18347_s20 + $0xf4] ss:$8 sps:$4 sm:$0xff]  }
 0xe7b   : > { %v8319_v39 = vpack.c.bf16 %v8309_v38, %v8308_v53  ;;  %v8307_v1 = vadd.f32 %v8270_v11, %v8161_v51  ;;  %9337 = vmatprep.subr.bf16.mxu1 %v13162_v0  ;;  %v8434_v53 = vpop.permute.xlu1 %8433  ;;  %v8429_v38 = vpop.permute.xlu0 %8428 }
 0xe7d   : > { %v8318_v8 = vpack.c.bf16 %v8307_v1, %v8306_v33  ;;  %v13168_v1 = vld [vmem:[%s18347_s20 + $0xe4] ss:$8 sps:$4 sm:$0xff]  }
 0xe7f   : > { %v8389_v11 = vpop.permute.xlu0 %8388 }
 0xe83   : > { %v17252_v32 = vpop.permute.xlu0 %8438 }
 0xe84   : > { %v12558_v9 = vpop.f32.mrf.mxu0 }
 0xe85   : > { %v8312_v10 = vadd.f32 %v12558_v9, %v8166_v60 }
 0xe86   : > { %v8283_v21 = vpop.f32.mrf.mxu0 }
 0xe87   : > { %v8310_v12 = vadd.f32 %v8283_v21, %v8164_v26 }
 0xe88   : > { %v12559_v19 = vpop.f32.mrf.mxu0 }
 0xe89   : > { %v8313_v29 = vadd.f32 %v12559_v19, %v8167_v61  ;;  %v8399_v61 = vpop.permute.xlu0 %8398 }
 0xe8a   : > { %v8286_v7 = vpop.f32.mrf.mxu0 }
 0xe8b   : > { %v8321_v3 = vpack.c.bf16 %v8313_v29, %v8312_v10  ;;  %v8311_v42 = vadd.f32 %v8286_v7, %v8165_v16 }
 0xe8d   : > { %v8320_v50 = vpack.c.bf16 %v8311_v42, %v8310_v12  ;;  %12560 = vmatprep.subr.bf16.mxu0 %v8321_v3  ;;  %v17256_v42 = vpop.permute.xlu0 %8448 }
 0xe8e   : > { %12561 = vmatpush3.bf16.msra.mxu0 %v8321_v3 }
 0xe8f   : > { %12562 = vmatprep.subr.bf16.mxu0 %v8320_v50 }
 0xe92   : > { %12563 = vmatpush3.bf16.msra.mxu0 %v8320_v50  ;;  %v13160_v50 = vld [vmem:[%s18347_s20 + $0xf0] ss:$8 sps:$4 sm:$0xff]  }
 0xe93   : > { %12564 = vmatprep.subr.bf16.mxu0 %v8319_v39 }
 0xe96   : > { %12565 = vmatpush3.bf16.msra.mxu0 %v8319_v39  ;;  %v8394_v39 = vpop.permute.xlu1 %8393 }
 0xe97   : > { %12566 = vmatprep.subr.bf16.mxu0 %v8318_v8 }
 0xe9a   : > { %12567 = vmatpush3.bf16.msra.mxu0 %v8318_v8  ;;  %v17250_v9 = vpop.permute.xlu1 %8443 }
 0xe9b   : > { %12568 = vmatprep.subr.bf16.mxu0 %v8317_v28 }
 0xe9e   : > { %12569 = vmatpush3.bf16.msra.mxu0 %v8317_v28  ;;  %v13148_v28 = vld [vmem:[%s18347_s20 + $0x60] ss:$8 sps:$4 sm:$0xff]   ;;  %v8404_v30 = vpop.permute.xlu1 %8403 }
 0xe9f   : > { %12570 = vmatprep.subr.bf16.mxu0 %v8316_v54 }
 0xea2   : > { %12571 = vmatpush3.bf16.msra.mxu0 %v8316_v54  ;;  %v17254_v29 = vpop.permute.xlu1 %8453  ;;  %v8409_v54 = vpop.permute.xlu0 %8408 }
 0xea3   : > { %12572 = vmatprep.subr.bf16.mxu0 %v17131_v59 }
 0xea6   : > { %12573 = vmatpush3.bf16.msra.mxu0 %v17131_v59  ;;  %v13129_v59 = vld [vmem:[%s18333_s6 + $0x48] sm:$0xff]   ;;  %v8414_v8 = vpop.permute.xlu1 %8413 }
 0xea7   : > { %12574 = vmatprep.subr.bf16.mxu0 %v8314_v40 }
 0xeaa   : > { %12575 = vmatpush3.bf16.msra.mxu0 %v8314_v40  ;;  %v13172_v40 = vld [vmem:[%s18347_s20 + $0xd0] ss:$8 sps:$4 sm:$0xff]  }
 0xeab   : > { %8928 = vmatprep.subr.bf16.mxu0 %v13147_v56 }
 0xead   : > { %12577 = vmatmul.mubr.bf16.vlgmr.msra.gmra.mxu0 %v13118_v31 }
 0xeae   : > { %12580 = vmatprep.mubr.bf16.mxu0 %v13119_v46  ;;  %8929 = vmatpush1.bf16.msra.mxu0 %v13145_v23 }
 0xeaf   : > { %8930 = vmatprep.subr.bf16.mxu0 %v13150_v43 }
 0xeb2   : > { %8931 = vmatpush1.bf16.msra.mxu0 %v13148_v28 }
 0xeb3   : > { %8932 = vmatprep.subr.bf16.mxu0 %v13153_v47  ;;  %v13157_v47 = vld [vmem:[%s18347_s20 + $0xb0] ss:$8 sps:$4 sm:$0xff]  }
 0xeb5   : > { %12581 = vmatmul.mubr.bf16.gmra.mxu0 %v13120_v58  ;;  %v13180_v58 = vld [vmem:[%s18347_s20 + $0xc4] ss:$8 sps:$4 sm:$0xff]  }
 0xeb6   : > { %12584 = vmatprep.mubr.bf16.mxu0 %v13121_v37  ;;  %8933 = vmatpush1.bf16.msra.mxu0 %v13151_v52  ;;  %v17278_v37 = vpop.permute.xlu1 %8463 }
 0xeb7   : > { %8934 = vmatprep.subr.bf16.mxu0 %v13156_v25 }
 0xeba   : > { %8935 = vmatpush1.bf16.msra.mxu0 %v13154_v27  ;;  %v8424_v44 = vpop.permute.xlu1 %8423 }
 0xebb   : > { %9187 = vmatprep.subr.bf16.mxu0 %v13159_v35  ;;  %v13165_v35 = vld [vmem:[%s18347_s20 + $0xa4] ss:$8 sps:$4 sm:$0xff]  }
 0xebd   : > { %12585 = vmatmul.mubr.bf16.gmra.mxu0 %v13125_v4 }
 0xebe   : > { %12588 = vmatprep.mubr.bf16.mxu0 %v13126_v36 }
 0xec5   : > { %12589 = vmatmul.mubr.bf16.gmra.mxu0 %v13127_v45 }
 0xec6   : > { %12592 = vmatprep.mubr.bf16.mxu0 %v13128_v41  ;;  %v17281_v41 = vpop.permute.xlu0 %8458 }
 0xeca   : > { %v8419_v25 = vpop.permute.xlu0 %8418 }
 0xecd   : > { %12593 = vmatmul.mubr.bf16.gmra.mxu0 %v13129_v59 }
 0xece   : > { %12596 = vmatprep.mubr.bf16.mxu0 %v13130_v49  ;;  %v13178_v49 = vld [vmem:[%s18347_s20 + $0xc0] ss:$8 sps:$4 sm:$0xff]  }
 0xed5   : > { %12597 = vmatmul.mubr.bf16.gmra.mxu0 %v13131_v17 }
 0xed6   : > { %12600 = vmatprep.mubr.bf16.mxu0 %v13132_v24 }
 0xedd   : > { %12601 = vmatmul.mubr.bf16.gmra.mxu0 %v13133_v5 }
 0xede   : > { %12604 = vmatprep.mubr.bf16.mxu0 %v13134_v6 }
 0xee5   : > { %12605 = vmatmul.mubr.bf16.gmra.mxu0 %v13135_v55 }
 0xee6   : > { %8952 = vmatprep.mubr.bf16.mxu0 %v18700_v18 }
 0xf6d   : > { %v12578_v21 = vpop.f32.mrf.mxu0 }
 0xf6e   : > { %v8685_v13 = vadd.f32 %v12578_v21, %v8399_v61  ;;  %v8474_v21 = vpop.permute.xlu1 %8473 }
 0xf6f   : > { %v8676_v60 = vpop.f32.mrf.mxu0 }
 0xf70   : > { %v8677_v26 = vadd.f32 %v8676_v60, %v8389_v11  ;;  %v8805_v15 = vmax.f32 %v8685_v13, 0.0 }
 0xf71   : > { %v12579_v19 = vpop.f32.mrf.mxu0 }
 0xf72   : > { %v8803_v12 = vmax.f32 %v8677_v26, 0.0  ;;  %v8688_v51 = vadd.f32 %v12579_v19, %v8404_v30  ;;  %v8469_v19 = vpop.permute.xlu0 %8468 }
 0xf73   : > { %v8679_v16 = vpop.f32.mrf.mxu0 }
 0xf74   : > { %v8680_v10 = vadd.f32 %v8679_v16, %v8394_v39  ;;  %v8806_v34 = vmax.f32 %v8688_v51, 0.0  ;;  %v8514_v51 = vpop.permute.xlu1 %8513 }
 0xf75   : > { %v12582_v7 = vpop.f32.mrf.mxu0 }
 0xf76   : > { %v8804_v3 = vmax.f32 %v8680_v10, 0.0  ;;  %v8836_v31 = vpack.c.bf16 %v8806_v34, %v8805_v15  ;;  %v8701_v0 = vadd.f32 %v12582_v7, %v8419_v25 }
 0xf77   : > { %v8692_v20 = vpop.f32.mrf.mxu0 }
 0xf78   : > { %v8835_v22 = vpack.c.bf16 %v8804_v3, %v8803_v12  ;;  %v8693_v36 = vadd.f32 %v8692_v20, %v8409_v54  ;;  %v8809_v60 = vmax.f32 %v8701_v0, 0.0  ;;  %v13169_v12 = vld [vmem:[%s18347_s20 + $0x90] ss:$8 sps:$4 sm:$0xff]   ;;  %v13177_v20 = vld [vmem:[%s18347_s20 + $0x84] ss:$8 sps:$4 sm:$0xff]   ;;  %v8484_v34 = vpop.permute.xlu1 %8483 }
 0xf79   : > { %v12583_v33 = vpop.f32.mrf.mxu0 }
 0xf7a   : > { %11277 = vmatmul.mubr.msk.bf16.vlgmr.msra.gmra.mxu1 %vm3049_vm13, %v8835_v22  ;;  %v8807_v6 = vmax.f32 %v8693_v36, 0.0  ;;  %v8704_v56 = vadd.f32 %v12583_v33, %v8424_v44  ;;  %v8509_v33 = vpop.permute.xlu0 %8508 }
 0xf7b   : > { %v8695_v62 = vpop.f32.mrf.mxu0  ;;  %9087 = vmatprep.mubr.bf16.mxu1 %v18700_v18  ;;  %9338 = vmatpush1.bf16.msra.mxu1 %v13160_v50 }
 0xf7c   : > { %9339 = vmatprep.subr.bf16.mxu1 %v13168_v1  ;;  %v8696_v46 = vadd.f32 %v8695_v62, %v8414_v8  ;;  %v8810_v39 = vmax.f32 %v8704_v56, 0.0  ;;  %v13175_v1 = vld [vmem:[%s18347_s20 + $0x80] ss:$8 sps:$4 sm:$0xff]  }
 0xf7d   : > { %v12586_v14 = vpop.f32.mrf.mxu0 }
 0xf7e   : > { %v8808_v17 = vmax.f32 %v8696_v46, 0.0  ;;  %v8838_v16 = vpack.c.bf16 %v8810_v39, %v8809_v60  ;;  %v8524_v46 = vpop.permute.xlu1 %8523 }
 0xf7f   : > { %v8708_v63 = vpop.f32.mrf.mxu0  ;;  %9340 = vmatpush1.bf16.msra.mxu1 %v13166_v57 }
 0xf80   : > { %9341 = vmatprep.subr.bf16.mxu1 %v13174_v2  ;;  %v8709_v45 = vadd.f32 %v8708_v63, %v8429_v38  ;;  %v8837_v43 = vpack.c.bf16 %v8808_v17, %v8807_v6 }
 0xf81   : > { %v12587_v4 = vpop.f32.mrf.mxu0 }
 0xf82   : > { %11278 = vmatmul.mubr.msk.bf16.gmra.mxu1 %vm3049_vm13, %v8836_v31  ;;  %v8811_v55 = vmax.f32 %v8709_v45, 0.0  ;;  %v8720_v28 = vadd.f32 %v12587_v4, %v17250_v9  ;;  %v13163_v9 = vld [vmem:[%s18347_s20 + $0xa0] ss:$8 sps:$4 sm:$0xff]  }
 0xf83   : > { %v8711_v59 = vpop.f32.mrf.mxu0  ;;  %9097 = vmatprep.mubr.bf16.mxu1 %v18700_v18  ;;  %9342 = vmatpush1.bf16.msra.mxu1 %v13172_v40 }
 0xf84   : > { %v8712_v24 = vadd.f32 %v8711_v59, %v8434_v53  ;;  %9343 = vmatprep.subr.bf16.mxu1 %v13180_v58  ;;  %v8717_v53 = vadd.f32 %v12586_v14, %v17252_v32  ;;  %v8814_v11 = vmax.f32 %v8720_v28, 0.0  ;;  %v13171_v32 = vld [vmem:[%s18347_s20 + $0x94] ss:$8 sps:$4 sm:$0xff]   ;;  %v8479_v14 = vpop.permute.xlu0 %8478 }
 0xf85   : > { %v12590_v5 = vpop.f32.mrf.mxu0 }
 0xf86   : > { %v8812_v48 = vmax.f32 %v8712_v24, 0.0  ;;  %v8813_v61 = vmax.f32 %v8717_v53, 0.0  ;;  %v8733_v54 = vadd.f32 %v12590_v5, %v17281_v41  ;;  %v8494_v5 = vpop.permute.xlu1 %8493 }
 0xf87   : > { %v8724_v23 = vpop.f32.mrf.mxu0  ;;  %9344 = vmatpush1.bf16.msra.mxu1 %v13178_v49 }
 0xf88   : > { %v8839_v52 = vpack.c.bf16 %v8812_v48, %v8811_v55  ;;  %v8840_v10 = vpack.c.bf16 %v8814_v11, %v8813_v61  ;;  %v8725_v50 = vadd.f32 %v8724_v23, %v17256_v42  ;;  %v8817_v31 = vmax.f32 %v8733_v54, 0.0  ;;  %v8519_v36 = vpop.permute.xlu0 %8518 }
 0xf89   : > { %v12591_v27 = vpop.f32.mrf.mxu0 }
 0xf8a   : > { %11265 = vmatmul.mubr.msk.bf16.vlgmr.msra.gmra.mxu0 %vm3049_vm13, %v8839_v52  ;;  %11279 = vmatmul.mubr.msk.bf16.gmra.mxu1 %vm3049_vm13, %v8837_v43  ;;  %v8815_v42 = vmax.f32 %v8725_v50, 0.0  ;;  %v8736_v62 = vadd.f32 %v12591_v27, %v17278_v37  ;;  %v8534_v0 = vpop.permute.xlu1 %8533 }
 0xf8b   : > { %v8727_v38 = vpop.f32.mrf.mxu0  ;;  %8962 = vmatprep.mubr.bf16.mxu0 %v18700_v18  ;;  %9107 = vmatprep.mubr.bf16.mxu1 %v18700_v18 }
 0xf8c   : > { %9188 = vmatpush1.bf16.msra.mxu0 %v13157_v47  ;;  %v8728_v7 = vadd.f32 %v8727_v38, %v17254_v29  ;;  %v8818_v63 = vmax.f32 %v8736_v62, 0.0  ;;  %v8489_v23 = vpop.permute.xlu0 %8488 }
 0xf8d   : > { %v17302_v30 = vpop.f32.mrf.mxu0  ;;  %9189 = vmatprep.subr.bf16.mxu0 %v13165_v35 }
 0xf8e   : > { %v8816_v29 = vmax.f32 %v8728_v7, 0.0  ;;  %v8842_v4 = vpack.c.bf16 %v8818_v63, %v8817_v31  ;;  %v8749_v27 = vadd.f32 %v17302_v30, %v8479_v14 }
 0xf8f   : > { %v8740_v26 = vpop.f32.mrf.mxu0 }
 0xf90   : > { %9190 = vmatpush1.bf16.msra.mxu0 %v13163_v9  ;;  %v8841_v57 = vpack.c.bf16 %v8816_v29, %v8815_v42  ;;  %v8741_v59 = vadd.f32 %v8740_v26, %v8469_v19  ;;  %v8529_v39 = vpop.permute.xlu0 %8528  ;;  %v8821_v9 = vmax.f32 %v8749_v27, 0.0  ;;  %v8504_v19 = vpop.permute.xlu1 %8503 }
 0xf91   : > { %v12595_v3 = vpop.f32.mrf.mxu0  ;;  %9191 = vmatprep.subr.bf16.mxu0 %v13171_v32 }
 0xf92   : > { %11266 = vmatmul.mubr.msk.bf16.gmra.mxu0 %vm3049_vm13, %v8840_v10  ;;  %11280 = vmatmul.mubr.msk.bf16.gmra.mxu1 %vm3049_vm13, %v8838_v16  ;;  %v8819_v55 = vmax.f32 %v8741_v59, 0.0  ;;  %v8752_v43 = vadd.f32 %v12595_v3, %v8484_v34 }
 0xf93   : > { %v8743_v22 = vpop.f32.mrf.mxu0  ;;  %8972 = vmatprep.mubr.bf16.mxu0 %v18700_v18  ;;  %9361 = vmatprep.mubr.bf16.mxu1 %v18700_v18 }
 0xf94   : > { %9192 = vmatpush1.bf16.msra.mxu0 %v13169_v12  ;;  %v8744_v37 = vadd.f32 %v8743_v22, %v8474_v21  ;;  %v8822_v53 = vmax.f32 %v8752_v43, 0.0  ;;  %v8499_v10 = vpop.permute.xlu0 %8498  ;;  %v8544_v50 = vpop.permute.xlu1 %8543 }
 0xf95   : > { %v17322_v13 = vpop.f32.mrf.mxu0  ;;  %9193 = vmatprep.subr.bf16.mxu0 %v13177_v20 }
 0xf96   : > { %v8820_v17 = vmax.f32 %v8744_v37, 0.0  ;;  %v8844_v32 = vpack.c.bf16 %v8822_v53, %v8821_v9  ;;  %v8765_v42 = vadd.f32 %v17322_v13, %v8499_v10 }
 0xf97   : > { %v8756_v8 = vpop.f32.mrf.mxu0 }
 0xf98   : > { %9194 = vmatpush1.bf16.msra.mxu0 %v13175_v1  ;;  %v8843_v28 = vpack.c.bf16 %v8820_v17, %v8819_v55  ;;  %v8757_v26 = vadd.f32 %v8756_v8, %v8489_v23  ;;  %v8825_v34 = vmax.f32 %v8765_v42, 0.0 }
 0xf99   : > { %v17325_v2 = vpop.f32.mrf.mxu0 }
 0xf9a   : > { %11267 = vmatmul.mubr.msk.bf16.gmra.mxu0 %vm3049_vm13, %v8841_v57  ;;  %v8823_v3 = vmax.f32 %v8757_v26, 0.0 }
 0xf9b   : > { %v8759_v15 = vpop.f32.mrf.mxu0  ;;  %8982 = vmatprep.mubr.bf16.mxu0 %v18700_v18 }
 0xf9c   : > { %v8760_v60 = vadd.f32 %v8759_v15, %v8494_v5 }
 0xf9d   : > { %v12602_v40 = vpop.f32.mrf.mxu0 }
 0xf9e   : > { %v8781_v35 = vadd.f32 %v12602_v40, %v8519_v36  ;;  %v8824_v7 = vmax.f32 %v8760_v60, 0.0 }
 0xf9f   : > { %v8772_v58 = vpop.f32.mrf.mxu0 }
 0xfa0   : > { %v8773_v49 = vadd.f32 %v8772_v58, %v8509_v33  ;;  %v8829_v21 = vmax.f32 %v8781_v35, 0.0  ;;  %v8845_v22 = vpack.c.bf16 %v8824_v7, %v8823_v3  ;;  %v8539_v33 = vpop.permute.xlu0 %8538 }
 0xfa1   : > { %v12603_v45 = vpop.f32.mrf.mxu0 }
 0xfa2   : > { %11268 = vmatmul.mubr.msk.bf16.gmra.mxu0 %vm3049_vm13, %v8842_v4  ;;  %v8827_v48 = vmax.f32 %v8773_v49, 0.0  ;;  %v8784_v52 = vadd.f32 %v12603_v45, %v8524_v46 }
 0xfa3   : > { %v8775_v41 = vpop.f32.mrf.mxu0  ;;  %9211 = vmatprep.mubr.bf16.mxu0 %v18700_v18 }
 0xfa4   : > { %v8776_v24 = vadd.f32 %v8775_v41, %v8514_v51  ;;  %v8830_v38 = vmax.f32 %v8784_v52, 0.0  ;;  %v8768_v51 = vadd.f32 %v17325_v2, %v8504_v19 }
 0xfa5   : > { %v12606_v6 = vpop.f32.mrf.mxu0 }
 0xfa6   : > { %v8828_v44 = vmax.f32 %v8776_v24, 0.0  ;;  %v8848_v61 = vpack.c.bf16 %v8830_v38, %v8829_v21  ;;  %v8797_v8 = vadd.f32 %v12606_v6, %v8539_v33  ;;  %v8826_v62 = vmax.f32 %v8768_v51, 0.0 }
 0xfa7   : > { %v8788_v56 = vpop.f32.mrf.mxu0 }
 0xfa8   : > { %v8847_v47 = vpack.c.bf16 %v8828_v44, %v8827_v48  ;;  %v8789_v16 = vadd.f32 %v8788_v56, %v8529_v39  ;;  %v8833_v54 = vmax.f32 %v8797_v8, 0.0  ;;  %v8846_v2 = vpack.c.bf16 %v8826_v62, %v8825_v34 }
 0xfa9   : > { %v12607_v25 = vpop.f32.mrf.mxu0 }
 0xfaa   : > { %11297 = vmatmul.mubr.msk.bf16.vlgmr.msra.gmra.mxu0 %vm3049_vm13, %v8843_v28  ;;  %11317 = vmatmul.mubr.msk.bf16.vlgmr.msra.gmra.mxu1 %vm3049_vm13, %v8847_v47  ;;  %v8831_v20 = vmax.f32 %v8789_v16, 0.0  ;;  %v8800_v29 = vadd.f32 %v12607_v25, %v8544_v50 }
 0xfab   : > { %9221 = vmatprep.mubr.bf16.mxu0 %v18700_v18  ;;  %9371 = vmatprep.mubr.bf16.mxu1 %v18700_v18  ;;  %v8791_v11 = vpop.f32.mrf.mxu0 }
 0xfac   : > { %v8792_v30 = vadd.f32 %v8791_v11, %v8534_v0  ;;  %v8834_v57 = vmax.f32 %v8800_v29, 0.0 }
 0xfae   : > { %v8832_v12 = vmax.f32 %v8792_v30, 0.0  ;;  %v8850_v14 = vpack.c.bf16 %v8834_v57, %v8833_v54 }
 0xfb0   : > { %v8849_v1 = vpack.c.bf16 %v8832_v12, %v8831_v20 }
 0xfb2   : > { %11298 = vmatmul.mubr.msk.bf16.gmra.mxu0 %vm3049_vm13, %v8844_v32  ;;  %11318 = vmatmul.mubr.msk.bf16.gmra.mxu1 %vm3049_vm13, %v8848_v61 }
 0xfb3   : > { %9231 = vmatprep.mubr.bf16.mxu0 %v18700_v18  ;;  %9381 = vmatprep.mubr.bf16.mxu1 %v18700_v18 }
 0xfba   : > { %11299 = vmatmul.mubr.msk.bf16.gmra.mxu0 %vm3049_vm13, %v8845_v22  ;;  %11319 = vmatmul.mubr.msk.bf16.gmra.mxu1 %vm3049_vm13, %v8849_v1 }
 0xfbb   : > { %9241 = vmatprep.mubr.bf16.mxu0 %v18700_v18  ;;  %9391 = vmatprep.mubr.bf16.mxu1 %v18700_v18 }
 0xfc2   : > { %11300 = vmatmul.mubr.msk.bf16.gmra.mxu0 %vm3049_vm13, %v8846_v2  ;;  %11320 = vmatmul.mubr.msk.bf16.gmra.mxu1 %vm3049_vm13, %v8850_v14 }
0x103a   : > { %v9079_v13 = vpop.f32.mrf.mxu1 }
0x103c   : > { %v9081_v15 = vpop.f32.mrf.mxu1 }
0x103e   : > { %v9083_v63 = vpop.f32.mrf.mxu1 }
0x1040   : > { %v9085_v40 = vpop.f32.mrf.mxu1 }
0x1042   : > { %v9089_v31 = vpop.f32.mrf.mxu1 }
0x1044   : > { %v9091_v46 = vpop.f32.mrf.mxu1 }
0x1046   : > { %v9093_v58 = vpop.f32.mrf.mxu1 }
0x1048   : > { %v9095_v4 = vpop.f32.mrf.mxu1 }
0x104a   : > { %v8954_v37 = vpop.f32.mrf.mxu0  ;;  %v17349_v36 = vpop.f32.mrf.mxu1 }
0x104b   : > { %v9080_v11 = vadd.f32 %v9079_v13, %v8954_v37 }
0x104c   : > { %v8956_v45 = vpop.f32.mrf.mxu0  ;;  %v17351_v49 = vpop.f32.mrf.mxu1 }
0x104d   : > { %v9082_v32 = vadd.f32 %v9081_v15, %v8956_v45 }
0x104e   : > { %v8958_v59 = vpop.f32.mrf.mxu0  ;;  %v17353_v24 = vpop.f32.mrf.mxu1 }
0x104f   : > { %v9084_v60 = vadd.f32 %v9083_v63, %v8958_v59 }
0x1050   : > { %v8960_v41 = vpop.f32.mrf.mxu0  ;;  %v17355_v55 = vpop.f32.mrf.mxu1 }
0x1051   : > { %v9086_v26 = vadd.f32 %v9085_v40, %v8960_v41 }
0x1052   : > { %v8964_v17 = vpop.f32.mrf.mxu0  ;;  %v17357_v23 = vpop.f32.mrf.mxu1 }
0x1053   : > { %v9090_v29 = vadd.f32 %v9089_v31, %v8964_v17 }
0x1054   : > { %v8966_v5 = vpop.f32.mrf.mxu0  ;;  %v17359_v28 = vpop.f32.mrf.mxu1 }
0x1055   : > { %v9092_v57 = vadd.f32 %v9091_v46, %v8966_v5 }
0x1056   : > { %v8968_v6 = vpop.f32.mrf.mxu0  ;;  %v17365_v25 = vpop.f32.mrf.mxu1 }
0x1057   : > { %v9094_v34 = vadd.f32 %v9093_v58, %v8968_v6 }
0x1058   : > { %v8970_v48 = vpop.f32.mrf.mxu0  ;;  %v17371_v0 = vpop.f32.mrf.mxu1 }
0x1059   : > { %v9096_v15 = vadd.f32 %v9095_v4, %v8970_v48 }
0x105a   : > { %v8974_v44 = vpop.f32.mrf.mxu0 }
0x105b   : > { %v9100_v46 = vadd.f32 %v17349_v36, %v8974_v44 }
0x105c   : > { %v8976_v56 = vpop.f32.mrf.mxu0 }
0x105d   : > { %v9102_v4 = vadd.f32 %v17351_v49, %v8976_v56 }
0x105e   : > { %v8978_v43 = vpop.f32.mrf.mxu0 }
0x105f   : > { %v9104_v48 = vadd.f32 %v17353_v24, %v8978_v43 }
0x1060   : > { %v17361_v52 = vpop.f32.mrf.mxu0 }
0x1062   : > { %v17363_v47 = vpop.f32.mrf.mxu0 }
0x1063   : > { %v9110_v43 = vadd.f32 %v17357_v23, %v17363_v47 }
0x1064   : > { %v17367_v27 = vpop.f32.mrf.mxu0 }
0x1066   : > { %v17369_v35 = vpop.f32.mrf.mxu0 }
0x1068   : > { %v17373_v53 = vpop.f32.mrf.mxu0 }
0x1069   : > { %v9116_v23 = vadd.f32 %v17371_v0, %v17373_v53 }
0x106a   : > { %v9213_v38 = vpop.f32.mrf.mxu0  ;;  %v9363_v39 = vpop.f32.mrf.mxu1 }
0x106b   : > { %v9252_v61 = vadd.f32 %v9213_v38, %v9080_v11 }
0x106c   : > { %v9215_v9 = vpop.f32.mrf.mxu0  ;;  %v9365_v21 = vpop.f32.mrf.mxu1 }
0x106d   : > { %v9253_v16 = vadd.f32 %v9215_v9, %v9082_v32  ;;  %v9402_v3 = vadd.f32 %v9363_v39, %v9252_v61  ;;  %v9106_v61 = vadd.f32 %v17355_v55, %v17361_v52  ;;  %v9112_v55 = vadd.f32 %v17359_v28, %v17367_v27 }
0x106e   : > { %v9217_v30 = vpop.f32.mrf.mxu0  ;;  %v9367_v19 = vpop.f32.mrf.mxu1  ;;  %v9114_v52 = vadd.f32 %v17365_v25, %v17369_v35 }
0x106f   : > { %v9254_v10 = vadd.f32 %v9217_v30, %v9084_v60  ;;  %v9403_v1 = vadd.f32 %v9365_v21, %v9253_v16 }
0x1070   : > { %v9219_v7 = vpop.f32.mrf.mxu0  ;;  %v9369_v12 = vpop.f32.mrf.mxu1 }
0x1071   : > { %v9404_v20 = vadd.f32 %v9367_v19, %v9254_v10  ;;  %v9255_v50 = vadd.f32 %v9219_v7, %v9086_v26 }
0x1072   : > { %v9223_v51 = vpop.f32.mrf.mxu0  ;;  %v9373_v22 = vpop.f32.mrf.mxu1 }
0x1073   : > { %v9418_v33 = vpack.c.bf16 %v9404_v20, %v9402_v3  ;;  %v9405_v42 = vadd.f32 %v9369_v12, %v9255_v50  ;;  %v9256_v2 = vadd.f32 %v9223_v51, %v9090_v29 }
0x1074   : > { %v9225_v8 = vpop.f32.mrf.mxu0  ;;  %v9375_v62 = vpop.f32.mrf.mxu1 }
0x1075   : > { %v9419_v54 = vpack.c.bf16 %v9405_v42, %v9403_v1  ;;  %9434 = vrot.lane.b32.xlu0 %v9418_v33, %s18821_s2  ;;  %v9257_v63 = vadd.f32 %v9225_v8, %v9092_v57  ;;  %v9406_v45 = vadd.f32 %v9373_v22, %v9256_v2  ;;  %v18824_v2 = vld [vmem:[#allocation6_spill] sm:$0xff] }
0x1076   : > { %v9227_v14 = vpop.f32.mrf.mxu0  ;;  %v9377_v13 = vpop.f32.mrf.mxu1  ;;  %vm18825_vm4 = vcmp.ne.s16.totalorder %v18824_v2, 0 }
0x1077   : > { %v9258_v40 = vadd.f32 %v9227_v14, %v9094_v34  ;;  %9436 = vrot.lane.b32.xlu1 %v9419_v54, %s18821_s2  ;;  %v9407_v58 = vadd.f32 %v9375_v62, %v9257_v63 }
0x1078   : > { %v9229_v37 = vpop.f32.mrf.mxu0  ;;  %v9379_v31 = vpop.f32.mrf.mxu1 }
0x1079   : > { %v9408_v59 = vadd.f32 %v9377_v13, %v9258_v40  ;;  %v9259_v41 = vadd.f32 %v9229_v37, %v9096_v15  ;;  %v18827_v15 = vld [vmem:[#allocation11_spill] sm:$0xff] }
0x107a   : > { %v9233_v17 = vpop.f32.mrf.mxu0  ;;  %v9383_v38 = vpop.f32.mrf.mxu1  ;;  %vm18828_vm3 = vcmp.ne.s16.totalorder %v18827_v15, 0  ;;  %v18829_v40 = vld [vmem:[#allocation7_spill] sm:$0xff] }
0x107b   : > { %v9420_v5 = vpack.c.bf16 %v9408_v59, %v9406_v45  ;;  %v9409_v6 = vadd.f32 %v9379_v31, %v9259_v41  ;;  %v9260_v21 = vadd.f32 %v9233_v17, %v9100_v46  ;;  %vm18830_vm0 = vcmp.ne.s16.totalorder %v18829_v40, 0  ;;  %v18831_v31 = vld [vmem:[#allocation10_spill] sm:$0xff]  ;;  %v18836_v46 = vld [vmem:[#allocation19_spill] sm:$0xff] }
0x107c   : > { %v9235_v39 = vpop.f32.mrf.mxu0  ;;  %v9385_v11 = vpop.f32.mrf.mxu1  ;;  %vm18832_vm14 = vcmp.ne.s16.totalorder %v18831_v31, 0  ;;  %v18833_v59 = vld [vmem:[#allocation18_spill] sm:$0xff] }
0x107d   : > { %v9421_v9 = vpack.c.bf16 %v9409_v6, %v9407_v58  ;;  %9438 = vrot.lane.b32.xlu0 %v9420_v5, %s18821_s2  ;;  %v9261_v30 = vadd.f32 %v9235_v39, %v9102_v4  ;;  %v9410_v26 = vadd.f32 %v9383_v38, %v9260_v21  ;;  %vm18834_vm10 = vcmp.ne.s16.totalorder %v18833_v59, 0  ;;  %v18839_v6 = vld [vmem:[#allocation16_spill] sm:$0xff] }
0x107e   : > { %v9237_v32 = vpop.f32.mrf.mxu0  ;;  %v9387_v60 = vpop.f32.mrf.mxu1 }
0x107f   : > { %v9262_v36 = vadd.f32 %v9237_v32, %v9104_v48  ;;  %9440 = vrot.lane.b32.xlu1 %v9421_v9, %s18821_s2  ;;  %v9411_v10 = vadd.f32 %v9385_v11, %v9261_v30  ;;  %v18847_v30 = vld [vmem:[#allocation20_spill] sm:$0xff] }
0x1080   : > { %v9239_v44 = vpop.f32.mrf.mxu0  ;;  %v9389_v19 = vpop.f32.mrf.mxu1 }
0x1081   : > { %v9412_v16 = vadd.f32 %v9387_v60, %v9262_v36  ;;  %v9263_v49 = vadd.f32 %v9239_v44, %v9106_v61 }
0x1082   : > { %v9243_v56 = vpop.f32.mrf.mxu0  ;;  %v9393_v24 = vpop.f32.mrf.mxu1 }
0x1083   : > { %v9422_v7 = vpack.c.bf16 %v9412_v16, %v9410_v26  ;;  %v9413_v12 = vadd.f32 %v9389_v19, %v9263_v49  ;;  %v9264_v51 = vadd.f32 %v9243_v56, %v9110_v43  ;;  %v18850_v26 = vld [vmem:[#allocation15_spill] sm:$0xff] }
0x1084   : > { %v9245_v3 = vpop.f32.mrf.mxu0  ;;  %v9395_v20 = vpop.f32.mrf.mxu1 }
0x1085   : > { %v9423_v50 = vpack.c.bf16 %v9413_v12, %v9411_v10  ;;  %9442 = vrot.lane.b32.xlu0 %v9422_v7, %s18821_s2  ;;  %v9265_v47 = vadd.f32 %v9245_v3, %v9112_v55  ;;  %v9414_v42 = vadd.f32 %v9393_v24, %v9264_v51 }
0x1086   : > { %v9247_v22 = vpop.f32.mrf.mxu0  ;;  %v9397_v29 = vpop.f32.mrf.mxu1 }
0x1087   : > { %v9266_v1 = vadd.f32 %v9247_v22, %v9114_v52  ;;  %9444 = vrot.lane.b32.xlu1 %v9423_v50, %s18821_s2  ;;  %v9415_v62 = vadd.f32 %v9395_v20, %v9265_v47 }
0x1088   : > { %v9249_v33 = vpop.f32.mrf.mxu0  ;;  %v9399_v27 = vpop.f32.mrf.mxu1 }
0x1089   : > { %v9416_v8 = vadd.f32 %v9397_v29, %v9266_v1  ;;  %v9267_v28 = vadd.f32 %v9249_v33, %v9116_v23 }
0x108b   : > { %v9424_v25 = vpack.c.bf16 %v9416_v8, %v9414_v42  ;;  %v9417_v35 = vadd.f32 %v9399_v27, %v9267_v28 }
0x108d   : > { %v9425_v57 = vpack.c.bf16 %v9417_v35, %v9415_v62  ;;  %9446 = vrot.lane.b32.xlu0 %v9424_v25, %s18821_s2 }
0x108f   : > { %9448 = vrot.lane.b32.xlu1 %v9425_v57, %s18821_s2 }
0x10e7   : > { %v9435_v34 = vpop.permute.xlu0 %9434 }
0x10e8   : > { %v17397_v0 = vsel %vm18822_vm11, 0, %v9435_v34  ;;  %vm18837_vm11 = vcmp.ne.s16.totalorder %v18836_v46, 0 }
0x10e9   : > { %9702 = vrot.lane.b32.xlu0 %v17397_v0, %s18564_s28  ;;  %9558 = vrot.lane.b32.xlu1 %v17397_v0, %s18603_s23  ;;  %v9437_v53 = vpop.permute.xlu1 %9436  ;;  %v9514_v14 = vsel %vm18825_vm4, %v17397_v0, 0  ;;  %v9502_v63 = vsel %vm18828_vm3, %v17397_v0, 0  ;;  %vm18840_vm4 = vcmp.ne.s16.totalorder %v18839_v6, 0 }
0x10ea   : > { %v17404_v54 = vsel %vm18823_vm5, %v9437_v53, 0  ;;  %v17413_v13 = vsel %vm18826_vm9, %v9435_v34, %v9437_v53  ;;  %vm18838_vm5 = vmmov %vm18828_vm3  ;;  %vm18842_vm3 = vcmp.ne.s16.totalorder %v18824_v2, 0 }
0x10eb   : > { %v9516_v37 = vsel %vm18830_vm0, %v17404_v54, 0  ;;  %v9504_v45 = vsel %vm18832_vm14, %v17404_v54, 0  ;;  %v9515_v41 = vsel %vm18834_vm10, %v17413_v13, 0  ;;  %v9503_v58 = vsel %vm18837_vm11, %v17413_v13, 0  ;;  %vm18841_vm9 = vmmov %vm18835_vm1 }
0x10ec   : > { %vm18843_vm0 = vmmov %vm18835_vm1  ;;  %vm18844_vm14 = vcmp.ne.s16.totalorder %v18829_v40, 0 }
0x10ed   : > { %9754 = vrot.lane.b32.xlu1 %v9514_v14, %s18612_s22  ;;  %9562 = vrot.lane.b32.xlu0 %v17404_v54, %s18603_s23 }
0x10ef   : > { %v9439_v17 = vpop.permute.xlu0 %9438 }
0x10f0   : > { %v17440_v38 = vsel %vm18835_vm1, 0, %v9439_v17  ;;  %vm18845_vm1 = vmmov %vm18837_vm11  ;;  %vm18846_vm11 = vcmp.ne.s16.totalorder %v18831_v31, 0 }
0x10f1   : > { %9662 = vrot.lane.b32.xlu1 %v9502_v63, %s18610_s4  ;;  %9704 = vrot.lane.b32.xlu0 %v17413_v13, %s18564_s28  ;;  %v9505_v5 = vsel %vm18838_vm5, %v17440_v38, 0  ;;  %v9493_v39 = vsel %vm18840_vm4, %v17440_v38, 0  ;;  %v9441_v11 = vpop.permute.xlu1 %9440  ;;  %v9517_v48 = vsel %vm18842_vm3, %v17440_v38, 0  ;;  %vm18848_vm5 = vcmp.ne.s16.totalorder %v18847_v30, 0  ;;  %vm18849_vm4 = vmmov %vm18843_vm0 }
0x10f2   : > { %v17461_v4 = vsel %vm18841_vm9, %v9441_v11, 0  ;;  %v17470_v9 = vsel %vm18843_vm0, %v9439_v17, %v9441_v11  ;;  %vm18851_vm9 = vcmp.ne.s16.totalorder %v18850_v26, 0  ;;  %vm18852_vm0 = vcmp.ne.s16.totalorder %v18827_v15, 0 }
0x10f3   : > { %v9519_v21 = vsel %vm18844_vm14, %v17461_v4, 0  ;;  %v9518_v32 = vsel %vm18834_vm10, %v17470_v9, 0  ;;  %v9506_v60 = vsel %vm18845_vm1, %v17470_v9, 0  ;;  %v9507_v61 = vsel %vm18846_vm11, %v17461_v4, 0  ;;  %vm18853_vm14 = vmmov %vm18849_vm4 }
0x10f4   : > { %v9494_v36 = vsel %vm18848_vm5, %v17470_v9, 0  ;;  %v9495_v16 = vsel %vm18851_vm9, %v17461_v4, 0  ;;  %vm18854_vm10 = vcmp.ne.s16.totalorder %v18839_v6, 0  ;;  %vm18855_vm1 = vmmov %vm18849_vm4  ;;  %vm18856_vm11 = vcmp.ne.s16.totalorder %v18829_v40, 0 }
0x10f5   : > { %9848 = vrot.lane.b32.xlu0 %v17413_v13, %s18552_s24  ;;  %9560 = vrot.lane.b32.xlu1 %v17413_v13, %s18603_s23  ;;  %vm18857_vm5 = vcmp.ne.s16.totalorder %v18831_v31, 0 }
0x10f7   : > { %v9443_v44 = vpop.permute.xlu0 %9442 }
0x10f8   : > { %v17503_v19 = vsel %vm18849_vm4, 0, %v9443_v44  ;;  %vm18858_vm4 = vcmp.ne.s16.totalorder %v18833_v59, 0 }
0x10f9   : > { %9758 = vrot.lane.b32.xlu0 %v9516_v37, %s18612_s22  ;;  %9706 = vrot.lane.b32.xlu1 %v17404_v54, %s18564_s28  ;;  %v9520_v49 = vsel %vm18842_vm3, %v17503_v19, 0  ;;  %v9508_v56 = vsel %vm18852_vm0, %v17503_v19, 0  ;;  %v9445_v24 = vpop.permute.xlu1 %9444  ;;  %v9496_v10 = vsel %vm18854_vm10, %v17503_v19, 0  ;;  %vm18859_vm3 = vcmp.ne.s16.totalorder %v18836_v46, 0  ;;  %vm18860_vm0 = vmmov %vm18855_vm1 }
0x10fa   : > { %v17524_v43 = vsel %vm18853_vm14, %v9445_v24, 0  ;;  %v17533_v7 = vsel %vm18855_vm1, %v9443_v44, %v9445_v24  ;;  %vm18861_vm14 = vcmp.ne.s16.totalorder %v18847_v30, 0  ;;  %vm18862_vm10 = vcmp.ne.s16.totalorder %v18827_v15, 0  ;;  %v18881_v24 = vld [vmem:[#allocation8_spill] sm:$0xff] }
0x10fb   : > { %v9522_v12 = vsel %vm18856_vm11, %v17524_v43, 0  ;;  %v9510_v3 = vsel %vm18857_vm5, %v17524_v43, 0  ;;  %v9521_v20 = vsel %vm18858_vm4, %v17533_v7, 0  ;;  %v9498_v55 = vsel %vm18851_vm9, %v17524_v43, 0  ;;  %vm18864_vm11 = vmmov %vm18860_vm0 }
0x10fc   : > { %v9509_v52 = vsel %vm18859_vm3, %v17533_v7, 0  ;;  %v9497_v22 = vsel %vm18861_vm14, %v17533_v7, 0  ;;  %vm18863_vm1 = vcmp.ne.s16.totalorder %v18839_v6, 0  ;;  %vm18865_vm5 = vcmp.ne.s16.totalorder %v18824_v2, 0  ;;  %vm18866_vm4 = vmmov %vm18860_vm0 }
0x10fd   : > { %9666 = vrot.lane.b32.xlu0 %v9504_v45, %s18610_s4  ;;  %9756 = vrot.lane.b32.xlu1 %v9515_v41, %s18612_s22  ;;  %vm18867_vm9 = vcmp.ne.s16.totalorder %v18829_v40, 0  ;;  %vm18868_vm3 = vcmp.ne.s16.totalorder %v18833_v59, 0 }
0x10ff   : > { %v9447_v50 = vpop.permute.xlu0 %9446 }
0x1100   : > { %v17566_v51 = vsel %vm18860_vm0, 0, %v9447_v50  ;;  %vm18870_vm0 = vmmov %vm18861_vm14 }
0x1101   : > { %9564 = vrot.lane.b32.xlu0 %v17440_v38, %s18603_s23  ;;  %9664 = vrot.lane.b32.xlu1 %v9503_v58, %s18610_s4  ;;  %v9511_v29 = vsel %vm18862_vm10, %v17566_v51, 0  ;;  %v9499_v23 = vsel %vm18863_vm1, %v17566_v51, 0  ;;  %v9449_v47 = vpop.permute.xlu1 %9448  ;;  %v9523_v33 = vsel %vm18865_vm5, %v17566_v51, 0  ;;  %v9491_v63 = vsel %vm18870_vm0, %v17413_v13, 0  ;;  %vm18871_vm14 = vmmov %vm18863_vm1 }
0x1102   : > { %v17587_v1 = vsel %vm18864_vm11, %v9449_v47, 0  ;;  %v17596_v42 = vsel %vm18866_vm4, %v9447_v50, %v9449_v47  ;;  %v9490_v41 = vsel %vm18871_vm14, %v17397_v0, 0  ;;  %vm18872_vm10 = vcmp.ne.s16.totalorder %v18850_v26, 0 }
0x1103   : > { %v9525_v57 = vsel %vm18867_vm9, %v17587_v1, 0  ;;  %v9524_v34 = vsel %vm18868_vm3, %v17596_v42, 0  ;;  %v9492_v17 = vsel %vm18872_vm10, %v17404_v54, 0  ;;  %vm18879_vm4 = vcmp.ne.s16.totalorder %v18836_v46, 0 }
0x1104   : > { %v9512_v44 = vsel %vm18879_vm4, %v17596_v42, 0  ;;  %vm18880_vm9 = vcmp.ne.s16.totalorder %v18831_v31, 0  ;;  %vm18882_vm3 = vcmp.ne.s16.totalorder %v18881_v24, 0  ;;  %vm18893_vm4 = vcmp.ne.s16.totalorder %v18850_v26, 0 }
0x1105   : > { %9708 = vrot.lane.b32.xlu0 %v17440_v38, %s18564_s28  ;;  %9668 = vrot.lane.b32.xlu1 %v9505_v5, %s18610_s4 }
0x1109   : > { %9852 = vrot.lane.b32.xlu0 %v17440_v38, %s18552_s24  ;;  %9616 = vrot.lane.b32.xlu1 %v9493_v39, %s18607_s29  ;;  %v18873_v39 = vld [vmem:[#allocation14_spill] sm:$0xff] }
0x110a   : > { %vm18874_vm1 = vcmp.ne.s16.totalorder %v18873_v39, 0 }
0x110b   : > { %v9547_v11 = vsel %vm18874_vm1, %v17566_v51, 0  ;;  %v9544_v47 = vsel %vm18874_vm1, %v17503_v19, 0 }
0x110d   : > { %9760 = vrot.lane.b32.xlu0 %v9517_v48, %s18612_s22  ;;  %9568 = vrot.lane.b32.xlu1 %v17461_v4, %s18603_s23  ;;  %v18875_v48 = vld [vmem:[#allocation9_spill] sm:$0xff] }
0x110e   : > { %vm18876_vm11 = vcmp.ne.s16.totalorder %v18875_v48, 0 }
0x110f   : > { %vm18885_vm0 = vmmov %vm18876_vm11 }
0x1111   : > { %9712 = vrot.lane.b32.xlu1 %v17461_v4, %s18564_s28  ;;  %9566 = vrot.lane.b32.xlu0 %v17470_v9, %s18603_s23 }
0x1115   : > { %9856 = vrot.lane.b32.xlu1 %v17461_v4, %s18552_s24  ;;  %9710 = vrot.lane.b32.xlu0 %v17470_v9, %s18564_s28 }
0x1119   : > { %9764 = vrot.lane.b32.xlu1 %v9519_v21, %s18612_s22  ;;  %9854 = vrot.lane.b32.xlu0 %v17470_v9, %s18552_s24  ;;  %v9535_v21 = vsel %vm18876_vm11, %v17566_v51, 0 }
0x111d   : > { %9762 = vrot.lane.b32.xlu0 %v9518_v32, %s18612_s22  ;;  %9670 = vrot.lane.b32.xlu1 %v9506_v60, %s18610_s4 }
0x1121   : > { %9672 = vrot.lane.b32.xlu0 %v9507_v61, %s18610_s4  ;;  %9618 = vrot.lane.b32.xlu1 %v9494_v36, %s18607_s29  ;;  %v18877_v61 = vld [vmem:[#allocation13_spill] sm:$0xff] }
0x1122   : > { %vm18878_vm5 = vcmp.ne.s16.totalorder %v18877_v61, 0 }
0x1123   : > { %v9533_v36 = vsel %vm18878_vm5, %v17533_v7, 0  ;;  %vm18890_vm11 = vmmov %vm18878_vm5  ;;  %vm18891_vm5 = vcmp.ne.s16.totalorder %v18847_v30, 0 }
0x1124   : > { %vm18901_vm1 = vmmov %vm18890_vm11 }
0x1125   : > { %9620 = vrot.lane.b32.xlu0 %v9495_v16, %s18607_s29  ;;  %9570 = vrot.lane.b32.xlu1 %v17503_v19, %s18603_s23 }
0x1129   : > { %9714 = vrot.lane.b32.xlu0 %v17503_v19, %s18564_s28  ;;  %9766 = vrot.lane.b32.xlu1 %v9520_v49, %s18612_s22 }
0x112d   : > { %9858 = vrot.lane.b32.xlu0 %v17503_v19, %s18552_s24  ;;  %9674 = vrot.lane.b32.xlu1 %v9508_v56, %s18610_s4  ;;  %v9513_v56 = vsel %vm18880_vm9, %v17587_v1, 0  ;;  %vm18894_vm9 = vmmov %vm18882_vm3 }
0x1131   : > { %9622 = vrot.lane.b32.xlu1 %v9496_v10, %s18607_s29  ;;  %9574 = vrot.lane.b32.xlu0 %v17524_v43, %s18603_s23  ;;  %v9534_v10 = vsel %vm18882_vm3, %v17524_v43, 0  ;;  %vm18896_vm3 = vmmov %vm18885_vm0 }
0x1135   : > { %9716 = vrot.lane.b32.xlu0 %v17533_v7, %s18564_s28  ;;  %9572 = vrot.lane.b32.xlu1 %v17533_v7, %s18603_s23 }
0x1139   : > { %9860 = vrot.lane.b32.xlu0 %v17533_v7, %s18552_s24  ;;  %9718 = vrot.lane.b32.xlu1 %v17524_v43, %s18564_s28 }
0x113d   : > { %9770 = vrot.lane.b32.xlu0 %v9522_v12, %s18612_s22  ;;  %9862 = vrot.lane.b32.xlu1 %v17524_v43, %s18552_s24 }
0x1141   : > { %9678 = vrot.lane.b32.xlu0 %v9510_v3, %s18610_s4  ;;  %9768 = vrot.lane.b32.xlu1 %v9521_v20, %s18612_s22  ;;  %v9532_v20 = vsel %vm18885_vm0, %v17503_v19, 0 }
0x1145   : > { %9626 = vrot.lane.b32.xlu0 %v9498_v55, %s18607_s29  ;;  %9676 = vrot.lane.b32.xlu1 %v9509_v52, %s18610_s4  ;;  %v18886_v55 = vld [vmem:[#allocation17_spill] sm:$0xff] }
0x1146   : > { %vm18887_vm14 = vcmp.ne.s16.totalorder %v18886_v55, 0 }
0x1147   : > { %v9545_v52 = vsel %vm18887_vm14, %v17533_v7, 0  ;;  %vm18897_vm0 = vmmov %vm18887_vm14 }
0x1149   : > { %9576 = vrot.lane.b32.xlu0 %v17566_v51, %s18603_s23  ;;  %9624 = vrot.lane.b32.xlu1 %v9497_v22, %s18607_s29 }
0x114d   : > { %9720 = vrot.lane.b32.xlu0 %v17566_v51, %s18564_s28  ;;  %9680 = vrot.lane.b32.xlu1 %v9511_v29, %s18610_s4  ;;  %v18888_v29 = vld [vmem:[#allocation12_spill] sm:$0xff] }
0x114e   : > { %vm18889_vm10 = vcmp.ne.s16.totalorder %v18888_v29, 0 }
0x114f   : > { %vm18898_vm14 = vmmov %vm18889_vm10 }
0x1151   : > { %9864 = vrot.lane.b32.xlu0 %v17566_v51, %s18552_s24  ;;  %9628 = vrot.lane.b32.xlu1 %v9499_v23, %s18607_s29  ;;  %v9546_v23 = vsel %vm18889_vm10, %v17524_v43, 0  ;;  %v9500_v43 = vsel %vm18891_vm5, %v17596_v42, 0  ;;  %vm18899_vm10 = vmmov %vm18894_vm9 }
0x1152   : > { %vm18904_vm5 = vmmov %vm18898_vm14 }
0x1155   : > { %9772 = vrot.lane.b32.xlu0 %v9523_v33, %s18612_s22  ;;  %9580 = vrot.lane.b32.xlu1 %v17587_v1, %s18603_s23 }
0x1159   : > { %9850 = vrot.lane.b32.xlu1 %v17404_v54, %s18552_s24  ;;  %9578 = vrot.lane.b32.xlu0 %v17596_v42, %s18603_s23 }
0x115b   : > { %v17602_v8 = vpop.permute.xlu0 %9702  ;;  %v17604_v28 = vpop.permute.xlu1 %9558 }
0x115d   : > { %9724 = vrot.lane.b32.xlu1 %v17587_v1, %s18564_s28  ;;  %9722 = vrot.lane.b32.xlu0 %v17596_v42, %s18564_s28 }
0x115f   : > { %v17610_v27 = vpop.permute.xlu0 %9562  ;;  %v17612_v62 = vpop.permute.xlu1 %9754 }
0x1161   : > { %9868 = vrot.lane.b32.xlu1 %v17587_v1, %s18552_s24  ;;  %9866 = vrot.lane.b32.xlu0 %v17596_v42, %s18552_s24 }
0x1163   : > { %v17618_v25 = vpop.permute.xlu0 %9704  ;;  %v17620_v35 = vpop.permute.xlu1 %9662 }
0x1165   : > { %9776 = vrot.lane.b32.xlu1 %v9525_v57, %s18612_s22  ;;  %9774 = vrot.lane.b32.xlu0 %v9524_v34, %s18612_s22  ;;  %v9530_v34 = vsel %vm18890_vm11, %v17470_v9, 0  ;;  %vm18902_vm11 = vmmov %vm18897_vm0 }
0x1167   : > { %v17630_v53 = vpop.permute.xlu0 %9848  ;;  %v17632_v14 = vpop.permute.xlu1 %9560 }
0x1168   : > { %18869 = vst [vmem:[#allocation43_spill] sm:$0xff] %v17630_v53 }
0x1169   : > { %9612 = vrot.lane.b32.xlu1 %v9491_v63, %s18607_s29  ;;  %9846 = vrot.lane.b32.xlu0 %v17397_v0, %s18552_s24 }
0x116b   : > { %v17640_v37 = vpop.permute.xlu0 %9758  ;;  %v17642_v45 = vpop.permute.xlu1 %9706 }
0x116d   : > { %9610 = vrot.lane.b32.xlu1 %v9490_v41, %s18607_s29  ;;  %9614 = vrot.lane.b32.xlu0 %v9492_v17, %s18607_s29  ;;  %v9501_v17 = vsel %vm18893_vm4, %v17587_v1, 0  ;;  %vm18905_vm4 = vcmp.ne.s16.totalorder %v18873_v39, 0 }
0x116f   : > { %v17652_v58 = vpop.permute.xlu0 %9666  ;;  %v17654_v5 = vpop.permute.xlu1 %9756 }
0x1171   : > { %9916 = vrot.lane.b32.xlu1 %v9547_v11, %s18568_s26  ;;  %9824 = vrot.lane.b32.xlu0 %v9535_v21, %s18556_s27  ;;  %v9531_v11 = vsel %vm18894_vm9, %v17461_v4, 0  ;;  %vm18906_vm9 = vmmov %vm18901_vm1 }
0x1173   : > { %v17664_v32 = vpop.permute.xlu0 %9564  ;;  %v17666_v60 = vpop.permute.xlu1 %9664 }
0x1175   : > { %9820 = vrot.lane.b32.xlu0 %v9533_v36, %s18556_s27  ;;  %9682 = vrot.lane.b32.xlu1 %v9512_v44, %s18610_s4  ;;  %v9529_v44 = vsel %vm18896_vm3, %v17440_v38, 0  ;;  %vm18907_vm3 = vmmov %vm18899_vm10 }
0x1177   : > { %v17676_v16 = vpop.permute.xlu0 %9708  ;;  %v17678_v49 = vpop.permute.xlu1 %9668 }
0x1179   : > { %9684 = vrot.lane.b32.xlu0 %v9513_v56, %s18610_s4  ;;  %9822 = vrot.lane.b32.xlu1 %v9534_v10, %s18556_s27  ;;  %v9542_v56 = vsel %vm18897_vm0, %v17470_v9, 0  ;;  %v13183_v10 = vld [vmem:[%s18334_s7 + $0x4] ss:$20 sps:$4 sm:$0xff]   ;;  %vm18908_vm0 = vcmp.ne.s16.totalorder %v18875_v48, 0 }
0x117a   : > { %10062 = vmatprep.mubr.bf16.mxu0 %v13183_v10  ;;  %v9541_v10 = vsel %vm18905_vm4, %v17440_v38, 0 }
0x117b   : > { %v17688_v12 = vpop.permute.xlu0 %9852  ;;  %v17690_v3 = vpop.permute.xlu1 %9616 }
0x117c   : > { %18883 = vst [vmem:[#allocation40_spill] sm:$0xff] %v17688_v12  ;;  %18884 = vst [vmem:[#allocation39_spill] sm:$0xff] %v17690_v3 }
0x117d   : > { %9818 = vrot.lane.b32.xlu0 %v9532_v20, %s18556_s27  ;;  %9912 = vrot.lane.b32.xlu1 %v9545_v52, %s18568_s26 }
0x117f   : > { %v17700_v50 = vpop.permute.xlu0 %9760  ;;  %v17702_v22 = vpop.permute.xlu1 %9568 }
0x1181   : > { %9914 = vrot.lane.b32.xlu0 %v9546_v23, %s18568_s26  ;;  %9910 = vrot.lane.b32.xlu1 %v9544_v47, %s18568_s26  ;;  %v9543_v23 = vsel %vm18898_vm14, %v17461_v4, 0  ;;  %v9537_v47 = vsel %vm18899_vm10, %v17587_v1, 0  ;;  %v9548_v4 = vsel %vm18902_vm11, %v17596_v42, 0  ;;  %vm18909_vm14 = vmmov %vm18902_vm11 }
0x1182   : > { %v9539_v40 = vsel %vm18909_vm14, %v17413_v13, 0  ;;  %vm18911_vm10 = vmmov %vm18904_vm5 }
0x1183   : > { %v17712_v33 = vpop.permute.xlu0 %9566  ;;  %v17714_v57 = vpop.permute.xlu1 %9712 }
0x1185   : > { %9814 = vrot.lane.b32.xlu0 %v9530_v34, %s18556_s27  ;;  %9630 = vrot.lane.b32.xlu1 %v9500_v43, %s18607_s29 }
0x1187   : > { %v17724_v63 = vpop.permute.xlu0 %9710  ;;  %v17726_v41 = vpop.permute.xlu1 %9856 }
0x1188   : > { %18892 = vst [vmem:[#allocation41_spill] sm:$0xff] %v17726_v41 }
0x1189   : > { %9632 = vrot.lane.b32.xlu0 %v9501_v17, %s18607_s29  ;;  %9816 = vrot.lane.b32.xlu1 %v9531_v11, %s18556_s27  ;;  %v9536_v17 = vsel %vm18901_vm1, %v17596_v42, 0  ;;  %vm18912_vm1 = vmmov %vm18905_vm4 }
0x118a   : > { %v9538_v59 = vsel %vm18912_vm1, %v17397_v0, 0  ;;  %vm18935_vm1 = vcmask 785408  }
0x118b   : > { %v17736_v21 = vpop.permute.xlu0 %9854  ;;  %v17738_v36 = vpop.permute.xlu1 %9764 }
0x118c   : > { %18895 = vst [vmem:[#allocation46_spill] sm:$0xff] %v17736_v21 }
0x118d   : > { %9812 = vrot.lane.b32.xlu0 %v9529_v44, %s18556_s27  ;;  %9906 = vrot.lane.b32.xlu1 %v9542_v56, %s18568_s26  ;;  %v9549_v56 = vsel %vm18904_vm5, %v17587_v1, 0  ;;  %v9527_v1 = vsel %vm18906_vm9, %v17413_v13, 0 }
0x118f   : > { %v17751_v20 = vpop.permute.xlu0 %9762  ;;  %v17753_v52 = vpop.permute.xlu1 %9670 }
0x1191   : > { %9908 = vrot.lane.b32.xlu0 %v9543_v23, %s18568_s26  ;;  %9828 = vrot.lane.b32.xlu1 %v9537_v47, %s18556_s27  ;;  %v13189_v23 = vld [vmem:[%s18334_s7 + $0xc] ss:$20 sps:$4 sm:$0xff]  }
0x1192   : > { %10115 = vmatprep.mubr.bf16.mxu1 %v13189_v23  ;;  %v9526_v23 = vsel %vm18908_vm0, %v17397_v0, 0 }
0x1193   : > { %v17763_v34 = vpop.permute.xlu0 %9672  ;;  %v17765_v43 = vpop.permute.xlu1 %9618 }
0x1194   : > { %18900 = vst [vmem:[#allocation22_spill] sm:$0xff] %v17765_v43 }
0x1195   : > { %9826 = vrot.lane.b32.xlu0 %v9536_v17, %s18556_s27  ;;  %9918 = vrot.lane.b32.xlu1 %v9548_v4, %s18568_s26  ;;  %v9528_v4 = vsel %vm18907_vm3, %v17404_v54, 0 }
0x1197   : > { %v17775_v11 = vpop.permute.xlu0 %9620  ;;  %v9571_v44 = vpop.permute.xlu1 %9570 }
0x1198   : > { %18903 = vst [vmem:[#allocation29_spill] sm:$0xff] %v17775_v11 }
0x1199   : > { %9920 = vrot.lane.b32.xlu0 %v9549_v56, %s18568_s26  ;;  %9904 = vrot.lane.b32.xlu1 %v9541_v10, %s18568_s26 }
0x119b   : > { %v17788_v47 = vpop.permute.xlu0 %9714  ;;  %v17790_v17 = vpop.permute.xlu1 %9766 }
0x119d   : > { %9808 = vrot.lane.b32.xlu0 %v9527_v1, %s18556_s27  ;;  %9810 = vrot.lane.b32.xlu1 %v9528_v4, %s18556_s27  ;;  %v9540_v4 = vsel %vm18911_vm10, %v17404_v54, 0  ;;  %v9950_v54 = vld [vmem:[%s18342_s15] sm:$0xff] }
0x119f   : > { %v17800_v56 = vpop.permute.xlu0 %9858  ;;  %v17802_v10 = vpop.permute.xlu1 %9674 }
0x11a1   : > { %9806 = vrot.lane.b32.xlu0 %v9526_v23, %s18556_s27  ;;  %9900 = vrot.lane.b32.xlu1 %v9539_v40, %s18568_s26  ;;  %v9952_v23 = vld [vmem:[%s18342_s15 + $0x10] sm:$0xff]  ;;  %v9953_v40 = vld [vmem:[%s18342_s15 + $0x18] sm:$0xff] }
0x11a3   : > { %v9575_v2 = vpop.permute.xlu0 %9574  ;;  %v17812_v1 = vpop.permute.xlu1 %9622 }
0x11a4   : > { %18910 = vst [vmem:[#allocation44_spill] sm:$0xff] %v17812_v1 }
0x11a5   : > { %9902 = vrot.lane.b32.xlu0 %v9540_v4, %s18568_s26  ;;  %9898 = vrot.lane.b32.xlu1 %v9538_v59, %s18568_s26  ;;  %v9951_v59 = vld [vmem:[%s18342_s15 + $0x8] sm:$0xff] }
0x11a7   : > { %v17828_v55 = vpop.permute.xlu0 %9716  ;;  %v9573_v29 = vpop.permute.xlu1 %9572 }
0x11a8   : > { %v9587_v12 = vsel %vm804_vm8, %v9573_v29, %v9575_v2  ;;  %v9586_v41 = vsel %vm804_vm8, %v9571_v44, %v9573_v29  ;;  %v9583_v2 = vsel %vm804_vm8, %v17632_v14, %v17610_v27  ;;  %v18915_v27 = vld [vmem:[#allocation4_spill] sm:$0xff]  ;;  %v9780_v44 = vsel %vm906_vm12, %v17700_v50, %v17751_v20 }
0x11a9   : > { %9966 = vperm.xlu0 %12652, %v9952_v23   ;;  %9971 = vperm.xlu1 %12653, %v9953_v40   ;;  %vm18916_vm11 = vcmp.ne.s16.totalorder %v18915_v27, 0  ;;  %v9778_v50 = vsel %vm906_vm12, %v17612_v62, %v17654_v5 }
0x11aa   : > { %vm18919_vm4 = vmmov %vm18916_vm11 }
0x11ab   : > { %v17836_v4 = vpop.permute.xlu0 %9860  ;;  %v17838_v39 = vpop.permute.xlu1 %9718  ;;  %vm18921_vm3 = vmmov %vm18919_vm4 }
0x11ac   : > { %vm18923_vm14 = vmmov %vm18921_vm3  ;;  %v9731_v62 = vsel %vm870_vm15, %v17828_v55, %v17838_v39  ;;  %v9729_v39 = vsel %vm870_vm15, %v17724_v63, %v17714_v57  ;;  %v9727_v57 = vsel %vm870_vm15, %v17618_v25, %v17642_v45  ;;  %v9687_v45 = vsel %vm854_vm6, %v17666_v60, %v17652_v58 }
0x11ad   : > { %9956 = vperm.xlu0 %12652, %v9950_v54   ;;  %9961 = vperm.xlu1 %12653, %v9951_v59  }
0x11af   : > { %v9771_v24 = vpop.permute.xlu0 %9770  ;;  %v17840_v48 = vpop.permute.xlu1 %9862 }
0x11b3   : > { %v17842_v61 = vpop.permute.xlu0 %9678  ;;  %v9769_v23 = vpop.permute.xlu1 %9768 }
0x11b7   : > { %v17844_v40 = vpop.permute.xlu0 %9626  ;;  %v17846_v30 = vpop.permute.xlu1 %9676 }
0x11b8   : > { %18913 = vst [vmem:[#allocation23_spill] sm:$0xff] %v17844_v40 }
0x11bb   : > { %v9577_v46 = vpop.permute.xlu0 %9576  ;;  %v17848_v26 = vpop.permute.xlu1 %9624 }
0x11bc   : > { %18914 = vst [vmem:[#allocation35_spill] sm:$0xff] %v17848_v26  ;;  %v9585_v26 = vsel %vm804_vm8, %v17712_v33, %v17702_v22 }
0x11bf   : > { %v17850_v6 = vpop.permute.xlu0 %9720  ;;  %v17852_v31 = vpop.permute.xlu1 %9680 }
0x11c3   : > { %v17854_v15 = vpop.permute.xlu0 %9864  ;;  %v17856_v54 = vpop.permute.xlu1 %9628 }
0x11c7   : > { %v9773_v59 = vpop.permute.xlu0 %9772  ;;  %v9581_v18 = vpop.permute.xlu1 %9580 }
0x11cb   : > { %v9579_v3 = vpop.permute.xlu0 %9578  ;;  %v17858_v53 = vpop.permute.xlu1 %9850 }
0x11cc   : > { %v9588_v43 = vsel %vm804_vm8, %v9577_v46, %v9579_v3  ;;  %v9589_v11 = vsel %vm804_vm8, %v9579_v3, %v9581_v18  ;;  %v9584_v18 = vsel %vm804_vm8, %v17664_v32, %v17712_v33  ;;  %v9783_v32 = vsel %vm906_vm12, %v9769_v23, %v9771_v24 }
0x11cd   : > { %10030 = vmatprep.subr.bf16.mxu0 %v9589_v11 }
0x11ce   : > { %10031 = vmatpush1.bf16.msra.mxu0 %v9588_v43  ;;  %v18917_v43 = vld [vmem:[#allocation5_spill] sm:$0xff] }
0x11cf   : > { %v9723_v1 = vpop.permute.xlu0 %9722  ;;  %10032 = vmatprep.subr.bf16.mxu0 %v9587_v12  ;;  %v9725_v21 = vpop.permute.xlu1 %9724  ;;  %vm18918_vm5 = vcmp.ne.s16.totalorder %v18917_v43, 0 }
0x11d0   : > { %v9488_v11 = vsel %vm18918_vm5, %v17566_v51, 0  ;;  %vm18920_vm9 = vmmov %vm18918_vm5 }
0x11d1   : > { %v9486_v51 = vsel %vm18920_vm9, %v17503_v19, 0  ;;  %vm18922_vm0 = vmmov %vm18918_vm5 }
0x11d2   : > { %10033 = vmatpush1.bf16.msra.mxu0 %v9586_v41  ;;  %v9484_v19 = vsel %vm18922_vm0, %v17440_v38, 0  ;;  %vm18924_vm10 = vmmov %vm18922_vm0 }
0x11d3   : > { %v17867_v40 = vpop.permute.xlu0 %9866  ;;  %10034 = vmatprep.subr.bf16.mxu0 %v9585_v26  ;;  %v17869_v46 = vpop.permute.xlu1 %9868  ;;  %v9582_v26 = vsel %vm804_vm8, %v17604_v28, %v17632_v14  ;;  %v9782_v28 = vsel %vm906_vm12, %v17790_v17, %v9769_v23  ;;  %v9781_v14 = vsel %vm906_vm12, %v17751_v20, %v17738_v36  ;;  %v9779_v36 = vsel %vm906_vm12, %v17654_v5, %v17640_v37  ;;  %vm18937_vm5 = vmmov %vm18935_vm1 }
0x11d4   : > { %v9733_v37 = vsel %vm870_vm15, %v9723_v1, %v9725_v21  ;;  %v9732_v23 = vsel %vm870_vm15, %v17850_v6, %v9723_v1  ;;  %v9482_v38 = vsel %vm18924_vm10, %v17397_v0, 0  ;;  %v9730_v0 = vsel %vm870_vm15, %v17788_v47, %v17828_v55  ;;  %vm18939_vm9 = vmmov %vm18935_vm1 }
0x11d5   : > { %v9691_v6 = vsel %vm854_vm6, %v17846_v30, %v17842_v61  ;;  %v9690_v55 = vsel %vm854_vm6, %v17802_v10, %v17846_v30  ;;  %v9728_v47 = vsel %vm870_vm15, %v17676_v16, %v17724_v63  ;;  %v9689_v61 = vsel %vm854_vm6, %v17753_v52, %v17763_v34  ;;  %vm18941_vm0 = vmmov %vm18935_vm1 }
0x11d6   : > { %10035 = vmatpush1.bf16.msra.mxu0 %v9584_v18  ;;  %v9688_v30 = vsel %vm854_vm6, %v17678_v49, %v17753_v52  ;;  %v9726_v16 = vsel %vm870_vm15, %v17602_v8, %v17618_v25  ;;  %v9877_v63 = vsel %vm943_vm7, %v17867_v40, %v17869_v46  ;;  %v9876_v49 = vsel %vm943_vm7, %v17854_v15, %v17867_v40 }
0x11d7   : > { %v9775_v12 = vpop.permute.xlu0 %9774  ;;  %10036 = vmatprep.subr.bf16.mxu0 %v9583_v2  ;;  %v9777_v3 = vpop.permute.xlu1 %9776  ;;  %v9686_v8 = vsel %vm854_vm6, %v17620_v35, %v17666_v60  ;;  %v9875_v25 = vsel %vm943_vm7, %v17836_v4, %v17840_v48  ;;  %v9874_v15 = vsel %vm943_vm7, %v17800_v56, %v17836_v4  ;;  %v18925_v35 = vld [vmem:[#allocation23_spill] sm:$0xff]  ;;  %v18927_v48 = vld [vmem:[#allocation41_spill] sm:$0xff]  ;;  %v18930_v56 = vld [vmem:[#allocation40_spill] sm:$0xff] }
0x11d8   : > { %v9784_v29 = vsel %vm906_vm12, %v9773_v59, %v9775_v12  ;;  %v9785_v22 = vsel %vm906_vm12, %v9775_v12, %v9777_v3  ;;  %v18926_v60 = vld [vmem:[#allocation35_spill] sm:$0xff]  ;;  %v18928_v3 = vld [vmem:[#allocation46_spill] sm:$0xff] }
0x11d9   : > { %10083 = vmatprep.subr.bf16.mxu1 %v9785_v22  ;;  %v9639_v40 = vsel %vm821_vm2, %v18926_v60, %v18925_v35  ;;  %v9872_v4 = vsel %vm943_vm7, %v18930_v56, %v18928_v3 }
0x11da   : > { %10037 = vmatpush1.bf16.msra.mxu0 %v9582_v26  ;;  %10084 = vmatpush1.bf16.msra.mxu1 %v9784_v29  ;;  %v9873_v29 = vsel %vm943_vm7, %v18928_v3, %v18927_v48 }
0x11db   : > { %v17883_v33 = vpop.permute.xlu0 %9846  ;;  %11331 = vmatprep.subr.msk.bf16.mxu0 %vm18916_vm11, %v17596_v42  ;;  %10085 = vmatprep.subr.bf16.mxu1 %v9783_v32  ;;  %v17888_v41 = vpop.permute.xlu1 %9612  ;;  %vm18936_vm11 = vmmov %vm18935_vm1 }
0x11de   : > { %10039 = vmatpush1.bf16.msra.mxu0 %v9488_v11  ;;  %10086 = vmatpush1.bf16.msra.mxu1 %v9782_v28  ;;  %v18931_v11 = vld [vmem:[#allocation29_spill] sm:$0xff]  ;;  %v18932_v28 = vld [vmem:[#allocation22_spill] sm:$0xff] }
0x11df   : > { %v17898_v24 = vpop.permute.xlu0 %9614  ;;  %11332 = vmatprep.subr.msk.bf16.mxu0 %vm18919_vm4, %v17533_v7  ;;  %10087 = vmatprep.subr.bf16.mxu1 %v9781_v14  ;;  %v17903_v42 = vpop.permute.xlu1 %9610  ;;  %v9637_v14 = vsel %vm821_vm2, %v18932_v28, %v18931_v11  ;;  %vm18938_vm4 = vcmask 769024  }
0x11e2   : > { %10041 = vmatpush1.bf16.msra.mxu0 %v9486_v51  ;;  %10088 = vmatpush1.bf16.msra.mxu1 %v9780_v44  ;;  %v18933_v51 = vld [vmem:[#allocation43_spill] sm:$0xff] }
0x11e3   : > { %v17914_v17 = vpop.permute.xlu0 %9824  ;;  %11333 = vmatprep.subr.msk.bf16.mxu0 %vm18921_vm3, %v17470_v9  ;;  %10089 = vmatprep.subr.bf16.mxu1 %v9779_v36  ;;  %v17919_v7 = vpop.permute.xlu1 %9916  ;;  %v9871_v44 = vsel %vm943_vm7, %v18933_v51, %v17858_v53  ;;  %vm18940_vm3 = vmmov %vm18938_vm4 }
0x11e4   : > { %vm18943_vm10 = vmmov %vm18940_vm3 }
0x11e6   : > { %10043 = vmatpush1.bf16.msra.mxu0 %v9484_v19  ;;  %10090 = vmatpush1.bf16.msra.mxu1 %v9778_v50  ;;  %v9870_v50 = vsel %vm943_vm7, %v17883_v33, %v18933_v51  ;;  %v9634_v33 = vsel %vm821_vm2, %v17903_v42, %v17888_v41 }
0x11e7   : > { %v17928_v20 = vpop.permute.xlu0 %9820  ;;  %11334 = vmatprep.subr.msk.bf16.mxu0 %vm18923_vm14, %v17413_v13  ;;  %10091 = vmatprep.subr.bf16.mxu1 %v9733_v37  ;;  %v9683_v9 = vpop.permute.xlu1 %9682  ;;  %v18934_v37 = vld [vmem:[#allocation39_spill] sm:$0xff]  ;;  %vm18942_vm14 = vmmov %vm18940_vm3 }
0x11e8   : > { %v9692_v59 = vsel %vm854_vm6, %v17852_v31, %v9683_v9 }
0x11ea   : > { %10045 = vmatpush1.bf16.msra.mxu0 %v9482_v38  ;;  %10092 = vmatpush1.bf16.msra.mxu1 %v9732_v23  ;;  %v9635_v23 = vsel %vm821_vm2, %v17888_v41, %v17898_v24  ;;  %v13186_v41 = vld [vmem:[%s18334_s7 + $0x2c] ss:$20 sps:$4 sm:$0xff]  }
0x11eb   : > { %v9685_v5 = vpop.permute.xlu0 %9684  ;;  %10093 = vmatprep.subr.bf16.mxu1 %v9731_v62  ;;  %v17941_v21 = vpop.permute.xlu1 %9822 }
0x11ec   : > { %v9693_v13 = vsel %vm854_vm6, %v9683_v9, %v9685_v5  ;;  %v9636_v9 = vsel %vm821_vm2, %v18934_v37, %v18932_v28  ;;  %v9835_v24 = vsel %vm18937_vm5, %v17928_v20, %v17941_v21  ;;  %vm18946_vm5 = vmmov %vm18940_vm3 }
0x11ed   : > { %10046 = vmatprep.subr.bf16.mxu0 %v9693_v13  ;;  %v13181_v13 = vld [vmem:[%s18334_s7] ss:$20 sps:$4 sm:$0xff]  }
0x11ee   : > { %10047 = vmatpush2.bf16.msra.mxu0 %v9692_v59  ;;  %10094 = vmatpush1.bf16.msra.mxu1 %v9730_v0 }
0x11ef   : > { %v17955_v1 = vpop.permute.xlu0 %9818  ;;  %10048 = vmatprep.subr.bf16.mxu0 %v9691_v6  ;;  %10095 = vmatprep.subr.bf16.mxu1 %v9729_v39  ;;  %v17957_v31 = vpop.permute.xlu1 %9912 }
0x11f0   : > { %v9834_v42 = vsel %vm18939_vm9, %v17955_v1, %v17928_v20  ;;  %v13184_v1 = vld [vmem:[%s18334_s7 + $0x28] ss:$20 sps:$4 sm:$0xff]   ;;  %vm18948_vm9 = vmmov %vm18940_vm3 }
0x11f2   : > { %10049 = vmatpush2.bf16.msra.mxu0 %v9690_v55  ;;  %10096 = vmatpush1.bf16.msra.mxu1 %v9728_v47 }
0x11f3   : > { %v17971_v18 = vpop.permute.xlu0 %9914  ;;  %10050 = vmatprep.subr.bf16.mxu0 %v9689_v61  ;;  %10097 = vmatprep.subr.bf16.mxu1 %v9727_v57  ;;  %v17973_v2 = vpop.permute.xlu1 %9910 }
0x11f4   : > { %v9927_v39 = vsel %vm18942_vm14, %v17957_v31, %v17971_v18 }
0x11f6   : > { %10051 = vmatpush2.bf16.msra.mxu0 %v9688_v30  ;;  %10098 = vmatpush1.bf16.msra.mxu1 %v9726_v16 }
0x11f7   : > { %v17987_v34 = vpop.permute.xlu0 %9814  ;;  %10052 = vmatprep.subr.bf16.mxu0 %v9687_v45  ;;  %10099 = vmatprep.subr.bf16.mxu1 %v9877_v63  ;;  %v9631_v10 = vpop.permute.xlu1 %9630  ;;  %v13193_v45 = vld [vmem:[%s18334_s7 + $0x34] ss:$20 sps:$4 sm:$0xff]  }
0x11f8   : > { %v9640_v12 = vsel %vm821_vm2, %v17856_v54, %v9631_v10  ;;  %v18929_v54 = vld [vmem:[#allocation44_spill] sm:$0xff] }
0x11f9   : > { %v9638_v32 = vsel %vm821_vm2, %v18929_v54, %v18926_v60 }
0x11fa   : > { %10053 = vmatpush2.bf16.msra.mxu0 %v9686_v8  ;;  %10100 = vmatpush2.bf16.msra.mxu1 %v9876_v49 }
0x11fb   : > { %v9633_v58 = vpop.permute.xlu0 %9632  ;;  %10101 = vmatprep.subr.bf16.mxu1 %v9875_v25  ;;  %v9817_v52 = vpop.permute.xlu1 %9816  ;;  %v13190_v25 = vld [vmem:[%s18334_s7 + $0x10] ss:$20 sps:$4 sm:$0xff]  }
0x11fc   : > { %v9641_v46 = vsel %vm821_vm2, %v9631_v10, %v9633_v58  ;;  %v9833_v21 = vsel %vm18941_vm0, %v17987_v34, %v9817_v52  ;;  %v18949_v10 = vmov 0   ;;  %v13191_v58 = vld [vmem:[%s18334_s7 + $0x30] ss:$20 sps:$4 sm:$0xff]   ;;  %v13194_v52 = vld [vmem:[%s18334_s7 + $0x38] ss:$20 sps:$4 sm:$0xff]  }
0x11fd   : > { %10054 = vmatprep.subr.bf16.mxu0 %v9641_v46 }
0x11fe   : > { %10055 = vmatpush2.bf16.msra.mxu0 %v9640_v12  ;;  %10102 = vmatpush2.bf16.msra.mxu1 %v9874_v15 }
0x11ff   : > { %v9813_v22 = vpop.permute.xlu0 %9812  ;;  %10056 = vmatprep.subr.bf16.mxu0 %v9639_v40  ;;  %10103 = vmatprep.subr.bf16.mxu1 %v9873_v29  ;;  %v9907_v26 = vpop.permute.xlu1 %9906 }
0x1202   : > { %10057 = vmatpush2.bf16.msra.mxu0 %v9638_v32  ;;  %10104 = vmatpush2.bf16.msra.mxu1 %v9872_v4 }
0x1203   : > { %v9909_v36 = vpop.permute.xlu0 %9908  ;;  %10058 = vmatprep.subr.bf16.mxu0 %v9637_v14  ;;  %10105 = vmatprep.subr.bf16.mxu1 %v9871_v44  ;;  %v9829_v19 = vpop.permute.xlu1 %9828 }
0x1204   : > { %v9925_v57 = vsel %vm18946_vm5, %v9907_v26, %v9909_v36 }
0x1206   : > { %10059 = vmatpush2.bf16.msra.mxu0 %v9636_v9  ;;  %10106 = vmatpush2.bf16.msra.mxu1 %v9870_v50 }
0x1207   : > { %v9827_v38 = vpop.permute.xlu0 %9826  ;;  %10060 = vmatprep.subr.bf16.mxu0 %v9635_v23  ;;  %v9919_v53 = vpop.permute.xlu1 %9918 }
0x1208   : > { %v9836_v62 = vsel %vm18935_vm1, %v17914_v17, %v9827_v38  ;;  %v9837_v5 = vsel %vm18936_vm11, %v9827_v38, %v9829_v19  ;;  %v9928_v6 = vsel %vm18940_vm3, %v17919_v7, %v9919_v53  ;;  %v9926_v7 = vsel %vm18943_vm10, %v17973_v2, %v17957_v31  ;;  %vm18944_vm1 = vmmov %vm18941_vm0  ;;  %v13187_v2 = vld [vmem:[%s18334_s7 + $0x8] ss:$20 sps:$4 sm:$0xff]  }
0x1209   : > { %10107 = vmatprep.subr.bf16.mxu1 %v9837_v5  ;;  %v9832_v20 = vsel %vm18944_vm1, %v9813_v22, %v17987_v34  ;;  %vm18945_vm11 = vmmov %vm18941_vm0 }
0x120a   : > { %10061 = vmatpush2.bf16.msra.mxu0 %v9634_v33  ;;  %10108 = vmatpush2.bf16.msra.mxu1 %v9836_v62 }
0x120b   : > { %v9921_v59 = vpop.permute.xlu0 %9920  ;;  %10109 = vmatprep.subr.bf16.mxu1 %v9835_v24  ;;  %v9905_v17 = vpop.permute.xlu1 %9904 }
0x120c   : > { %v9929_v0 = vsel %vm18938_vm4, %v9919_v53, %v9921_v59  ;;  %vm18947_vm4 = vmmov %vm18941_vm0  ;;  %v9924_v31 = vsel %vm18948_vm9, %v9905_v17, %v9907_v26 }
0x120d   : > { %10063 = vmatmul.mubr.bf16.vlgmr.msra.gmra.mxu0 %v13181_v13  ;;  %10144 = vmatprep.subr.bf16.mxu0 %v9929_v0  ;;  %vm18950_vm0 = vmmov %vm18940_vm3 }
0x120e   : > { %10110 = vmatpush2.bf16.msra.mxu1 %v9834_v42  ;;  %10145 = vmatpush1.bf16.msra.mxu0 %v9928_v6 }
0x120f   : > { %v9809_v55 = vpop.permute.xlu0 %9808  ;;  %10111 = vmatprep.subr.bf16.mxu1 %v9833_v21  ;;  %10146 = vmatprep.subr.bf16.mxu0 %v9927_v39  ;;  %v9811_v47 = vpop.permute.xlu1 %9810 }
0x1210   : > { %10072 = vmatprep.mubr.bf16.mxu0 %v13186_v41  ;;  %v9831_v61 = vsel %vm18945_vm11, %v9809_v55, %v9811_v47 }
0x1212   : > { %10112 = vmatpush2.bf16.msra.mxu1 %v9832_v20  ;;  %10147 = vmatpush1.bf16.msra.mxu0 %v9926_v7 }
0x1213   : > { %v9807_v18 = vpop.permute.xlu0 %9806  ;;  %10113 = vmatprep.subr.bf16.mxu1 %v9831_v61  ;;  %10148 = vmatprep.subr.bf16.mxu0 %v9925_v57  ;;  %v9901_v30 = vpop.permute.xlu1 %9900 }
0x1214   : > { %v9830_v16 = vsel %vm18947_vm4, %v9807_v18, %v9809_v55 }
0x1215   : > { %10073 = vmatmul.mubr.bf16.gmra.mxu0 %v13184_v1 }
0x1216   : > { %10114 = vmatpush2.bf16.msra.mxu1 %v9830_v16  ;;  %10149 = vmatpush1.bf16.msra.mxu0 %v9924_v31 }
0x1217   : > { %v9903_v63 = vpop.permute.xlu0 %9902  ;;  %v9899_v34 = vpop.permute.xlu1 %9898  ;;  %10168 = vmatprep.mubr.bf16.mxu0 %v18949_v10 }
0x1218   : > { %v9922_v49 = vsel %vm18940_vm3, %v9899_v34, %v9901_v30  ;;  %v9923_v8 = vsel %vm18950_vm0, %v9901_v30, %v9903_v63 }
0x1219   : > { %10116 = vmatmul.mubr.bf16.vlgmr.msra.gmra.mxu1 %v13187_v2  ;;  %10150 = vmatprep.subr.bf16.mxu0 %v9923_v8 }
0x121a   : > { %10151 = vmatpush1.bf16.msra.mxu0 %v9922_v49  ;;  %10125 = vmatprep.mubr.bf16.mxu1 %v13193_v45 }
0x121d   : > { %11335 = vmatmul.mubr.msk.bf16.vlgmr.msra.gmra.mxu0 %vm3049_vm13, %v13190_v25 }
0x121e   : > { %10178 = vmatprep.mubr.bf16.mxu0 %v18949_v10 }
0x1221   : > { %10126 = vmatmul.mubr.bf16.gmra.mxu1 %v13191_v58 }
0x1224   : > { %v9972_v32 = vpop.permute.xlu1 %9971  ;;  %v9967_v11 = vpop.permute.xlu0 %9966 }
0x1225   : > { %11336 = vmatmul.mubr.msk.bf16.gmra.mxu0 %vm3049_vm13, %v13194_v52  ;;  %vm18951_vm13 = vcmask 138240  }
0x1226   : > { %10559 = vmatprep.mubr.bf16.mxu0 %v18949_v10  ;;  %vm18952_vm14 = vmmov %vm18951_vm13 }
0x1227   : > { %vm18961_vm4 = vmmov %vm18951_vm13 }
0x1228   : > { %v9962_v36 = vpop.permute.xlu1 %9961  ;;  %v9957_v9 = vpop.permute.xlu0 %9956  ;;  %vm18962_vm9 = vmmov %vm18961_vm4 }
0x12cd   : > { %v10064_v46 = vpop.f32.mrf.mxu0 }
0x12ce   : > { %v10065_v5 = vadd.f32 %v10064_v46, %v9957_v9 }
0x12cf   : > { %v10066_v12 = vpop.f32.mrf.mxu0 }
0x12d0   : > { %v10067_v6 = vadd.f32 %v10066_v12, %v9957_v9 }
0x12d1   : > { %v10068_v15 = vpop.f32.mrf.mxu0 }
0x12d2   : > { %v10069_v23 = vadd.f32 %v10068_v15, %v9962_v36 }
0x12d3   : > { %v10070_v35 = vpop.f32.mrf.mxu0 }
0x12d4   : > { %v10071_v33 = vadd.f32 %v10070_v35, %v9962_v36 }
0x12d5   : > { %v10074_v60 = vpop.f32.mrf.mxu0 }
0x12d6   : > { %v10075_v19 = vadd.f32 %v10074_v60, %v9967_v11 }
0x12d7   : > { %v10076_v40 = vpop.f32.mrf.mxu0 }
0x12d8   : > { %v10077_v38 = vadd.f32 %v10076_v40, %v9967_v11 }
0x12d9   : > { %v10078_v48 = vpop.f32.mrf.mxu0  ;;  %v10117_v3 = vpop.f32.mrf.mxu1 }
0x12da   : > { %v10079_v53 = vadd.f32 %v10078_v48, %v9972_v32  ;;  %v10118_v21 = vadd.f32 %v10117_v3, %v10065_v5 }
0x12db   : > { %v10080_v29 = vpop.f32.mrf.mxu0  ;;  %v10119_v22 = vpop.f32.mrf.mxu1 }
0x12dc   : > { %v10081_v13 = vadd.f32 %v10080_v29, %v9972_v32  ;;  %v10120_v61 = vadd.f32 %v10119_v22, %v10067_v6  ;;  %v18953_v29 = vld [vmem:[#allocation11_spill] sm:$0xff]  ;;  %v18957_v32 = vld [vmem:[#allocation16_spill] sm:$0xff] }
0x12dd   : > { %v10121_v26 = vpop.f32.mrf.mxu1  ;;  %v10170_v54 = vpop.f32.mrf.mxu0  ;;  %vm18954_vm10 = vcmp.ne.s16.totalorder %v18953_v29, 0  ;;  %vm18958_vm11 = vcmp.ne.s16.totalorder %v18957_v32, 0 }
0x12de   : > { %v10122_v17 = vadd.f32 %v10121_v26, %v10069_v23  ;;  %v10171_v57 = vadd.f32 %v10170_v54, %v10118_v21  ;;  %v18955_v26 = vld [vmem:[#allocation10_spill] sm:$0xff]  ;;  %vm18965_vm0 = vmmov %vm18954_vm10 }
0x12df   : > { %v10123_v56 = vpop.f32.mrf.mxu1  ;;  %v10172_v4 = vpop.f32.mrf.mxu0  ;;  %vm18956_vm1 = vcmp.ne.s16.totalorder %v18955_v26, 0  ;;  %v18984_v21 = vld [vmem:[#allocation6_spill] sm:$0xff] }
0x12e0   : > { %v10124_v39 = vadd.f32 %v10123_v56, %v10071_v33  ;;  %v10173_v45 = vadd.f32 %v10172_v4, %v10120_v61  ;;  %v10189_v8 = vmax.f32 %v10171_v57, 0.0  ;;  %v18959_v4 = vld [vmem:[#allocation15_spill] sm:$0xff]  ;;  %v18975_v33 = vld [vmem:[#allocation13_spill] sm:$0xff]  ;;  %v18991_v61 = vld [vmem:[#allocation14_spill] sm:$0xff] }
0x12e1   : > { %v10127_v28 = vpop.f32.mrf.mxu1  ;;  %v10174_v14 = vpop.f32.mrf.mxu0  ;;  %vm18960_vm5 = vcmp.ne.s16.totalorder %v18959_v4, 0 }
0x12e2   : > { %v10128_v62 = vadd.f32 %v10127_v28, %v10075_v19  ;;  %v10175_v47 = vadd.f32 %v10174_v14, %v10122_v17  ;;  %v10190_v52 = vmax.f32 %v10173_v45, 0.0  ;;  %v18966_v19 = vld [vmem:[#allocation20_spill] sm:$0xff]  ;;  %v18995_v45 = vld [vmem:[#allocation17_spill] sm:$0xff] }
0x12e3   : > { %v10129_v51 = vpop.f32.mrf.mxu1  ;;  %v10176_v44 = vpop.f32.mrf.mxu0 }
0x12e4   : > { %v10130_v0 = vadd.f32 %v10129_v51, %v10077_v38  ;;  %v10177_v30 = vadd.f32 %v10176_v44, %v10124_v39  ;;  %v10191_v63 = vmax.f32 %v10175_v47, 0.0  ;;  %v18963_v51 = vld [vmem:[#allocation19_spill] sm:$0xff] }
0x12e5   : > { %v10131_v50 = vpop.f32.mrf.mxu1  ;;  %v10180_v37 = vpop.f32.mrf.mxu0  ;;  %vm18964_vm3 = vcmp.ne.s16.totalorder %v18963_v51, 0  ;;  %v18987_v47 = vld [vmem:[#allocation7_spill] sm:$0xff] }
0x12e6   : > { %v10132_v41 = vadd.f32 %v10131_v50, %v10079_v53  ;;  %v10181_v42 = vadd.f32 %v10180_v37, %v10128_v62  ;;  %v10192_v25 = vmax.f32 %v10177_v30, 0.0  ;;  %v10197_v46 = vpack.c.bf16 %v10191_v63, %v10189_v8 }
0x12e7   : > { %v10133_v24 = vpop.f32.mrf.mxu1  ;;  %v10182_v59 = vpop.f32.mrf.mxu0 }
0x12e8   : > { %v10134_v7 = vadd.f32 %v10133_v24, %v10081_v13  ;;  %v10183_v20 = vadd.f32 %v10182_v59, %v10130_v0  ;;  %v10193_v16 = vmax.f32 %v10181_v42, 0.0  ;;  %v10198_v12 = vpack.c.bf16 %v10192_v25, %v10190_v52  ;;  %v18977_v24 = vld [vmem:[#allocation9_spill] sm:$0xff]  ;;  %v18980_v0 = vld [vmem:[#allocation8_spill] sm:$0xff]  ;;  %v18982_v42 = vld [vmem:[#allocation18_spill] sm:$0xff] }
0x12e9   : > { %v10184_v55 = vpop.f32.mrf.mxu0 }
0x12ea   : > { %v10185_v1 = vadd.f32 %v10184_v55, %v10132_v41  ;;  %v10194_v34 = vmax.f32 %v10183_v20, 0.0 }
0x12eb   : > { %v10186_v18 = vpop.f32.mrf.mxu0 }
0x12ec   : > { %v10195_v31 = vmax.f32 %v10185_v1, 0.0  ;;  %v10187_v2 = vadd.f32 %v10186_v18, %v10134_v7 }
0x12ee   : > { %v10199_v10 = vpack.c.bf16 %v10195_v31, %v10193_v16  ;;  %v10196_v49 = vmax.f32 %v10187_v2, 0.0  ;;  %v13234_v16 = vmov 1983009808   ;;  %v10457_v2 = vld [vmem:[%s18335_s8] sm:$0x3f] }
0x12ef   : > { %v10467_v31 = vunpack.c.l.s4 %v13234_v16 }
0x12f0   : > { %v10200_v58 = vpack.c.bf16 %v10196_v49, %v10194_v34  ;;  %10209 = vrot.lane.b32.xlu0 %v10199_v10, %s18821_s2  ;;  %v10465_v34 = vcombine.high %v10457_v2, %v10457_v2  ;;  %v18997_v49 = vld [vmem:[#allocation3_spill] sm:$0xff] }
0x12f1   : > { %v10468_v10 = vunpack.c.0.s8 %v10467_v31 }
0x12f2   : > { %10211 = vrot.lane.b32.xlu1 %v10200_v58, %s18821_s2 }
0x12f3   : > { %v10471_v8 = vsub.s32 %v10468_v10, %v18997_v49 }
0x12f4   : > { %10205 = vrot.lane.b32.xlu0 %v10197_v46, %s18821_s2  ;;  %v18999_v46 = vld [vmem:[#allocation12_spill] sm:$0xff] }
0x12f5   : > { %v18251_v58 = vrot.slane %v10457_v2, %v10471_v8  ;;  %v18253_v52 = vrot.slane %v10465_v34, %v10471_v8 }
0x12f6   : > { %10207 = vrot.lane.b32.xlu1 %v10198_v12, %s18821_s2 }
0x1362   : > { %v10210_v15 = vpop.permute.xlu0 %10209 }
0x1363   : > { %v18127_v14 = vsel %vm18962_vm9, 0, %v10210_v15 }
0x1364   : > { %v10212_v35 = vpop.permute.xlu1 %10211  ;;  %v10242_v36 = vsel %vm18965_vm0, %v18127_v14, 0  ;;  %vm18978_vm0 = vcmp.ne.s16.totalorder %v18977_v24, 0 }
0x1365   : > { %v10254_v59 = vsel %vm18978_vm0, %v18127_v14, 0 }
0x1366   : > { %v10206_v60 = vpop.permute.xlu0 %10205 }
0x1367   : > { %v18096_v40 = vsel %vm18951_vm13, 0, %v10206_v60  ;;  %vm18967_vm13 = vcmp.ne.s16.totalorder %v18966_v19, 0 }
0x1368   : > { %10267 = vrot.lane.b32.xlu1 %v18096_v40, %s18603_s23  ;;  %v10208_v48 = vpop.permute.xlu1 %10207  ;;  %v10239_v22 = vsel %vm18954_vm10, %v18096_v40, 0  ;;  %v10233_v56 = vsel %vm18958_vm11, %v18096_v40, 0  ;;  %vm18969_vm10 = vmmov %vm18961_vm4 }
0x1369   : > { %v18101_v3 = vsel %vm18952_vm14, %v10208_v48, 0  ;;  %v18122_v28 = vsel %vm18961_vm4, %v10206_v60, %v10208_v48  ;;  %vm18968_vm14 = vmmov %vm18958_vm11  ;;  %v10227_v9 = vsel %vm18969_vm10, %v10212_v35, 0  ;;  %vm18971_vm11 = vcmp.ne.s16.totalorder %v18955_v26, 0  ;;  %v10458_v48 = vld [vmem:[%s18343_s16] sm:$0x7] }
0x136a   : > { %10271 = vrot.lane.b32.xlu0 %v18101_v3, %s18603_s23  ;;  %v10241_v54 = vsel %vm18956_vm1, %v18101_v3, 0  ;;  %v10235_v11 = vsel %vm18960_vm5, %v18101_v3, 0  ;;  %v10240_v44 = vsel %vm18964_vm3, %v18122_v28, 0  ;;  %v10234_v50 = vsel %vm18967_vm13, %v18122_v28, 0  ;;  %vm18970_vm1 = vmmov %vm18961_vm4 }
0x136b   : > { %v10236_v37 = vsel %vm18968_vm14, %v18127_v14, 0  ;;  %v18150_v23 = vsel %vm18970_vm1, %v10210_v15, %v10212_v35  ;;  %v10244_v38 = vsel %vm18971_vm11, %v10227_v9, 0  ;;  %vm18972_vm5 = vmmov %vm18964_vm3  ;;  %vm18973_vm4 = vcmp.ne.s16.totalorder %v18959_v4, 0 }
0x136c   : > { %10319 = vrot.lane.b32.xlu1 %v10239_v22, %s18610_s4  ;;  %v10243_v53 = vsel %vm18972_vm5, %v18150_v23, 0  ;;  %v10238_v62 = vsel %vm18973_vm4, %v10227_v9, 0  ;;  %vm18974_vm9 = vmmov %vm18967_vm13  ;;  %vm18976_vm3 = vcmp.ne.s16.totalorder %v18975_v33, 0  ;;  %vm18981_vm14 = vcmp.ne.s16.totalorder %v18980_v0, 0 }
0x136d   : > { %v10237_v5 = vsel %vm18974_vm9, %v18150_v23, 0  ;;  %v10252_v13 = vsel %vm18976_vm3, %v18122_v28, 0  ;;  %vm18979_vm13 = vmmov %vm18978_vm0  ;;  %v10253_v41 = vsel %vm18981_vm14, %v18101_v3, 0  ;;  %vm18983_vm10 = vcmp.ne.s16.totalorder %v18982_v42, 0 }
0x136e   : > { %10323 = vrot.lane.b32.xlu0 %v10241_v54, %s18610_s4  ;;  %v10251_v17 = vsel %vm18979_vm13, %v18096_v40, 0  ;;  %v10246_v6 = vsel %vm18983_vm10, %v18122_v28, 0  ;;  %vm18985_vm1 = vcmp.ne.s16.totalorder %v18984_v21, 0  ;;  %vm18988_vm5 = vcmp.ne.s16.totalorder %v18987_v47, 0  ;;  %vm18989_vm4 = vmmov %vm18981_vm14 }
0x136f   : > { %v10248_v39 = vsel %vm18985_vm1, %v18127_v14, 0  ;;  %vm18986_vm11 = vmmov %vm18985_vm1  ;;  %v10247_v7 = vsel %vm18988_vm5, %v18101_v3, 0  ;;  %v10256_v20 = vsel %vm18989_vm4, %v10227_v9, 0  ;;  %vm18996_vm14 = vcmp.ne.s16.totalorder %v18995_v45, 0 }
0x1370   : > { %10293 = vrot.lane.b32.xlu1 %v10233_v56, %s18607_s29  ;;  %v10245_v55 = vsel %vm18986_vm11, %v18096_v40, 0  ;;  %vm18990_vm9 = vmmov %vm18976_vm3  ;;  %vm18992_vm3 = vcmp.ne.s16.totalorder %v18991_v61, 0  ;;  %v10261_v63 = vsel %vm18996_vm14, %v18150_v23, 0  ;;  %vm19000_vm1 = vcmp.ne.s16.totalorder %v18999_v46, 0 }
0x1371   : > { %v10255_v1 = vsel %vm18990_vm9, %v18150_v23, 0  ;;  %v10260_v57 = vsel %vm18992_vm3, %v18127_v14, 0  ;;  %vm18993_vm0 = vmmov %vm18988_vm5  ;;  %v10262_v12 = vsel %vm19000_vm1, %v10227_v9, 0  ;;  %v10480_v15 = vcombine.high %v18251_v58, %v18251_v58 }
0x1372   : > { %10297 = vrot.lane.b32.xlu0 %v10235_v11, %s18607_s29  ;;  %v10250_v18 = vsel %vm18993_vm0, %v10227_v9, 0  ;;  %vm18994_vm13 = vmmov %vm18983_vm10  ;;  %vm19007_vm9 = vcmask 785408  }
0x1373   : > { %v10249_v30 = vsel %vm18994_vm13, %v18150_v23, 0  ;;  %vm18998_vm10 = vmmov %vm18996_vm14  ;;  %10518 = vmatprep.mubr.bf16.mxu1 %v10480_v15 }
0x1374   : > { %10269 = vrot.lane.b32.xlu1 %v18122_v28, %s18603_s23  ;;  %v10258_v25 = vsel %vm18998_vm10, %v18122_v28, 0  ;;  %vm19001_vm11 = vmmov %vm18992_vm3 }
0x1375   : > { %v10257_v35 = vsel %vm19001_vm11, %v18096_v40, 0  ;;  %vm19002_vm5 = vmmov %vm19000_vm1  ;;  %vm19015_vm1 = vcmask 261120  }
0x1376   : > { %10273 = vrot.lane.b32.xlu0 %v18127_v14, %s18603_s23  ;;  %v10259_v60 = vsel %vm19002_vm5, %v18101_v3, 0  ;;  %vm19008_vm3 = vmmov %vm19007_vm9 }
0x1377   : > { %vm19009_vm0 = vmmov %vm19008_vm3 }
0x1378   : > { %10321 = vrot.lane.b32.xlu1 %v10240_v44, %s18610_s4  ;;  %vm19010_vm13 = vmmov %vm19009_vm0 }
0x137a   : > { %10325 = vrot.lane.b32.xlu0 %v10242_v36, %s18610_s4 }
0x137c   : > { %10295 = vrot.lane.b32.xlu1 %v10234_v50, %s18607_s29 }
0x137e   : > { %10299 = vrot.lane.b32.xlu0 %v10236_v37, %s18607_s29 }
0x1380   : > { %10277 = vrot.lane.b32.xlu1 %v10227_v9, %s18603_s23 }
0x1382   : > { %10275 = vrot.lane.b32.xlu0 %v18150_v23, %s18603_s23 }
0x1384   : > { %10329 = vrot.lane.b32.xlu1 %v10244_v38, %s18610_s4 }
0x1386   : > { %10327 = vrot.lane.b32.xlu0 %v10243_v53, %s18610_s4 }
0x1388   : > { %10421 = vrot.lane.b32.xlu1 %v10227_v9, %s18552_s24 }
0x138a   : > { %10419 = vrot.lane.b32.xlu0 %v18150_v23, %s18552_s24 }
0x138c   : > { %10303 = vrot.lane.b32.xlu1 %v10238_v62, %s18607_s29 }
0x138e   : > { %10301 = vrot.lane.b32.xlu0 %v10237_v5, %s18607_s29 }
0x1390   : > { %10413 = vrot.lane.b32.xlu1 %v18122_v28, %s18552_s24 }
0x1392   : > { %10417 = vrot.lane.b32.xlu0 %v18127_v14, %s18552_s24 }
0x1394   : > { %10411 = vrot.lane.b32.xlu1 %v18096_v40, %s18552_s24 }
0x1396   : > { %10415 = vrot.lane.b32.xlu0 %v18101_v3, %s18552_s24 }
0x1398   : > { %10393 = vrot.lane.b32.xlu1 %v10252_v13, %s18556_s27 }
0x139a   : > { %10397 = vrot.lane.b32.xlu0 %v10254_v59, %s18556_s27 }
0x139c   : > { %10391 = vrot.lane.b32.xlu1 %v10251_v17, %s18556_s27 }
0x139e   : > { %10395 = vrot.lane.b32.xlu0 %v10253_v41, %s18556_s27 }
0x13a0   : > { %10367 = vrot.lane.b32.xlu1 %v10246_v6, %s18612_s22 }
0x13a2   : > { %10371 = vrot.lane.b32.xlu0 %v10248_v39, %s18612_s22 }
0x13a4   : > { %10365 = vrot.lane.b32.xlu1 %v10245_v55, %s18612_s22 }
0x13a6   : > { %10369 = vrot.lane.b32.xlu0 %v10247_v7, %s18612_s22 }
0x13a8   : > { %10349 = vrot.lane.b32.xlu1 %v10227_v9, %s18564_s28 }
0x13aa   : > { %10347 = vrot.lane.b32.xlu0 %v18150_v23, %s18564_s28 }
0x13ac   : > { %10401 = vrot.lane.b32.xlu1 %v10256_v20, %s18556_s27 }
0x13ae   : > { %10399 = vrot.lane.b32.xlu0 %v10255_v1, %s18556_s27 }
0x13b0   : > { %10443 = vrot.lane.b32.xlu1 %v10260_v57, %s18568_s26 }
0x13b2   : > { %10345 = vrot.lane.b32.xlu0 %v18127_v14, %s18564_s28 }
0x13b4   : > { %10375 = vrot.lane.b32.xlu1 %v10250_v18, %s18612_s22 }
0x13b6   : > { %10373 = vrot.lane.b32.xlu0 %v10249_v30, %s18612_s22  ;;  %s19017_s22 = sld [smem:[#allocation63_spill]] }
0x13b8   : > { %10343 = vrot.lane.b32.xlu1 %v18101_v3, %s18564_s28 }
0x13ba   : > { %10341 = vrot.lane.b32.xlu0 %v18122_v28, %s18564_s28 }
0x13bc   : > { %10445 = vrot.lane.b32.xlu1 %v10261_v63, %s18568_s26 }
0x13be   : > { %10339 = vrot.lane.b32.xlu0 %v18096_v40, %s18564_s28 }
0x13c0   : > { %10439 = vrot.lane.b32.xlu1 %v10258_v25, %s18568_s26 }
0x13c2   : > { %10447 = vrot.lane.b32.xlu0 %v10262_v12, %s18568_s26 }
0x13c4   : > { %10437 = vrot.lane.b32.xlu1 %v10257_v35, %s18568_s26 }
0x13c6   : > { %10441 = vrot.lane.b32.xlu0 %v10259_v60, %s18568_s26  ;;  %s19016_s26 = sshll.u32 %s19020_s25, 3 }
0x13c7   : > { %s656_s2 = scalar_lea.vmem %s19017_s22, %s19016_s26 }
0x13ca   : > { %10461 = vperm.xlu0 %12652, %v10458_v48  }
0x13da   : > { %v10268_v29 = vpop.permute.xlu1 %10267 }
0x13dc   : > { %v10272_v22 = vpop.permute.xlu0 %10271 }
0x13de   : > { %v10320_v26 = vpop.permute.xlu1 %10319 }
0x13e0   : > { %v10324_v54 = vpop.permute.xlu0 %10323 }
0x13e2   : > { %v10294_v32 = vpop.permute.xlu1 %10293 }
0x13e4   : > { %v10298_v56 = vpop.permute.xlu0 %10297 }
0x13e6   : > { %v10270_v4 = vpop.permute.xlu1 %10269 }
0x13e7   : > { %v10280_v1 = vsel %vm804_vm8, %v10270_v4, %v10272_v22  ;;  %v10279_v57 = vsel %vm804_vm8, %v10268_v29, %v10270_v4 }
0x13e8   : > { %v10274_v11 = vpop.permute.xlu0 %10273 }
0x13ea   : > { %v10322_v51 = vpop.permute.xlu1 %10321 }
0x13eb   : > { %v10332_v5 = vsel %vm854_vm6, %v10322_v51, %v10324_v54  ;;  %v10331_v13 = vsel %vm854_vm6, %v10320_v26, %v10322_v51 }
0x13ec   : > { %v10326_v44 = vpop.permute.xlu0 %10325 }
0x13ee   : > { %v10296_v36 = vpop.permute.xlu1 %10295 }
0x13ef   : > { %v10306_v42 = vsel %vm821_vm2, %v10296_v36, %v10298_v56  ;;  %v10305_v21 = vsel %vm821_vm2, %v10294_v32, %v10296_v36 }
0x13f0   : > { %v10300_v19 = vpop.permute.xlu0 %10299 }
0x13f2   : > { %v10278_v3 = vpop.permute.xlu1 %10277 }
0x13f4   : > { %v10276_v50 = vpop.permute.xlu0 %10275 }
0x13f5   : > { %v10282_v55 = vsel %vm804_vm8, %v10276_v50, %v10278_v3  ;;  %v10281_v7 = vsel %vm804_vm8, %v10274_v11, %v10276_v50 }
0x13f6   : > { %v10330_v37 = vpop.permute.xlu1 %10329 }
0x13f8   : > { %v10328_v9 = vpop.permute.xlu0 %10327 }
0x13f9   : > { %v10333_v38 = vsel %vm854_vm6, %v10326_v44, %v10328_v9  ;;  %v10334_v53 = vsel %vm854_vm6, %v10328_v9, %v10330_v37  ;;  %vm19003_vm6 = vcmp.ne.s16.totalorder %v18915_v27, 0 }
0x13fa   : > { %10486 = vmatprep.subr.bf16.mxu1 %v10334_v53  ;;  %v10422_v62 = vpop.permute.xlu1 %10421  ;;  %vm19005_vm4 = vmmov %vm19003_vm6 }
0x13fb   : > { %10487 = vmatpush1.bf16.msra.mxu1 %v10333_v38 }
0x13fc   : > { %v10420_v33 = vpop.permute.xlu0 %10419  ;;  %10488 = vmatprep.subr.bf16.mxu1 %v10332_v5 }
0x13fd   : > { %v10426_v34 = vsel %vm943_vm7, %v10420_v33, %v10422_v62 }
0x13fe   : > { %v10304_v24 = vpop.permute.xlu1 %10303 }
0x13ff   : > { %10489 = vmatpush1.bf16.msra.mxu1 %v10331_v13 }
0x1400   : > { %v10302_v59 = vpop.permute.xlu0 %10301 }
0x1401   : > { %v10307_v17 = vsel %vm821_vm2, %v10300_v19, %v10302_v59  ;;  %v10308_v0 = vsel %vm821_vm2, %v10302_v59, %v10304_v24  ;;  %vm19004_vm2 = vcmp.ne.s16.totalorder %v18917_v43, 0 }
0x1402   : > { %10490 = vmatprep.subr.bf16.mxu1 %v10308_v0  ;;  %v10414_v41 = vpop.permute.xlu1 %10413  ;;  %v10231_v31 = vsel %vm19004_vm2, %v18127_v14, 0  ;;  %vm19006_vm8 = vmmov %vm19004_vm2 }
0x1403   : > { %10491 = vmatpush1.bf16.msra.mxu1 %v10307_v17  ;;  %v10229_v63 = vsel %vm19006_vm8, %v18096_v40, 0 }
0x1404   : > { %v10418_v6 = vpop.permute.xlu0 %10417  ;;  %10492 = vmatprep.subr.bf16.mxu1 %v10306_v42 }
0x1405   : > { %v10425_v10 = vsel %vm943_vm7, %v10418_v6, %v10420_v33 }
0x1406   : > { %v10412_v39 = vpop.permute.xlu1 %10411 }
0x1407   : > { %10493 = vmatpush1.bf16.msra.mxu1 %v10305_v21  ;;  %v10423_v27 = vsel %vm943_vm7, %v10412_v39, %v10414_v41 }
0x1408   : > { %v10416_v47 = vpop.permute.xlu0 %10415  ;;  %10494 = vmatprep.subr.bf16.mxu1 %v10282_v55 }
0x1409   : > { %v10424_v14 = vsel %vm943_vm7, %v10414_v41, %v10416_v47  ;;  %vm19011_vm7 = vcmask 769024  }
0x140a   : > { %v10394_v20 = vpop.permute.xlu1 %10393  ;;  %vm19012_vm14 = vmmov %vm19011_vm7 }
0x140b   : > { %10495 = vmatpush1.bf16.msra.mxu1 %v10281_v7  ;;  %vm19014_vm10 = vmmov %vm19011_vm7 }
0x140c   : > { %v10398_v61 = vpop.permute.xlu0 %10397  ;;  %10496 = vmatprep.subr.bf16.mxu1 %v10280_v1 }
0x140e   : > { %v10392_v18 = vpop.permute.xlu1 %10391 }
0x140f   : > { %10497 = vmatpush1.bf16.msra.mxu1 %v10279_v57  ;;  %v10403_v35 = vsel %vm19010_vm13, %v10392_v18, %v10394_v20 }
0x1410   : > { %v10396_v30 = vpop.permute.xlu0 %10395  ;;  %11337 = vmatprep.subr.msk.bf16.mxu1 %vm19003_vm6, %v18150_v23 }
0x1411   : > { %v10404_v12 = vsel %vm19009_vm0, %v10394_v20, %v10396_v30 }
0x1412   : > { %v10368_v16 = vpop.permute.xlu1 %10367 }
0x1413   : > { %10499 = vmatpush1.bf16.msra.mxu1 %v10231_v31 }
0x1414   : > { %v10372_v2 = vpop.permute.xlu0 %10371  ;;  %11338 = vmatprep.subr.msk.bf16.mxu1 %vm19005_vm4, %v18122_v28 }
0x1416   : > { %v10366_v45 = vpop.permute.xlu1 %10365 }
0x1417   : > { %10501 = vmatpush1.bf16.msra.mxu1 %v10229_v63  ;;  %v10377_v56 = vsel %vm906_vm12, %v10366_v45, %v10368_v16 }
0x1418   : > { %v10370_v23 = vpop.permute.xlu0 %10369  ;;  %10502 = vmatprep.subr.bf16.mxu1 %v10426_v34 }
0x1419   : > { %v10378_v54 = vsel %vm906_vm12, %v10368_v16, %v10370_v23 }
0x141a   : > { %v10350_v49 = vpop.permute.xlu1 %10349 }
0x141b   : > { %10503 = vmatpush2.bf16.msra.mxu1 %v10425_v10 }
0x141c   : > { %v10348_v8 = vpop.permute.xlu0 %10347  ;;  %10504 = vmatprep.subr.bf16.mxu1 %v10424_v14 }
0x141d   : > { %v10354_v11 = vsel %vm870_vm15, %v10348_v8, %v10350_v49 }
0x141e   : > { %v10402_v28 = vpop.permute.xlu1 %10401 }
0x141f   : > { %10505 = vmatpush2.bf16.msra.mxu1 %v10423_v27 }
0x1420   : > { %v10400_v25 = vpop.permute.xlu0 %10399 }
0x1421   : > { %v10405_v43 = vsel %vm19007_vm9, %v10398_v61, %v10400_v25  ;;  %v10406_v40 = vsel %vm19008_vm3, %v10400_v25, %v10402_v28 }
0x1422   : > { %10506 = vmatprep.subr.bf16.mxu1 %v10406_v40  ;;  %v10444_v46 = vpop.permute.xlu1 %10443 }
0x1423   : > { %10507 = vmatpush2.bf16.msra.mxu1 %v10405_v43 }
0x1424   : > { %v10346_v15 = vpop.permute.xlu0 %10345  ;;  %10508 = vmatprep.subr.bf16.mxu1 %v10404_v12 }
0x1425   : > { %v10353_v44 = vsel %vm870_vm15, %v10346_v15, %v10348_v8 }
0x1426   : > { %v10376_v60 = vpop.permute.xlu1 %10375 }
0x1427   : > { %10509 = vmatpush2.bf16.msra.mxu1 %v10403_v35 }
0x1428   : > { %v10374_v48 = vpop.permute.xlu0 %10373 }
0x1429   : > { %v10379_v29 = vsel %vm906_vm12, %v10372_v2, %v10374_v48  ;;  %v10380_v22 = vsel %vm906_vm12, %v10374_v48, %v10376_v60  ;;  %vm19013_vm12 = vmmov %vm19011_vm7 }
0x142a   : > { %10510 = vmatprep.subr.bf16.mxu1 %v10380_v22  ;;  %v10344_v26 = vpop.permute.xlu1 %10343 }
0x142b   : > { %10511 = vmatpush2.bf16.msra.mxu1 %v10379_v29 }
0x142c   : > { %v10342_v32 = vpop.permute.xlu0 %10341  ;;  %10512 = vmatprep.subr.bf16.mxu1 %v10378_v54 }
0x142d   : > { %v10352_v19 = vsel %vm870_vm15, %v10342_v32, %v10344_v26 }
0x142e   : > { %v10446_v4 = vpop.permute.xlu1 %10445 }
0x142f   : > { %10513 = vmatpush2.bf16.msra.mxu1 %v10377_v56  ;;  %v10451_v37 = vsel %vm19012_vm14, %v10444_v46, %v10446_v4 }
0x1430   : > { %v10340_v51 = vpop.permute.xlu0 %10339  ;;  %10514 = vmatprep.subr.bf16.mxu1 %v10354_v11 }
0x1431   : > { %v10351_v9 = vsel %vm870_vm15, %v10340_v51, %v10342_v32 }
0x1432   : > { %v10440_v36 = vpop.permute.xlu1 %10439 }
0x1433   : > { %10515 = vmatpush2.bf16.msra.mxu1 %v10353_v44 }
0x1434   : > { %v10448_v3 = vpop.permute.xlu0 %10447  ;;  %10516 = vmatprep.subr.bf16.mxu1 %v10352_v19 }
0x1435   : > { %v10452_v50 = vsel %vm19011_vm7, %v10446_v4, %v10448_v3 }
0x1436   : > { %10539 = vmatprep.subr.bf16.mxu0 %v10452_v50  ;;  %v10438_v38 = vpop.permute.xlu1 %10437 }
0x1437   : > { %10517 = vmatpush2.bf16.msra.mxu1 %v10351_v9  ;;  %10540 = vmatpush1.bf16.msra.mxu0 %v10451_v37  ;;  %v10449_v5 = vsel %vm19014_vm10, %v10438_v38, %v10440_v36 }
0x1438   : > { %v10442_v53 = vpop.permute.xlu0 %10441 }
0x1439   : > { %v10450_v62 = vsel %vm19013_vm12, %v10440_v36, %v10442_v53 }
0x143a   : > { %10519 = vmatmul.mubr.bf16.vlgmr.msra.gmra.mxu1 %v18251_v58  ;;  %10541 = vmatprep.subr.bf16.mxu0 %v10450_v62 }
0x143b   : > { %10542 = vmatpush1.bf16.msra.mxu0 %v10449_v5 }
0x143e   : > { %11339 = vmatmul.mubr.msk.bf16.vlgmr.msra.gmra.mxu0 %vm19015_vm1, %v18253_v52 }
0x1445   : > { %v10462_v13 = vpop.permute.xlu0 %10461 }
0x14fa   : > { %v10520_v33 = vpop.f32.mrf.mxu1 }
0x14fb   : > { %v10521_v59 = vadd.f32 %v10520_v33, %v10462_v13 }
0x14fc   : > { %v10522_v24 = vpop.f32.mrf.mxu1 }
0x14fd   : > { %v10523_v41 = vadd.f32 %v10522_v24, %v10462_v13 }
0x14fe   : > { %v10561_v17 = vpop.f32.mrf.mxu0  ;;  %v10524_v0 = vpop.f32.mrf.mxu1 }
0x14ff   : > { %v10562_v42 = vadd.f32 %v10561_v17, %v10521_v59 }
0x1500   : > { %v10563_v6 = vpop.f32.mrf.mxu0  ;;  %v10525_v21 = vpop.f32.mrf.mxu1 }
0x1501   : > { %v10568_v39 = vsub.f32 0.0, %v10562_v42  ;;  %v10564_v55 = vadd.f32 %v10563_v6, %v10523_v41 }
0x1502   : > { %v10565_v47 = vpop.f32.mrf.mxu0 }
0x1503   : > { %v10570_v58 = vmul.f32 1.442695, %v10568_v39  ;;  %v10569_v7 = vsub.f32 0.0, %v10564_v55 }
0x1504   : > { %v10566_v20 = vpop.f32.mrf.mxu0 }
0x1505   : > { %13196 = vpow2.f32 %v10570_v58  ;;  %v10572_v1 = vmul.f32 1.442695, %v10569_v7 }
0x1507   : > { %13198 = vpow2.f32 %v10572_v1 }
0x1512   : > { %v13197_v52 = vpop.eup %13196 }
0x1513   : > { %v10574_v61 = vadd.f32 1.0, %v13197_v52 }
0x1514   : > { %v13199_v57 = vpop.eup %13198 }
0x1515   : > { %v10575_v18 = vadd.f32 1.0, %v13199_v57  ;;  %13200 = vrcp.f32 %v10574_v61 }
0x1517   : > { %13202 = vrcp.f32 %v10575_v18 }
0x1522   : > { %v13201_v30 = vpop.eup %13200 }
0x1524   : > { %v13203_v16 = vpop.eup %13202 }
0x1525   : > { %v10582_v31 = vcombine.low %v13201_v30, %v13203_v16 }
0x1527   : > { %10584 = vst [vmem:[%s656_s2] sm:$0x77] %v10582_v31 }
0x1528 PF: > { %s19018_s30 = sld [smem:[#allocation2_spill]] }
0x152e   : > { %s31_s2 = sadd.s32 1, %s19018_s30  }
0x152f   : > { %p28_p4 = scmp.ge.s32.totalorder %s31_s2, 4  }
0x1531   :  { %30 = sbr.rel (!%p28_p4) target bundleno = 13 (0xd), region = 146 }

</bundles_post_ra>
